<compile_context>
chip_gen: v5e
topology: v5e:2x2
jax: 0.10.0
libtpu: 0.0.40
codegen_flags: <defaults>
</compile_context>

<pallas_src>
import jax
import jax.numpy as jnp
from jax.experimental import pallas as pl
from jax.experimental.pallas import tpu as pltpu

# --------------------------- model hyper-parameters ---------------------------
SRC_VOCAB = 20
TRG_VOCAB = 20   # stands in for len(trgField.vocab)
EMB = 16
HID = 32
SRC_LEN = 8
TRG_LEN = 8
BATCH = 2
BP = 8           # batch padded to sublane granularity
VPAD = 128       # lane-dense padding of the vocab projection output
KPAD = 128       # fused decoder gate-input width (2H + TRG_VOCAB + H = 116 -> 128)
NEG = -1e30


# ------------------------------ fused kernel ----------------------------------
def _seq2seq_kernel(tf_ref,                                   # SMEM: (T,) teacher-force flags
                    src_ref, trg_ref,                         # (S*BP,1), (T*BP,1) int32 tokens
                    enc_wcomb_ref, enc_bcat_ref,              # (SRC_VOCAB, 8H), (1, 8H)
                    whh_f_ref, whh_b_ref,                     # (H, 4H) each
                    fch_w_ref, fch_b_ref, fcc_w_ref, fcc_b_ref,
                    e_we_ref, e_wh_ref, e_b_ref,              # (1,2H), (1,H), (1,1)
                    dec_w_ref, dec_b_ref,                     # (KPAD, 4H), (1, 4H)
                    fc_w_ref, fc_b_ref,                       # (H, VPAD), (1, VPAD)
                    out_ref,                                  # (T, BP, VPAD)
                    gx_ref, enc_ref, es_ref, xcat_ref):
    S, T, H, V, B = SRC_LEN, TRG_LEN, HID, TRG_VOCAB, BP
    f32 = jnp.float32

    def lstm_gates(g, c_prev):
        gi = jax.nn.sigmoid(g[:, 0:H])
        gf = jax.nn.sigmoid(g[:, H:2 * H])
        gg = jnp.tanh(g[:, 2 * H:3 * H])
        go = jax.nn.sigmoid(g[:, 3 * H:4 * H])
        c_new = gf * c_prev + gi * gg
        h_new = go * jnp.tanh(c_new)
        return h_new, c_new

    # ---------------- encoder ----------------
    # Hoisted input projection for BOTH directions: one-hot(source) @ (emb_table @ W_ih),
    # a single (S*B, SRC_VOCAB) @ (SRC_VOCAB, 8H) matmul (embedding gather folded into weight).
    s_iota = jax.lax.broadcasted_iota(jnp.int32, (S * B, SRC_VOCAB), 1)
    src_oh = (s_iota == src_ref[...]).astype(f32)
    gx_ref[...] = (jnp.dot(src_oh, enc_wcomb_ref[...], preferred_element_type=f32)
                   + enc_bcat_ref[...])

    hf = jnp.zeros((B, H), f32)
    cf = jnp.zeros((B, H), f32)
    hb = jnp.zeros((B, H), f32)
    cb = jnp.zeros((B, H), f32)

    # Interleave fwd (time k) and bwd (time S-1-k) chains in one loop; per-timestep states
    # are stored directly in the decoder layout: lanes [0:H] = fwd hidden, [H:2H] = bwd.
    for k in range(S):
        tb = S - 1 - k
        g_f = (gx_ref[k * B:(k + 1) * B, 0:4 * H]
               + jnp.dot(hf, whh_f_ref[...], preferred_element_type=f32))
        g_b = (gx_ref[tb * B:(tb + 1) * B, 4 * H:8 * H]
               + jnp.dot(hb, whh_b_ref[...], preferred_element_type=f32))
        hf, cf = lstm_gates(g_f, cf)
        hb, cb = lstm_gates(g_b, cb)
        enc_ref[k * B:(k + 1) * B, 0:H] = hf
        enc_ref[tb * B:(tb + 1) * B, H:2 * H] = hb

    # ---------------- encoder -> decoder bridge (fc_hidden / fc_cell, fused) ----------------
    hidden = (jnp.dot(hf, fch_w_ref[0:H, :], preferred_element_type=f32)
              + jnp.dot(hb, fch_w_ref[H:2 * H, :], preferred_element_type=f32)
              + fch_b_ref[...])
    cell = (jnp.dot(cf, fcc_w_ref[0:H, :], preferred_element_type=f32)
            + jnp.dot(cb, fcc_w_ref[H:2 * H, :], preferred_element_type=f32)
            + fcc_b_ref[...])

    # Hidden-independent half of the attention energy, hoisted out of the decoder loop.
    for s in range(S):
        col = (jnp.sum(enc_ref[s * B:(s + 1) * B, :] * e_we_ref[...],
                       axis=-1, keepdims=True) + e_b_ref[0, 0])
        es_ref[:, s:s + 1] = col

    # ---------------- decoder ----------------
    out_ref[0] = jnp.zeros((B, VPAD), f32)        # outputs[0] stays zero (reference semantics)
    xcat_ref[...] = jnp.zeros_like(xcat_ref)      # zero the fused-input pad lanes once
    tok = trg_ref[0:B, :]                         # x = target[0], (B, 1) int32
    v_iota = jax.lax.broadcasted_iota(jnp.int32, (B, V), 1)
    lane = jax.lax.broadcasted_iota(jnp.int32, (B, VPAD), 1)

    for t in range(1, T):
        # Attention (softmax axis on lanes).
        h_score = jnp.sum(hidden * e_wh_ref[...], axis=-1, keepdims=True)     # (B, 1)
        energy = jnp.maximum(es_ref[...] + h_score, 0.0)                      # (B, S)
        m = jnp.max(energy, axis=-1, keepdims=True)
        e = jnp.exp(energy - m)
        attn = e * pl.reciprocal(jnp.sum(e, axis=-1, keepdims=True), approx=True)
        ctx = attn[:, 0:1] * enc_ref[0:B, :]
        for s in range(1, S):
            ctx = ctx + attn[:, s:s + 1] * enc_ref[s * B:(s + 1) * B, :]      # (B, 2H)

        # Fused gate input [ctx | one-hot(token) | hidden | 0-pad] -> ONE gate matmul.
        # (decoder embedding table is folded into rows [2H : 2H+V] of dec_w_ref)
        onehot = (v_iota == tok).astype(f32)                                  # (B, V)
        xcat_ref[:, 0:2 * H] = ctx
        xcat_ref[:, 2 * H:2 * H + V] = onehot
        xcat_ref[:, 2 * H + V:2 * H + V + H] = hidden
        gates = (jnp.dot(xcat_ref[...], dec_w_ref[...], preferred_element_type=f32)
                 + dec_b_ref[...])
        hidden, cell = lstm_gates(gates, cell)

        # Lane-dense vocab projection; padded lanes carry a -1e30 bias so they can never
        # win the argmax (wrapper slices the real vocab back out).
        logits = (jnp.dot(hidden, fc_w_ref[...], preferred_element_type=f32)
                  + fc_b_ref[...])                                            # (B, VPAD)
        out_ref[t] = logits

        # Next input token: argmax (lowest lane on ties) or teacher forcing.
        mx = jnp.max(logits, axis=-1, keepdims=True)
        best = jnp.min(jnp.where(logits == mx, lane, VPAD), axis=-1, keepdims=True)
        trg_col = trg_ref[t * B:(t + 1) * B, :]                               # (B, 1) int32
        tok = jnp.where(tf_ref[t] == 1, trg_col, best)


# --------------------------------- forward pass --------------------------------
def seq2seq_forward(p, source, target, teacher_force_ratio=0.5,
                    rng=jax.random.PRNGKey(42)):
    S, B = source.shape
    T, _ = target.shape

    # Pad batch to 8 sublanes and flatten tokens to (time*BP, 1) columns.
    src_p = jnp.zeros((S, BP), jnp.int32).at[:, :B].set(source).reshape(S * BP, 1)
    trg_p = jnp.zeros((T, BP), jnp.int32).at[:, :B].set(target).reshape(T * BP, 1)

    # TODO(synk): Python random.random() teacher-forcing coin replaced by a deterministic
    # jax.random draw (same semantics: one scalar coin per decoding step).
    coins = jax.random.uniform(rng, (T,))
    tf_mask = (coins < teacher_force_ratio).astype(jnp.int32)

    def fullspec(*shape):
        return pl.BlockSpec(shape, lambda i, tf, _s=shape: (0,) * len(_s))

    grid_spec = pltpu.PrefetchScalarGridSpec(
        num_scalar_prefetch=1,                                   # tf_mask -> SMEM
        grid=(1,),                                               # single fused invocation
        in_specs=[
            fullspec(S * BP, 1),                                 # source tokens
            fullspec(T * BP, 1),                                 # target tokens
            fullspec(SRC_VOCAB, 8 * HID),                        # enc emb@W_ih (both dirs)
            fullspec(1, 8 * HID),                                # enc bias (both dirs)
            fullspec(HID, 4 * HID),                              # enc W_hh fwd
            fullspec(HID, 4 * HID),                              # enc W_hh bwd
            fullspec(2 * HID, HID), fullspec(1, HID),            # fc_hidden
            fullspec(2 * HID, HID), fullspec(1, HID),            # fc_cell
            fullspec(1, 2 * HID), fullspec(1, HID),              # energy weights
            fullspec(1, 1),                                      # energy bias
            fullspec(KPAD, 4 * HID), fullspec(1, 4 * HID),       # fused decoder gate W / b
            fullspec(HID, VPAD), fullspec(1, VPAD),              # vocab projection (padded)
        ],
        out_specs=pl.BlockSpec((T, BP, VPAD), lambda i, tf: (0, 0, 0)),
        scratch_shapes=[
            pltpu.VMEM((S * BP, 8 * HID), jnp.float32),          # hoisted encoder x-proj
            pltpu.VMEM((S * BP, 2 * HID), jnp.float32),          # encoder states [fwd|bwd]
            pltpu.VMEM((BP, S), jnp.float32),                    # hoisted attention energy
            pltpu.VMEM((BP, KPAD), jnp.float32),                 # fused decoder gate input
        ],
    )

    out = pl.pallas_call(
        _seq2seq_kernel,
        out_shape=jax.ShapeDtypeStruct((T, BP, VPAD), jnp.float32),
        grid_spec=grid_spec,
        compiler_params=pltpu.CompilerParams(dimension_semantics=("arbitrary",)),
    )(tf_mask, src_p, trg_p,
      p["enc_wcomb"], p["enc_bcat"], p["enc_whh_f"], p["enc_whh_b"],
      p["fch_w"], p["fch_b"], p["fcc_w"], p["fcc_b"],
      p["e_we"], p["e_wh"], p["e_b"],
      p["dec_wcat"], p["dec_b"], p["fc_w_pad"], p["fc_b_pad"])

    return out[:, :B, :TRG_VOCAB]


# -------------------------------- parameter init -------------------------------
def init_params(key):
    def nrm(k, shape, scale=0.1):
        return (scale * jax.random.normal(k, shape)).astype(jnp.float32)

    ks = iter(jax.random.split(key, 24))
    # raw parameters (same parameterization as the reference module)
    emb_enc = nrm(next(ks), (SRC_VOCAB, EMB))
    enc_wih = nrm(next(ks), (2, EMB, 4 * HID))
    enc_whh = nrm(next(ks), (2, HID, 4 * HID))
    enc_b = nrm(next(ks), (2, 1, 4 * HID))
    fc_hidden_w = nrm(next(ks), (2 * HID, HID))
    fc_hidden_b = nrm(next(ks), (1, HID))
    fc_cell_w = nrm(next(ks), (2 * HID, HID))
    fc_cell_b = nrm(next(ks), (1, HID))
    emb_dec = nrm(next(ks), (TRG_VOCAB, EMB))
    dec_w_ctx = nrm(next(ks), (2 * HID, 4 * HID))
    dec_w_emb = nrm(next(ks), (EMB, 4 * HID))
    dec_whh = nrm(next(ks), (HID, 4 * HID))
    dec_b = nrm(next(ks), (1, 4 * HID))
    energy_wh = nrm(next(ks), (1, HID))
    energy_we = nrm(next(ks), (1, 2 * HID))
    energy_b = nrm(next(ks), (1, 1))
    fc_w = nrm(next(ks), (HID, TRG_VOCAB))
    fc_b = nrm(next(ks), (1, TRG_VOCAB))

    p = {}
    # encoder: embedding table folded into the hoisted input projection, both directions on lanes
    p["enc_wcomb"] = jnp.concatenate([emb_enc @ enc_wih[0], emb_enc @ enc_wih[1]], axis=-1)
    p["enc_bcat"] = jnp.concatenate([enc_b[0], enc_b[1]], axis=-1)
    p["enc_whh_f"] = enc_whh[0]
    p["enc_whh_b"] = enc_whh[1]
    p["fch_w"], p["fch_b"] = fc_hidden_w, fc_hidden_b
    p["fcc_w"], p["fcc_b"] = fc_cell_w, fc_cell_b
    p["e_we"], p["e_wh"], p["e_b"] = energy_we, energy_wh, energy_b
    # decoder: single fused gate weight [W_ctx ; emb_dec@W_emb ; W_hh ; zero pad rows]
    dec_wcat = jnp.zeros((KPAD, 4 * HID), jnp.float32)
    dec_wcat = dec_wcat.at[0:2 * HID].set(dec_w_ctx)
    dec_wcat = dec_wcat.at[2 * HID:2 * HID + TRG_VOCAB].set(emb_dec @ dec_w_emb)
    dec_wcat = dec_wcat.at[2 * HID + TRG_VOCAB:2 * HID + TRG_VOCAB + HID].set(dec_whh)
    p["dec_wcat"] = dec_wcat
    p["dec_b"] = dec_b
    # vocab projection padded to a lane-dense 128-wide output; padded bias lanes = -1e30 so the
    # in-kernel argmax never needs masking (wrapper slices the real vocab back out).
    p["fc_w_pad"] = jnp.zeros((HID, VPAD), jnp.float32).at[:, :TRG_VOCAB].set(fc_w)
    p["fc_b_pad"] = jnp.full((1, VPAD), NEG, jnp.float32).at[:, :TRG_VOCAB].set(fc_b)
    return p


# ------------------------------------- main -------------------------------------
if __name__ == "__main__":
    key = jax.random.PRNGKey(0)
    k_par, k_src, k_trg, k_tf = jax.random.split(key, 4)
    params = init_params(k_par)

    source = jax.random.randint(k_src, (SRC_LEN, BATCH), 0, SRC_VOCAB, dtype=jnp.int32)
    target = jax.random.randint(k_trg, (TRG_LEN, BATCH), 0, TRG_VOCAB, dtype=jnp.int32)

    fwd = jax.jit(seq2seq_forward)
    outputs = fwd(params, source, target, 0.5, k_tf)
    outputs = jax.block_until_ready(outputs)

    assert outputs.shape == (TRG_LEN, BATCH, TRG_VOCAB)
    assert bool(jnp.all(jnp.isfinite(outputs)))
    print("KERNEL_OK")
</pallas_src>

<mosaic_0001>
module attributes {stable_mosaic.version = 11 : i64} {
  func.func @_seq2seq_kernel(%arg0: i32, %arg1: memref<8xi32, #tpu.memory_space<smem>>, %arg2: memref<64x1xi32, #tpu.memory_space<vmem>>, %arg3: memref<64x1xi32, #tpu.memory_space<vmem>>, %arg4: memref<20x256xf32, #tpu.memory_space<vmem>>, %arg5: memref<1x256xf32, #tpu.memory_space<vmem>>, %arg6: memref<32x128xf32, #tpu.memory_space<vmem>>, %arg7: memref<32x128xf32, #tpu.memory_space<vmem>>, %arg8: memref<64x32xf32, #tpu.memory_space<vmem>>, %arg9: memref<1x32xf32, #tpu.memory_space<vmem>>, %arg10: memref<64x32xf32, #tpu.memory_space<vmem>>, %arg11: memref<1x32xf32, #tpu.memory_space<vmem>>, %arg12: memref<1x64xf32, #tpu.memory_space<vmem>>, %arg13: memref<1x32xf32, #tpu.memory_space<vmem>>, %arg14: memref<1x1xf32, #tpu.memory_space<vmem>>, %arg15: memref<128x128xf32, #tpu.memory_space<vmem>>, %arg16: memref<1x128xf32, #tpu.memory_space<vmem>>, %arg17: memref<32x128xf32, #tpu.memory_space<vmem>>, %arg18: memref<1x128xf32, #tpu.memory_space<vmem>>, %arg19: memref<8x8x128xf32, #tpu.memory_space<vmem>>, %arg20: memref<64x256xf32, #tpu.memory_space<vmem>>, %arg21: memref<64x64xf32, #tpu.memory_space<vmem>>, %arg22: memref<8x8xf32, #tpu.memory_space<vmem>>, %arg23: memref<8x128xf32, #tpu.memory_space<vmem>>) attributes {dimension_semantics = [#tpu.dimension_semantics<arbitrary>], iteration_bounds = array<i64: 1>, scalar_prefetch = 1 : i64, scratch_operands = 4 : i64, tpu.core_type = #tpu.core_type<tc>, window_params = [{pipeline_mode = #tpu.pipeline_mode<synchronous>, transform_indices = @transform_0, window_bounds = array<i64: 64, 1>}, {pipeline_mode = #tpu.pipeline_mode<synchronous>, transform_indices = @transform_1, window_bounds = array<i64: 64, 1>}, {pipeline_mode = #tpu.pipeline_mode<synchronous>, transform_indices = @transform_2, window_bounds = array<i64: 20, 256>}, {pipeline_mode = #tpu.pipeline_mode<synchronous>, transform_indices = @transform_3, window_bounds = array<i64: 1, 256>}, {pipeline_mode = #tpu.pipeline_mode<synchronous>, transform_indices = @transform_4, window_bounds = array<i64: 32, 128>}, {pipeline_mode = #tpu.pipeline_mode<synchronous>, transform_indices = @transform_5, window_bounds = array<i64: 32, 128>}, {pipeline_mode = #tpu.pipeline_mode<synchronous>, transform_indices = @transform_6, window_bounds = array<i64: 64, 32>}, {pipeline_mode = #tpu.pipeline_mode<synchronous>, transform_indices = @transform_7, window_bounds = array<i64: 1, 32>}, {pipeline_mode = #tpu.pipeline_mode<synchronous>, transform_indices = @transform_8, window_bounds = array<i64: 64, 32>}, {pipeline_mode = #tpu.pipeline_mode<synchronous>, transform_indices = @transform_9, window_bounds = array<i64: 1, 32>}, {pipeline_mode = #tpu.pipeline_mode<synchronous>, transform_indices = @transform_10, window_bounds = array<i64: 1, 64>}, {pipeline_mode = #tpu.pipeline_mode<synchronous>, transform_indices = @transform_11, window_bounds = array<i64: 1, 32>}, {pipeline_mode = #tpu.pipeline_mode<synchronous>, transform_indices = @transform_12, window_bounds = array<i64: 1, 1>}, {pipeline_mode = #tpu.pipeline_mode<synchronous>, transform_indices = @transform_13, window_bounds = array<i64: 128, 128>}, {pipeline_mode = #tpu.pipeline_mode<synchronous>, transform_indices = @transform_14, window_bounds = array<i64: 1, 128>}, {pipeline_mode = #tpu.pipeline_mode<synchronous>, transform_indices = @transform_15, window_bounds = array<i64: 32, 128>}, {pipeline_mode = #tpu.pipeline_mode<synchronous>, transform_indices = @transform_16, window_bounds = array<i64: 1, 128>}, {pipeline_mode = #tpu.pipeline_mode<synchronous>, transform_indices = @transform_17, window_bounds = array<i64: 8, 8, 128>}]} {
    %0 = tpu.iota {dimensions = array<i32: 1>} : vector<64x20xi32>
    %c0 = arith.constant 0 : index
    %c0_0 = arith.constant 0 : index
    %1 = vector.load %arg2[%c0, %c0_0] : memref<64x1xi32, #tpu.memory_space<vmem>>, vector<64x1xi32>
    %2 = vector.broadcast %1 : vector<64x1xi32> to vector<64x20xi32>
    %3 = arith.cmpi eq, %0, %2 : vector<64x20xi32>
    %4 = arith.extui %3 : vector<64x20xi1> to vector<64x20xi32>
    %5 = arith.sitofp %4 : vector<64x20xi32> to vector<64x20xf32>
    %c0_1 = arith.constant 0 : index
    %c0_2 = arith.constant 0 : index
    %6 = vector.load %arg4[%c0_1, %c0_2] : memref<20x256xf32, #tpu.memory_space<vmem>>, vector<20x256xf32>
    %cst = arith.constant dense<0.000000e+00> : vector<64x256xf32>
    %7 = tpu.matmul %5, %6, %cst {dimension_numbers = #tpu.dot_dimension_numbers<[1], [0], [0], [1], [0, 0, 1, 1], [], []>} : vector<64x20xf32>, vector<20x256xf32>, vector<64x256xf32> -> vector<64x256xf32>
    %c0_3 = arith.constant 0 : index
    %c0_4 = arith.constant 0 : index
    %8 = vector.load %arg5[%c0_3, %c0_4] : memref<1x256xf32, #tpu.memory_space<vmem>>, vector<1x256xf32>
    %9 = vector.broadcast %8 : vector<1x256xf32> to vector<64x256xf32>
    %10 = arith.addf %7, %9 : vector<64x256xf32>
    %c0_5 = arith.constant 0 : index
    %c0_6 = arith.constant 0 : index
    %11 = vector.load %arg20[%c0_5, %c0_6] : memref<64x256xf32, #tpu.memory_space<vmem>>, vector<64x256xf32>
    tpu.vector_store %arg20[%c0_5, %c0_6], %10 {strides = array<i32>} : memref<64x256xf32, #tpu.memory_space<vmem>>, vector<64x256xf32>,
    %cst_7 = arith.constant 0.000000e+00 : f32
    %12 = vector.broadcast %cst_7 : f32 to vector<8x32xf32>
    %cst_8 = arith.constant 0.000000e+00 : f32
    %13 = vector.broadcast %cst_8 : f32 to vector<8x32xf32>
    %cst_9 = arith.constant 0.000000e+00 : f32
    %14 = vector.broadcast %cst_9 : f32 to vector<8x32xf32>
    %cst_10 = arith.constant 0.000000e+00 : f32
    %15 = vector.broadcast %cst_10 : f32 to vector<8x32xf32>
    %c0_11 = arith.constant 0 : index
    %c0_12 = arith.constant 0 : index
    %16 = vector.load %arg20[%c0_11, %c0_12] : memref<64x256xf32, #tpu.memory_space<vmem>>, vector<8x128xf32>
    %c0_13 = arith.constant 0 : index
    %c0_14 = arith.constant 0 : index
    %17 = vector.load %arg6[%c0_13, %c0_14] : memref<32x128xf32, #tpu.memory_space<vmem>>, vector<32x128xf32>
    %cst_15 = arith.constant dense<0.000000e+00> : vector<8x128xf32>
    %18 = tpu.matmul %12, %17, %cst_15 {dimension_numbers = #tpu.dot_dimension_numbers<[1], [0], [0], [1], [0, 0, 1, 1], [], []>} : vector<8x32xf32>, vector<32x128xf32>, vector<8x128xf32> -> vector<8x128xf32>
    %19 = arith.addf %16, %18 : vector<8x128xf32>
    %c56 = arith.constant 56 : index
    %c128 = arith.constant 128 : index
    %20 = vector.load %arg20[%c56, %c128] : memref<64x256xf32, #tpu.memory_space<vmem>>, vector<8x128xf32>
    %c0_16 = arith.constant 0 : index
    %c0_17 = arith.constant 0 : index
    %21 = vector.load %arg7[%c0_16, %c0_17] : memref<32x128xf32, #tpu.memory_space<vmem>>, vector<32x128xf32>
    %cst_18 = arith.constant dense<0.000000e+00> : vector<8x128xf32>
    %22 = tpu.matmul %14, %21, %cst_18 {dimension_numbers = #tpu.dot_dimension_numbers<[1], [0], [0], [1], [0, 0, 1, 1], [], []>} : vector<8x32xf32>, vector<32x128xf32>, vector<8x128xf32> -> vector<8x128xf32>
    %23 = arith.addf %20, %22 : vector<8x128xf32>
    %24 = vector.extract_strided_slice %19 {offsets = [0, 0], sizes = [8, 32], strides = [1, 1]} : vector<8x128xf32> to vector<8x32xf32>
    %25 = arith.negf %24 : vector<8x32xf32>
    %26 = math.exp %25 : vector<8x32xf32>
    %cst_19 = arith.constant 1.000000e+00 : f32
    %27 = vector.broadcast %cst_19 : f32 to vector<8x32xf32>
    %28 = arith.addf %27, %26 : vector<8x32xf32>
    %29 = arith.divf %27, %28 : vector<8x32xf32>
    %30 = vector.extract_strided_slice %19 {offsets = [0, 32], sizes = [8, 32], strides = [1, 1]} : vector<8x128xf32> to vector<8x32xf32>
    %31 = arith.negf %30 : vector<8x32xf32>
    %32 = math.exp %31 : vector<8x32xf32>
    %cst_20 = arith.constant 1.000000e+00 : f32
    %33 = vector.broadcast %cst_20 : f32 to vector<8x32xf32>
    %34 = arith.addf %33, %32 : vector<8x32xf32>
    %35 = arith.divf %33, %34 : vector<8x32xf32>
    %36 = vector.extract_strided_slice %19 {offsets = [0, 64], sizes = [8, 32], strides = [1, 1]} : vector<8x128xf32> to vector<8x32xf32>
    %37 = math.tanh %36 : vector<8x32xf32>
    %38 = vector.extract_strided_slice %19 {offsets = [0, 96], sizes = [8, 32], strides = [1, 1]} : vector<8x128xf32> to vector<8x32xf32>
    %39 = arith.negf %38 : vector<8x32xf32>
    %40 = math.exp %39 : vector<8x32xf32>
    %cst_21 = arith.constant 1.000000e+00 : f32
    %41 = vector.broadcast %cst_21 : f32 to vector<8x32xf32>
    %42 = arith.addf %41, %40 : vector<8x32xf32>
    %43 = arith.divf %41, %42 : vector<8x32xf32>
    %44 = arith.mulf %35, %13 : vector<8x32xf32>
    %45 = arith.mulf %29, %37 : vector<8x32xf32>
    %46 = arith.addf %44, %45 : vector<8x32xf32>
    %47 = math.tanh %46 : vector<8x32xf32>
    %48 = arith.mulf %43, %47 : vector<8x32xf32>
    %49 = vector.extract_strided_slice %23 {offsets = [0, 0], sizes = [8, 32], strides = [1, 1]} : vector<8x128xf32> to vector<8x32xf32>
    %50 = arith.negf %49 : vector<8x32xf32>
    %51 = math.exp %50 : vector<8x32xf32>
    %cst_22 = arith.constant 1.000000e+00 : f32
    %52 = vector.broadcast %cst_22 : f32 to vector<8x32xf32>
    %53 = arith.addf %52, %51 : vector<8x32xf32>
    %54 = arith.divf %52, %53 : vector<8x32xf32>
    %55 = vector.extract_strided_slice %23 {offsets = [0, 32], sizes = [8, 32], strides = [1, 1]} : vector<8x128xf32> to vector<8x32xf32>
    %56 = arith.negf %55 : vector<8x32xf32>
    %57 = math.exp %56 : vector<8x32xf32>
    %cst_23 = arith.constant 1.000000e+00 : f32
    %58 = vector.broadcast %cst_23 : f32 to vector<8x32xf32>
    %59 = arith.addf %58, %57 : vector<8x32xf32>
    %60 = arith.divf %58, %59 : vector<8x32xf32>
    %61 = vector.extract_strided_slice %23 {offsets = [0, 64], sizes = [8, 32], strides = [1, 1]} : vector<8x128xf32> to vector<8x32xf32>
    %62 = math.tanh %61 : vector<8x32xf32>
    %63 = vector.extract_strided_slice %23 {offsets = [0, 96], sizes = [8, 32], strides = [1, 1]} : vector<8x128xf32> to vector<8x32xf32>
    %64 = arith.negf %63 : vector<8x32xf32>
    %65 = math.exp %64 : vector<8x32xf32>
    %cst_24 = arith.constant 1.000000e+00 : f32
    %66 = vector.broadcast %cst_24 : f32 to vector<8x32xf32>
    %67 = arith.addf %66, %65 : vector<8x32xf32>
    %68 = arith.divf %66, %67 : vector<8x32xf32>
    %69 = arith.mulf %60, %15 : vector<8x32xf32>
    %70 = arith.mulf %54, %62 : vector<8x32xf32>
    %71 = arith.addf %69, %70 : vector<8x32xf32>
    %72 = math.tanh %71 : vector<8x32xf32>
    %73 = arith.mulf %68, %72 : vector<8x32xf32>
    %c0_25 = arith.constant 0 : index
    %c0_26 = arith.constant 0 : index
    %74 = vector.load %arg21[%c0_25, %c0_26] : memref<64x64xf32, #tpu.memory_space<vmem>>, vector<8x32xf32>
    tpu.vector_store %arg21[%c0_25, %c0_26], %48 {strides = array<i32>} : memref<64x64xf32, #tpu.memory_space<vmem>>, vector<8x32xf32>,
    %c56_27 = arith.constant 56 : index
    %c32 = arith.constant 32 : index
    %75 = vector.load %arg21[%c56_27, %c32] : memref<64x64xf32, #tpu.memory_space<vmem>>, vector<8x32xf32>
    tpu.vector_store %arg21[%c56_27, %c32], %73 {strides = array<i32>} : memref<64x64xf32, #tpu.memory_space<vmem>>, vector<8x32xf32>,
    %c8 = arith.constant 8 : index
    %c0_28 = arith.constant 0 : index
    %76 = vector.load %arg20[%c8, %c0_28] : memref<64x256xf32, #tpu.memory_space<vmem>>, vector<8x128xf32>
    %c0_29 = arith.constant 0 : index
    %c0_30 = arith.constant 0 : index
    %77 = vector.load %arg6[%c0_29, %c0_30] : memref<32x128xf32, #tpu.memory_space<vmem>>, vector<32x128xf32>
    %cst_31 = arith.constant dense<0.000000e+00> : vector<8x128xf32>
    %78 = tpu.matmul %48, %77, %cst_31 {dimension_numbers = #tpu.dot_dimension_numbers<[1], [0], [0], [1], [0, 0, 1, 1], [], []>} : vector<8x32xf32>, vector<32x128xf32>, vector<8x128xf32> -> vector<8x128xf32>
    %79 = arith.addf %76, %78 : vector<8x128xf32>
    %c48 = arith.constant 48 : index
    %c128_32 = arith.constant 128 : index
    %80 = vector.load %arg20[%c48, %c128_32] : memref<64x256xf32, #tpu.memory_space<vmem>>, vector<8x128xf32>
    %c0_33 = arith.constant 0 : index
    %c0_34 = arith.constant 0 : index
    %81 = vector.load %arg7[%c0_33, %c0_34] : memref<32x128xf32, #tpu.memory_space<vmem>>, vector<32x128xf32>
    %cst_35 = arith.constant dense<0.000000e+00> : vector<8x128xf32>
    %82 = tpu.matmul %73, %81, %cst_35 {dimension_numbers = #tpu.dot_dimension_numbers<[1], [0], [0], [1], [0, 0, 1, 1], [], []>} : vector<8x32xf32>, vector<32x128xf32>, vector<8x128xf32> -> vector<8x128xf32>
    %83 = arith.addf %80, %82 : vector<8x128xf32>
    %84 = vector.extract_strided_slice %79 {offsets = [0, 0], sizes = [8, 32], strides = [1, 1]} : vector<8x128xf32> to vector<8x32xf32>
    %85 = arith.negf %84 : vector<8x32xf32>
    %86 = math.exp %85 : vector<8x32xf32>
    %cst_36 = arith.constant 1.000000e+00 : f32
    %87 = vector.broadcast %cst_36 : f32 to vector<8x32xf32>
    %88 = arith.addf %87, %86 : vector<8x32xf32>
    %89 = arith.divf %87, %88 : vector<8x32xf32>
    %90 = vector.extract_strided_slice %79 {offsets = [0, 32], sizes = [8, 32], strides = [1, 1]} : vector<8x128xf32> to vector<8x32xf32>
    %91 = arith.negf %90 : vector<8x32xf32>
    %92 = math.exp %91 : vector<8x32xf32>
    %cst_37 = arith.constant 1.000000e+00 : f32
    %93 = vector.broadcast %cst_37 : f32 to vector<8x32xf32>
    %94 = arith.addf %93, %92 : vector<8x32xf32>
    %95 = arith.divf %93, %94 : vector<8x32xf32>
    %96 = vector.extract_strided_slice %79 {offsets = [0, 64], sizes = [8, 32], strides = [1, 1]} : vector<8x128xf32> to vector<8x32xf32>
    %97 = math.tanh %96 : vector<8x32xf32>
    %98 = vector.extract_strided_slice %79 {offsets = [0, 96], sizes = [8, 32], strides = [1, 1]} : vector<8x128xf32> to vector<8x32xf32>
    %99 = arith.negf %98 : vector<8x32xf32>
    %100 = math.exp %99 : vector<8x32xf32>
    %cst_38 = arith.constant 1.000000e+00 : f32
    %101 = vector.broadcast %cst_38 : f32 to vector<8x32xf32>
    %102 = arith.addf %101, %100 : vector<8x32xf32>
    %103 = arith.divf %101, %102 : vector<8x32xf32>
    %104 = arith.mulf %95, %46 : vector<8x32xf32>
    %105 = arith.mulf %89, %97 : vector<8x32xf32>
    %106 = arith.addf %104, %105 : vector<8x32xf32>
    %107 = math.tanh %106 : vector<8x32xf32>
    %108 = arith.mulf %103, %107 : vector<8x32xf32>
    %109 = vector.extract_strided_slice %83 {offsets = [0, 0], sizes = [8, 32], strides = [1, 1]} : vector<8x128xf32> to vector<8x32xf32>
    %110 = arith.negf %109 : vector<8x32xf32>
    %111 = math.exp %110 : vector<8x32xf32>
    %cst_39 = arith.constant 1.000000e+00 : f32
    %112 = vector.broadcast %cst_39 : f32 to vector<8x32xf32>
    %113 = arith.addf %112, %111 : vector<8x32xf32>
    %114 = arith.divf %112, %113 : vector<8x32xf32>
    %115 = vector.extract_strided_slice %83 {offsets = [0, 32], sizes = [8, 32], strides = [1, 1]} : vector<8x128xf32> to vector<8x32xf32>
    %116 = arith.negf %115 : vector<8x32xf32>
    %117 = math.exp %116 : vector<8x32xf32>
    %cst_40 = arith.constant 1.000000e+00 : f32
    %118 = vector.broadcast %cst_40 : f32 to vector<8x32xf32>
    %119 = arith.addf %118, %117 : vector<8x32xf32>
    %120 = arith.divf %118, %119 : vector<8x32xf32>
    %121 = vector.extract_strided_slice %83 {offsets = [0, 64], sizes = [8, 32], strides = [1, 1]} : vector<8x128xf32> to vector<8x32xf32>
    %122 = math.tanh %121 : vector<8x32xf32>
    %123 = vector.extract_strided_slice %83 {offsets = [0, 96], sizes = [8, 32], strides = [1, 1]} : vector<8x128xf32> to vector<8x32xf32>
    %124 = arith.negf %123 : vector<8x32xf32>
    %125 = math.exp %124 : vector<8x32xf32>
    %cst_41 = arith.constant 1.000000e+00 : f32
    %126 = vector.broadcast %cst_41 : f32 to vector<8x32xf32>
    %127 = arith.addf %126, %125 : vector<8x32xf32>
    %128 = arith.divf %126, %127 : vector<8x32xf32>
    %129 = arith.mulf %120, %71 : vector<8x32xf32>
    %130 = arith.mulf %114, %122 : vector<8x32xf32>
    %131 = arith.addf %129, %130 : vector<8x32xf32>
    %132 = math.tanh %131 : vector<8x32xf32>
    %133 = arith.mulf %128, %132 : vector<8x32xf32>
    %c8_42 = arith.constant 8 : index
    %c0_43 = arith.constant 0 : index
    %134 = vector.load %arg21[%c8_42, %c0_43] : memref<64x64xf32, #tpu.memory_space<vmem>>, vector<8x32xf32>
    tpu.vector_store %arg21[%c8_42, %c0_43], %108 {strides = array<i32>} : memref<64x64xf32, #tpu.memory_space<vmem>>, vector<8x32xf32>,
    %c48_44 = arith.constant 48 : index
    %c32_45 = arith.constant 32 : index
    %135 = vector.load %arg21[%c48_44, %c32_45] : memref<64x64xf32, #tpu.memory_space<vmem>>, vector<8x32xf32>
    tpu.vector_store %arg21[%c48_44, %c32_45], %133 {strides = array<i32>} : memref<64x64xf32, #tpu.memory_space<vmem>>, vector<8x32xf32>,
    %c16 = arith.constant 16 : index
    %c0_46 = arith.constant 0 : index
    %136 = vector.load %arg20[%c16, %c0_46] : memref<64x256xf32, #tpu.memory_space<vmem>>, vector<8x128xf32>
    %c0_47 = arith.constant 0 : index
    %c0_48 = arith.constant 0 : index
    %137 = vector.load %arg6[%c0_47, %c0_48] : memref<32x128xf32, #tpu.memory_space<vmem>>, vector<32x128xf32>
    %cst_49 = arith.constant dense<0.000000e+00> : vector<8x128xf32>
    %138 = tpu.matmul %108, %137, %cst_49 {dimension_numbers = #tpu.dot_dimension_numbers<[1], [0], [0], [1], [0, 0, 1, 1], [], []>} : vector<8x32xf32>, vector<32x128xf32>, vector<8x128xf32> -> vector<8x128xf32>
    %139 = arith.addf %136, %138 : vector<8x128xf32>
    %c40 = arith.constant 40 : index
    %c128_50 = arith.constant 128 : index
    %140 = vector.load %arg20[%c40, %c128_50] : memref<64x256xf32, #tpu.memory_space<vmem>>, vector<8x128xf32>
    %c0_51 = arith.constant 0 : index
    %c0_52 = arith.constant 0 : index
    %141 = vector.load %arg7[%c0_51, %c0_52] : memref<32x128xf32, #tpu.memory_space<vmem>>, vector<32x128xf32>
    %cst_53 = arith.constant dense<0.000000e+00> : vector<8x128xf32>
    %142 = tpu.matmul %133, %141, %cst_53 {dimension_numbers = #tpu.dot_dimension_numbers<[1], [0], [0], [1], [0, 0, 1, 1], [], []>} : vector<8x32xf32>, vector<32x128xf32>, vector<8x128xf32> -> vector<8x128xf32>
    %143 = arith.addf %140, %142 : vector<8x128xf32>
    %144 = vector.extract_strided_slice %139 {offsets = [0, 0], sizes = [8, 32], strides = [1, 1]} : vector<8x128xf32> to vector<8x32xf32>
    %145 = arith.negf %144 : vector<8x32xf32>
    %146 = math.exp %145 : vector<8x32xf32>
    %cst_54 = arith.constant 1.000000e+00 : f32
    %147 = vector.broadcast %cst_54 : f32 to vector<8x32xf32>
    %148 = arith.addf %147, %146 : vector<8x32xf32>
    %149 = arith.divf %147, %148 : vector<8x32xf32>
    %150 = vector.extract_strided_slice %139 {offsets = [0, 32], sizes = [8, 32], strides = [1, 1]} : vector<8x128xf32> to vector<8x32xf32>
    %151 = arith.negf %150 : vector<8x32xf32>
    %152 = math.exp %151 : vector<8x32xf32>
    %cst_55 = arith.constant 1.000000e+00 : f32
    %153 = vector.broadcast %cst_55 : f32 to vector<8x32xf32>
    %154 = arith.addf %153, %152 : vector<8x32xf32>
    %155 = arith.divf %153, %154 : vector<8x32xf32>
    %156 = vector.extract_strided_slice %139 {offsets = [0, 64], sizes = [8, 32], strides = [1, 1]} : vector<8x128xf32> to vector<8x32xf32>
    %157 = math.tanh %156 : vector<8x32xf32>
    %158 = vector.extract_strided_slice %139 {offsets = [0, 96], sizes = [8, 32], strides = [1, 1]} : vector<8x128xf32> to vector<8x32xf32>
    %159 = arith.negf %158 : vector<8x32xf32>
    %160 = math.exp %159 : vector<8x32xf32>
    %cst_56 = arith.constant 1.000000e+00 : f32
    %161 = vector.broadcast %cst_56 : f32 to vector<8x32xf32>
    %162 = arith.addf %161, %160 : vector<8x32xf32>
    %163 = arith.divf %161, %162 : vector<8x32xf32>
    %164 = arith.mulf %155, %106 : vector<8x32xf32>
    %165 = arith.mulf %149, %157 : vector<8x32xf32>
    %166 = arith.addf %164, %165 : vector<8x32xf32>
    %167 = math.tanh %166 : vector<8x32xf32>
    %168 = arith.mulf %163, %167 : vector<8x32xf32>
    %169 = vector.extract_strided_slice %143 {offsets = [0, 0], sizes = [8, 32], strides = [1, 1]} : vector<8x128xf32> to vector<8x32xf32>
    %170 = arith.negf %169 : vector<8x32xf32>
    %171 = math.exp %170 : vector<8x32xf32>
    %cst_57 = arith.constant 1.000000e+00 : f32
    %172 = vector.broadcast %cst_57 : f32 to vector<8x32xf32>
    %173 = arith.addf %172, %171 : vector<8x32xf32>
    %174 = arith.divf %172, %173 : vector<8x32xf32>
    %175 = vector.extract_strided_slice %143 {offsets = [0, 32], sizes = [8, 32], strides = [1, 1]} : vector<8x128xf32> to vector<8x32xf32>
    %176 = arith.negf %175 : vector<8x32xf32>
    %177 = math.exp %176 : vector<8x32xf32>
    %cst_58 = arith.constant 1.000000e+00 : f32
    %178 = vector.broadcast %cst_58 : f32 to vector<8x32xf32>
    %179 = arith.addf %178, %177 : vector<8x32xf32>
    %180 = arith.divf %178, %179 : vector<8x32xf32>
    %181 = vector.extract_strided_slice %143 {offsets = [0, 64], sizes = [8, 32], strides = [1, 1]} : vector<8x128xf32> to vector<8x32xf32>
    %182 = math.tanh %181 : vector<8x32xf32>
    %183 = vector.extract_strided_slice %143 {offsets = [0, 96], sizes = [8, 32], strides = [1, 1]} : vector<8x128xf32> to vector<8x32xf32>
    %184 = arith.negf %183 : vector<8x32xf32>
    %185 = math.exp %184 : vector<8x32xf32>
    %cst_59 = arith.constant 1.000000e+00 : f32
    %186 = vector.broadcast %cst_59 : f32 to vector<8x32xf32>
    %187 = arith.addf %186, %185 : vector<8x32xf32>
    %188 = arith.divf %186, %187 : vector<8x32xf32>
    %189 = arith.mulf %180, %131 : vector<8x32xf32>
    %190 = arith.mulf %174, %182 : vector<8x32xf32>
    %191 = arith.addf %189, %190 : vector<8x32xf32>
    %192 = math.tanh %191 : vector<8x32xf32>
    %193 = arith.mulf %188, %192 : vector<8x32xf32>
    %c16_60 = arith.constant 16 : index
    %c0_61 = arith.constant 0 : index
    %194 = vector.load %arg21[%c16_60, %c0_61] : memref<64x64xf32, #tpu.memory_space<vmem>>, vector<8x32xf32>
    tpu.vector_store %arg21[%c16_60, %c0_61], %168 {strides = array<i32>} : memref<64x64xf32, #tpu.memory_space<vmem>>, vector<8x32xf32>,
    %c40_62 = arith.constant 40 : index
    %c32_63 = arith.constant 32 : index
    %195 = vector.load %arg21[%c40_62, %c32_63] : memref<64x64xf32, #tpu.memory_space<vmem>>, vector<8x32xf32>
    tpu.vector_store %arg21[%c40_62, %c32_63], %193 {strides = array<i32>} : memref<64x64xf32, #tpu.memory_space<vmem>>, vector<8x32xf32>,
    %c24 = arith.constant 24 : index
    %c0_64 = arith.constant 0 : index
    %196 = vector.load %arg20[%c24, %c0_64] : memref<64x256xf32, #tpu.memory_space<vmem>>, vector<8x128xf32>
    %c0_65 = arith.constant 0 : index
    %c0_66 = arith.constant 0 : index
    %197 = vector.load %arg6[%c0_65, %c0_66] : memref<32x128xf32, #tpu.memory_space<vmem>>, vector<32x128xf32>
    %cst_67 = arith.constant dense<0.000000e+00> : vector<8x128xf32>
    %198 = tpu.matmul %168, %197, %cst_67 {dimension_numbers = #tpu.dot_dimension_numbers<[1], [0], [0], [1], [0, 0, 1, 1], [], []>} : vector<8x32xf32>, vector<32x128xf32>, vector<8x128xf32> -> vector<8x128xf32>
    %199 = arith.addf %196, %198 : vector<8x128xf32>
    %c32_68 = arith.constant 32 : index
    %c128_69 = arith.constant 128 : index
    %200 = vector.load %arg20[%c32_68, %c128_69] : memref<64x256xf32, #tpu.memory_space<vmem>>, vector<8x128xf32>
    %c0_70 = arith.constant 0 : index
    %c0_71 = arith.constant 0 : index
    %201 = vector.load %arg7[%c0_70, %c0_71] : memref<32x128xf32, #tpu.memory_space<vmem>>, vector<32x128xf32>
    %cst_72 = arith.constant dense<0.000000e+00> : vector<8x128xf32>
    %202 = tpu.matmul %193, %201, %cst_72 {dimension_numbers = #tpu.dot_dimension_numbers<[1], [0], [0], [1], [0, 0, 1, 1], [], []>} : vector<8x32xf32>, vector<32x128xf32>, vector<8x128xf32> -> vector<8x128xf32>
    %203 = arith.addf %200, %202 : vector<8x128xf32>
    %204 = vector.extract_strided_slice %199 {offsets = [0, 0], sizes = [8, 32], strides = [1, 1]} : vector<8x128xf32> to vector<8x32xf32>
    %205 = arith.negf %204 : vector<8x32xf32>
    %206 = math.exp %205 : vector<8x32xf32>
    %cst_73 = arith.constant 1.000000e+00 : f32
    %207 = vector.broadcast %cst_73 : f32 to vector<8x32xf32>
    %208 = arith.addf %207, %206 : vector<8x32xf32>
    %209 = arith.divf %207, %208 : vector<8x32xf32>
    %210 = vector.extract_strided_slice %199 {offsets = [0, 32], sizes = [8, 32], strides = [1, 1]} : vector<8x128xf32> to vector<8x32xf32>
    %211 = arith.negf %210 : vector<8x32xf32>
    %212 = math.exp %211 : vector<8x32xf32>
    %cst_74 = arith.constant 1.000000e+00 : f32
    %213 = vector.broadcast %cst_74 : f32 to vector<8x32xf32>
    %214 = arith.addf %213, %212 : vector<8x32xf32>
    %215 = arith.divf %213, %214 : vector<8x32xf32>
    %216 = vector.extract_strided_slice %199 {offsets = [0, 64], sizes = [8, 32], strides = [1, 1]} : vector<8x128xf32> to vector<8x32xf32>
    %217 = math.tanh %216 : vector<8x32xf32>
    %218 = vector.extract_strided_slice %199 {offsets = [0, 96], sizes = [8, 32], strides = [1, 1]} : vector<8x128xf32> to vector<8x32xf32>
    %219 = arith.negf %218 : vector<8x32xf32>
    %220 = math.exp %219 : vector<8x32xf32>
    %cst_75 = arith.constant 1.000000e+00 : f32
    %221 = vector.broadcast %cst_75 : f32 to vector<8x32xf32>
    %222 = arith.addf %221, %220 : vector<8x32xf32>
    %223 = arith.divf %221, %222 : vector<8x32xf32>
    %224 = arith.mulf %215, %166 : vector<8x32xf32>
    %225 = arith.mulf %209, %217 : vector<8x32xf32>
    %226 = arith.addf %224, %225 : vector<8x32xf32>
    %227 = math.tanh %226 : vector<8x32xf32>
    %228 = arith.mulf %223, %227 : vector<8x32xf32>
    %229 = vector.extract_strided_slice %203 {offsets = [0, 0], sizes = [8, 32], strides = [1, 1]} : vector<8x128xf32> to vector<8x32xf32>
    %230 = arith.negf %229 : vector<8x32xf32>
    %231 = math.exp %230 : vector<8x32xf32>
    %cst_76 = arith.constant 1.000000e+00 : f32
    %232 = vector.broadcast %cst_76 : f32 to vector<8x32xf32>
    %233 = arith.addf %232, %231 : vector<8x32xf32>
    %234 = arith.divf %232, %233 : vector<8x32xf32>
    %235 = vector.extract_strided_slice %203 {offsets = [0, 32], sizes = [8, 32], strides = [1, 1]} : vector<8x128xf32> to vector<8x32xf32>
    %236 = arith.negf %235 : vector<8x32xf32>
    %237 = math.exp %236 : vector<8x32xf32>
    %cst_77 = arith.constant 1.000000e+00 : f32
    %238 = vector.broadcast %cst_77 : f32 to vector<8x32xf32>
    %239 = arith.addf %238, %237 : vector<8x32xf32>
    %240 = arith.divf %238, %239 : vector<8x32xf32>
    %241 = vector.extract_strided_slice %203 {offsets = [0, 64], sizes = [8, 32], strides = [1, 1]} : vector<8x128xf32> to vector<8x32xf32>
    %242 = math.tanh %241 : vector<8x32xf32>
    %243 = vector.extract_strided_slice %203 {offsets = [0, 96], sizes = [8, 32], strides = [1, 1]} : vector<8x128xf32> to vector<8x32xf32>
    %244 = arith.negf %243 : vector<8x32xf32>
    %245 = math.exp %244 : vector<8x32xf32>
    %cst_78 = arith.constant 1.000000e+00 : f32
    %246 = vector.broadcast %cst_78 : f32 to vector<8x32xf32>
    %247 = arith.addf %246, %245 : vector<8x32xf32>
    %248 = arith.divf %246, %247 : vector<8x32xf32>
    %249 = arith.mulf %240, %191 : vector<8x32xf32>
    %250 = arith.mulf %234, %242 : vector<8x32xf32>
    %251 = arith.addf %249, %250 : vector<8x32xf32>
    %252 = math.tanh %251 : vector<8x32xf32>
    %253 = arith.mulf %248, %252 : vector<8x32xf32>
    %c24_79 = arith.constant 24 : index
    %c0_80 = arith.constant 0 : index
    %254 = vector.load %arg21[%c24_79, %c0_80] : memref<64x64xf32, #tpu.memory_space<vmem>>, vector<8x32xf32>
    tpu.vector_store %arg21[%c24_79, %c0_80], %228 {strides = array<i32>} : memref<64x64xf32, #tpu.memory_space<vmem>>, vector<8x32xf32>,
    %c32_81 = arith.constant 32 : index
    %c32_82 = arith.constant 32 : index
    %255 = vector.load %arg21[%c32_81, %c32_82] : memref<64x64xf32, #tpu.memory_space<vmem>>, vector<8x32xf32>
    tpu.vector_store %arg21[%c32_81, %c32_82], %253 {strides = array<i32>} : memref<64x64xf32, #tpu.memory_space<vmem>>, vector<8x32xf32>,
    %c32_83 = arith.constant 32 : index
    %c0_84 = arith.constant 0 : index
    %256 = vector.load %arg20[%c32_83, %c0_84] : memref<64x256xf32, #tpu.memory_space<vmem>>, vector<8x128xf32>
    %c0_85 = arith.constant 0 : index
    %c0_86 = arith.constant 0 : index
    %257 = vector.load %arg6[%c0_85, %c0_86] : memref<32x128xf32, #tpu.memory_space<vmem>>, vector<32x128xf32>
    %cst_87 = arith.constant dense<0.000000e+00> : vector<8x128xf32>
    %258 = tpu.matmul %228, %257, %cst_87 {dimension_numbers = #tpu.dot_dimension_numbers<[1], [0], [0], [1], [0, 0, 1, 1], [], []>} : vector<8x32xf32>, vector<32x128xf32>, vector<8x128xf32> -> vector<8x128xf32>
    %259 = arith.addf %256, %258 : vector<8x128xf32>
    %c24_88 = arith.constant 24 : index
    %c128_89 = arith.constant 128 : index
    %260 = vector.load %arg20[%c24_88, %c128_89] : memref<64x256xf32, #tpu.memory_space<vmem>>, vector<8x128xf32>
    %c0_90 = arith.constant 0 : index
    %c0_91 = arith.constant 0 : index
    %261 = vector.load %arg7[%c0_90, %c0_91] : memref<32x128xf32, #tpu.memory_space<vmem>>, vector<32x128xf32>
    %cst_92 = arith.constant dense<0.000000e+00> : vector<8x128xf32>
    %262 = tpu.matmul %253, %261, %cst_92 {dimension_numbers = #tpu.dot_dimension_numbers<[1], [0], [0], [1], [0, 0, 1, 1], [], []>} : vector<8x32xf32>, vector<32x128xf32>, vector<8x128xf32> -> vector<8x128xf32>
    %263 = arith.addf %260, %262 : vector<8x128xf32>
    %264 = vector.extract_strided_slice %259 {offsets = [0, 0], sizes = [8, 32], strides = [1, 1]} : vector<8x128xf32> to vector<8x32xf32>
    %265 = arith.negf %264 : vector<8x32xf32>
    %266 = math.exp %265 : vector<8x32xf32>
    %cst_93 = arith.constant 1.000000e+00 : f32
    %267 = vector.broadcast %cst_93 : f32 to vector<8x32xf32>
    %268 = arith.addf %267, %266 : vector<8x32xf32>
    %269 = arith.divf %267, %268 : vector<8x32xf32>
    %270 = vector.extract_strided_slice %259 {offsets = [0, 32], sizes = [8, 32], strides = [1, 1]} : vector<8x128xf32> to vector<8x32xf32>
    %271 = arith.negf %270 : vector<8x32xf32>
    %272 = math.exp %271 : vector<8x32xf32>
    %cst_94 = arith.constant 1.000000e+00 : f32
    %273 = vector.broadcast %cst_94 : f32 to vector<8x32xf32>
    %274 = arith.addf %273, %272 : vector<8x32xf32>
    %275 = arith.divf %273, %274 : vector<8x32xf32>
    %276 = vector.extract_strided_slice %259 {offsets = [0, 64], sizes = [8, 32], strides = [1, 1]} : vector<8x128xf32> to vector<8x32xf32>
    %277 = math.tanh %276 : vector<8x32xf32>
    %278 = vector.extract_strided_slice %259 {offsets = [0, 96], sizes = [8, 32], strides = [1, 1]} : vector<8x128xf32> to vector<8x32xf32>
    %279 = arith.negf %278 : vector<8x32xf32>
    %280 = math.exp %279 : vector<8x32xf32>
    %cst_95 = arith.constant 1.000000e+00 : f32
    %281 = vector.broadcast %cst_95 : f32 to vector<8x32xf32>
    %282 = arith.addf %281, %280 : vector<8x32xf32>
    %283 = arith.divf %281, %282 : vector<8x32xf32>
    %284 = arith.mulf %275, %226 : vector<8x32xf32>
    %285 = arith.mulf %269, %277 : vector<8x32xf32>
    %286 = arith.addf %284, %285 : vector<8x32xf32>
    %287 = math.tanh %286 : vector<8x32xf32>
    %288 = arith.mulf %283, %287 : vector<8x32xf32>
    %289 = vector.extract_strided_slice %263 {offsets = [0, 0], sizes = [8, 32], strides = [1, 1]} : vector<8x128xf32> to vector<8x32xf32>
    %290 = arith.negf %289 : vector<8x32xf32>
    %291 = math.exp %290 : vector<8x32xf32>
    %cst_96 = arith.constant 1.000000e+00 : f32
    %292 = vector.broadcast %cst_96 : f32 to vector<8x32xf32>
    %293 = arith.addf %292, %291 : vector<8x32xf32>
    %294 = arith.divf %292, %293 : vector<8x32xf32>
    %295 = vector.extract_strided_slice %263 {offsets = [0, 32], sizes = [8, 32], strides = [1, 1]} : vector<8x128xf32> to vector<8x32xf32>
    %296 = arith.negf %295 : vector<8x32xf32>
    %297 = math.exp %296 : vector<8x32xf32>
    %cst_97 = arith.constant 1.000000e+00 : f32
    %298 = vector.broadcast %cst_97 : f32 to vector<8x32xf32>
    %299 = arith.addf %298, %297 : vector<8x32xf32>
    %300 = arith.divf %298, %299 : vector<8x32xf32>
    %301 = vector.extract_strided_slice %263 {offsets = [0, 64], sizes = [8, 32], strides = [1, 1]} : vector<8x128xf32> to vector<8x32xf32>
    %302 = math.tanh %301 : vector<8x32xf32>
    %303 = vector.extract_strided_slice %263 {offsets = [0, 96], sizes = [8, 32], strides = [1, 1]} : vector<8x128xf32> to vector<8x32xf32>
    %304 = arith.negf %303 : vector<8x32xf32>
    %305 = math.exp %304 : vector<8x32xf32>
    %cst_98 = arith.constant 1.000000e+00 : f32
    %306 = vector.broadcast %cst_98 : f32 to vector<8x32xf32>
    %307 = arith.addf %306, %305 : vector<8x32xf32>
    %308 = arith.divf %306, %307 : vector<8x32xf32>
    %309 = arith.mulf %300, %251 : vector<8x32xf32>
    %310 = arith.mulf %294, %302 : vector<8x32xf32>
    %311 = arith.addf %309, %310 : vector<8x32xf32>
    %312 = math.tanh %311 : vector<8x32xf32>
    %313 = arith.mulf %308, %312 : vector<8x32xf32>
    %c32_99 = arith.constant 32 : index
    %c0_100 = arith.constant 0 : index
    %314 = vector.load %arg21[%c32_99, %c0_100] : memref<64x64xf32, #tpu.memory_space<vmem>>, vector<8x32xf32>
    tpu.vector_store %arg21[%c32_99, %c0_100], %288 {strides = array<i32>} : memref<64x64xf32, #tpu.memory_space<vmem>>, vector<8x32xf32>,
    %c24_101 = arith.constant 24 : index
    %c32_102 = arith.constant 32 : index
    %315 = vector.load %arg21[%c24_101, %c32_102] : memref<64x64xf32, #tpu.memory_space<vmem>>, vector<8x32xf32>
    tpu.vector_store %arg21[%c24_101, %c32_102], %313 {strides = array<i32>} : memref<64x64xf32, #tpu.memory_space<vmem>>, vector<8x32xf32>,
    %c40_103 = arith.constant 40 : index
    %c0_104 = arith.constant 0 : index
    %316 = vector.load %arg20[%c40_103, %c0_104] : memref<64x256xf32, #tpu.memory_space<vmem>>, vector<8x128xf32>
    %c0_105 = arith.constant 0 : index
    %c0_106 = arith.constant 0 : index
    %317 = vector.load %arg6[%c0_105, %c0_106] : memref<32x128xf32, #tpu.memory_space<vmem>>, vector<32x128xf32>
    %cst_107 = arith.constant dense<0.000000e+00> : vector<8x128xf32>
    %318 = tpu.matmul %288, %317, %cst_107 {dimension_numbers = #tpu.dot_dimension_numbers<[1], [0], [0], [1], [0, 0, 1, 1], [], []>} : vector<8x32xf32>, vector<32x128xf32>, vector<8x128xf32> -> vector<8x128xf32>
    %319 = arith.addf %316, %318 : vector<8x128xf32>
    %c16_108 = arith.constant 16 : index
    %c128_109 = arith.constant 128 : index
    %320 = vector.load %arg20[%c16_108, %c128_109] : memref<64x256xf32, #tpu.memory_space<vmem>>, vector<8x128xf32>
    %c0_110 = arith.constant 0 : index
    %c0_111 = arith.constant 0 : index
    %321 = vector.load %arg7[%c0_110, %c0_111] : memref<32x128xf32, #tpu.memory_space<vmem>>, vector<32x128xf32>
    %cst_112 = arith.constant dense<0.000000e+00> : vector<8x128xf32>
    %322 = tpu.matmul %313, %321, %cst_112 {dimension_numbers = #tpu.dot_dimension_numbers<[1], [0], [0], [1], [0, 0, 1, 1], [], []>} : vector<8x32xf32>, vector<32x128xf32>, vector<8x128xf32> -> vector<8x128xf32>
    %323 = arith.addf %320, %322 : vector<8x128xf32>
    %324 = vector.extract_strided_slice %319 {offsets = [0, 0], sizes = [8, 32], strides = [1, 1]} : vector<8x128xf32> to vector<8x32xf32>
    %325 = arith.negf %324 : vector<8x32xf32>
    %326 = math.exp %325 : vector<8x32xf32>
    %cst_113 = arith.constant 1.000000e+00 : f32
    %327 = vector.broadcast %cst_113 : f32 to vector<8x32xf32>
    %328 = arith.addf %327, %326 : vector<8x32xf32>
    %329 = arith.divf %327, %328 : vector<8x32xf32>
    %330 = vector.extract_strided_slice %319 {offsets = [0, 32], sizes = [8, 32], strides = [1, 1]} : vector<8x128xf32> to vector<8x32xf32>
    %331 = arith.negf %330 : vector<8x32xf32>
    %332 = math.exp %331 : vector<8x32xf32>
    %cst_114 = arith.constant 1.000000e+00 : f32
    %333 = vector.broadcast %cst_114 : f32 to vector<8x32xf32>
    %334 = arith.addf %333, %332 : vector<8x32xf32>
    %335 = arith.divf %333, %334 : vector<8x32xf32>
    %336 = vector.extract_strided_slice %319 {offsets = [0, 64], sizes = [8, 32], strides = [1, 1]} : vector<8x128xf32> to vector<8x32xf32>
    %337 = math.tanh %336 : vector<8x32xf32>
    %338 = vector.extract_strided_slice %319 {offsets = [0, 96], sizes = [8, 32], strides = [1, 1]} : vector<8x128xf32> to vector<8x32xf32>
    %339 = arith.negf %338 : vector<8x32xf32>
    %340 = math.exp %339 : vector<8x32xf32>
    %cst_115 = arith.constant 1.000000e+00 : f32
    %341 = vector.broadcast %cst_115 : f32 to vector<8x32xf32>
    %342 = arith.addf %341, %340 : vector<8x32xf32>
    %343 = arith.divf %341, %342 : vector<8x32xf32>
    %344 = arith.mulf %335, %286 : vector<8x32xf32>
    %345 = arith.mulf %329, %337 : vector<8x32xf32>
    %346 = arith.addf %344, %345 : vector<8x32xf32>
    %347 = math.tanh %346 : vector<8x32xf32>
    %348 = arith.mulf %343, %347 : vector<8x32xf32>
    %349 = vector.extract_strided_slice %323 {offsets = [0, 0], sizes = [8, 32], strides = [1, 1]} : vector<8x128xf32> to vector<8x32xf32>
    %350 = arith.negf %349 : vector<8x32xf32>
    %351 = math.exp %350 : vector<8x32xf32>
    %cst_116 = arith.constant 1.000000e+00 : f32
    %352 = vector.broadcast %cst_116 : f32 to vector<8x32xf32>
    %353 = arith.addf %352, %351 : vector<8x32xf32>
    %354 = arith.divf %352, %353 : vector<8x32xf32>
    %355 = vector.extract_strided_slice %323 {offsets = [0, 32], sizes = [8, 32], strides = [1, 1]} : vector<8x128xf32> to vector<8x32xf32>
    %356 = arith.negf %355 : vector<8x32xf32>
    %357 = math.exp %356 : vector<8x32xf32>
    %cst_117 = arith.constant 1.000000e+00 : f32
    %358 = vector.broadcast %cst_117 : f32 to vector<8x32xf32>
    %359 = arith.addf %358, %357 : vector<8x32xf32>
    %360 = arith.divf %358, %359 : vector<8x32xf32>
    %361 = vector.extract_strided_slice %323 {offsets = [0, 64], sizes = [8, 32], strides = [1, 1]} : vector<8x128xf32> to vector<8x32xf32>
    %362 = math.tanh %361 : vector<8x32xf32>
    %363 = vector.extract_strided_slice %323 {offsets = [0, 96], sizes = [8, 32], strides = [1, 1]} : vector<8x128xf32> to vector<8x32xf32>
    %364 = arith.negf %363 : vector<8x32xf32>
    %365 = math.exp %364 : vector<8x32xf32>
    %cst_118 = arith.constant 1.000000e+00 : f32
    %366 = vector.broadcast %cst_118 : f32 to vector<8x32xf32>
    %367 = arith.addf %366, %365 : vector<8x32xf32>
    %368 = arith.divf %366, %367 : vector<8x32xf32>
    %369 = arith.mulf %360, %311 : vector<8x32xf32>
    %370 = arith.mulf %354, %362 : vector<8x32xf32>
    %371 = arith.addf %369, %370 : vector<8x32xf32>
    %372 = math.tanh %371 : vector<8x32xf32>
    %373 = arith.mulf %368, %372 : vector<8x32xf32>
    %c40_119 = arith.constant 40 : index
    %c0_120 = arith.constant 0 : index
    %374 = vector.load %arg21[%c40_119, %c0_120] : memref<64x64xf32, #tpu.memory_space<vmem>>, vector<8x32xf32>
    tpu.vector_store %arg21[%c40_119, %c0_120], %348 {strides = array<i32>} : memref<64x64xf32, #tpu.memory_space<vmem>>, vector<8x32xf32>,
    %c16_121 = arith.constant 16 : index
    %c32_122 = arith.constant 32 : index
    %375 = vector.load %arg21[%c16_121, %c32_122] : memref<64x64xf32, #tpu.memory_space<vmem>>, vector<8x32xf32>
    tpu.vector_store %arg21[%c16_121, %c32_122], %373 {strides = array<i32>} : memref<64x64xf32, #tpu.memory_space<vmem>>, vector<8x32xf32>,
    %c48_123 = arith.constant 48 : index
    %c0_124 = arith.constant 0 : index
    %376 = vector.load %arg20[%c48_123, %c0_124] : memref<64x256xf32, #tpu.memory_space<vmem>>, vector<8x128xf32>
    %c0_125 = arith.constant 0 : index
    %c0_126 = arith.constant 0 : index
    %377 = vector.load %arg6[%c0_125, %c0_126] : memref<32x128xf32, #tpu.memory_space<vmem>>, vector<32x128xf32>
    %cst_127 = arith.constant dense<0.000000e+00> : vector<8x128xf32>
    %378 = tpu.matmul %348, %377, %cst_127 {dimension_numbers = #tpu.dot_dimension_numbers<[1], [0], [0], [1], [0, 0, 1, 1], [], []>} : vector<8x32xf32>, vector<32x128xf32>, vector<8x128xf32> -> vector<8x128xf32>
    %379 = arith.addf %376, %378 : vector<8x128xf32>
    %c8_128 = arith.constant 8 : index
    %c128_129 = arith.constant 128 : index
    %380 = vector.load %arg20[%c8_128, %c128_129] : memref<64x256xf32, #tpu.memory_space<vmem>>, vector<8x128xf32>
    %c0_130 = arith.constant 0 : index
    %c0_131 = arith.constant 0 : index
    %381 = vector.load %arg7[%c0_130, %c0_131] : memref<32x128xf32, #tpu.memory_space<vmem>>, vector<32x128xf32>
    %cst_132 = arith.constant dense<0.000000e+00> : vector<8x128xf32>
    %382 = tpu.matmul %373, %381, %cst_132 {dimension_numbers = #tpu.dot_dimension_numbers<[1], [0], [0], [1], [0, 0, 1, 1], [], []>} : vector<8x32xf32>, vector<32x128xf32>, vector<8x128xf32> -> vector<8x128xf32>
    %383 = arith.addf %380, %382 : vector<8x128xf32>
    %384 = vector.extract_strided_slice %379 {offsets = [0, 0], sizes = [8, 32], strides = [1, 1]} : vector<8x128xf32> to vector<8x32xf32>
    %385 = arith.negf %384 : vector<8x32xf32>
    %386 = math.exp %385 : vector<8x32xf32>
    %cst_133 = arith.constant 1.000000e+00 : f32
    %387 = vector.broadcast %cst_133 : f32 to vector<8x32xf32>
    %388 = arith.addf %387, %386 : vector<8x32xf32>
    %389 = arith.divf %387, %388 : vector<8x32xf32>
    %390 = vector.extract_strided_slice %379 {offsets = [0, 32], sizes = [8, 32], strides = [1, 1]} : vector<8x128xf32> to vector<8x32xf32>
    %391 = arith.negf %390 : vector<8x32xf32>
    %392 = math.exp %391 : vector<8x32xf32>
    %cst_134 = arith.constant 1.000000e+00 : f32
    %393 = vector.broadcast %cst_134 : f32 to vector<8x32xf32>
    %394 = arith.addf %393, %392 : vector<8x32xf32>
    %395 = arith.divf %393, %394 : vector<8x32xf32>
    %396 = vector.extract_strided_slice %379 {offsets = [0, 64], sizes = [8, 32], strides = [1, 1]} : vector<8x128xf32> to vector<8x32xf32>
    %397 = math.tanh %396 : vector<8x32xf32>
    %398 = vector.extract_strided_slice %379 {offsets = [0, 96], sizes = [8, 32], strides = [1, 1]} : vector<8x128xf32> to vector<8x32xf32>
    %399 = arith.negf %398 : vector<8x32xf32>
    %400 = math.exp %399 : vector<8x32xf32>
    %cst_135 = arith.constant 1.000000e+00 : f32
    %401 = vector.broadcast %cst_135 : f32 to vector<8x32xf32>
    %402 = arith.addf %401, %400 : vector<8x32xf32>
    %403 = arith.divf %401, %402 : vector<8x32xf32>
    %404 = arith.mulf %395, %346 : vector<8x32xf32>
    %405 = arith.mulf %389, %397 : vector<8x32xf32>
    %406 = arith.addf %404, %405 : vector<8x32xf32>
    %407 = math.tanh %406 : vector<8x32xf32>
    %408 = arith.mulf %403, %407 : vector<8x32xf32>
    %409 = vector.extract_strided_slice %383 {offsets = [0, 0], sizes = [8, 32], strides = [1, 1]} : vector<8x128xf32> to vector<8x32xf32>
    %410 = arith.negf %409 : vector<8x32xf32>
    %411 = math.exp %410 : vector<8x32xf32>
    %cst_136 = arith.constant 1.000000e+00 : f32
    %412 = vector.broadcast %cst_136 : f32 to vector<8x32xf32>
    %413 = arith.addf %412, %411 : vector<8x32xf32>
    %414 = arith.divf %412, %413 : vector<8x32xf32>
    %415 = vector.extract_strided_slice %383 {offsets = [0, 32], sizes = [8, 32], strides = [1, 1]} : vector<8x128xf32> to vector<8x32xf32>
    %416 = arith.negf %415 : vector<8x32xf32>
    %417 = math.exp %416 : vector<8x32xf32>
    %cst_137 = arith.constant 1.000000e+00 : f32
    %418 = vector.broadcast %cst_137 : f32 to vector<8x32xf32>
    %419 = arith.addf %418, %417 : vector<8x32xf32>
    %420 = arith.divf %418, %419 : vector<8x32xf32>
    %421 = vector.extract_strided_slice %383 {offsets = [0, 64], sizes = [8, 32], strides = [1, 1]} : vector<8x128xf32> to vector<8x32xf32>
    %422 = math.tanh %421 : vector<8x32xf32>
    %423 = vector.extract_strided_slice %383 {offsets = [0, 96], sizes = [8, 32], strides = [1, 1]} : vector<8x128xf32> to vector<8x32xf32>
    %424 = arith.negf %423 : vector<8x32xf32>
    %425 = math.exp %424 : vector<8x32xf32>
    %cst_138 = arith.constant 1.000000e+00 : f32
    %426 = vector.broadcast %cst_138 : f32 to vector<8x32xf32>
    %427 = arith.addf %426, %425 : vector<8x32xf32>
    %428 = arith.divf %426, %427 : vector<8x32xf32>
    %429 = arith.mulf %420, %371 : vector<8x32xf32>
    %430 = arith.mulf %414, %422 : vector<8x32xf32>
    %431 = arith.addf %429, %430 : vector<8x32xf32>
    %432 = math.tanh %431 : vector<8x32xf32>
    %433 = arith.mulf %428, %432 : vector<8x32xf32>
    %c48_139 = arith.constant 48 : index
    %c0_140 = arith.constant 0 : index
    %434 = vector.load %arg21[%c48_139, %c0_140] : memref<64x64xf32, #tpu.memory_space<vmem>>, vector<8x32xf32>
    tpu.vector_store %arg21[%c48_139, %c0_140], %408 {strides = array<i32>} : memref<64x64xf32, #tpu.memory_space<vmem>>, vector<8x32xf32>,
    %c8_141 = arith.constant 8 : index
    %c32_142 = arith.constant 32 : index
    %435 = vector.load %arg21[%c8_141, %c32_142] : memref<64x64xf32, #tpu.memory_space<vmem>>, vector<8x32xf32>
    tpu.vector_store %arg21[%c8_141, %c32_142], %433 {strides = array<i32>} : memref<64x64xf32, #tpu.memory_space<vmem>>, vector<8x32xf32>,
    %c56_143 = arith.constant 56 : index
    %c0_144 = arith.constant 0 : index
    %436 = vector.load %arg20[%c56_143, %c0_144] : memref<64x256xf32, #tpu.memory_space<vmem>>, vector<8x128xf32>
    %c0_145 = arith.constant 0 : index
    %c0_146 = arith.constant 0 : index
    %437 = vector.load %arg6[%c0_145, %c0_146] : memref<32x128xf32, #tpu.memory_space<vmem>>, vector<32x128xf32>
    %cst_147 = arith.constant dense<0.000000e+00> : vector<8x128xf32>
    %438 = tpu.matmul %408, %437, %cst_147 {dimension_numbers = #tpu.dot_dimension_numbers<[1], [0], [0], [1], [0, 0, 1, 1], [], []>} : vector<8x32xf32>, vector<32x128xf32>, vector<8x128xf32> -> vector<8x128xf32>
    %439 = arith.addf %436, %438 : vector<8x128xf32>
    %c0_148 = arith.constant 0 : index
    %c128_149 = arith.constant 128 : index
    %440 = vector.load %arg20[%c0_148, %c128_149] : memref<64x256xf32, #tpu.memory_space<vmem>>, vector<8x128xf32>
    %c0_150 = arith.constant 0 : index
    %c0_151 = arith.constant 0 : index
    %441 = vector.load %arg7[%c0_150, %c0_151] : memref<32x128xf32, #tpu.memory_space<vmem>>, vector<32x128xf32>
    %cst_152 = arith.constant dense<0.000000e+00> : vector<8x128xf32>
    %442 = tpu.matmul %433, %441, %cst_152 {dimension_numbers = #tpu.dot_dimension_numbers<[1], [0], [0], [1], [0, 0, 1, 1], [], []>} : vector<8x32xf32>, vector<32x128xf32>, vector<8x128xf32> -> vector<8x128xf32>
    %443 = arith.addf %440, %442 : vector<8x128xf32>
    %444 = vector.extract_strided_slice %439 {offsets = [0, 0], sizes = [8, 32], strides = [1, 1]} : vector<8x128xf32> to vector<8x32xf32>
    %445 = arith.negf %444 : vector<8x32xf32>
    %446 = math.exp %445 : vector<8x32xf32>
    %cst_153 = arith.constant 1.000000e+00 : f32
    %447 = vector.broadcast %cst_153 : f32 to vector<8x32xf32>
    %448 = arith.addf %447, %446 : vector<8x32xf32>
    %449 = arith.divf %447, %448 : vector<8x32xf32>
    %450 = vector.extract_strided_slice %439 {offsets = [0, 32], sizes = [8, 32], strides = [1, 1]} : vector<8x128xf32> to vector<8x32xf32>
    %451 = arith.negf %450 : vector<8x32xf32>
    %452 = math.exp %451 : vector<8x32xf32>
    %cst_154 = arith.constant 1.000000e+00 : f32
    %453 = vector.broadcast %cst_154 : f32 to vector<8x32xf32>
    %454 = arith.addf %453, %452 : vector<8x32xf32>
    %455 = arith.divf %453, %454 : vector<8x32xf32>
    %456 = vector.extract_strided_slice %439 {offsets = [0, 64], sizes = [8, 32], strides = [1, 1]} : vector<8x128xf32> to vector<8x32xf32>
    %457 = math.tanh %456 : vector<8x32xf32>
    %458 = vector.extract_strided_slice %439 {offsets = [0, 96], sizes = [8, 32], strides = [1, 1]} : vector<8x128xf32> to vector<8x32xf32>
    %459 = arith.negf %458 : vector<8x32xf32>
    %460 = math.exp %459 : vector<8x32xf32>
    %cst_155 = arith.constant 1.000000e+00 : f32
    %461 = vector.broadcast %cst_155 : f32 to vector<8x32xf32>
    %462 = arith.addf %461, %460 : vector<8x32xf32>
    %463 = arith.divf %461, %462 : vector<8x32xf32>
    %464 = arith.mulf %455, %406 : vector<8x32xf32>
    %465 = arith.mulf %449, %457 : vector<8x32xf32>
    %466 = arith.addf %464, %465 : vector<8x32xf32>
    %467 = math.tanh %466 : vector<8x32xf32>
    %468 = arith.mulf %463, %467 : vector<8x32xf32>
    %469 = vector.extract_strided_slice %443 {offsets = [0, 0], sizes = [8, 32], strides = [1, 1]} : vector<8x128xf32> to vector<8x32xf32>
    %470 = arith.negf %469 : vector<8x32xf32>
    %471 = math.exp %470 : vector<8x32xf32>
    %cst_156 = arith.constant 1.000000e+00 : f32
    %472 = vector.broadcast %cst_156 : f32 to vector<8x32xf32>
    %473 = arith.addf %472, %471 : vector<8x32xf32>
    %474 = arith.divf %472, %473 : vector<8x32xf32>
    %475 = vector.extract_strided_slice %443 {offsets = [0, 32], sizes = [8, 32], strides = [1, 1]} : vector<8x128xf32> to vector<8x32xf32>
    %476 = arith.negf %475 : vector<8x32xf32>
    %477 = math.exp %476 : vector<8x32xf32>
    %cst_157 = arith.constant 1.000000e+00 : f32
    %478 = vector.broadcast %cst_157 : f32 to vector<8x32xf32>
    %479 = arith.addf %478, %477 : vector<8x32xf32>
    %480 = arith.divf %478, %479 : vector<8x32xf32>
    %481 = vector.extract_strided_slice %443 {offsets = [0, 64], sizes = [8, 32], strides = [1, 1]} : vector<8x128xf32> to vector<8x32xf32>
    %482 = math.tanh %481 : vector<8x32xf32>
    %483 = vector.extract_strided_slice %443 {offsets = [0, 96], sizes = [8, 32], strides = [1, 1]} : vector<8x128xf32> to vector<8x32xf32>
    %484 = arith.negf %483 : vector<8x32xf32>
    %485 = math.exp %484 : vector<8x32xf32>
    %cst_158 = arith.constant 1.000000e+00 : f32
    %486 = vector.broadcast %cst_158 : f32 to vector<8x32xf32>
    %487 = arith.addf %486, %485 : vector<8x32xf32>
    %488 = arith.divf %486, %487 : vector<8x32xf32>
    %489 = arith.mulf %480, %431 : vector<8x32xf32>
    %490 = arith.mulf %474, %482 : vector<8x32xf32>
    %491 = arith.addf %489, %490 : vector<8x32xf32>
    %492 = math.tanh %491 : vector<8x32xf32>
    %493 = arith.mulf %488, %492 : vector<8x32xf32>
    %c56_159 = arith.constant 56 : index
    %c0_160 = arith.constant 0 : index
    %494 = vector.load %arg21[%c56_159, %c0_160] : memref<64x64xf32, #tpu.memory_space<vmem>>, vector<8x32xf32>
    tpu.vector_store %arg21[%c56_159, %c0_160], %468 {strides = array<i32>} : memref<64x64xf32, #tpu.memory_space<vmem>>, vector<8x32xf32>,
    %c0_161 = arith.constant 0 : index
    %c32_162 = arith.constant 32 : index
    %495 = vector.load %arg21[%c0_161, %c32_162] : memref<64x64xf32, #tpu.memory_space<vmem>>, vector<8x32xf32>
    tpu.vector_store %arg21[%c0_161, %c32_162], %493 {strides = array<i32>} : memref<64x64xf32, #tpu.memory_space<vmem>>, vector<8x32xf32>,
    %c0_163 = arith.constant 0 : index
    %c0_164 = arith.constant 0 : index
    %496 = vector.load %arg8[%c0_163, %c0_164] : memref<64x32xf32, #tpu.memory_space<vmem>>, vector<32x32xf32>
    %cst_165 = arith.constant dense<0.000000e+00> : vector<8x32xf32>
    %497 = tpu.matmul %468, %496, %cst_165 {dimension_numbers = #tpu.dot_dimension_numbers<[1], [0], [0], [1], [0, 0, 1, 1], [], []>} : vector<8x32xf32>, vector<32x32xf32>, vector<8x32xf32> -> vector<8x32xf32>
    %c32_166 = arith.constant 32 : index
    %c0_167 = arith.constant 0 : index
    %498 = vector.load %arg8[%c32_166, %c0_167] : memref<64x32xf32, #tpu.memory_space<vmem>>, vector<32x32xf32>
    %cst_168 = arith.constant dense<0.000000e+00> : vector<8x32xf32>
    %499 = tpu.matmul %493, %498, %cst_168 {dimension_numbers = #tpu.dot_dimension_numbers<[1], [0], [0], [1], [0, 0, 1, 1], [], []>} : vector<8x32xf32>, vector<32x32xf32>, vector<8x32xf32> -> vector<8x32xf32>
    %500 = arith.addf %497, %499 : vector<8x32xf32>
    %c0_169 = arith.constant 0 : index
    %c0_170 = arith.constant 0 : index
    %501 = vector.load %arg9[%c0_169, %c0_170] : memref<1x32xf32, #tpu.memory_space<vmem>>, vector<1x32xf32>
    %502 = vector.broadcast %501 : vector<1x32xf32> to vector<8x32xf32>
    %503 = arith.addf %500, %502 : vector<8x32xf32>
    %c0_171 = arith.constant 0 : index
    %c0_172 = arith.constant 0 : index
    %504 = vector.load %arg10[%c0_171, %c0_172] : memref<64x32xf32, #tpu.memory_space<vmem>>, vector<32x32xf32>
    %cst_173 = arith.constant dense<0.000000e+00> : vector<8x32xf32>
    %505 = tpu.matmul %466, %504, %cst_173 {dimension_numbers = #tpu.dot_dimension_numbers<[1], [0], [0], [1], [0, 0, 1, 1], [], []>} : vector<8x32xf32>, vector<32x32xf32>, vector<8x32xf32> -> vector<8x32xf32>
    %c32_174 = arith.constant 32 : index
    %c0_175 = arith.constant 0 : index
    %506 = vector.load %arg10[%c32_174, %c0_175] : memref<64x32xf32, #tpu.memory_space<vmem>>, vector<32x32xf32>
    %cst_176 = arith.constant dense<0.000000e+00> : vector<8x32xf32>
    %507 = tpu.matmul %491, %506, %cst_176 {dimension_numbers = #tpu.dot_dimension_numbers<[1], [0], [0], [1], [0, 0, 1, 1], [], []>} : vector<8x32xf32>, vector<32x32xf32>, vector<8x32xf32> -> vector<8x32xf32>
    %508 = arith.addf %505, %507 : vector<8x32xf32>
    %c0_177 = arith.constant 0 : index
    %c0_178 = arith.constant 0 : index
    %509 = vector.load %arg11[%c0_177, %c0_178] : memref<1x32xf32, #tpu.memory_space<vmem>>, vector<1x32xf32>
    %510 = vector.broadcast %509 : vector<1x32xf32> to vector<8x32xf32>
    %511 = arith.addf %508, %510 : vector<8x32xf32>
    %c0_179 = arith.constant 0 : index
    %c0_180 = arith.constant 0 : index
    %512 = vector.load %arg21[%c0_179, %c0_180] : memref<64x64xf32, #tpu.memory_space<vmem>>, vector<8x64xf32>
    %c0_181 = arith.constant 0 : index
    %c0_182 = arith.constant 0 : index
    %513 = vector.load %arg12[%c0_181, %c0_182] : memref<1x64xf32, #tpu.memory_space<vmem>>, vector<1x64xf32>
    %514 = vector.broadcast %513 : vector<1x64xf32> to vector<8x64xf32>
    %515 = arith.mulf %512, %514 : vector<8x64xf32>
    %cst_183 = arith.constant dense<0.000000e+00> : vector<8xf32>
    %516 = vector.multi_reduction <add>, %515, %cst_183 [1] : vector<8x64xf32> to vector<8xf32>
    %517 = vector.shape_cast %516 : vector<8xf32> to vector<8x1xf32>
    %c0_184 = arith.constant 0 : index
    %c0_185 = arith.constant 0 : index
    %518 = vector.load %arg14[%c0_184, %c0_185] : memref<1x1xf32, #tpu.memory_space<vmem>>, vector<1x1xf32>
    %519 = vector.extract %518[0, 0] : f32 from vector<1x1xf32>
    %520 = vector.broadcast %519 : f32 to vector<8x1xf32>
    %521 = arith.addf %517, %520 : vector<8x1xf32>
    %c0_186 = arith.constant 0 : index
    %c0_187 = arith.constant 0 : index
    %522 = vector.load %arg22[%c0_186, %c0_187] : memref<8x8xf32, #tpu.memory_space<vmem>>, vector<8x1xf32>
    tpu.vector_store %arg22[%c0_186, %c0_187], %521 {strides = array<i32>} : memref<8x8xf32, #tpu.memory_space<vmem>>, vector<8x1xf32>,
    %c8_188 = arith.constant 8 : index
    %c0_189 = arith.constant 0 : index
    %523 = vector.load %arg21[%c8_188, %c0_189] : memref<64x64xf32, #tpu.memory_space<vmem>>, vector<8x64xf32>
    %c0_190 = arith.constant 0 : index
    %c0_191 = arith.constant 0 : index
    %524 = vector.load %arg12[%c0_190, %c0_191] : memref<1x64xf32, #tpu.memory_space<vmem>>, vector<1x64xf32>
    %525 = vector.broadcast %524 : vector<1x64xf32> to vector<8x64xf32>
    %526 = arith.mulf %523, %525 : vector<8x64xf32>
    %cst_192 = arith.constant dense<0.000000e+00> : vector<8xf32>
    %527 = vector.multi_reduction <add>, %526, %cst_192 [1] : vector<8x64xf32> to vector<8xf32>
    %528 = vector.shape_cast %527 : vector<8xf32> to vector<8x1xf32>
    %c0_193 = arith.constant 0 : index
    %c0_194 = arith.constant 0 : index
    %529 = vector.load %arg14[%c0_193, %c0_194] : memref<1x1xf32, #tpu.memory_space<vmem>>, vector<1x1xf32>
    %530 = vector.extract %529[0, 0] : f32 from vector<1x1xf32>
    %531 = vector.broadcast %530 : f32 to vector<8x1xf32>
    %532 = arith.addf %528, %531 : vector<8x1xf32>
    %c0_195 = arith.constant 0 : index
    %c1 = arith.constant 1 : index
    %533 = vector.load %arg22[%c0_195, %c1] : memref<8x8xf32, #tpu.memory_space<vmem>>, vector<8x1xf32>
    tpu.vector_store %arg22[%c0_195, %c1], %532 {strides = array<i32>} : memref<8x8xf32, #tpu.memory_space<vmem>>, vector<8x1xf32>,
    %c16_196 = arith.constant 16 : index
    %c0_197 = arith.constant 0 : index
    %534 = vector.load %arg21[%c16_196, %c0_197] : memref<64x64xf32, #tpu.memory_space<vmem>>, vector<8x64xf32>
    %c0_198 = arith.constant 0 : index
    %c0_199 = arith.constant 0 : index
    %535 = vector.load %arg12[%c0_198, %c0_199] : memref<1x64xf32, #tpu.memory_space<vmem>>, vector<1x64xf32>
    %536 = vector.broadcast %535 : vector<1x64xf32> to vector<8x64xf32>
    %537 = arith.mulf %534, %536 : vector<8x64xf32>
    %cst_200 = arith.constant dense<0.000000e+00> : vector<8xf32>
    %538 = vector.multi_reduction <add>, %537, %cst_200 [1] : vector<8x64xf32> to vector<8xf32>
    %539 = vector.shape_cast %538 : vector<8xf32> to vector<8x1xf32>
    %c0_201 = arith.constant 0 : index
    %c0_202 = arith.constant 0 : index
    %540 = vector.load %arg14[%c0_201, %c0_202] : memref<1x1xf32, #tpu.memory_space<vmem>>, vector<1x1xf32>
    %541 = vector.extract %540[0, 0] : f32 from vector<1x1xf32>
    %542 = vector.broadcast %541 : f32 to vector<8x1xf32>
    %543 = arith.addf %539, %542 : vector<8x1xf32>
    %c0_203 = arith.constant 0 : index
    %c2 = arith.constant 2 : index
    %544 = vector.load %arg22[%c0_203, %c2] : memref<8x8xf32, #tpu.memory_space<vmem>>, vector<8x1xf32>
    tpu.vector_store %arg22[%c0_203, %c2], %543 {strides = array<i32>} : memref<8x8xf32, #tpu.memory_space<vmem>>, vector<8x1xf32>,
    %c24_204 = arith.constant 24 : index
    %c0_205 = arith.constant 0 : index
    %545 = vector.load %arg21[%c24_204, %c0_205] : memref<64x64xf32, #tpu.memory_space<vmem>>, vector<8x64xf32>
    %c0_206 = arith.constant 0 : index
    %c0_207 = arith.constant 0 : index
    %546 = vector.load %arg12[%c0_206, %c0_207] : memref<1x64xf32, #tpu.memory_space<vmem>>, vector<1x64xf32>
    %547 = vector.broadcast %546 : vector<1x64xf32> to vector<8x64xf32>
    %548 = arith.mulf %545, %547 : vector<8x64xf32>
    %cst_208 = arith.constant dense<0.000000e+00> : vector<8xf32>
    %549 = vector.multi_reduction <add>, %548, %cst_208 [1] : vector<8x64xf32> to vector<8xf32>
    %550 = vector.shape_cast %549 : vector<8xf32> to vector<8x1xf32>
    %c0_209 = arith.constant 0 : index
    %c0_210 = arith.constant 0 : index
    %551 = vector.load %arg14[%c0_209, %c0_210] : memref<1x1xf32, #tpu.memory_space<vmem>>, vector<1x1xf32>
    %552 = vector.extract %551[0, 0] : f32 from vector<1x1xf32>
    %553 = vector.broadcast %552 : f32 to vector<8x1xf32>
    %554 = arith.addf %550, %553 : vector<8x1xf32>
    %c0_211 = arith.constant 0 : index
    %c3 = arith.constant 3 : index
    %555 = vector.load %arg22[%c0_211, %c3] : memref<8x8xf32, #tpu.memory_space<vmem>>, vector<8x1xf32>
    tpu.vector_store %arg22[%c0_211, %c3], %554 {strides = array<i32>} : memref<8x8xf32, #tpu.memory_space<vmem>>, vector<8x1xf32>,
    %c32_212 = arith.constant 32 : index
    %c0_213 = arith.constant 0 : index
    %556 = vector.load %arg21[%c32_212, %c0_213] : memref<64x64xf32, #tpu.memory_space<vmem>>, vector<8x64xf32>
    %c0_214 = arith.constant 0 : index
    %c0_215 = arith.constant 0 : index
    %557 = vector.load %arg12[%c0_214, %c0_215] : memref<1x64xf32, #tpu.memory_space<vmem>>, vector<1x64xf32>
    %558 = vector.broadcast %557 : vector<1x64xf32> to vector<8x64xf32>
    %559 = arith.mulf %556, %558 : vector<8x64xf32>
    %cst_216 = arith.constant dense<0.000000e+00> : vector<8xf32>
    %560 = vector.multi_reduction <add>, %559, %cst_216 [1] : vector<8x64xf32> to vector<8xf32>
    %561 = vector.shape_cast %560 : vector<8xf32> to vector<8x1xf32>
    %c0_217 = arith.constant 0 : index
    %c0_218 = arith.constant 0 : index
    %562 = vector.load %arg14[%c0_217, %c0_218] : memref<1x1xf32, #tpu.memory_space<vmem>>, vector<1x1xf32>
    %563 = vector.extract %562[0, 0] : f32 from vector<1x1xf32>
    %564 = vector.broadcast %563 : f32 to vector<8x1xf32>
    %565 = arith.addf %561, %564 : vector<8x1xf32>
    %c0_219 = arith.constant 0 : index
    %c4 = arith.constant 4 : index
    %566 = vector.load %arg22[%c0_219, %c4] : memref<8x8xf32, #tpu.memory_space<vmem>>, vector<8x1xf32>
    tpu.vector_store %arg22[%c0_219, %c4], %565 {strides = array<i32>} : memref<8x8xf32, #tpu.memory_space<vmem>>, vector<8x1xf32>,
    %c40_220 = arith.constant 40 : index
    %c0_221 = arith.constant 0 : index
    %567 = vector.load %arg21[%c40_220, %c0_221] : memref<64x64xf32, #tpu.memory_space<vmem>>, vector<8x64xf32>
    %c0_222 = arith.constant 0 : index
    %c0_223 = arith.constant 0 : index
    %568 = vector.load %arg12[%c0_222, %c0_223] : memref<1x64xf32, #tpu.memory_space<vmem>>, vector<1x64xf32>
    %569 = vector.broadcast %568 : vector<1x64xf32> to vector<8x64xf32>
    %570 = arith.mulf %567, %569 : vector<8x64xf32>
    %cst_224 = arith.constant dense<0.000000e+00> : vector<8xf32>
    %571 = vector.multi_reduction <add>, %570, %cst_224 [1] : vector<8x64xf32> to vector<8xf32>
    %572 = vector.shape_cast %571 : vector<8xf32> to vector<8x1xf32>
    %c0_225 = arith.constant 0 : index
    %c0_226 = arith.constant 0 : index
    %573 = vector.load %arg14[%c0_225, %c0_226] : memref<1x1xf32, #tpu.memory_space<vmem>>, vector<1x1xf32>
    %574 = vector.extract %573[0, 0] : f32 from vector<1x1xf32>
    %575 = vector.broadcast %574 : f32 to vector<8x1xf32>
    %576 = arith.addf %572, %575 : vector<8x1xf32>
    %c0_227 = arith.constant 0 : index
    %c5 = arith.constant 5 : index
    %577 = vector.load %arg22[%c0_227, %c5] : memref<8x8xf32, #tpu.memory_space<vmem>>, vector<8x1xf32>
    tpu.vector_store %arg22[%c0_227, %c5], %576 {strides = array<i32>} : memref<8x8xf32, #tpu.memory_space<vmem>>, vector<8x1xf32>,
    %c48_228 = arith.constant 48 : index
    %c0_229 = arith.constant 0 : index
    %578 = vector.load %arg21[%c48_228, %c0_229] : memref<64x64xf32, #tpu.memory_space<vmem>>, vector<8x64xf32>
    %c0_230 = arith.constant 0 : index
    %c0_231 = arith.constant 0 : index
    %579 = vector.load %arg12[%c0_230, %c0_231] : memref<1x64xf32, #tpu.memory_space<vmem>>, vector<1x64xf32>
    %580 = vector.broadcast %579 : vector<1x64xf32> to vector<8x64xf32>
    %581 = arith.mulf %578, %580 : vector<8x64xf32>
    %cst_232 = arith.constant dense<0.000000e+00> : vector<8xf32>
    %582 = vector.multi_reduction <add>, %581, %cst_232 [1] : vector<8x64xf32> to vector<8xf32>
    %583 = vector.shape_cast %582 : vector<8xf32> to vector<8x1xf32>
    %c0_233 = arith.constant 0 : index
    %c0_234 = arith.constant 0 : index
    %584 = vector.load %arg14[%c0_233, %c0_234] : memref<1x1xf32, #tpu.memory_space<vmem>>, vector<1x1xf32>
    %585 = vector.extract %584[0, 0] : f32 from vector<1x1xf32>
    %586 = vector.broadcast %585 : f32 to vector<8x1xf32>
    %587 = arith.addf %583, %586 : vector<8x1xf32>
    %c0_235 = arith.constant 0 : index
    %c6 = arith.constant 6 : index
    %588 = vector.load %arg22[%c0_235, %c6] : memref<8x8xf32, #tpu.memory_space<vmem>>, vector<8x1xf32>
    tpu.vector_store %arg22[%c0_235, %c6], %587 {strides = array<i32>} : memref<8x8xf32, #tpu.memory_space<vmem>>, vector<8x1xf32>,
    %c56_236 = arith.constant 56 : index
    %c0_237 = arith.constant 0 : index
    %589 = vector.load %arg21[%c56_236, %c0_237] : memref<64x64xf32, #tpu.memory_space<vmem>>, vector<8x64xf32>
    %c0_238 = arith.constant 0 : index
    %c0_239 = arith.constant 0 : index
    %590 = vector.load %arg12[%c0_238, %c0_239] : memref<1x64xf32, #tpu.memory_space<vmem>>, vector<1x64xf32>
    %591 = vector.broadcast %590 : vector<1x64xf32> to vector<8x64xf32>
    %592 = arith.mulf %589, %591 : vector<8x64xf32>
    %cst_240 = arith.constant dense<0.000000e+00> : vector<8xf32>
    %593 = vector.multi_reduction <add>, %592, %cst_240 [1] : vector<8x64xf32> to vector<8xf32>
    %594 = vector.shape_cast %593 : vector<8xf32> to vector<8x1xf32>
    %c0_241 = arith.constant 0 : index
    %c0_242 = arith.constant 0 : index
    %595 = vector.load %arg14[%c0_241, %c0_242] : memref<1x1xf32, #tpu.memory_space<vmem>>, vector<1x1xf32>
    %596 = vector.extract %595[0, 0] : f32 from vector<1x1xf32>
    %597 = vector.broadcast %596 : f32 to vector<8x1xf32>
    %598 = arith.addf %594, %597 : vector<8x1xf32>
    %c0_243 = arith.constant 0 : index
    %c7 = arith.constant 7 : index
    %599 = vector.load %arg22[%c0_243, %c7] : memref<8x8xf32, #tpu.memory_space<vmem>>, vector<8x1xf32>
    tpu.vector_store %arg22[%c0_243, %c7], %598 {strides = array<i32>} : memref<8x8xf32, #tpu.memory_space<vmem>>, vector<8x1xf32>,
    %cst_244 = arith.constant 0.000000e+00 : f32
    %600 = vector.broadcast %cst_244 : f32 to vector<8x128xf32>
    %c0_245 = arith.constant 0 : index
    %c0_246 = arith.constant 0 : index
    %c0_247 = arith.constant 0 : index
    %601 = vector.load %arg19[%c0_245, %c0_246, %c0_247] : memref<8x8x128xf32, #tpu.memory_space<vmem>>, vector<1x8x128xf32>
    %602 = vector.shape_cast %601 : vector<1x8x128xf32> to vector<8x128xf32>
    %603 = vector.shape_cast %600 : vector<8x128xf32> to vector<1x8x128xf32>
    tpu.vector_store %arg19[%c0_245, %c0_246, %c0_247], %603 {strides = array<i32>} : memref<8x8x128xf32, #tpu.memory_space<vmem>>, vector<1x8x128xf32>,
    %cst_248 = arith.constant 0.000000e+00 : f32
    %604 = vector.broadcast %cst_248 : f32 to vector<8x128xf32>
    %c0_249 = arith.constant 0 : index
    %c0_250 = arith.constant 0 : index
    %605 = vector.load %arg23[%c0_249, %c0_250] : memref<8x128xf32, #tpu.memory_space<vmem>>, vector<8x128xf32>
    tpu.vector_store %arg23[%c0_249, %c0_250], %604 {strides = array<i32>} : memref<8x128xf32, #tpu.memory_space<vmem>>, vector<8x128xf32>,
    %c0_251 = arith.constant 0 : index
    %c0_252 = arith.constant 0 : index
    %606 = vector.load %arg3[%c0_251, %c0_252] : memref<64x1xi32, #tpu.memory_space<vmem>>, vector<8x1xi32>
    %607 = tpu.iota {dimensions = array<i32: 1>} : vector<8x20xi32>
    %608 = tpu.iota {dimensions = array<i32: 1>} : vector<8x128xi32>
    %c0_253 = arith.constant 0 : index
    %c0_254 = arith.constant 0 : index
    %609 = vector.load %arg13[%c0_253, %c0_254] : memref<1x32xf32, #tpu.memory_space<vmem>>, vector<1x32xf32>
    %610 = vector.broadcast %609 : vector<1x32xf32> to vector<8x32xf32>
    %611 = arith.mulf %503, %610 : vector<8x32xf32>
    %cst_255 = arith.constant dense<0.000000e+00> : vector<8xf32>
    %612 = vector.multi_reduction <add>, %611, %cst_255 [1] : vector<8x32xf32> to vector<8xf32>
    %613 = vector.shape_cast %612 : vector<8xf32> to vector<8x1xf32>
    %c0_256 = arith.constant 0 : index
    %c0_257 = arith.constant 0 : index
    %614 = vector.load %arg22[%c0_256, %c0_257] : memref<8x8xf32, #tpu.memory_space<vmem>>, vector<8x8xf32>
    %615 = vector.broadcast %613 : vector<8x1xf32> to vector<8x8xf32>
    %616 = arith.addf %614, %615 : vector<8x8xf32>
    %cst_258 = arith.constant 0.000000e+00 : f32
    %617 = vector.broadcast %cst_258 : f32 to vector<8x8xf32>
    %618 = arith.maximumf %616, %617 : vector<8x8xf32>
    %cst_259 = arith.constant dense<0xFF800000> : vector<8xf32>
    %619 = vector.multi_reduction <maximumf>, %618, %cst_259 [1] : vector<8x8xf32> to vector<8xf32>
    %620 = vector.shape_cast %619 : vector<8xf32> to vector<8x1xf32>
    %621 = vector.broadcast %620 : vector<8x1xf32> to vector<8x8xf32>
    %622 = arith.subf %618, %621 : vector<8x8xf32>
    %623 = math.exp %622 : vector<8x8xf32>
    %cst_260 = arith.constant dense<0.000000e+00> : vector<8xf32>
    %624 = vector.multi_reduction <add>, %623, %cst_260 [1] : vector<8x8xf32> to vector<8xf32>
    %625 = vector.shape_cast %624 : vector<8xf32> to vector<8x1xf32>
    %626 = tpu.reciprocal %625 {approx = true} : vector<8x1xf32> -> vector<8x1xf32>
    %627 = vector.broadcast %626 : vector<8x1xf32> to vector<8x8xf32>
    %628 = arith.mulf %623, %627 : vector<8x8xf32>
    %629 = vector.extract_strided_slice %628 {offsets = [0, 0], sizes = [8, 1], strides = [1, 1]} : vector<8x8xf32> to vector<8x1xf32>
    %c0_261 = arith.constant 0 : index
    %c0_262 = arith.constant 0 : index
    %630 = vector.load %arg21[%c0_261, %c0_262] : memref<64x64xf32, #tpu.memory_space<vmem>>, vector<8x64xf32>
    %631 = vector.broadcast %629 : vector<8x1xf32> to vector<8x64xf32>
    %632 = arith.mulf %631, %630 : vector<8x64xf32>
    %633 = vector.extract_strided_slice %628 {offsets = [0, 1], sizes = [8, 1], strides = [1, 1]} : vector<8x8xf32> to vector<8x1xf32>
    %c8_263 = arith.constant 8 : index
    %c0_264 = arith.constant 0 : index
    %634 = vector.load %arg21[%c8_263, %c0_264] : memref<64x64xf32, #tpu.memory_space<vmem>>, vector<8x64xf32>
    %635 = vector.broadcast %633 : vector<8x1xf32> to vector<8x64xf32>
    %636 = arith.mulf %635, %634 : vector<8x64xf32>
    %637 = arith.addf %632, %636 : vector<8x64xf32>
    %638 = vector.extract_strided_slice %628 {offsets = [0, 2], sizes = [8, 1], strides = [1, 1]} : vector<8x8xf32> to vector<8x1xf32>
    %c16_265 = arith.constant 16 : index
    %c0_266 = arith.constant 0 : index
    %639 = vector.load %arg21[%c16_265, %c0_266] : memref<64x64xf32, #tpu.memory_space<vmem>>, vector<8x64xf32>
    %640 = vector.broadcast %638 : vector<8x1xf32> to vector<8x64xf32>
    %641 = arith.mulf %640, %639 : vector<8x64xf32>
    %642 = arith.addf %637, %641 : vector<8x64xf32>
    %643 = vector.extract_strided_slice %628 {offsets = [0, 3], sizes = [8, 1], strides = [1, 1]} : vector<8x8xf32> to vector<8x1xf32>
    %c24_267 = arith.constant 24 : index
    %c0_268 = arith.constant 0 : index
    %644 = vector.load %arg21[%c24_267, %c0_268] : memref<64x64xf32, #tpu.memory_space<vmem>>, vector<8x64xf32>
    %645 = vector.broadcast %643 : vector<8x1xf32> to vector<8x64xf32>
    %646 = arith.mulf %645, %644 : vector<8x64xf32>
    %647 = arith.addf %642, %646 : vector<8x64xf32>
    %648 = vector.extract_strided_slice %628 {offsets = [0, 4], sizes = [8, 1], strides = [1, 1]} : vector<8x8xf32> to vector<8x1xf32>
    %c32_269 = arith.constant 32 : index
    %c0_270 = arith.constant 0 : index
    %649 = vector.load %arg21[%c32_269, %c0_270] : memref<64x64xf32, #tpu.memory_space<vmem>>, vector<8x64xf32>
    %650 = vector.broadcast %648 : vector<8x1xf32> to vector<8x64xf32>
    %651 = arith.mulf %650, %649 : vector<8x64xf32>
    %652 = arith.addf %647, %651 : vector<8x64xf32>
    %653 = vector.extract_strided_slice %628 {offsets = [0, 5], sizes = [8, 1], strides = [1, 1]} : vector<8x8xf32> to vector<8x1xf32>
    %c40_271 = arith.constant 40 : index
    %c0_272 = arith.constant 0 : index
    %654 = vector.load %arg21[%c40_271, %c0_272] : memref<64x64xf32, #tpu.memory_space<vmem>>, vector<8x64xf32>
    %655 = vector.broadcast %653 : vector<8x1xf32> to vector<8x64xf32>
    %656 = arith.mulf %655, %654 : vector<8x64xf32>
    %657 = arith.addf %652, %656 : vector<8x64xf32>
    %658 = vector.extract_strided_slice %628 {offsets = [0, 6], sizes = [8, 1], strides = [1, 1]} : vector<8x8xf32> to vector<8x1xf32>
    %c48_273 = arith.constant 48 : index
    %c0_274 = arith.constant 0 : index
    %659 = vector.load %arg21[%c48_273, %c0_274] : memref<64x64xf32, #tpu.memory_space<vmem>>, vector<8x64xf32>
    %660 = vector.broadcast %658 : vector<8x1xf32> to vector<8x64xf32>
    %661 = arith.mulf %660, %659 : vector<8x64xf32>
    %662 = arith.addf %657, %661 : vector<8x64xf32>
    %663 = vector.extract_strided_slice %628 {offsets = [0, 7], sizes = [8, 1], strides = [1, 1]} : vector<8x8xf32> to vector<8x1xf32>
    %c56_275 = arith.constant 56 : index
    %c0_276 = arith.constant 0 : index
    %664 = vector.load %arg21[%c56_275, %c0_276] : memref<64x64xf32, #tpu.memory_space<vmem>>, vector<8x64xf32>
    %665 = vector.broadcast %663 : vector<8x1xf32> to vector<8x64xf32>
    %666 = arith.mulf %665, %664 : vector<8x64xf32>
    %667 = arith.addf %662, %666 : vector<8x64xf32>
    %668 = vector.broadcast %606 : vector<8x1xi32> to vector<8x20xi32>
    %669 = arith.cmpi eq, %607, %668 : vector<8x20xi32>
    %670 = arith.extui %669 : vector<8x20xi1> to vector<8x20xi32>
    %671 = arith.sitofp %670 : vector<8x20xi32> to vector<8x20xf32>
    %c0_277 = arith.constant 0 : index
    %c0_278 = arith.constant 0 : index
    %672 = vector.load %arg23[%c0_277, %c0_278] : memref<8x128xf32, #tpu.memory_space<vmem>>, vector<8x64xf32>
    tpu.vector_store %arg23[%c0_277, %c0_278], %667 {strides = array<i32>} : memref<8x128xf32, #tpu.memory_space<vmem>>, vector<8x64xf32>,
    %c0_279 = arith.constant 0 : index
    %c64 = arith.constant 64 : index
    %673 = vector.load %arg23[%c0_279, %c64] : memref<8x128xf32, #tpu.memory_space<vmem>>, vector<8x20xf32>
    tpu.vector_store %arg23[%c0_279, %c64], %671 {strides = array<i32>} : memref<8x128xf32, #tpu.memory_space<vmem>>, vector<8x20xf32>,
    %c0_280 = arith.constant 0 : index
    %c84 = arith.constant 84 : index
    %674 = vector.load %arg23[%c0_280, %c84] : memref<8x128xf32, #tpu.memory_space<vmem>>, vector<8x32xf32>
    tpu.vector_store %arg23[%c0_280, %c84], %503 {strides = array<i32>} : memref<8x128xf32, #tpu.memory_space<vmem>>, vector<8x32xf32>,
    %c0_281 = arith.constant 0 : index
    %c0_282 = arith.constant 0 : index
    %675 = vector.load %arg23[%c0_281, %c0_282] : memref<8x128xf32, #tpu.memory_space<vmem>>, vector<8x128xf32>
    %c0_283 = arith.constant 0 : index
    %c0_284 = arith.constant 0 : index
    %676 = vector.load %arg15[%c0_283, %c0_284] : memref<128x128xf32, #tpu.memory_space<vmem>>, vector<128x128xf32>
    %cst_285 = arith.constant dense<0.000000e+00> : vector<8x128xf32>
    %677 = tpu.matmul %675, %676, %cst_285 {dimension_numbers = #tpu.dot_dimension_numbers<[1], [0], [0], [1], [0, 0, 1, 1], [], []>} : vector<8x128xf32>, vector<128x128xf32>, vector<8x128xf32> -> vector<8x128xf32>
    %c0_286 = arith.constant 0 : index
    %c0_287 = arith.constant 0 : index
    %678 = vector.load %arg16[%c0_286, %c0_287] : memref<1x128xf32, #tpu.memory_space<vmem>>, vector<1x128xf32>
    %679 = vector.broadcast %678 : vector<1x128xf32> to vector<8x128xf32>
    %680 = arith.addf %677, %679 : vector<8x128xf32>
    %681 = vector.extract_strided_slice %680 {offsets = [0, 0], sizes = [8, 32], strides = [1, 1]} : vector<8x128xf32> to vector<8x32xf32>
    %682 = arith.negf %681 : vector<8x32xf32>
    %683 = math.exp %682 : vector<8x32xf32>
    %cst_288 = arith.constant 1.000000e+00 : f32
    %684 = vector.broadcast %cst_288 : f32 to vector<8x32xf32>
    %685 = arith.addf %684, %683 : vector<8x32xf32>
    %686 = arith.divf %684, %685 : vector<8x32xf32>
    %687 = vector.extract_strided_slice %680 {offsets = [0, 32], sizes = [8, 32], strides = [1, 1]} : vector<8x128xf32> to vector<8x32xf32>
    %688 = arith.negf %687 : vector<8x32xf32>
    %689 = math.exp %688 : vector<8x32xf32>
    %cst_289 = arith.constant 1.000000e+00 : f32
    %690 = vector.broadcast %cst_289 : f32 to vector<8x32xf32>
    %691 = arith.addf %690, %689 : vector<8x32xf32>
    %692 = arith.divf %690, %691 : vector<8x32xf32>
    %693 = vector.extract_strided_slice %680 {offsets = [0, 64], sizes = [8, 32], strides = [1, 1]} : vector<8x128xf32> to vector<8x32xf32>
    %694 = math.tanh %693 : vector<8x32xf32>
    %695 = vector.extract_strided_slice %680 {offsets = [0, 96], sizes = [8, 32], strides = [1, 1]} : vector<8x128xf32> to vector<8x32xf32>
    %696 = arith.negf %695 : vector<8x32xf32>
    %697 = math.exp %696 : vector<8x32xf32>
    %cst_290 = arith.constant 1.000000e+00 : f32
    %698 = vector.broadcast %cst_290 : f32 to vector<8x32xf32>
    %699 = arith.addf %698, %697 : vector<8x32xf32>
    %700 = arith.divf %698, %699 : vector<8x32xf32>
    %701 = arith.mulf %692, %511 : vector<8x32xf32>
    %702 = arith.mulf %686, %694 : vector<8x32xf32>
    %703 = arith.addf %701, %702 : vector<8x32xf32>
    %704 = math.tanh %703 : vector<8x32xf32>
    %705 = arith.mulf %700, %704 : vector<8x32xf32>
    %c0_291 = arith.constant 0 : index
    %c0_292 = arith.constant 0 : index
    %706 = vector.load %arg17[%c0_291, %c0_292] : memref<32x128xf32, #tpu.memory_space<vmem>>, vector<32x128xf32>
    %cst_293 = arith.constant dense<0.000000e+00> : vector<8x128xf32>
    %707 = tpu.matmul %705, %706, %cst_293 {dimension_numbers = #tpu.dot_dimension_numbers<[1], [0], [0], [1], [0, 0, 1, 1], [], []>} : vector<8x32xf32>, vector<32x128xf32>, vector<8x128xf32> -> vector<8x128xf32>
    %c0_294 = arith.constant 0 : index
    %c0_295 = arith.constant 0 : index
    %708 = vector.load %arg18[%c0_294, %c0_295] : memref<1x128xf32, #tpu.memory_space<vmem>>, vector<1x128xf32>
    %709 = vector.broadcast %708 : vector<1x128xf32> to vector<8x128xf32>
    %710 = arith.addf %707, %709 : vector<8x128xf32>
    %c1_296 = arith.constant 1 : index
    %c0_297 = arith.constant 0 : index
    %c0_298 = arith.constant 0 : index
    %711 = vector.load %arg19[%c1_296, %c0_297, %c0_298] : memref<8x8x128xf32, #tpu.memory_space<vmem>>, vector<1x8x128xf32>
    %712 = vector.shape_cast %711 : vector<1x8x128xf32> to vector<8x128xf32>
    %713 = vector.shape_cast %710 : vector<8x128xf32> to vector<1x8x128xf32>
    tpu.vector_store %arg19[%c1_296, %c0_297, %c0_298], %713 {strides = array<i32>} : memref<8x8x128xf32, #tpu.memory_space<vmem>>, vector<1x8x128xf32>,
    %cst_299 = arith.constant dense<0xFF800000> : vector<8xf32>
    %714 = vector.multi_reduction <maximumf>, %710, %cst_299 [1] : vector<8x128xf32> to vector<8xf32>
    %715 = vector.shape_cast %714 : vector<8xf32> to vector<8x1xf32>
    %716 = vector.broadcast %715 : vector<8x1xf32> to vector<8x128xf32>
    %717 = arith.cmpf oeq, %710, %716 : vector<8x128xf32>
    %c128_i32 = arith.constant 128 : i32
    %718 = vector.broadcast %c128_i32 : i32 to vector<8x128xi32>
    %719 = arith.select %717, %608, %718 : vector<8x128xi1>, vector<8x128xi32>
    %cst_300 = arith.constant dense<2147483647> : vector<8xi32>
    %720 = vector.multi_reduction <minsi>, %719, %cst_300 [1] : vector<8x128xi32> to vector<8xi32>
    %721 = vector.shape_cast %720 : vector<8xi32> to vector<8x1xi32>
    %c8_301 = arith.constant 8 : index
    %c0_302 = arith.constant 0 : index
    %722 = vector.load %arg3[%c8_301, %c0_302] : memref<64x1xi32, #tpu.memory_space<vmem>>, vector<8x1xi32>
    %c1_303 = arith.constant 1 : index
    %723 = memref.load %arg1[%c1_303] : memref<8xi32, #tpu.memory_space<smem>>
    %c1_i32 = arith.constant 1 : i32
    %724 = arith.cmpi eq, %723, %c1_i32 : i32
    %725 = arith.select %724, %722, %721 : vector<8x1xi32>
    %c0_304 = arith.constant 0 : index
    %c0_305 = arith.constant 0 : index
    %726 = vector.load %arg13[%c0_304, %c0_305] : memref<1x32xf32, #tpu.memory_space<vmem>>, vector<1x32xf32>
    %727 = vector.broadcast %726 : vector<1x32xf32> to vector<8x32xf32>
    %728 = arith.mulf %705, %727 : vector<8x32xf32>
    %cst_306 = arith.constant dense<0.000000e+00> : vector<8xf32>
    %729 = vector.multi_reduction <add>, %728, %cst_306 [1] : vector<8x32xf32> to vector<8xf32>
    %730 = vector.shape_cast %729 : vector<8xf32> to vector<8x1xf32>
    %c0_307 = arith.constant 0 : index
    %c0_308 = arith.constant 0 : index
    %731 = vector.load %arg22[%c0_307, %c0_308] : memref<8x8xf32, #tpu.memory_space<vmem>>, vector<8x8xf32>
    %732 = vector.broadcast %730 : vector<8x1xf32> to vector<8x8xf32>
    %733 = arith.addf %731, %732 : vector<8x8xf32>
    %cst_309 = arith.constant 0.000000e+00 : f32
    %734 = vector.broadcast %cst_309 : f32 to vector<8x8xf32>
    %735 = arith.maximumf %733, %734 : vector<8x8xf32>
    %cst_310 = arith.constant dense<0xFF800000> : vector<8xf32>
    %736 = vector.multi_reduction <maximumf>, %735, %cst_310 [1] : vector<8x8xf32> to vector<8xf32>
    %737 = vector.shape_cast %736 : vector<8xf32> to vector<8x1xf32>
    %738 = vector.broadcast %737 : vector<8x1xf32> to vector<8x8xf32>
    %739 = arith.subf %735, %738 : vector<8x8xf32>
    %740 = math.exp %739 : vector<8x8xf32>
    %cst_311 = arith.constant dense<0.000000e+00> : vector<8xf32>
    %741 = vector.multi_reduction <add>, %740, %cst_311 [1] : vector<8x8xf32> to vector<8xf32>
    %742 = vector.shape_cast %741 : vector<8xf32> to vector<8x1xf32>
    %743 = tpu.reciprocal %742 {approx = true} : vector<8x1xf32> -> vector<8x1xf32>
    %744 = vector.broadcast %743 : vector<8x1xf32> to vector<8x8xf32>
    %745 = arith.mulf %740, %744 : vector<8x8xf32>
    %746 = vector.extract_strided_slice %745 {offsets = [0, 0], sizes = [8, 1], strides = [1, 1]} : vector<8x8xf32> to vector<8x1xf32>
    %c0_312 = arith.constant 0 : index
    %c0_313 = arith.constant 0 : index
    %747 = vector.load %arg21[%c0_312, %c0_313] : memref<64x64xf32, #tpu.memory_space<vmem>>, vector<8x64xf32>
    %748 = vector.broadcast %746 : vector<8x1xf32> to vector<8x64xf32>
    %749 = arith.mulf %748, %747 : vector<8x64xf32>
    %750 = vector.extract_strided_slice %745 {offsets = [0, 1], sizes = [8, 1], strides = [1, 1]} : vector<8x8xf32> to vector<8x1xf32>
    %c8_314 = arith.constant 8 : index
    %c0_315 = arith.constant 0 : index
    %751 = vector.load %arg21[%c8_314, %c0_315] : memref<64x64xf32, #tpu.memory_space<vmem>>, vector<8x64xf32>
    %752 = vector.broadcast %750 : vector<8x1xf32> to vector<8x64xf32>
    %753 = arith.mulf %752, %751 : vector<8x64xf32>
    %754 = arith.addf %749, %753 : vector<8x64xf32>
    %755 = vector.extract_strided_slice %745 {offsets = [0, 2], sizes = [8, 1], strides = [1, 1]} : vector<8x8xf32> to vector<8x1xf32>
    %c16_316 = arith.constant 16 : index
    %c0_317 = arith.constant 0 : index
    %756 = vector.load %arg21[%c16_316, %c0_317] : memref<64x64xf32, #tpu.memory_space<vmem>>, vector<8x64xf32>
    %757 = vector.broadcast %755 : vector<8x1xf32> to vector<8x64xf32>
    %758 = arith.mulf %757, %756 : vector<8x64xf32>
    %759 = arith.addf %754, %758 : vector<8x64xf32>
    %760 = vector.extract_strided_slice %745 {offsets = [0, 3], sizes = [8, 1], strides = [1, 1]} : vector<8x8xf32> to vector<8x1xf32>
    %c24_318 = arith.constant 24 : index
    %c0_319 = arith.constant 0 : index
    %761 = vector.load %arg21[%c24_318, %c0_319] : memref<64x64xf32, #tpu.memory_space<vmem>>, vector<8x64xf32>
    %762 = vector.broadcast %760 : vector<8x1xf32> to vector<8x64xf32>
    %763 = arith.mulf %762, %761 : vector<8x64xf32>
    %764 = arith.addf %759, %763 : vector<8x64xf32>
    %765 = vector.extract_strided_slice %745 {offsets = [0, 4], sizes = [8, 1], strides = [1, 1]} : vector<8x8xf32> to vector<8x1xf32>
    %c32_320 = arith.constant 32 : index
    %c0_321 = arith.constant 0 : index
    %766 = vector.load %arg21[%c32_320, %c0_321] : memref<64x64xf32, #tpu.memory_space<vmem>>, vector<8x64xf32>
    %767 = vector.broadcast %765 : vector<8x1xf32> to vector<8x64xf32>
    %768 = arith.mulf %767, %766 : vector<8x64xf32>
    %769 = arith.addf %764, %768 : vector<8x64xf32>
    %770 = vector.extract_strided_slice %745 {offsets = [0, 5], sizes = [8, 1], strides = [1, 1]} : vector<8x8xf32> to vector<8x1xf32>
    %c40_322 = arith.constant 40 : index
    %c0_323 = arith.constant 0 : index
    %771 = vector.load %arg21[%c40_322, %c0_323] : memref<64x64xf32, #tpu.memory_space<vmem>>, vector<8x64xf32>
    %772 = vector.broadcast %770 : vector<8x1xf32> to vector<8x64xf32>
    %773 = arith.mulf %772, %771 : vector<8x64xf32>
    %774 = arith.addf %769, %773 : vector<8x64xf32>
    %775 = vector.extract_strided_slice %745 {offsets = [0, 6], sizes = [8, 1], strides = [1, 1]} : vector<8x8xf32> to vector<8x1xf32>
    %c48_324 = arith.constant 48 : index
    %c0_325 = arith.constant 0 : index
    %776 = vector.load %arg21[%c48_324, %c0_325] : memref<64x64xf32, #tpu.memory_space<vmem>>, vector<8x64xf32>
    %777 = vector.broadcast %775 : vector<8x1xf32> to vector<8x64xf32>
    %778 = arith.mulf %777, %776 : vector<8x64xf32>
    %779 = arith.addf %774, %778 : vector<8x64xf32>
    %780 = vector.extract_strided_slice %745 {offsets = [0, 7], sizes = [8, 1], strides = [1, 1]} : vector<8x8xf32> to vector<8x1xf32>
    %c56_326 = arith.constant 56 : index
    %c0_327 = arith.constant 0 : index
    %781 = vector.load %arg21[%c56_326, %c0_327] : memref<64x64xf32, #tpu.memory_space<vmem>>, vector<8x64xf32>
    %782 = vector.broadcast %780 : vector<8x1xf32> to vector<8x64xf32>
    %783 = arith.mulf %782, %781 : vector<8x64xf32>
    %784 = arith.addf %779, %783 : vector<8x64xf32>
    %785 = vector.broadcast %725 : vector<8x1xi32> to vector<8x20xi32>
    %786 = arith.cmpi eq, %607, %785 : vector<8x20xi32>
    %787 = arith.extui %786 : vector<8x20xi1> to vector<8x20xi32>
    %788 = arith.sitofp %787 : vector<8x20xi32> to vector<8x20xf32>
    %c0_328 = arith.constant 0 : index
    %c0_329 = arith.constant 0 : index
    %789 = vector.load %arg23[%c0_328, %c0_329] : memref<8x128xf32, #tpu.memory_space<vmem>>, vector<8x64xf32>
    tpu.vector_store %arg23[%c0_328, %c0_329], %784 {strides = array<i32>} : memref<8x128xf32, #tpu.memory_space<vmem>>, vector<8x64xf32>,
    %c0_330 = arith.constant 0 : index
    %c64_331 = arith.constant 64 : index
    %790 = vector.load %arg23[%c0_330, %c64_331] : memref<8x128xf32, #tpu.memory_space<vmem>>, vector<8x20xf32>
    tpu.vector_store %arg23[%c0_330, %c64_331], %788 {strides = array<i32>} : memref<8x128xf32, #tpu.memory_space<vmem>>, vector<8x20xf32>,
    %c0_332 = arith.constant 0 : index
    %c84_333 = arith.constant 84 : index
    %791 = vector.load %arg23[%c0_332, %c84_333] : memref<8x128xf32, #tpu.memory_space<vmem>>, vector<8x32xf32>
    tpu.vector_store %arg23[%c0_332, %c84_333], %705 {strides = array<i32>} : memref<8x128xf32, #tpu.memory_space<vmem>>, vector<8x32xf32>,
    %c0_334 = arith.constant 0 : index
    %c0_335 = arith.constant 0 : index
    %792 = vector.load %arg23[%c0_334, %c0_335] : memref<8x128xf32, #tpu.memory_space<vmem>>, vector<8x128xf32>
    %c0_336 = arith.constant 0 : index
    %c0_337 = arith.constant 0 : index
    %793 = vector.load %arg15[%c0_336, %c0_337] : memref<128x128xf32, #tpu.memory_space<vmem>>, vector<128x128xf32>
    %cst_338 = arith.constant dense<0.000000e+00> : vector<8x128xf32>
    %794 = tpu.matmul %792, %793, %cst_338 {dimension_numbers = #tpu.dot_dimension_numbers<[1], [0], [0], [1], [0, 0, 1, 1], [], []>} : vector<8x128xf32>, vector<128x128xf32>, vector<8x128xf32> -> vector<8x128xf32>
    %c0_339 = arith.constant 0 : index
    %c0_340 = arith.constant 0 : index
    %795 = vector.load %arg16[%c0_339, %c0_340] : memref<1x128xf32, #tpu.memory_space<vmem>>, vector<1x128xf32>
    %796 = vector.broadcast %795 : vector<1x128xf32> to vector<8x128xf32>
    %797 = arith.addf %794, %796 : vector<8x128xf32>
    %798 = vector.extract_strided_slice %797 {offsets = [0, 0], sizes = [8, 32], strides = [1, 1]} : vector<8x128xf32> to vector<8x32xf32>
    %799 = arith.negf %798 : vector<8x32xf32>
    %800 = math.exp %799 : vector<8x32xf32>
    %cst_341 = arith.constant 1.000000e+00 : f32
    %801 = vector.broadcast %cst_341 : f32 to vector<8x32xf32>
    %802 = arith.addf %801, %800 : vector<8x32xf32>
    %803 = arith.divf %801, %802 : vector<8x32xf32>
    %804 = vector.extract_strided_slice %797 {offsets = [0, 32], sizes = [8, 32], strides = [1, 1]} : vector<8x128xf32> to vector<8x32xf32>
    %805 = arith.negf %804 : vector<8x32xf32>
    %806 = math.exp %805 : vector<8x32xf32>
    %cst_342 = arith.constant 1.000000e+00 : f32
    %807 = vector.broadcast %cst_342 : f32 to vector<8x32xf32>
    %808 = arith.addf %807, %806 : vector<8x32xf32>
    %809 = arith.divf %807, %808 : vector<8x32xf32>
    %810 = vector.extract_strided_slice %797 {offsets = [0, 64], sizes = [8, 32], strides = [1, 1]} : vector<8x128xf32> to vector<8x32xf32>
    %811 = math.tanh %810 : vector<8x32xf32>
    %812 = vector.extract_strided_slice %797 {offsets = [0, 96], sizes = [8, 32], strides = [1, 1]} : vector<8x128xf32> to vector<8x32xf32>
    %813 = arith.negf %812 : vector<8x32xf32>
    %814 = math.exp %813 : vector<8x32xf32>
    %cst_343 = arith.constant 1.000000e+00 : f32
    %815 = vector.broadcast %cst_343 : f32 to vector<8x32xf32>
    %816 = arith.addf %815, %814 : vector<8x32xf32>
    %817 = arith.divf %815, %816 : vector<8x32xf32>
    %818 = arith.mulf %809, %703 : vector<8x32xf32>
    %819 = arith.mulf %803, %811 : vector<8x32xf32>
    %820 = arith.addf %818, %819 : vector<8x32xf32>
    %821 = math.tanh %820 : vector<8x32xf32>
    %822 = arith.mulf %817, %821 : vector<8x32xf32>
    %c0_344 = arith.constant 0 : index
    %c0_345 = arith.constant 0 : index
    %823 = vector.load %arg17[%c0_344, %c0_345] : memref<32x128xf32, #tpu.memory_space<vmem>>, vector<32x128xf32>
    %cst_346 = arith.constant dense<0.000000e+00> : vector<8x128xf32>
    %824 = tpu.matmul %822, %823, %cst_346 {dimension_numbers = #tpu.dot_dimension_numbers<[1], [0], [0], [1], [0, 0, 1, 1], [], []>} : vector<8x32xf32>, vector<32x128xf32>, vector<8x128xf32> -> vector<8x128xf32>
    %c0_347 = arith.constant 0 : index
    %c0_348 = arith.constant 0 : index
    %825 = vector.load %arg18[%c0_347, %c0_348] : memref<1x128xf32, #tpu.memory_space<vmem>>, vector<1x128xf32>
    %826 = vector.broadcast %825 : vector<1x128xf32> to vector<8x128xf32>
    %827 = arith.addf %824, %826 : vector<8x128xf32>
    %c2_349 = arith.constant 2 : index
    %c0_350 = arith.constant 0 : index
    %c0_351 = arith.constant 0 : index
    %828 = vector.load %arg19[%c2_349, %c0_350, %c0_351] : memref<8x8x128xf32, #tpu.memory_space<vmem>>, vector<1x8x128xf32>
    %829 = vector.shape_cast %828 : vector<1x8x128xf32> to vector<8x128xf32>
    %830 = vector.shape_cast %827 : vector<8x128xf32> to vector<1x8x128xf32>
    tpu.vector_store %arg19[%c2_349, %c0_350, %c0_351], %830 {strides = array<i32>} : memref<8x8x128xf32, #tpu.memory_space<vmem>>, vector<1x8x128xf32>,
    %cst_352 = arith.constant dense<0xFF800000> : vector<8xf32>
    %831 = vector.multi_reduction <maximumf>, %827, %cst_352 [1] : vector<8x128xf32> to vector<8xf32>
    %832 = vector.shape_cast %831 : vector<8xf32> to vector<8x1xf32>
    %833 = vector.broadcast %832 : vector<8x1xf32> to vector<8x128xf32>
    %834 = arith.cmpf oeq, %827, %833 : vector<8x128xf32>
    %c128_i32_353 = arith.constant 128 : i32
    %835 = vector.broadcast %c128_i32_353 : i32 to vector<8x128xi32>
    %836 = arith.select %834, %608, %835 : vector<8x128xi1>, vector<8x128xi32>
    %cst_354 = arith.constant dense<2147483647> : vector<8xi32>
    %837 = vector.multi_reduction <minsi>, %836, %cst_354 [1] : vector<8x128xi32> to vector<8xi32>
    %838 = vector.shape_cast %837 : vector<8xi32> to vector<8x1xi32>
    %c16_355 = arith.constant 16 : index
    %c0_356 = arith.constant 0 : index
    %839 = vector.load %arg3[%c16_355, %c0_356] : memref<64x1xi32, #tpu.memory_space<vmem>>, vector<8x1xi32>
    %c2_357 = arith.constant 2 : index
    %840 = memref.load %arg1[%c2_357] : memref<8xi32, #tpu.memory_space<smem>>
    %c1_i32_358 = arith.constant 1 : i32
    %841 = arith.cmpi eq, %840, %c1_i32_358 : i32
    %842 = arith.select %841, %839, %838 : vector<8x1xi32>
    %c0_359 = arith.constant 0 : index
    %c0_360 = arith.constant 0 : index
    %843 = vector.load %arg13[%c0_359, %c0_360] : memref<1x32xf32, #tpu.memory_space<vmem>>, vector<1x32xf32>
    %844 = vector.broadcast %843 : vector<1x32xf32> to vector<8x32xf32>
    %845 = arith.mulf %822, %844 : vector<8x32xf32>
    %cst_361 = arith.constant dense<0.000000e+00> : vector<8xf32>
    %846 = vector.multi_reduction <add>, %845, %cst_361 [1] : vector<8x32xf32> to vector<8xf32>
    %847 = vector.shape_cast %846 : vector<8xf32> to vector<8x1xf32>
    %c0_362 = arith.constant 0 : index
    %c0_363 = arith.constant 0 : index
    %848 = vector.load %arg22[%c0_362, %c0_363] : memref<8x8xf32, #tpu.memory_space<vmem>>, vector<8x8xf32>
    %849 = vector.broadcast %847 : vector<8x1xf32> to vector<8x8xf32>
    %850 = arith.addf %848, %849 : vector<8x8xf32>
    %cst_364 = arith.constant 0.000000e+00 : f32
    %851 = vector.broadcast %cst_364 : f32 to vector<8x8xf32>
    %852 = arith.maximumf %850, %851 : vector<8x8xf32>
    %cst_365 = arith.constant dense<0xFF800000> : vector<8xf32>
    %853 = vector.multi_reduction <maximumf>, %852, %cst_365 [1] : vector<8x8xf32> to vector<8xf32>
    %854 = vector.shape_cast %853 : vector<8xf32> to vector<8x1xf32>
    %855 = vector.broadcast %854 : vector<8x1xf32> to vector<8x8xf32>
    %856 = arith.subf %852, %855 : vector<8x8xf32>
    %857 = math.exp %856 : vector<8x8xf32>
    %cst_366 = arith.constant dense<0.000000e+00> : vector<8xf32>
    %858 = vector.multi_reduction <add>, %857, %cst_366 [1] : vector<8x8xf32> to vector<8xf32>
    %859 = vector.shape_cast %858 : vector<8xf32> to vector<8x1xf32>
    %860 = tpu.reciprocal %859 {approx = true} : vector<8x1xf32> -> vector<8x1xf32>
    %861 = vector.broadcast %860 : vector<8x1xf32> to vector<8x8xf32>
    %862 = arith.mulf %857, %861 : vector<8x8xf32>
    %863 = vector.extract_strided_slice %862 {offsets = [0, 0], sizes = [8, 1], strides = [1, 1]} : vector<8x8xf32> to vector<8x1xf32>
    %c0_367 = arith.constant 0 : index
    %c0_368 = arith.constant 0 : index
    %864 = vector.load %arg21[%c0_367, %c0_368] : memref<64x64xf32, #tpu.memory_space<vmem>>, vector<8x64xf32>
    %865 = vector.broadcast %863 : vector<8x1xf32> to vector<8x64xf32>
    %866 = arith.mulf %865, %864 : vector<8x64xf32>
    %867 = vector.extract_strided_slice %862 {offsets = [0, 1], sizes = [8, 1], strides = [1, 1]} : vector<8x8xf32> to vector<8x1xf32>
    %c8_369 = arith.constant 8 : index
    %c0_370 = arith.constant 0 : index
    %868 = vector.load %arg21[%c8_369, %c0_370] : memref<64x64xf32, #tpu.memory_space<vmem>>, vector<8x64xf32>
    %869 = vector.broadcast %867 : vector<8x1xf32> to vector<8x64xf32>
    %870 = arith.mulf %869, %868 : vector<8x64xf32>
    %871 = arith.addf %866, %870 : vector<8x64xf32>
    %872 = vector.extract_strided_slice %862 {offsets = [0, 2], sizes = [8, 1], strides = [1, 1]} : vector<8x8xf32> to vector<8x1xf32>
    %c16_371 = arith.constant 16 : index
    %c0_372 = arith.constant 0 : index
    %873 = vector.load %arg21[%c16_371, %c0_372] : memref<64x64xf32, #tpu.memory_space<vmem>>, vector<8x64xf32>
    %874 = vector.broadcast %872 : vector<8x1xf32> to vector<8x64xf32>
    %875 = arith.mulf %874, %873 : vector<8x64xf32>
    %876 = arith.addf %871, %875 : vector<8x64xf32>
    %877 = vector.extract_strided_slice %862 {offsets = [0, 3], sizes = [8, 1], strides = [1, 1]} : vector<8x8xf32> to vector<8x1xf32>
    %c24_373 = arith.constant 24 : index
    %c0_374 = arith.constant 0 : index
    %878 = vector.load %arg21[%c24_373, %c0_374] : memref<64x64xf32, #tpu.memory_space<vmem>>, vector<8x64xf32>
    %879 = vector.broadcast %877 : vector<8x1xf32> to vector<8x64xf32>
    %880 = arith.mulf %879, %878 : vector<8x64xf32>
    %881 = arith.addf %876, %880 : vector<8x64xf32>
    %882 = vector.extract_strided_slice %862 {offsets = [0, 4], sizes = [8, 1], strides = [1, 1]} : vector<8x8xf32> to vector<8x1xf32>
    %c32_375 = arith.constant 32 : index
    %c0_376 = arith.constant 0 : index
    %883 = vector.load %arg21[%c32_375, %c0_376] : memref<64x64xf32, #tpu.memory_space<vmem>>, vector<8x64xf32>
    %884 = vector.broadcast %882 : vector<8x1xf32> to vector<8x64xf32>
    %885 = arith.mulf %884, %883 : vector<8x64xf32>
    %886 = arith.addf %881, %885 : vector<8x64xf32>
    %887 = vector.extract_strided_slice %862 {offsets = [0, 5], sizes = [8, 1], strides = [1, 1]} : vector<8x8xf32> to vector<8x1xf32>
    %c40_377 = arith.constant 40 : index
    %c0_378 = arith.constant 0 : index
    %888 = vector.load %arg21[%c40_377, %c0_378] : memref<64x64xf32, #tpu.memory_space<vmem>>, vector<8x64xf32>
    %889 = vector.broadcast %887 : vector<8x1xf32> to vector<8x64xf32>
    %890 = arith.mulf %889, %888 : vector<8x64xf32>
    %891 = arith.addf %886, %890 : vector<8x64xf32>
    %892 = vector.extract_strided_slice %862 {offsets = [0, 6], sizes = [8, 1], strides = [1, 1]} : vector<8x8xf32> to vector<8x1xf32>
    %c48_379 = arith.constant 48 : index
    %c0_380 = arith.constant 0 : index
    %893 = vector.load %arg21[%c48_379, %c0_380] : memref<64x64xf32, #tpu.memory_space<vmem>>, vector<8x64xf32>
    %894 = vector.broadcast %892 : vector<8x1xf32> to vector<8x64xf32>
    %895 = arith.mulf %894, %893 : vector<8x64xf32>
    %896 = arith.addf %891, %895 : vector<8x64xf32>
    %897 = vector.extract_strided_slice %862 {offsets = [0, 7], sizes = [8, 1], strides = [1, 1]} : vector<8x8xf32> to vector<8x1xf32>
    %c56_381 = arith.constant 56 : index
    %c0_382 = arith.constant 0 : index
    %898 = vector.load %arg21[%c56_381, %c0_382] : memref<64x64xf32, #tpu.memory_space<vmem>>, vector<8x64xf32>
    %899 = vector.broadcast %897 : vector<8x1xf32> to vector<8x64xf32>
    %900 = arith.mulf %899, %898 : vector<8x64xf32>
    %901 = arith.addf %896, %900 : vector<8x64xf32>
    %902 = vector.broadcast %842 : vector<8x1xi32> to vector<8x20xi32>
    %903 = arith.cmpi eq, %607, %902 : vector<8x20xi32>
    %904 = arith.extui %903 : vector<8x20xi1> to vector<8x20xi32>
    %905 = arith.sitofp %904 : vector<8x20xi32> to vector<8x20xf32>
    %c0_383 = arith.constant 0 : index
    %c0_384 = arith.constant 0 : index
    %906 = vector.load %arg23[%c0_383, %c0_384] : memref<8x128xf32, #tpu.memory_space<vmem>>, vector<8x64xf32>
    tpu.vector_store %arg23[%c0_383, %c0_384], %901 {strides = array<i32>} : memref<8x128xf32, #tpu.memory_space<vmem>>, vector<8x64xf32>,
    %c0_385 = arith.constant 0 : index
    %c64_386 = arith.constant 64 : index
    %907 = vector.load %arg23[%c0_385, %c64_386] : memref<8x128xf32, #tpu.memory_space<vmem>>, vector<8x20xf32>
    tpu.vector_store %arg23[%c0_385, %c64_386], %905 {strides = array<i32>} : memref<8x128xf32, #tpu.memory_space<vmem>>, vector<8x20xf32>,
    %c0_387 = arith.constant 0 : index
    %c84_388 = arith.constant 84 : index
    %908 = vector.load %arg23[%c0_387, %c84_388] : memref<8x128xf32, #tpu.memory_space<vmem>>, vector<8x32xf32>
    tpu.vector_store %arg23[%c0_387, %c84_388], %822 {strides = array<i32>} : memref<8x128xf32, #tpu.memory_space<vmem>>, vector<8x32xf32>,
    %c0_389 = arith.constant 0 : index
    %c0_390 = arith.constant 0 : index
    %909 = vector.load %arg23[%c0_389, %c0_390] : memref<8x128xf32, #tpu.memory_space<vmem>>, vector<8x128xf32>
    %c0_391 = arith.constant 0 : index
    %c0_392 = arith.constant 0 : index
    %910 = vector.load %arg15[%c0_391, %c0_392] : memref<128x128xf32, #tpu.memory_space<vmem>>, vector<128x128xf32>
    %cst_393 = arith.constant dense<0.000000e+00> : vector<8x128xf32>
    %911 = tpu.matmul %909, %910, %cst_393 {dimension_numbers = #tpu.dot_dimension_numbers<[1], [0], [0], [1], [0, 0, 1, 1], [], []>} : vector<8x128xf32>, vector<128x128xf32>, vector<8x128xf32> -> vector<8x128xf32>
    %c0_394 = arith.constant 0 : index
    %c0_395 = arith.constant 0 : index
    %912 = vector.load %arg16[%c0_394, %c0_395] : memref<1x128xf32, #tpu.memory_space<vmem>>, vector<1x128xf32>
    %913 = vector.broadcast %912 : vector<1x128xf32> to vector<8x128xf32>
    %914 = arith.addf %911, %913 : vector<8x128xf32>
    %915 = vector.extract_strided_slice %914 {offsets = [0, 0], sizes = [8, 32], strides = [1, 1]} : vector<8x128xf32> to vector<8x32xf32>
    %916 = arith.negf %915 : vector<8x32xf32>
    %917 = math.exp %916 : vector<8x32xf32>
    %cst_396 = arith.constant 1.000000e+00 : f32
    %918 = vector.broadcast %cst_396 : f32 to vector<8x32xf32>
    %919 = arith.addf %918, %917 : vector<8x32xf32>
    %920 = arith.divf %918, %919 : vector<8x32xf32>
    %921 = vector.extract_strided_slice %914 {offsets = [0, 32], sizes = [8, 32], strides = [1, 1]} : vector<8x128xf32> to vector<8x32xf32>
    %922 = arith.negf %921 : vector<8x32xf32>
    %923 = math.exp %922 : vector<8x32xf32>
    %cst_397 = arith.constant 1.000000e+00 : f32
    %924 = vector.broadcast %cst_397 : f32 to vector<8x32xf32>
    %925 = arith.addf %924, %923 : vector<8x32xf32>
    %926 = arith.divf %924, %925 : vector<8x32xf32>
    %927 = vector.extract_strided_slice %914 {offsets = [0, 64], sizes = [8, 32], strides = [1, 1]} : vector<8x128xf32> to vector<8x32xf32>
    %928 = math.tanh %927 : vector<8x32xf32>
    %929 = vector.extract_strided_slice %914 {offsets = [0, 96], sizes = [8, 32], strides = [1, 1]} : vector<8x128xf32> to vector<8x32xf32>
    %930 = arith.negf %929 : vector<8x32xf32>
    %931 = math.exp %930 : vector<8x32xf32>
    %cst_398 = arith.constant 1.000000e+00 : f32
    %932 = vector.broadcast %cst_398 : f32 to vector<8x32xf32>
    %933 = arith.addf %932, %931 : vector<8x32xf32>
    %934 = arith.divf %932, %933 : vector<8x32xf32>
    %935 = arith.mulf %926, %820 : vector<8x32xf32>
    %936 = arith.mulf %920, %928 : vector<8x32xf32>
    %937 = arith.addf %935, %936 : vector<8x32xf32>
    %938 = math.tanh %937 : vector<8x32xf32>
    %939 = arith.mulf %934, %938 : vector<8x32xf32>
    %c0_399 = arith.constant 0 : index
    %c0_400 = arith.constant 0 : index
    %940 = vector.load %arg17[%c0_399, %c0_400] : memref<32x128xf32, #tpu.memory_space<vmem>>, vector<32x128xf32>
    %cst_401 = arith.constant dense<0.000000e+00> : vector<8x128xf32>
    %941 = tpu.matmul %939, %940, %cst_401 {dimension_numbers = #tpu.dot_dimension_numbers<[1], [0], [0], [1], [0, 0, 1, 1], [], []>} : vector<8x32xf32>, vector<32x128xf32>, vector<8x128xf32> -> vector<8x128xf32>
    %c0_402 = arith.constant 0 : index
    %c0_403 = arith.constant 0 : index
    %942 = vector.load %arg18[%c0_402, %c0_403] : memref<1x128xf32, #tpu.memory_space<vmem>>, vector<1x128xf32>
    %943 = vector.broadcast %942 : vector<1x128xf32> to vector<8x128xf32>
    %944 = arith.addf %941, %943 : vector<8x128xf32>
    %c3_404 = arith.constant 3 : index
    %c0_405 = arith.constant 0 : index
    %c0_406 = arith.constant 0 : index
    %945 = vector.load %arg19[%c3_404, %c0_405, %c0_406] : memref<8x8x128xf32, #tpu.memory_space<vmem>>, vector<1x8x128xf32>
    %946 = vector.shape_cast %945 : vector<1x8x128xf32> to vector<8x128xf32>
    %947 = vector.shape_cast %944 : vector<8x128xf32> to vector<1x8x128xf32>
    tpu.vector_store %arg19[%c3_404, %c0_405, %c0_406], %947 {strides = array<i32>} : memref<8x8x128xf32, #tpu.memory_space<vmem>>, vector<1x8x128xf32>,
    %cst_407 = arith.constant dense<0xFF800000> : vector<8xf32>
    %948 = vector.multi_reduction <maximumf>, %944, %cst_407 [1] : vector<8x128xf32> to vector<8xf32>
    %949 = vector.shape_cast %948 : vector<8xf32> to vector<8x1xf32>
    %950 = vector.broadcast %949 : vector<8x1xf32> to vector<8x128xf32>
    %951 = arith.cmpf oeq, %944, %950 : vector<8x128xf32>
    %c128_i32_408 = arith.constant 128 : i32
    %952 = vector.broadcast %c128_i32_408 : i32 to vector<8x128xi32>
    %953 = arith.select %951, %608, %952 : vector<8x128xi1>, vector<8x128xi32>
    %cst_409 = arith.constant dense<2147483647> : vector<8xi32>
    %954 = vector.multi_reduction <minsi>, %953, %cst_409 [1] : vector<8x128xi32> to vector<8xi32>
    %955 = vector.shape_cast %954 : vector<8xi32> to vector<8x1xi32>
    %c24_410 = arith.constant 24 : index
    %c0_411 = arith.constant 0 : index
    %956 = vector.load %arg3[%c24_410, %c0_411] : memref<64x1xi32, #tpu.memory_space<vmem>>, vector<8x1xi32>
    %c3_412 = arith.constant 3 : index
    %957 = memref.load %arg1[%c3_412] : memref<8xi32, #tpu.memory_space<smem>>
    %c1_i32_413 = arith.constant 1 : i32
    %958 = arith.cmpi eq, %957, %c1_i32_413 : i32
    %959 = arith.select %958, %956, %955 : vector<8x1xi32>
    %c0_414 = arith.constant 0 : index
    %c0_415 = arith.constant 0 : index
    %960 = vector.load %arg13[%c0_414, %c0_415] : memref<1x32xf32, #tpu.memory_space<vmem>>, vector<1x32xf32>
    %961 = vector.broadcast %960 : vector<1x32xf32> to vector<8x32xf32>
    %962 = arith.mulf %939, %961 : vector<8x32xf32>
    %cst_416 = arith.constant dense<0.000000e+00> : vector<8xf32>
    %963 = vector.multi_reduction <add>, %962, %cst_416 [1] : vector<8x32xf32> to vector<8xf32>
    %964 = vector.shape_cast %963 : vector<8xf32> to vector<8x1xf32>
    %c0_417 = arith.constant 0 : index
    %c0_418 = arith.constant 0 : index
    %965 = vector.load %arg22[%c0_417, %c0_418] : memref<8x8xf32, #tpu.memory_space<vmem>>, vector<8x8xf32>
    %966 = vector.broadcast %964 : vector<8x1xf32> to vector<8x8xf32>
    %967 = arith.addf %965, %966 : vector<8x8xf32>
    %cst_419 = arith.constant 0.000000e+00 : f32
    %968 = vector.broadcast %cst_419 : f32 to vector<8x8xf32>
    %969 = arith.maximumf %967, %968 : vector<8x8xf32>
    %cst_420 = arith.constant dense<0xFF800000> : vector<8xf32>
    %970 = vector.multi_reduction <maximumf>, %969, %cst_420 [1] : vector<8x8xf32> to vector<8xf32>
    %971 = vector.shape_cast %970 : vector<8xf32> to vector<8x1xf32>
    %972 = vector.broadcast %971 : vector<8x1xf32> to vector<8x8xf32>
    %973 = arith.subf %969, %972 : vector<8x8xf32>
    %974 = math.exp %973 : vector<8x8xf32>
    %cst_421 = arith.constant dense<0.000000e+00> : vector<8xf32>
    %975 = vector.multi_reduction <add>, %974, %cst_421 [1] : vector<8x8xf32> to vector<8xf32>
    %976 = vector.shape_cast %975 : vector<8xf32> to vector<8x1xf32>
    %977 = tpu.reciprocal %976 {approx = true} : vector<8x1xf32> -> vector<8x1xf32>
    %978 = vector.broadcast %977 : vector<8x1xf32> to vector<8x8xf32>
    %979 = arith.mulf %974, %978 : vector<8x8xf32>
    %980 = vector.extract_strided_slice %979 {offsets = [0, 0], sizes = [8, 1], strides = [1, 1]} : vector<8x8xf32> to vector<8x1xf32>
    %c0_422 = arith.constant 0 : index
    %c0_423 = arith.constant 0 : index
    %981 = vector.load %arg21[%c0_422, %c0_423] : memref<64x64xf32, #tpu.memory_space<vmem>>, vector<8x64xf32>
    %982 = vector.broadcast %980 : vector<8x1xf32> to vector<8x64xf32>
    %983 = arith.mulf %982, %981 : vector<8x64xf32>
    %984 = vector.extract_strided_slice %979 {offsets = [0, 1], sizes = [8, 1], strides = [1, 1]} : vector<8x8xf32> to vector<8x1xf32>
    %c8_424 = arith.constant 8 : index
    %c0_425 = arith.constant 0 : index
    %985 = vector.load %arg21[%c8_424, %c0_425] : memref<64x64xf32, #tpu.memory_space<vmem>>, vector<8x64xf32>
    %986 = vector.broadcast %984 : vector<8x1xf32> to vector<8x64xf32>
    %987 = arith.mulf %986, %985 : vector<8x64xf32>
    %988 = arith.addf %983, %987 : vector<8x64xf32>
    %989 = vector.extract_strided_slice %979 {offsets = [0, 2], sizes = [8, 1], strides = [1, 1]} : vector<8x8xf32> to vector<8x1xf32>
    %c16_426 = arith.constant 16 : index
    %c0_427 = arith.constant 0 : index
    %990 = vector.load %arg21[%c16_426, %c0_427] : memref<64x64xf32, #tpu.memory_space<vmem>>, vector<8x64xf32>
    %991 = vector.broadcast %989 : vector<8x1xf32> to vector<8x64xf32>
    %992 = arith.mulf %991, %990 : vector<8x64xf32>
    %993 = arith.addf %988, %992 : vector<8x64xf32>
    %994 = vector.extract_strided_slice %979 {offsets = [0, 3], sizes = [8, 1], strides = [1, 1]} : vector<8x8xf32> to vector<8x1xf32>
    %c24_428 = arith.constant 24 : index
    %c0_429 = arith.constant 0 : index
    %995 = vector.load %arg21[%c24_428, %c0_429] : memref<64x64xf32, #tpu.memory_space<vmem>>, vector<8x64xf32>
    %996 = vector.broadcast %994 : vector<8x1xf32> to vector<8x64xf32>
    %997 = arith.mulf %996, %995 : vector<8x64xf32>
    %998 = arith.addf %993, %997 : vector<8x64xf32>
    %999 = vector.extract_strided_slice %979 {offsets = [0, 4], sizes = [8, 1], strides = [1, 1]} : vector<8x8xf32> to vector<8x1xf32>
    %c32_430 = arith.constant 32 : index
    %c0_431 = arith.constant 0 : index
    %1000 = vector.load %arg21[%c32_430, %c0_431] : memref<64x64xf32, #tpu.memory_space<vmem>>, vector<8x64xf32>
    %1001 = vector.broadcast %999 : vector<8x1xf32> to vector<8x64xf32>
    %1002 = arith.mulf %1001, %1000 : vector<8x64xf32>
    %1003 = arith.addf %998, %1002 : vector<8x64xf32>
    %1004 = vector.extract_strided_slice %979 {offsets = [0, 5], sizes = [8, 1], strides = [1, 1]} : vector<8x8xf32> to vector<8x1xf32>
    %c40_432 = arith.constant 40 : index
    %c0_433 = arith.constant 0 : index
    %1005 = vector.load %arg21[%c40_432, %c0_433] : memref<64x64xf32, #tpu.memory_space<vmem>>, vector<8x64xf32>
    %1006 = vector.broadcast %1004 : vector<8x1xf32> to vector<8x64xf32>
    %1007 = arith.mulf %1006, %1005 : vector<8x64xf32>
    %1008 = arith.addf %1003, %1007 : vector<8x64xf32>
    %1009 = vector.extract_strided_slice %979 {offsets = [0, 6], sizes = [8, 1], strides = [1, 1]} : vector<8x8xf32> to vector<8x1xf32>
    %c48_434 = arith.constant 48 : index
    %c0_435 = arith.constant 0 : index
    %1010 = vector.load %arg21[%c48_434, %c0_435] : memref<64x64xf32, #tpu.memory_space<vmem>>, vector<8x64xf32>
    %1011 = vector.broadcast %1009 : vector<8x1xf32> to vector<8x64xf32>
    %1012 = arith.mulf %1011, %1010 : vector<8x64xf32>
    %1013 = arith.addf %1008, %1012 : vector<8x64xf32>
    %1014 = vector.extract_strided_slice %979 {offsets = [0, 7], sizes = [8, 1], strides = [1, 1]} : vector<8x8xf32> to vector<8x1xf32>
    %c56_436 = arith.constant 56 : index
    %c0_437 = arith.constant 0 : index
    %1015 = vector.load %arg21[%c56_436, %c0_437] : memref<64x64xf32, #tpu.memory_space<vmem>>, vector<8x64xf32>
    %1016 = vector.broadcast %1014 : vector<8x1xf32> to vector<8x64xf32>
    %1017 = arith.mulf %1016, %1015 : vector<8x64xf32>
    %1018 = arith.addf %1013, %1017 : vector<8x64xf32>
    %1019 = vector.broadcast %959 : vector<8x1xi32> to vector<8x20xi32>
    %1020 = arith.cmpi eq, %607, %1019 : vector<8x20xi32>
    %1021 = arith.extui %1020 : vector<8x20xi1> to vector<8x20xi32>
    %1022 = arith.sitofp %1021 : vector<8x20xi32> to vector<8x20xf32>
    %c0_438 = arith.constant 0 : index
    %c0_439 = arith.constant 0 : index
    %1023 = vector.load %arg23[%c0_438, %c0_439] : memref<8x128xf32, #tpu.memory_space<vmem>>, vector<8x64xf32>
    tpu.vector_store %arg23[%c0_438, %c0_439], %1018 {strides = array<i32>} : memref<8x128xf32, #tpu.memory_space<vmem>>, vector<8x64xf32>,
    %c0_440 = arith.constant 0 : index
    %c64_441 = arith.constant 64 : index
    %1024 = vector.load %arg23[%c0_440, %c64_441] : memref<8x128xf32, #tpu.memory_space<vmem>>, vector<8x20xf32>
    tpu.vector_store %arg23[%c0_440, %c64_441], %1022 {strides = array<i32>} : memref<8x128xf32, #tpu.memory_space<vmem>>, vector<8x20xf32>,
    %c0_442 = arith.constant 0 : index
    %c84_443 = arith.constant 84 : index
    %1025 = vector.load %arg23[%c0_442, %c84_443] : memref<8x128xf32, #tpu.memory_space<vmem>>, vector<8x32xf32>
    tpu.vector_store %arg23[%c0_442, %c84_443], %939 {strides = array<i32>} : memref<8x128xf32, #tpu.memory_space<vmem>>, vector<8x32xf32>,
    %c0_444 = arith.constant 0 : index
    %c0_445 = arith.constant 0 : index
    %1026 = vector.load %arg23[%c0_444, %c0_445] : memref<8x128xf32, #tpu.memory_space<vmem>>, vector<8x128xf32>
    %c0_446 = arith.constant 0 : index
    %c0_447 = arith.constant 0 : index
    %1027 = vector.load %arg15[%c0_446, %c0_447] : memref<128x128xf32, #tpu.memory_space<vmem>>, vector<128x128xf32>
    %cst_448 = arith.constant dense<0.000000e+00> : vector<8x128xf32>
    %1028 = tpu.matmul %1026, %1027, %cst_448 {dimension_numbers = #tpu.dot_dimension_numbers<[1], [0], [0], [1], [0, 0, 1, 1], [], []>} : vector<8x128xf32>, vector<128x128xf32>, vector<8x128xf32> -> vector<8x128xf32>
    %c0_449 = arith.constant 0 : index
    %c0_450 = arith.constant 0 : index
    %1029 = vector.load %arg16[%c0_449, %c0_450] : memref<1x128xf32, #tpu.memory_space<vmem>>, vector<1x128xf32>
    %1030 = vector.broadcast %1029 : vector<1x128xf32> to vector<8x128xf32>
    %1031 = arith.addf %1028, %1030 : vector<8x128xf32>
    %1032 = vector.extract_strided_slice %1031 {offsets = [0, 0], sizes = [8, 32], strides = [1, 1]} : vector<8x128xf32> to vector<8x32xf32>
    %1033 = arith.negf %1032 : vector<8x32xf32>
    %1034 = math.exp %1033 : vector<8x32xf32>
    %cst_451 = arith.constant 1.000000e+00 : f32
    %1035 = vector.broadcast %cst_451 : f32 to vector<8x32xf32>
    %1036 = arith.addf %1035, %1034 : vector<8x32xf32>
    %1037 = arith.divf %1035, %1036 : vector<8x32xf32>
    %1038 = vector.extract_strided_slice %1031 {offsets = [0, 32], sizes = [8, 32], strides = [1, 1]} : vector<8x128xf32> to vector<8x32xf32>
    %1039 = arith.negf %1038 : vector<8x32xf32>
    %1040 = math.exp %1039 : vector<8x32xf32>
    %cst_452 = arith.constant 1.000000e+00 : f32
    %1041 = vector.broadcast %cst_452 : f32 to vector<8x32xf32>
    %1042 = arith.addf %1041, %1040 : vector<8x32xf32>
    %1043 = arith.divf %1041, %1042 : vector<8x32xf32>
    %1044 = vector.extract_strided_slice %1031 {offsets = [0, 64], sizes = [8, 32], strides = [1, 1]} : vector<8x128xf32> to vector<8x32xf32>
    %1045 = math.tanh %1044 : vector<8x32xf32>
    %1046 = vector.extract_strided_slice %1031 {offsets = [0, 96], sizes = [8, 32], strides = [1, 1]} : vector<8x128xf32> to vector<8x32xf32>
    %1047 = arith.negf %1046 : vector<8x32xf32>
    %1048 = math.exp %1047 : vector<8x32xf32>
    %cst_453 = arith.constant 1.000000e+00 : f32
    %1049 = vector.broadcast %cst_453 : f32 to vector<8x32xf32>
    %1050 = arith.addf %1049, %1048 : vector<8x32xf32>
    %1051 = arith.divf %1049, %1050 : vector<8x32xf32>
    %1052 = arith.mulf %1043, %937 : vector<8x32xf32>
    %1053 = arith.mulf %1037, %1045 : vector<8x32xf32>
    %1054 = arith.addf %1052, %1053 : vector<8x32xf32>
    %1055 = math.tanh %1054 : vector<8x32xf32>
    %1056 = arith.mulf %1051, %1055 : vector<8x32xf32>
    %c0_454 = arith.constant 0 : index
    %c0_455 = arith.constant 0 : index
    %1057 = vector.load %arg17[%c0_454, %c0_455] : memref<32x128xf32, #tpu.memory_space<vmem>>, vector<32x128xf32>
    %cst_456 = arith.constant dense<0.000000e+00> : vector<8x128xf32>
    %1058 = tpu.matmul %1056, %1057, %cst_456 {dimension_numbers = #tpu.dot_dimension_numbers<[1], [0], [0], [1], [0, 0, 1, 1], [], []>} : vector<8x32xf32>, vector<32x128xf32>, vector<8x128xf32> -> vector<8x128xf32>
    %c0_457 = arith.constant 0 : index
    %c0_458 = arith.constant 0 : index
    %1059 = vector.load %arg18[%c0_457, %c0_458] : memref<1x128xf32, #tpu.memory_space<vmem>>, vector<1x128xf32>
    %1060 = vector.broadcast %1059 : vector<1x128xf32> to vector<8x128xf32>
    %1061 = arith.addf %1058, %1060 : vector<8x128xf32>
    %c4_459 = arith.constant 4 : index
    %c0_460 = arith.constant 0 : index
    %c0_461 = arith.constant 0 : index
    %1062 = vector.load %arg19[%c4_459, %c0_460, %c0_461] : memref<8x8x128xf32, #tpu.memory_space<vmem>>, vector<1x8x128xf32>
    %1063 = vector.shape_cast %1062 : vector<1x8x128xf32> to vector<8x128xf32>
    %1064 = vector.shape_cast %1061 : vector<8x128xf32> to vector<1x8x128xf32>
    tpu.vector_store %arg19[%c4_459, %c0_460, %c0_461], %1064 {strides = array<i32>} : memref<8x8x128xf32, #tpu.memory_space<vmem>>, vector<1x8x128xf32>,
    %cst_462 = arith.constant dense<0xFF800000> : vector<8xf32>
    %1065 = vector.multi_reduction <maximumf>, %1061, %cst_462 [1] : vector<8x128xf32> to vector<8xf32>
    %1066 = vector.shape_cast %1065 : vector<8xf32> to vector<8x1xf32>
    %1067 = vector.broadcast %1066 : vector<8x1xf32> to vector<8x128xf32>
    %1068 = arith.cmpf oeq, %1061, %1067 : vector<8x128xf32>
    %c128_i32_463 = arith.constant 128 : i32
    %1069 = vector.broadcast %c128_i32_463 : i32 to vector<8x128xi32>
    %1070 = arith.select %1068, %608, %1069 : vector<8x128xi1>, vector<8x128xi32>
    %cst_464 = arith.constant dense<2147483647> : vector<8xi32>
    %1071 = vector.multi_reduction <minsi>, %1070, %cst_464 [1] : vector<8x128xi32> to vector<8xi32>
    %1072 = vector.shape_cast %1071 : vector<8xi32> to vector<8x1xi32>
    %c32_465 = arith.constant 32 : index
    %c0_466 = arith.constant 0 : index
    %1073 = vector.load %arg3[%c32_465, %c0_466] : memref<64x1xi32, #tpu.memory_space<vmem>>, vector<8x1xi32>
    %c4_467 = arith.constant 4 : index
    %1074 = memref.load %arg1[%c4_467] : memref<8xi32, #tpu.memory_space<smem>>
    %c1_i32_468 = arith.constant 1 : i32
    %1075 = arith.cmpi eq, %1074, %c1_i32_468 : i32
    %1076 = arith.select %1075, %1073, %1072 : vector<8x1xi32>
    %c0_469 = arith.constant 0 : index
    %c0_470 = arith.constant 0 : index
    %1077 = vector.load %arg13[%c0_469, %c0_470] : memref<1x32xf32, #tpu.memory_space<vmem>>, vector<1x32xf32>
    %1078 = vector.broadcast %1077 : vector<1x32xf32> to vector<8x32xf32>
    %1079 = arith.mulf %1056, %1078 : vector<8x32xf32>
    %cst_471 = arith.constant dense<0.000000e+00> : vector<8xf32>
    %1080 = vector.multi_reduction <add>, %1079, %cst_471 [1] : vector<8x32xf32> to vector<8xf32>
    %1081 = vector.shape_cast %1080 : vector<8xf32> to vector<8x1xf32>
    %c0_472 = arith.constant 0 : index
    %c0_473 = arith.constant 0 : index
    %1082 = vector.load %arg22[%c0_472, %c0_473] : memref<8x8xf32, #tpu.memory_space<vmem>>, vector<8x8xf32>
    %1083 = vector.broadcast %1081 : vector<8x1xf32> to vector<8x8xf32>
    %1084 = arith.addf %1082, %1083 : vector<8x8xf32>
    %cst_474 = arith.constant 0.000000e+00 : f32
    %1085 = vector.broadcast %cst_474 : f32 to vector<8x8xf32>
    %1086 = arith.maximumf %1084, %1085 : vector<8x8xf32>
    %cst_475 = arith.constant dense<0xFF800000> : vector<8xf32>
    %1087 = vector.multi_reduction <maximumf>, %1086, %cst_475 [1] : vector<8x8xf32> to vector<8xf32>
    %1088 = vector.shape_cast %1087 : vector<8xf32> to vector<8x1xf32>
    %1089 = vector.broadcast %1088 : vector<8x1xf32> to vector<8x8xf32>
    %1090 = arith.subf %1086, %1089 : vector<8x8xf32>
    %1091 = math.exp %1090 : vector<8x8xf32>
    %cst_476 = arith.constant dense<0.000000e+00> : vector<8xf32>
    %1092 = vector.multi_reduction <add>, %1091, %cst_476 [1] : vector<8x8xf32> to vector<8xf32>
    %1093 = vector.shape_cast %1092 : vector<8xf32> to vector<8x1xf32>
    %1094 = tpu.reciprocal %1093 {approx = true} : vector<8x1xf32> -> vector<8x1xf32>
    %1095 = vector.broadcast %1094 : vector<8x1xf32> to vector<8x8xf32>
    %1096 = arith.mulf %1091, %1095 : vector<8x8xf32>
    %1097 = vector.extract_strided_slice %1096 {offsets = [0, 0], sizes = [8, 1], strides = [1, 1]} : vector<8x8xf32> to vector<8x1xf32>
    %c0_477 = arith.constant 0 : index
    %c0_478 = arith.constant 0 : index
    %1098 = vector.load %arg21[%c0_477, %c0_478] : memref<64x64xf32, #tpu.memory_space<vmem>>, vector<8x64xf32>
    %1099 = vector.broadcast %1097 : vector<8x1xf32> to vector<8x64xf32>
    %1100 = arith.mulf %1099, %1098 : vector<8x64xf32>
    %1101 = vector.extract_strided_slice %1096 {offsets = [0, 1], sizes = [8, 1], strides = [1, 1]} : vector<8x8xf32> to vector<8x1xf32>
    %c8_479 = arith.constant 8 : index
    %c0_480 = arith.constant 0 : index
    %1102 = vector.load %arg21[%c8_479, %c0_480] : memref<64x64xf32, #tpu.memory_space<vmem>>, vector<8x64xf32>
    %1103 = vector.broadcast %1101 : vector<8x1xf32> to vector<8x64xf32>
    %1104 = arith.mulf %1103, %1102 : vector<8x64xf32>
    %1105 = arith.addf %1100, %1104 : vector<8x64xf32>
    %1106 = vector.extract_strided_slice %1096 {offsets = [0, 2], sizes = [8, 1], strides = [1, 1]} : vector<8x8xf32> to vector<8x1xf32>
    %c16_481 = arith.constant 16 : index
    %c0_482 = arith.constant 0 : index
    %1107 = vector.load %arg21[%c16_481, %c0_482] : memref<64x64xf32, #tpu.memory_space<vmem>>, vector<8x64xf32>
    %1108 = vector.broadcast %1106 : vector<8x1xf32> to vector<8x64xf32>
    %1109 = arith.mulf %1108, %1107 : vector<8x64xf32>
    %1110 = arith.addf %1105, %1109 : vector<8x64xf32>
    %1111 = vector.extract_strided_slice %1096 {offsets = [0, 3], sizes = [8, 1], strides = [1, 1]} : vector<8x8xf32> to vector<8x1xf32>
    %c24_483 = arith.constant 24 : index
    %c0_484 = arith.constant 0 : index
    %1112 = vector.load %arg21[%c24_483, %c0_484] : memref<64x64xf32, #tpu.memory_space<vmem>>, vector<8x64xf32>
    %1113 = vector.broadcast %1111 : vector<8x1xf32> to vector<8x64xf32>
    %1114 = arith.mulf %1113, %1112 : vector<8x64xf32>
    %1115 = arith.addf %1110, %1114 : vector<8x64xf32>
    %1116 = vector.extract_strided_slice %1096 {offsets = [0, 4], sizes = [8, 1], strides = [1, 1]} : vector<8x8xf32> to vector<8x1xf32>
    %c32_485 = arith.constant 32 : index
    %c0_486 = arith.constant 0 : index
    %1117 = vector.load %arg21[%c32_485, %c0_486] : memref<64x64xf32, #tpu.memory_space<vmem>>, vector<8x64xf32>
    %1118 = vector.broadcast %1116 : vector<8x1xf32> to vector<8x64xf32>
    %1119 = arith.mulf %1118, %1117 : vector<8x64xf32>
    %1120 = arith.addf %1115, %1119 : vector<8x64xf32>
    %1121 = vector.extract_strided_slice %1096 {offsets = [0, 5], sizes = [8, 1], strides = [1, 1]} : vector<8x8xf32> to vector<8x1xf32>
    %c40_487 = arith.constant 40 : index
    %c0_488 = arith.constant 0 : index
    %1122 = vector.load %arg21[%c40_487, %c0_488] : memref<64x64xf32, #tpu.memory_space<vmem>>, vector<8x64xf32>
    %1123 = vector.broadcast %1121 : vector<8x1xf32> to vector<8x64xf32>
    %1124 = arith.mulf %1123, %1122 : vector<8x64xf32>
    %1125 = arith.addf %1120, %1124 : vector<8x64xf32>
    %1126 = vector.extract_strided_slice %1096 {offsets = [0, 6], sizes = [8, 1], strides = [1, 1]} : vector<8x8xf32> to vector<8x1xf32>
    %c48_489 = arith.constant 48 : index
    %c0_490 = arith.constant 0 : index
    %1127 = vector.load %arg21[%c48_489, %c0_490] : memref<64x64xf32, #tpu.memory_space<vmem>>, vector<8x64xf32>
    %1128 = vector.broadcast %1126 : vector<8x1xf32> to vector<8x64xf32>
    %1129 = arith.mulf %1128, %1127 : vector<8x64xf32>
    %1130 = arith.addf %1125, %1129 : vector<8x64xf32>
    %1131 = vector.extract_strided_slice %1096 {offsets = [0, 7], sizes = [8, 1], strides = [1, 1]} : vector<8x8xf32> to vector<8x1xf32>
    %c56_491 = arith.constant 56 : index
    %c0_492 = arith.constant 0 : index
    %1132 = vector.load %arg21[%c56_491, %c0_492] : memref<64x64xf32, #tpu.memory_space<vmem>>, vector<8x64xf32>
    %1133 = vector.broadcast %1131 : vector<8x1xf32> to vector<8x64xf32>
    %1134 = arith.mulf %1133, %1132 : vector<8x64xf32>
    %1135 = arith.addf %1130, %1134 : vector<8x64xf32>
    %1136 = vector.broadcast %1076 : vector<8x1xi32> to vector<8x20xi32>
    %1137 = arith.cmpi eq, %607, %1136 : vector<8x20xi32>
    %1138 = arith.extui %1137 : vector<8x20xi1> to vector<8x20xi32>
    %1139 = arith.sitofp %1138 : vector<8x20xi32> to vector<8x20xf32>
    %c0_493 = arith.constant 0 : index
    %c0_494 = arith.constant 0 : index
    %1140 = vector.load %arg23[%c0_493, %c0_494] : memref<8x128xf32, #tpu.memory_space<vmem>>, vector<8x64xf32>
    tpu.vector_store %arg23[%c0_493, %c0_494], %1135 {strides = array<i32>} : memref<8x128xf32, #tpu.memory_space<vmem>>, vector<8x64xf32>,
    %c0_495 = arith.constant 0 : index
    %c64_496 = arith.constant 64 : index
    %1141 = vector.load %arg23[%c0_495, %c64_496] : memref<8x128xf32, #tpu.memory_space<vmem>>, vector<8x20xf32>
    tpu.vector_store %arg23[%c0_495, %c64_496], %1139 {strides = array<i32>} : memref<8x128xf32, #tpu.memory_space<vmem>>, vector<8x20xf32>,
    %c0_497 = arith.constant 0 : index
    %c84_498 = arith.constant 84 : index
    %1142 = vector.load %arg23[%c0_497, %c84_498] : memref<8x128xf32, #tpu.memory_space<vmem>>, vector<8x32xf32>
    tpu.vector_store %arg23[%c0_497, %c84_498], %1056 {strides = array<i32>} : memref<8x128xf32, #tpu.memory_space<vmem>>, vector<8x32xf32>,
    %c0_499 = arith.constant 0 : index
    %c0_500 = arith.constant 0 : index
    %1143 = vector.load %arg23[%c0_499, %c0_500] : memref<8x128xf32, #tpu.memory_space<vmem>>, vector<8x128xf32>
    %c0_501 = arith.constant 0 : index
    %c0_502 = arith.constant 0 : index
    %1144 = vector.load %arg15[%c0_501, %c0_502] : memref<128x128xf32, #tpu.memory_space<vmem>>, vector<128x128xf32>
    %cst_503 = arith.constant dense<0.000000e+00> : vector<8x128xf32>
    %1145 = tpu.matmul %1143, %1144, %cst_503 {dimension_numbers = #tpu.dot_dimension_numbers<[1], [0], [0], [1], [0, 0, 1, 1], [], []>} : vector<8x128xf32>, vector<128x128xf32>, vector<8x128xf32> -> vector<8x128xf32>
    %c0_504 = arith.constant 0 : index
    %c0_505 = arith.constant 0 : index
    %1146 = vector.load %arg16[%c0_504, %c0_505] : memref<1x128xf32, #tpu.memory_space<vmem>>, vector<1x128xf32>
    %1147 = vector.broadcast %1146 : vector<1x128xf32> to vector<8x128xf32>
    %1148 = arith.addf %1145, %1147 : vector<8x128xf32>
    %1149 = vector.extract_strided_slice %1148 {offsets = [0, 0], sizes = [8, 32], strides = [1, 1]} : vector<8x128xf32> to vector<8x32xf32>
    %1150 = arith.negf %1149 : vector<8x32xf32>
    %1151 = math.exp %1150 : vector<8x32xf32>
    %cst_506 = arith.constant 1.000000e+00 : f32
    %1152 = vector.broadcast %cst_506 : f32 to vector<8x32xf32>
    %1153 = arith.addf %1152, %1151 : vector<8x32xf32>
    %1154 = arith.divf %1152, %1153 : vector<8x32xf32>
    %1155 = vector.extract_strided_slice %1148 {offsets = [0, 32], sizes = [8, 32], strides = [1, 1]} : vector<8x128xf32> to vector<8x32xf32>
    %1156 = arith.negf %1155 : vector<8x32xf32>
    %1157 = math.exp %1156 : vector<8x32xf32>
    %cst_507 = arith.constant 1.000000e+00 : f32
    %1158 = vector.broadcast %cst_507 : f32 to vector<8x32xf32>
    %1159 = arith.addf %1158, %1157 : vector<8x32xf32>
    %1160 = arith.divf %1158, %1159 : vector<8x32xf32>
    %1161 = vector.extract_strided_slice %1148 {offsets = [0, 64], sizes = [8, 32], strides = [1, 1]} : vector<8x128xf32> to vector<8x32xf32>
    %1162 = math.tanh %1161 : vector<8x32xf32>
    %1163 = vector.extract_strided_slice %1148 {offsets = [0, 96], sizes = [8, 32], strides = [1, 1]} : vector<8x128xf32> to vector<8x32xf32>
    %1164 = arith.negf %1163 : vector<8x32xf32>
    %1165 = math.exp %1164 : vector<8x32xf32>
    %cst_508 = arith.constant 1.000000e+00 : f32
    %1166 = vector.broadcast %cst_508 : f32 to vector<8x32xf32>
    %1167 = arith.addf %1166, %1165 : vector<8x32xf32>
    %1168 = arith.divf %1166, %1167 : vector<8x32xf32>
    %1169 = arith.mulf %1160, %1054 : vector<8x32xf32>
    %1170 = arith.mulf %1154, %1162 : vector<8x32xf32>
    %1171 = arith.addf %1169, %1170 : vector<8x32xf32>
    %1172 = math.tanh %1171 : vector<8x32xf32>
    %1173 = arith.mulf %1168, %1172 : vector<8x32xf32>
    %c0_509 = arith.constant 0 : index
    %c0_510 = arith.constant 0 : index
    %1174 = vector.load %arg17[%c0_509, %c0_510] : memref<32x128xf32, #tpu.memory_space<vmem>>, vector<32x128xf32>
    %cst_511 = arith.constant dense<0.000000e+00> : vector<8x128xf32>
    %1175 = tpu.matmul %1173, %1174, %cst_511 {dimension_numbers = #tpu.dot_dimension_numbers<[1], [0], [0], [1], [0, 0, 1, 1], [], []>} : vector<8x32xf32>, vector<32x128xf32>, vector<8x128xf32> -> vector<8x128xf32>
    %c0_512 = arith.constant 0 : index
    %c0_513 = arith.constant 0 : index
    %1176 = vector.load %arg18[%c0_512, %c0_513] : memref<1x128xf32, #tpu.memory_space<vmem>>, vector<1x128xf32>
    %1177 = vector.broadcast %1176 : vector<1x128xf32> to vector<8x128xf32>
    %1178 = arith.addf %1175, %1177 : vector<8x128xf32>
    %c5_514 = arith.constant 5 : index
    %c0_515 = arith.constant 0 : index
    %c0_516 = arith.constant 0 : index
    %1179 = vector.load %arg19[%c5_514, %c0_515, %c0_516] : memref<8x8x128xf32, #tpu.memory_space<vmem>>, vector<1x8x128xf32>
    %1180 = vector.shape_cast %1179 : vector<1x8x128xf32> to vector<8x128xf32>
    %1181 = vector.shape_cast %1178 : vector<8x128xf32> to vector<1x8x128xf32>
    tpu.vector_store %arg19[%c5_514, %c0_515, %c0_516], %1181 {strides = array<i32>} : memref<8x8x128xf32, #tpu.memory_space<vmem>>, vector<1x8x128xf32>,
    %cst_517 = arith.constant dense<0xFF800000> : vector<8xf32>
    %1182 = vector.multi_reduction <maximumf>, %1178, %cst_517 [1] : vector<8x128xf32> to vector<8xf32>
    %1183 = vector.shape_cast %1182 : vector<8xf32> to vector<8x1xf32>
    %1184 = vector.broadcast %1183 : vector<8x1xf32> to vector<8x128xf32>
    %1185 = arith.cmpf oeq, %1178, %1184 : vector<8x128xf32>
    %c128_i32_518 = arith.constant 128 : i32
    %1186 = vector.broadcast %c128_i32_518 : i32 to vector<8x128xi32>
    %1187 = arith.select %1185, %608, %1186 : vector<8x128xi1>, vector<8x128xi32>
    %cst_519 = arith.constant dense<2147483647> : vector<8xi32>
    %1188 = vector.multi_reduction <minsi>, %1187, %cst_519 [1] : vector<8x128xi32> to vector<8xi32>
    %1189 = vector.shape_cast %1188 : vector<8xi32> to vector<8x1xi32>
    %c40_520 = arith.constant 40 : index
    %c0_521 = arith.constant 0 : index
    %1190 = vector.load %arg3[%c40_520, %c0_521] : memref<64x1xi32, #tpu.memory_space<vmem>>, vector<8x1xi32>
    %c5_522 = arith.constant 5 : index
    %1191 = memref.load %arg1[%c5_522] : memref<8xi32, #tpu.memory_space<smem>>
    %c1_i32_523 = arith.constant 1 : i32
    %1192 = arith.cmpi eq, %1191, %c1_i32_523 : i32
    %1193 = arith.select %1192, %1190, %1189 : vector<8x1xi32>
    %c0_524 = arith.constant 0 : index
    %c0_525 = arith.constant 0 : index
    %1194 = vector.load %arg13[%c0_524, %c0_525] : memref<1x32xf32, #tpu.memory_space<vmem>>, vector<1x32xf32>
    %1195 = vector.broadcast %1194 : vector<1x32xf32> to vector<8x32xf32>
    %1196 = arith.mulf %1173, %1195 : vector<8x32xf32>
    %cst_526 = arith.constant dense<0.000000e+00> : vector<8xf32>
    %1197 = vector.multi_reduction <add>, %1196, %cst_526 [1] : vector<8x32xf32> to vector<8xf32>
    %1198 = vector.shape_cast %1197 : vector<8xf32> to vector<8x1xf32>
    %c0_527 = arith.constant 0 : index
    %c0_528 = arith.constant 0 : index
    %1199 = vector.load %arg22[%c0_527, %c0_528] : memref<8x8xf32, #tpu.memory_space<vmem>>, vector<8x8xf32>
    %1200 = vector.broadcast %1198 : vector<8x1xf32> to vector<8x8xf32>
    %1201 = arith.addf %1199, %1200 : vector<8x8xf32>
    %cst_529 = arith.constant 0.000000e+00 : f32
    %1202 = vector.broadcast %cst_529 : f32 to vector<8x8xf32>
    %1203 = arith.maximumf %1201, %1202 : vector<8x8xf32>
    %cst_530 = arith.constant dense<0xFF800000> : vector<8xf32>
    %1204 = vector.multi_reduction <maximumf>, %1203, %cst_530 [1] : vector<8x8xf32> to vector<8xf32>
    %1205 = vector.shape_cast %1204 : vector<8xf32> to vector<8x1xf32>
    %1206 = vector.broadcast %1205 : vector<8x1xf32> to vector<8x8xf32>
    %1207 = arith.subf %1203, %1206 : vector<8x8xf32>
    %1208 = math.exp %1207 : vector<8x8xf32>
    %cst_531 = arith.constant dense<0.000000e+00> : vector<8xf32>
    %1209 = vector.multi_reduction <add>, %1208, %cst_531 [1] : vector<8x8xf32> to vector<8xf32>
    %1210 = vector.shape_cast %1209 : vector<8xf32> to vector<8x1xf32>
    %1211 = tpu.reciprocal %1210 {approx = true} : vector<8x1xf32> -> vector<8x1xf32>
    %1212 = vector.broadcast %1211 : vector<8x1xf32> to vector<8x8xf32>
    %1213 = arith.mulf %1208, %1212 : vector<8x8xf32>
    %1214 = vector.extract_strided_slice %1213 {offsets = [0, 0], sizes = [8, 1], strides = [1, 1]} : vector<8x8xf32> to vector<8x1xf32>
    %c0_532 = arith.constant 0 : index
    %c0_533 = arith.constant 0 : index
    %1215 = vector.load %arg21[%c0_532, %c0_533] : memref<64x64xf32, #tpu.memory_space<vmem>>, vector<8x64xf32>
    %1216 = vector.broadcast %1214 : vector<8x1xf32> to vector<8x64xf32>
    %1217 = arith.mulf %1216, %1215 : vector<8x64xf32>
    %1218 = vector.extract_strided_slice %1213 {offsets = [0, 1], sizes = [8, 1], strides = [1, 1]} : vector<8x8xf32> to vector<8x1xf32>
    %c8_534 = arith.constant 8 : index
    %c0_535 = arith.constant 0 : index
    %1219 = vector.load %arg21[%c8_534, %c0_535] : memref<64x64xf32, #tpu.memory_space<vmem>>, vector<8x64xf32>
    %1220 = vector.broadcast %1218 : vector<8x1xf32> to vector<8x64xf32>
    %1221 = arith.mulf %1220, %1219 : vector<8x64xf32>
    %1222 = arith.addf %1217, %1221 : vector<8x64xf32>
    %1223 = vector.extract_strided_slice %1213 {offsets = [0, 2], sizes = [8, 1], strides = [1, 1]} : vector<8x8xf32> to vector<8x1xf32>
    %c16_536 = arith.constant 16 : index
    %c0_537 = arith.constant 0 : index
    %1224 = vector.load %arg21[%c16_536, %c0_537] : memref<64x64xf32, #tpu.memory_space<vmem>>, vector<8x64xf32>
    %1225 = vector.broadcast %1223 : vector<8x1xf32> to vector<8x64xf32>
    %1226 = arith.mulf %1225, %1224 : vector<8x64xf32>
    %1227 = arith.addf %1222, %1226 : vector<8x64xf32>
    %1228 = vector.extract_strided_slice %1213 {offsets = [0, 3], sizes = [8, 1], strides = [1, 1]} : vector<8x8xf32> to vector<8x1xf32>
    %c24_538 = arith.constant 24 : index
    %c0_539 = arith.constant 0 : index
    %1229 = vector.load %arg21[%c24_538, %c0_539] : memref<64x64xf32, #tpu.memory_space<vmem>>, vector<8x64xf32>
    %1230 = vector.broadcast %1228 : vector<8x1xf32> to vector<8x64xf32>
    %1231 = arith.mulf %1230, %1229 : vector<8x64xf32>
    %1232 = arith.addf %1227, %1231 : vector<8x64xf32>
    %1233 = vector.extract_strided_slice %1213 {offsets = [0, 4], sizes = [8, 1], strides = [1, 1]} : vector<8x8xf32> to vector<8x1xf32>
    %c32_540 = arith.constant 32 : index
    %c0_541 = arith.constant 0 : index
    %1234 = vector.load %arg21[%c32_540, %c0_541] : memref<64x64xf32, #tpu.memory_space<vmem>>, vector<8x64xf32>
    %1235 = vector.broadcast %1233 : vector<8x1xf32> to vector<8x64xf32>
    %1236 = arith.mulf %1235, %1234 : vector<8x64xf32>
    %1237 = arith.addf %1232, %1236 : vector<8x64xf32>
    %1238 = vector.extract_strided_slice %1213 {offsets = [0, 5], sizes = [8, 1], strides = [1, 1]} : vector<8x8xf32> to vector<8x1xf32>
    %c40_542 = arith.constant 40 : index
    %c0_543 = arith.constant 0 : index
    %1239 = vector.load %arg21[%c40_542, %c0_543] : memref<64x64xf32, #tpu.memory_space<vmem>>, vector<8x64xf32>
    %1240 = vector.broadcast %1238 : vector<8x1xf32> to vector<8x64xf32>
    %1241 = arith.mulf %1240, %1239 : vector<8x64xf32>
    %1242 = arith.addf %1237, %1241 : vector<8x64xf32>
    %1243 = vector.extract_strided_slice %1213 {offsets = [0, 6], sizes = [8, 1], strides = [1, 1]} : vector<8x8xf32> to vector<8x1xf32>
    %c48_544 = arith.constant 48 : index
    %c0_545 = arith.constant 0 : index
    %1244 = vector.load %arg21[%c48_544, %c0_545] : memref<64x64xf32, #tpu.memory_space<vmem>>, vector<8x64xf32>
    %1245 = vector.broadcast %1243 : vector<8x1xf32> to vector<8x64xf32>
    %1246 = arith.mulf %1245, %1244 : vector<8x64xf32>
    %1247 = arith.addf %1242, %1246 : vector<8x64xf32>
    %1248 = vector.extract_strided_slice %1213 {offsets = [0, 7], sizes = [8, 1], strides = [1, 1]} : vector<8x8xf32> to vector<8x1xf32>
    %c56_546 = arith.constant 56 : index
    %c0_547 = arith.constant 0 : index
    %1249 = vector.load %arg21[%c56_546, %c0_547] : memref<64x64xf32, #tpu.memory_space<vmem>>, vector<8x64xf32>
    %1250 = vector.broadcast %1248 : vector<8x1xf32> to vector<8x64xf32>
    %1251 = arith.mulf %1250, %1249 : vector<8x64xf32>
    %1252 = arith.addf %1247, %1251 : vector<8x64xf32>
    %1253 = vector.broadcast %1193 : vector<8x1xi32> to vector<8x20xi32>
    %1254 = arith.cmpi eq, %607, %1253 : vector<8x20xi32>
    %1255 = arith.extui %1254 : vector<8x20xi1> to vector<8x20xi32>
    %1256 = arith.sitofp %1255 : vector<8x20xi32> to vector<8x20xf32>
    %c0_548 = arith.constant 0 : index
    %c0_549 = arith.constant 0 : index
    %1257 = vector.load %arg23[%c0_548, %c0_549] : memref<8x128xf32, #tpu.memory_space<vmem>>, vector<8x64xf32>
    tpu.vector_store %arg23[%c0_548, %c0_549], %1252 {strides = array<i32>} : memref<8x128xf32, #tpu.memory_space<vmem>>, vector<8x64xf32>,
    %c0_550 = arith.constant 0 : index
    %c64_551 = arith.constant 64 : index
    %1258 = vector.load %arg23[%c0_550, %c64_551] : memref<8x128xf32, #tpu.memory_space<vmem>>, vector<8x20xf32>
    tpu.vector_store %arg23[%c0_550, %c64_551], %1256 {strides = array<i32>} : memref<8x128xf32, #tpu.memory_space<vmem>>, vector<8x20xf32>,
    %c0_552 = arith.constant 0 : index
    %c84_553 = arith.constant 84 : index
    %1259 = vector.load %arg23[%c0_552, %c84_553] : memref<8x128xf32, #tpu.memory_space<vmem>>, vector<8x32xf32>
    tpu.vector_store %arg23[%c0_552, %c84_553], %1173 {strides = array<i32>} : memref<8x128xf32, #tpu.memory_space<vmem>>, vector<8x32xf32>,
    %c0_554 = arith.constant 0 : index
    %c0_555 = arith.constant 0 : index
    %1260 = vector.load %arg23[%c0_554, %c0_555] : memref<8x128xf32, #tpu.memory_space<vmem>>, vector<8x128xf32>
    %c0_556 = arith.constant 0 : index
    %c0_557 = arith.constant 0 : index
    %1261 = vector.load %arg15[%c0_556, %c0_557] : memref<128x128xf32, #tpu.memory_space<vmem>>, vector<128x128xf32>
    %cst_558 = arith.constant dense<0.000000e+00> : vector<8x128xf32>
    %1262 = tpu.matmul %1260, %1261, %cst_558 {dimension_numbers = #tpu.dot_dimension_numbers<[1], [0], [0], [1], [0, 0, 1, 1], [], []>} : vector<8x128xf32>, vector<128x128xf32>, vector<8x128xf32> -> vector<8x128xf32>
    %c0_559 = arith.constant 0 : index
    %c0_560 = arith.constant 0 : index
    %1263 = vector.load %arg16[%c0_559, %c0_560] : memref<1x128xf32, #tpu.memory_space<vmem>>, vector<1x128xf32>
    %1264 = vector.broadcast %1263 : vector<1x128xf32> to vector<8x128xf32>
    %1265 = arith.addf %1262, %1264 : vector<8x128xf32>
    %1266 = vector.extract_strided_slice %1265 {offsets = [0, 0], sizes = [8, 32], strides = [1, 1]} : vector<8x128xf32> to vector<8x32xf32>
    %1267 = arith.negf %1266 : vector<8x32xf32>
    %1268 = math.exp %1267 : vector<8x32xf32>
    %cst_561 = arith.constant 1.000000e+00 : f32
    %1269 = vector.broadcast %cst_561 : f32 to vector<8x32xf32>
    %1270 = arith.addf %1269, %1268 : vector<8x32xf32>
    %1271 = arith.divf %1269, %1270 : vector<8x32xf32>
    %1272 = vector.extract_strided_slice %1265 {offsets = [0, 32], sizes = [8, 32], strides = [1, 1]} : vector<8x128xf32> to vector<8x32xf32>
    %1273 = arith.negf %1272 : vector<8x32xf32>
    %1274 = math.exp %1273 : vector<8x32xf32>
    %cst_562 = arith.constant 1.000000e+00 : f32
    %1275 = vector.broadcast %cst_562 : f32 to vector<8x32xf32>
    %1276 = arith.addf %1275, %1274 : vector<8x32xf32>
    %1277 = arith.divf %1275, %1276 : vector<8x32xf32>
    %1278 = vector.extract_strided_slice %1265 {offsets = [0, 64], sizes = [8, 32], strides = [1, 1]} : vector<8x128xf32> to vector<8x32xf32>
    %1279 = math.tanh %1278 : vector<8x32xf32>
    %1280 = vector.extract_strided_slice %1265 {offsets = [0, 96], sizes = [8, 32], strides = [1, 1]} : vector<8x128xf32> to vector<8x32xf32>
    %1281 = arith.negf %1280 : vector<8x32xf32>
    %1282 = math.exp %1281 : vector<8x32xf32>
    %cst_563 = arith.constant 1.000000e+00 : f32
    %1283 = vector.broadcast %cst_563 : f32 to vector<8x32xf32>
    %1284 = arith.addf %1283, %1282 : vector<8x32xf32>
    %1285 = arith.divf %1283, %1284 : vector<8x32xf32>
    %1286 = arith.mulf %1277, %1171 : vector<8x32xf32>
    %1287 = arith.mulf %1271, %1279 : vector<8x32xf32>
    %1288 = arith.addf %1286, %1287 : vector<8x32xf32>
    %1289 = math.tanh %1288 : vector<8x32xf32>
    %1290 = arith.mulf %1285, %1289 : vector<8x32xf32>
    %c0_564 = arith.constant 0 : index
    %c0_565 = arith.constant 0 : index
    %1291 = vector.load %arg17[%c0_564, %c0_565] : memref<32x128xf32, #tpu.memory_space<vmem>>, vector<32x128xf32>
    %cst_566 = arith.constant dense<0.000000e+00> : vector<8x128xf32>
    %1292 = tpu.matmul %1290, %1291, %cst_566 {dimension_numbers = #tpu.dot_dimension_numbers<[1], [0], [0], [1], [0, 0, 1, 1], [], []>} : vector<8x32xf32>, vector<32x128xf32>, vector<8x128xf32> -> vector<8x128xf32>
    %c0_567 = arith.constant 0 : index
    %c0_568 = arith.constant 0 : index
    %1293 = vector.load %arg18[%c0_567, %c0_568] : memref<1x128xf32, #tpu.memory_space<vmem>>, vector<1x128xf32>
    %1294 = vector.broadcast %1293 : vector<1x128xf32> to vector<8x128xf32>
    %1295 = arith.addf %1292, %1294 : vector<8x128xf32>
    %c6_569 = arith.constant 6 : index
    %c0_570 = arith.constant 0 : index
    %c0_571 = arith.constant 0 : index
    %1296 = vector.load %arg19[%c6_569, %c0_570, %c0_571] : memref<8x8x128xf32, #tpu.memory_space<vmem>>, vector<1x8x128xf32>
    %1297 = vector.shape_cast %1296 : vector<1x8x128xf32> to vector<8x128xf32>
    %1298 = vector.shape_cast %1295 : vector<8x128xf32> to vector<1x8x128xf32>
    tpu.vector_store %arg19[%c6_569, %c0_570, %c0_571], %1298 {strides = array<i32>} : memref<8x8x128xf32, #tpu.memory_space<vmem>>, vector<1x8x128xf32>,
    %cst_572 = arith.constant dense<0xFF800000> : vector<8xf32>
    %1299 = vector.multi_reduction <maximumf>, %1295, %cst_572 [1] : vector<8x128xf32> to vector<8xf32>
    %1300 = vector.shape_cast %1299 : vector<8xf32> to vector<8x1xf32>
    %1301 = vector.broadcast %1300 : vector<8x1xf32> to vector<8x128xf32>
    %1302 = arith.cmpf oeq, %1295, %1301 : vector<8x128xf32>
    %c128_i32_573 = arith.constant 128 : i32
    %1303 = vector.broadcast %c128_i32_573 : i32 to vector<8x128xi32>
    %1304 = arith.select %1302, %608, %1303 : vector<8x128xi1>, vector<8x128xi32>
    %cst_574 = arith.constant dense<2147483647> : vector<8xi32>
    %1305 = vector.multi_reduction <minsi>, %1304, %cst_574 [1] : vector<8x128xi32> to vector<8xi32>
    %1306 = vector.shape_cast %1305 : vector<8xi32> to vector<8x1xi32>
    %c48_575 = arith.constant 48 : index
    %c0_576 = arith.constant 0 : index
    %1307 = vector.load %arg3[%c48_575, %c0_576] : memref<64x1xi32, #tpu.memory_space<vmem>>, vector<8x1xi32>
    %c6_577 = arith.constant 6 : index
    %1308 = memref.load %arg1[%c6_577] : memref<8xi32, #tpu.memory_space<smem>>
    %c1_i32_578 = arith.constant 1 : i32
    %1309 = arith.cmpi eq, %1308, %c1_i32_578 : i32
    %1310 = arith.select %1309, %1307, %1306 : vector<8x1xi32>
    %c0_579 = arith.constant 0 : index
    %c0_580 = arith.constant 0 : index
    %1311 = vector.load %arg13[%c0_579, %c0_580] : memref<1x32xf32, #tpu.memory_space<vmem>>, vector<1x32xf32>
    %1312 = vector.broadcast %1311 : vector<1x32xf32> to vector<8x32xf32>
    %1313 = arith.mulf %1290, %1312 : vector<8x32xf32>
    %cst_581 = arith.constant dense<0.000000e+00> : vector<8xf32>
    %1314 = vector.multi_reduction <add>, %1313, %cst_581 [1] : vector<8x32xf32> to vector<8xf32>
    %1315 = vector.shape_cast %1314 : vector<8xf32> to vector<8x1xf32>
    %c0_582 = arith.constant 0 : index
    %c0_583 = arith.constant 0 : index
    %1316 = vector.load %arg22[%c0_582, %c0_583] : memref<8x8xf32, #tpu.memory_space<vmem>>, vector<8x8xf32>
    %1317 = vector.broadcast %1315 : vector<8x1xf32> to vector<8x8xf32>
    %1318 = arith.addf %1316, %1317 : vector<8x8xf32>
    %cst_584 = arith.constant 0.000000e+00 : f32
    %1319 = vector.broadcast %cst_584 : f32 to vector<8x8xf32>
    %1320 = arith.maximumf %1318, %1319 : vector<8x8xf32>
    %cst_585 = arith.constant dense<0xFF800000> : vector<8xf32>
    %1321 = vector.multi_reduction <maximumf>, %1320, %cst_585 [1] : vector<8x8xf32> to vector<8xf32>
    %1322 = vector.shape_cast %1321 : vector<8xf32> to vector<8x1xf32>
    %1323 = vector.broadcast %1322 : vector<8x1xf32> to vector<8x8xf32>
    %1324 = arith.subf %1320, %1323 : vector<8x8xf32>
    %1325 = math.exp %1324 : vector<8x8xf32>
    %cst_586 = arith.constant dense<0.000000e+00> : vector<8xf32>
    %1326 = vector.multi_reduction <add>, %1325, %cst_586 [1] : vector<8x8xf32> to vector<8xf32>
    %1327 = vector.shape_cast %1326 : vector<8xf32> to vector<8x1xf32>
    %1328 = tpu.reciprocal %1327 {approx = true} : vector<8x1xf32> -> vector<8x1xf32>
    %1329 = vector.broadcast %1328 : vector<8x1xf32> to vector<8x8xf32>
    %1330 = arith.mulf %1325, %1329 : vector<8x8xf32>
    %1331 = vector.extract_strided_slice %1330 {offsets = [0, 0], sizes = [8, 1], strides = [1, 1]} : vector<8x8xf32> to vector<8x1xf32>
    %c0_587 = arith.constant 0 : index
    %c0_588 = arith.constant 0 : index
    %1332 = vector.load %arg21[%c0_587, %c0_588] : memref<64x64xf32, #tpu.memory_space<vmem>>, vector<8x64xf32>
    %1333 = vector.broadcast %1331 : vector<8x1xf32> to vector<8x64xf32>
    %1334 = arith.mulf %1333, %1332 : vector<8x64xf32>
    %1335 = vector.extract_strided_slice %1330 {offsets = [0, 1], sizes = [8, 1], strides = [1, 1]} : vector<8x8xf32> to vector<8x1xf32>
    %c8_589 = arith.constant 8 : index
    %c0_590 = arith.constant 0 : index
    %1336 = vector.load %arg21[%c8_589, %c0_590] : memref<64x64xf32, #tpu.memory_space<vmem>>, vector<8x64xf32>
    %1337 = vector.broadcast %1335 : vector<8x1xf32> to vector<8x64xf32>
    %1338 = arith.mulf %1337, %1336 : vector<8x64xf32>
    %1339 = arith.addf %1334, %1338 : vector<8x64xf32>
    %1340 = vector.extract_strided_slice %1330 {offsets = [0, 2], sizes = [8, 1], strides = [1, 1]} : vector<8x8xf32> to vector<8x1xf32>
    %c16_591 = arith.constant 16 : index
    %c0_592 = arith.constant 0 : index
    %1341 = vector.load %arg21[%c16_591, %c0_592] : memref<64x64xf32, #tpu.memory_space<vmem>>, vector<8x64xf32>
    %1342 = vector.broadcast %1340 : vector<8x1xf32> to vector<8x64xf32>
    %1343 = arith.mulf %1342, %1341 : vector<8x64xf32>
    %1344 = arith.addf %1339, %1343 : vector<8x64xf32>
    %1345 = vector.extract_strided_slice %1330 {offsets = [0, 3], sizes = [8, 1], strides = [1, 1]} : vector<8x8xf32> to vector<8x1xf32>
    %c24_593 = arith.constant 24 : index
    %c0_594 = arith.constant 0 : index
    %1346 = vector.load %arg21[%c24_593, %c0_594] : memref<64x64xf32, #tpu.memory_space<vmem>>, vector<8x64xf32>
    %1347 = vector.broadcast %1345 : vector<8x1xf32> to vector<8x64xf32>
    %1348 = arith.mulf %1347, %1346 : vector<8x64xf32>
    %1349 = arith.addf %1344, %1348 : vector<8x64xf32>
    %1350 = vector.extract_strided_slice %1330 {offsets = [0, 4], sizes = [8, 1], strides = [1, 1]} : vector<8x8xf32> to vector<8x1xf32>
    %c32_595 = arith.constant 32 : index
    %c0_596 = arith.constant 0 : index
    %1351 = vector.load %arg21[%c32_595, %c0_596] : memref<64x64xf32, #tpu.memory_space<vmem>>, vector<8x64xf32>
    %1352 = vector.broadcast %1350 : vector<8x1xf32> to vector<8x64xf32>
    %1353 = arith.mulf %1352, %1351 : vector<8x64xf32>
    %1354 = arith.addf %1349, %1353 : vector<8x64xf32>
    %1355 = vector.extract_strided_slice %1330 {offsets = [0, 5], sizes = [8, 1], strides = [1, 1]} : vector<8x8xf32> to vector<8x1xf32>
    %c40_597 = arith.constant 40 : index
    %c0_598 = arith.constant 0 : index
    %1356 = vector.load %arg21[%c40_597, %c0_598] : memref<64x64xf32, #tpu.memory_space<vmem>>, vector<8x64xf32>
    %1357 = vector.broadcast %1355 : vector<8x1xf32> to vector<8x64xf32>
    %1358 = arith.mulf %1357, %1356 : vector<8x64xf32>
    %1359 = arith.addf %1354, %1358 : vector<8x64xf32>
    %1360 = vector.extract_strided_slice %1330 {offsets = [0, 6], sizes = [8, 1], strides = [1, 1]} : vector<8x8xf32> to vector<8x1xf32>
    %c48_599 = arith.constant 48 : index
    %c0_600 = arith.constant 0 : index
    %1361 = vector.load %arg21[%c48_599, %c0_600] : memref<64x64xf32, #tpu.memory_space<vmem>>, vector<8x64xf32>
    %1362 = vector.broadcast %1360 : vector<8x1xf32> to vector<8x64xf32>
    %1363 = arith.mulf %1362, %1361 : vector<8x64xf32>
    %1364 = arith.addf %1359, %1363 : vector<8x64xf32>
    %1365 = vector.extract_strided_slice %1330 {offsets = [0, 7], sizes = [8, 1], strides = [1, 1]} : vector<8x8xf32> to vector<8x1xf32>
    %c56_601 = arith.constant 56 : index
    %c0_602 = arith.constant 0 : index
    %1366 = vector.load %arg21[%c56_601, %c0_602] : memref<64x64xf32, #tpu.memory_space<vmem>>, vector<8x64xf32>
    %1367 = vector.broadcast %1365 : vector<8x1xf32> to vector<8x64xf32>
    %1368 = arith.mulf %1367, %1366 : vector<8x64xf32>
    %1369 = arith.addf %1364, %1368 : vector<8x64xf32>
    %1370 = vector.broadcast %1310 : vector<8x1xi32> to vector<8x20xi32>
    %1371 = arith.cmpi eq, %607, %1370 : vector<8x20xi32>
    %1372 = arith.extui %1371 : vector<8x20xi1> to vector<8x20xi32>
    %1373 = arith.sitofp %1372 : vector<8x20xi32> to vector<8x20xf32>
    %c0_603 = arith.constant 0 : index
    %c0_604 = arith.constant 0 : index
    %1374 = vector.load %arg23[%c0_603, %c0_604] : memref<8x128xf32, #tpu.memory_space<vmem>>, vector<8x64xf32>
    tpu.vector_store %arg23[%c0_603, %c0_604], %1369 {strides = array<i32>} : memref<8x128xf32, #tpu.memory_space<vmem>>, vector<8x64xf32>,
    %c0_605 = arith.constant 0 : index
    %c64_606 = arith.constant 64 : index
    %1375 = vector.load %arg23[%c0_605, %c64_606] : memref<8x128xf32, #tpu.memory_space<vmem>>, vector<8x20xf32>
    tpu.vector_store %arg23[%c0_605, %c64_606], %1373 {strides = array<i32>} : memref<8x128xf32, #tpu.memory_space<vmem>>, vector<8x20xf32>,
    %c0_607 = arith.constant 0 : index
    %c84_608 = arith.constant 84 : index
    %1376 = vector.load %arg23[%c0_607, %c84_608] : memref<8x128xf32, #tpu.memory_space<vmem>>, vector<8x32xf32>
    tpu.vector_store %arg23[%c0_607, %c84_608], %1290 {strides = array<i32>} : memref<8x128xf32, #tpu.memory_space<vmem>>, vector<8x32xf32>,
    %c0_609 = arith.constant 0 : index
    %c0_610 = arith.constant 0 : index
    %1377 = vector.load %arg23[%c0_609, %c0_610] : memref<8x128xf32, #tpu.memory_space<vmem>>, vector<8x128xf32>
    %c0_611 = arith.constant 0 : index
    %c0_612 = arith.constant 0 : index
    %1378 = vector.load %arg15[%c0_611, %c0_612] : memref<128x128xf32, #tpu.memory_space<vmem>>, vector<128x128xf32>
    %cst_613 = arith.constant dense<0.000000e+00> : vector<8x128xf32>
    %1379 = tpu.matmul %1377, %1378, %cst_613 {dimension_numbers = #tpu.dot_dimension_numbers<[1], [0], [0], [1], [0, 0, 1, 1], [], []>} : vector<8x128xf32>, vector<128x128xf32>, vector<8x128xf32> -> vector<8x128xf32>
    %c0_614 = arith.constant 0 : index
    %c0_615 = arith.constant 0 : index
    %1380 = vector.load %arg16[%c0_614, %c0_615] : memref<1x128xf32, #tpu.memory_space<vmem>>, vector<1x128xf32>
    %1381 = vector.broadcast %1380 : vector<1x128xf32> to vector<8x128xf32>
    %1382 = arith.addf %1379, %1381 : vector<8x128xf32>
    %1383 = vector.extract_strided_slice %1382 {offsets = [0, 0], sizes = [8, 32], strides = [1, 1]} : vector<8x128xf32> to vector<8x32xf32>
    %1384 = arith.negf %1383 : vector<8x32xf32>
    %1385 = math.exp %1384 : vector<8x32xf32>
    %cst_616 = arith.constant 1.000000e+00 : f32
    %1386 = vector.broadcast %cst_616 : f32 to vector<8x32xf32>
    %1387 = arith.addf %1386, %1385 : vector<8x32xf32>
    %1388 = arith.divf %1386, %1387 : vector<8x32xf32>
    %1389 = vector.extract_strided_slice %1382 {offsets = [0, 32], sizes = [8, 32], strides = [1, 1]} : vector<8x128xf32> to vector<8x32xf32>
    %1390 = arith.negf %1389 : vector<8x32xf32>
    %1391 = math.exp %1390 : vector<8x32xf32>
    %cst_617 = arith.constant 1.000000e+00 : f32
    %1392 = vector.broadcast %cst_617 : f32 to vector<8x32xf32>
    %1393 = arith.addf %1392, %1391 : vector<8x32xf32>
    %1394 = arith.divf %1392, %1393 : vector<8x32xf32>
    %1395 = vector.extract_strided_slice %1382 {offsets = [0, 64], sizes = [8, 32], strides = [1, 1]} : vector<8x128xf32> to vector<8x32xf32>
    %1396 = math.tanh %1395 : vector<8x32xf32>
    %1397 = vector.extract_strided_slice %1382 {offsets = [0, 96], sizes = [8, 32], strides = [1, 1]} : vector<8x128xf32> to vector<8x32xf32>
    %1398 = arith.negf %1397 : vector<8x32xf32>
    %1399 = math.exp %1398 : vector<8x32xf32>
    %cst_618 = arith.constant 1.000000e+00 : f32
    %1400 = vector.broadcast %cst_618 : f32 to vector<8x32xf32>
    %1401 = arith.addf %1400, %1399 : vector<8x32xf32>
    %1402 = arith.divf %1400, %1401 : vector<8x32xf32>
    %1403 = arith.mulf %1394, %1288 : vector<8x32xf32>
    %1404 = arith.mulf %1388, %1396 : vector<8x32xf32>
    %1405 = arith.addf %1403, %1404 : vector<8x32xf32>
    %1406 = math.tanh %1405 : vector<8x32xf32>
    %1407 = arith.mulf %1402, %1406 : vector<8x32xf32>
    %c0_619 = arith.constant 0 : index
    %c0_620 = arith.constant 0 : index
    %1408 = vector.load %arg17[%c0_619, %c0_620] : memref<32x128xf32, #tpu.memory_space<vmem>>, vector<32x128xf32>
    %cst_621 = arith.constant dense<0.000000e+00> : vector<8x128xf32>
    %1409 = tpu.matmul %1407, %1408, %cst_621 {dimension_numbers = #tpu.dot_dimension_numbers<[1], [0], [0], [1], [0, 0, 1, 1], [], []>} : vector<8x32xf32>, vector<32x128xf32>, vector<8x128xf32> -> vector<8x128xf32>
    %c0_622 = arith.constant 0 : index
    %c0_623 = arith.constant 0 : index
    %1410 = vector.load %arg18[%c0_622, %c0_623] : memref<1x128xf32, #tpu.memory_space<vmem>>, vector<1x128xf32>
    %1411 = vector.broadcast %1410 : vector<1x128xf32> to vector<8x128xf32>
    %1412 = arith.addf %1409, %1411 : vector<8x128xf32>
    %c7_624 = arith.constant 7 : index
    %c0_625 = arith.constant 0 : index
    %c0_626 = arith.constant 0 : index
    %1413 = vector.load %arg19[%c7_624, %c0_625, %c0_626] : memref<8x8x128xf32, #tpu.memory_space<vmem>>, vector<1x8x128xf32>
    %1414 = vector.shape_cast %1413 : vector<1x8x128xf32> to vector<8x128xf32>
    %1415 = vector.shape_cast %1412 : vector<8x128xf32> to vector<1x8x128xf32>
    tpu.vector_store %arg19[%c7_624, %c0_625, %c0_626], %1415 {strides = array<i32>} : memref<8x8x128xf32, #tpu.memory_space<vmem>>, vector<1x8x128xf32>,
    return
  }
  func.func @transform_0(%arg0: i32, %arg1: memref<8xi32, #tpu.memory_space<smem>>) -> (i32, i32) {
    %c0_i32 = arith.constant 0 : i32
    %c0_i32_0 = arith.constant 0 : i32
    %c0_i32_1 = arith.constant 0 : i32
    return %c0_i32, %c0_i32_0 : i32, i32
  }
  func.func @transform_1(%arg0: i32, %arg1: memref<8xi32, #tpu.memory_space<smem>>) -> (i32, i32) {
    %c0_i32 = arith.constant 0 : i32
    %c0_i32_0 = arith.constant 0 : i32
    %c0_i32_1 = arith.constant 0 : i32
    return %c0_i32, %c0_i32_0 : i32, i32
  }
  func.func @transform_2(%arg0: i32, %arg1: memref<8xi32, #tpu.memory_space<smem>>) -> (i32, i32) {
    %c0_i32 = arith.constant 0 : i32
    %c0_i32_0 = arith.constant 0 : i32
    %c0_i32_1 = arith.constant 0 : i32
    return %c0_i32, %c0_i32_0 : i32, i32
  }
  func.func @transform_3(%arg0: i32, %arg1: memref<8xi32, #tpu.memory_space<smem>>) -> (i32, i32) {
    %c0_i32 = arith.constant 0 : i32
    %c0_i32_0 = arith.constant 0 : i32
    %c0_i32_1 = arith.constant 0 : i32
    return %c0_i32, %c0_i32_0 : i32, i32
  }
  func.func @transform_4(%arg0: i32, %arg1: memref<8xi32, #tpu.memory_space<smem>>) -> (i32, i32) {
    %c0_i32 = arith.constant 0 : i32
    %c0_i32_0 = arith.constant 0 : i32
    %c0_i32_1 = arith.constant 0 : i32
    return %c0_i32, %c0_i32_0 : i32, i32
  }
  func.func @transform_5(%arg0: i32, %arg1: memref<8xi32, #tpu.memory_space<smem>>) -> (i32, i32) {
    %c0_i32 = arith.constant 0 : i32
    %c0_i32_0 = arith.constant 0 : i32
    %c0_i32_1 = arith.constant 0 : i32
    return %c0_i32, %c0_i32_0 : i32, i32
  }
  func.func @transform_6(%arg0: i32, %arg1: memref<8xi32, #tpu.memory_space<smem>>) -> (i32, i32) {
    %c0_i32 = arith.constant 0 : i32
    %c0_i32_0 = arith.constant 0 : i32
    %c0_i32_1 = arith.constant 0 : i32
    return %c0_i32, %c0_i32_0 : i32, i32
  }
  func.func @transform_7(%arg0: i32, %arg1: memref<8xi32, #tpu.memory_space<smem>>) -> (i32, i32) {
    %c0_i32 = arith.constant 0 : i32
    %c0_i32_0 = arith.constant 0 : i32
    %c0_i32_1 = arith.constant 0 : i32
    return %c0_i32, %c0_i32_0 : i32, i32
  }
  func.func @transform_8(%arg0: i32, %arg1: memref<8xi32, #tpu.memory_space<smem>>) -> (i32, i32) {
    %c0_i32 = arith.constant 0 : i32
    %c0_i32_0 = arith.constant 0 : i32
    %c0_i32_1 = arith.constant 0 : i32
    return %c0_i32, %c0_i32_0 : i32, i32
  }
  func.func @transform_9(%arg0: i32, %arg1: memref<8xi32, #tpu.memory_space<smem>>) -> (i32, i32) {
    %c0_i32 = arith.constant 0 : i32
    %c0_i32_0 = arith.constant 0 : i32
    %c0_i32_1 = arith.constant 0 : i32
    return %c0_i32, %c0_i32_0 : i32, i32
  }
  func.func @transform_10(%arg0: i32, %arg1: memref<8xi32, #tpu.memory_space<smem>>) -> (i32, i32) {
    %c0_i32 = arith.constant 0 : i32
    %c0_i32_0 = arith.constant 0 : i32
    %c0_i32_1 = arith.constant 0 : i32
    return %c0_i32, %c0_i32_0 : i32, i32
  }
  func.func @transform_11(%arg0: i32, %arg1: memref<8xi32, #tpu.memory_space<smem>>) -> (i32, i32) {
    %c0_i32 = arith.constant 0 : i32
    %c0_i32_0 = arith.constant 0 : i32
    %c0_i32_1 = arith.constant 0 : i32
    return %c0_i32, %c0_i32_0 : i32, i32
  }
  func.func @transform_12(%arg0: i32, %arg1: memref<8xi32, #tpu.memory_space<smem>>) -> (i32, i32) {
    %c0_i32 = arith.constant 0 : i32
    %c0_i32_0 = arith.constant 0 : i32
    %c0_i32_1 = arith.constant 0 : i32
    return %c0_i32, %c0_i32_0 : i32, i32
  }
  func.func @transform_13(%arg0: i32, %arg1: memref<8xi32, #tpu.memory_space<smem>>) -> (i32, i32) {
    %c0_i32 = arith.constant 0 : i32
    %c0_i32_0 = arith.constant 0 : i32
    %c0_i32_1 = arith.constant 0 : i32
    return %c0_i32, %c0_i32_0 : i32, i32
  }
  func.func @transform_14(%arg0: i32, %arg1: memref<8xi32, #tpu.memory_space<smem>>) -> (i32, i32) {
    %c0_i32 = arith.constant 0 : i32
    %c0_i32_0 = arith.constant 0 : i32
    %c0_i32_1 = arith.constant 0 : i32
    return %c0_i32, %c0_i32_0 : i32, i32
  }
  func.func @transform_15(%arg0: i32, %arg1: memref<8xi32, #tpu.memory_space<smem>>) -> (i32, i32) {
    %c0_i32 = arith.constant 0 : i32
    %c0_i32_0 = arith.constant 0 : i32
    %c0_i32_1 = arith.constant 0 : i32
    return %c0_i32, %c0_i32_0 : i32, i32
  }
  func.func @transform_16(%arg0: i32, %arg1: memref<8xi32, #tpu.memory_space<smem>>) -> (i32, i32) {
    %c0_i32 = arith.constant 0 : i32
    %c0_i32_0 = arith.constant 0 : i32
    %c0_i32_1 = arith.constant 0 : i32
    return %c0_i32, %c0_i32_0 : i32, i32
  }
  func.func @transform_17(%arg0: i32, %arg1: memref<8xi32, #tpu.memory_space<smem>>) -> (i32, i32, i32) {
    %c0_i32 = arith.constant 0 : i32
    %c0_i32_0 = arith.constant 0 : i32
    %c0_i32_1 = arith.constant 0 : i32
    %c0_i32_2 = arith.constant 0 : i32
    return %c0_i32, %c0_i32_0, %c0_i32_1 : i32, i32, i32
  }
}

</mosaic_0001>

<bundles_post_ra>
// kernel: seq2seq_forward.1
= control target key start
LH: loop header
LB: loop body
LE: loop exit
PB: predicated region body
PF: predicated region fallthrough
CT: control target
= control target key end

     0   :  { %s3745_s19 = smov [#allocation7]   ;;  %s5142_s0 = inlined_call_operand.vmem [shape: s32[8], index: 0, kind: input, shape index: {}]   ;;  %s5143_s1 = inlined_call_operand.vmem [shape: s32[64,1], index: 1, kind: input, shape index: {}]   ;;  %s5144_s2 = inlined_call_operand.vmem [shape: s32[64,1], index: 2, kind: input, shape index: {}]   ;;  %s5145_s3 = inlined_call_operand.vmem [shape: f32[20,256], index: 3, kind: input, shape index: {}]   ;;  %s5146_s4 = inlined_call_operand.vmem [shape: f32[1,256], index: 4, kind: input, shape index: {}]   ;;  %s5147_s5 = inlined_call_operand.vmem [shape: f32[32,128], index: 5, kind: input, shape index: {}]   ;;  %s5148_s6 = inlined_call_operand.vmem [shape: f32[32,128], index: 6, kind: input, shape index: {}]   ;;  %s5149_s7 = inlined_call_operand.vmem [shape: f32[64,32], index: 7, kind: input, shape index: {}]   ;;  %s5150_s8 = inlined_call_operand.vmem [shape: f32[1,32], index: 8, kind: input, shape index: {}]   ;;  %s5151_s9 = inlined_call_operand.vmem [shape: f32[64,32], index: 9, kind: input, shape index: {}]   ;;  %s5152_s10 = inlined_call_operand.vmem [shape: f32[1,32], index: 10, kind: input, shape index: {}]   ;;  %s5153_s11 = inlined_call_operand.vmem [shape: f32[1,64], index: 11, kind: input, shape index: {}]   ;;  %s5154_s12 = inlined_call_operand.vmem [shape: f32[1,32], index: 12, kind: input, shape index: {}]   ;;  %s5155_s14 = inlined_call_operand.vmem [shape: f32[128,128], index: 14, kind: input, shape index: {}]   ;;  %s5156_s15 = inlined_call_operand.vmem [shape: f32[1,128], index: 15, kind: input, shape index: {}]   ;;  %s5157_s16 = inlined_call_operand.vmem [shape: f32[32,128], index: 16, kind: input, shape index: {}]   ;;  %s5158_s17 = inlined_call_operand.vmem [shape: f32[1,128], index: 17, kind: input, shape index: {}]   ;;  %s5159_s18 = inlined_call_operand.vmem [shape: f32[8,8,128], index: 18, kind: output, shape index: {}]   ;;  %s5160_s13 = inlined_call_operand.<no memory space> [shape: f32[1,1], index: 13, kind: input, shape index: {}]  }
   0x1   :  { %5163 = sst [smem:[#allocation10_spill]] %s5142_s0  ;;  %v28_v0 = vstv %s5160_s13 }
   0x2   :  { %5164 = sst [smem:[#allocation11_spill]] %s5143_s1  ;;  %29 = vst [vmem:[#allocation8] sm:$0x1] %v28_v0 }
   0x3   :  { %5165 = sst [smem:[#allocation12_spill]] %s5144_s2 }
   0x4   :  { %5166 = sst [smem:[#allocation13_spill]] %s5152_s10 }
   0x5   :  { %s5167_s29 = sld [smem:[#allocation10_spill]] }
   0xb   :  { %s24_s10 = sshll.u32 %s5167_s29, 4  ;;  %s25_s10 = int_to_ptr.vmem [resolvable:$true] %s24_s10 }
   0xc   :  { %27 = dma.vmem_to_smem %s25_s10, 16, %s3745_s19, [#allocation6] }
   0xd   :  { %3743 = dma.done.wait [#allocation6], 16 }
   0xe   :  { %3744 = vsyncadd [#allocation6], 4294967280 }
   0xf   :  { %32 = sfence }
  0x10   :  { %s5168_s21 = sld [smem:[#allocation11_spill]]  ;;  %v3746_v3 = vmov 0   ;;  %vm162_vm0 = vcmask 1043456   ;;  %v3747_v4 = vmov 0.0   ;;  %v3879_v6 = vld [vmem:[%s5147_s5 + $0x18] sm:$0xff]  ;;  %v3887_v7 = vld [vmem:[%s5147_s5 + $0x10] sm:$0xff]  ;;  %v67_v23 = vlaneseq }
  0x11   :  { %3421 = vset.pattern.permute.xlu1 %v3746_v3  ;;  %3420 = vset.pattern.permute.xlu0 %v3746_v3  ;;  %1645 = vst [vmem:[%s5159_s18] sm:$0xff] %v3747_v4  ;;  %v3892_v8 = vld [vmem:[%s5147_s5 + $0x8] sm:$0xff]  ;;  %v129_v9 = vld [vmem:[%s5145_s3 + $0x20] sm:$0xf]  ;;  %v127_v12 = vld [vmem:[%s5145_s3 + $0x10] sm:$0xff]  ;;  %vm137_vm1 = vcmask 162816   ;;  %s3748_s0 = smov 64  }
  0x12   :  { %1646 = vst [vmem:[#allocation5] sm:$0xff] %v3747_v4  ;;  %3422 = vset.pattern.permute.xlu2 %v3746_v3  ;;  %288 = vmatpush.msra.mxu2 %v3879_v6  ;;  %v130_v10 = vld [vmem:[%s5145_s3 + $0x28] sm:$0xf]  ;;  %v3904_v11 = vld [vmem:[%s5147_s5] sm:$0xff]  ;;  %v128_v15 = vld [vmem:[%s5145_s3 + $0x18] sm:$0xff]  ;;  %v3960_v24 = vand.u32 127, %v67_v23 }
  0x13   :  { %3303 = vmatpush.msk.msra.mxu0 %vm162_vm0, %v129_v9  ;;  %3312 = vmatpush.msk.msra.mxu1 %vm162_vm0, %v130_v10  ;;  %v125_v19 = vld [vmem:[%s5145_s3] sm:$0xff]  ;;  %v126_v20 = vld [vmem:[%s5145_s3 + $0x8] sm:$0xff]  ;;  %v3949_v21 = vld [vmem:[%s5148_s6 + $0x18] sm:$0xff]  ;;  %s5169_s30 = sld [smem:[#allocation12_spill]]  ;;  %s3755_s20 = smov 96  }
  0x14   :  { %289 = vmatpush.msra.mxu2 %v3887_v7  ;;  %457 = vmatpush.msra.mxu3 %v3949_v21  ;;  %v3956_v22 = vld [vmem:[%s5148_s6 + $0x10] sm:$0xff]  ;;  %v3969_v27 = vld [vmem:[%s5148_s6 + $0x8] sm:$0xff]  ;;  %v3984_v32 = vld [vmem:[%s5148_s6] sm:$0xff]  ;;  %s3758_s10 = smov 84   ;;  %s3359_s25 = sld [smem:[#allocation7 + $0x1]] }
  0x15   :  { %183 = vmatpush.msra.mxu0 %v127_v12  ;;  %224 = vmatpush.msra.mxu1 %v128_v15  ;;  %v131_v43 = vld [vmem:[%s5146_s4] sm:$0x3]  ;;  %s3749_s4 = smov 32   ;;  %s3364_s2 = sld [smem:[#allocation7 + $0x2]] }
  0x16   :  { %v71_v1 = vld [vmem:[%s5168_s21 + $0x10] sm:$0xff]  ;;  %v69_v2 = vld [vmem:[%s5168_s21] sm:$0xff]  ;;  %v72_v13 = vld [vmem:[%s5168_s21 + $0x18] sm:$0xff]  ;;  %290 = vmatpush.msra.mxu2 %v3892_v8  ;;  %458 = vmatpush.msra.mxu3 %v3956_v22  ;;  %v133_v44 = vperm.slane %v131_v43, 0  ;;  %v134_v45 = vperm.slane %v131_v43, 1 }
  0x17   :  { %84 = vperm.xlu1 %3421, %v71_v1   ;;  %78 = vperm.xlu0 %3420, %v69_v2   ;;  %v73_v5 = vld [vmem:[%s5168_s21 + $0x20] sm:$0xff]  ;;  %v70_v14 = vld [vmem:[%s5168_s21 + $0x8] sm:$0xff]  ;;  %v76_v17 = vld [vmem:[%s5168_s21 + $0x38] sm:$0xff] }
  0x18   :  { %90 = vperm.xlu2 %3422, %v73_v5   ;;  %v74_v16 = vld [vmem:[%s5168_s21 + $0x28] sm:$0xff]  ;;  %291 = vmatpush.msra.mxu2 %v3904_v11  ;;  %v75_v18 = vld [vmem:[%s5168_s21 + $0x30] sm:$0xff] }
  0x19   :  { %292 = vmatmul.f32.vlgmr.msra.gmra.mxu2 %v3747_v4  ;;  %184 = vmatpush.msra.mxu0 %v125_v19 }
  0x1a   :  { %427 = vmatpush.msrb.mxu2 %v3879_v6  ;;  %225 = vmatpush.msra.mxu1 %v126_v20  ;;  %p1883_p0 = scmp.eq.s32.totalorder %s3359_s25, 1  ;;  %s3384_s25 = sld [smem:[#allocation7 + $0x6]] }
  0x1b   :  { %314 = vmatpush.msrb.mxu0 %v3949_v21  ;;  %459 = vmatpush.msra.mxu3 %v3969_v27  ;;  %p2121_p1 = scmp.eq.s32.totalorder %s3364_s2, 1 }
  0x1c   :  { %428 = vmatpush.msrb.mxu2 %v3887_v7 }
  0x1d   :  { %315 = vmatpush.msrb.mxu0 %v3956_v22  ;;  %460 = vmatpush.msra.mxu3 %v3984_v32 }
  0x1e   :  { %429 = vmatpush.msrb.mxu2 %v3892_v8 }
  0x1f   :  { %87 = vperm.xlu1 %3421, %v72_v13   ;;  %81 = vperm.xlu0 %3420, %v70_v14  }
  0x20   :  { %93 = vperm.xlu2 %3422, %v74_v16   ;;  %430 = vmatpush.msrb.mxu2 %v3904_v11  ;;  %p3073_p5 = scmp.eq.s32.totalorder %s3384_s25, 1 }
  0x21   :  { %316 = vmatpush.msrb.mxu0 %v3969_v27  ;;  %599 = vmatpush.msrb.mxu3 %v3949_v21 }
  0x22   :  { %569 = vmatpush.msra.mxu2 %v3879_v6 }
  0x23   :  { %317 = vmatpush.msrb.mxu0 %v3984_v32  ;;  %600 = vmatpush.msrb.mxu3 %v3956_v22 }
  0x24   :  { %570 = vmatpush.msra.mxu2 %v3887_v7 }
  0x25   :  { %601 = vmatpush.msrb.mxu3 %v3969_v27 }
  0x26   :  { %571 = vmatpush.msra.mxu2 %v3892_v8 }
  0x27   :  { %99 = vperm.xlu1 %3421, %v76_v17   ;;  %96 = vperm.xlu0 %3420, %v75_v18  }
  0x28   :  { %572 = vmatpush.msra.mxu2 %v3904_v11  ;;  %602 = vmatpush.msrb.mxu3 %v3984_v32 }
  0x72   :  { %v91_v34 = vpop.permute.xlu2 %90 }
  0x73   :  { %vm105_vm6 = vcmp.eq.s32.totalorder %v3960_v24, %v91_v34 }
  0x74   :  { %v3299_v36 = vsel %vm105_vm6, 1.0, %v3747_v4 }
  0x7a   :  { %v94_v37 = vpop.permute.xlu2 %93 }
  0x7b   :  { %vm106_vm7 = vcmp.eq.s32.totalorder %v3960_v24, %v94_v37 }
  0x7c   :  { %v3300_v38 = vsel %vm106_vm7, 1.0, %v3747_v4 }
  0x89   :  { %v79_v25 = vpop.permute.xlu0 %78  ;;  %v85_v30 = vpop.permute.xlu1 %84 }
  0x8a   :  { %vm101_vm2 = vcmp.eq.s32.totalorder %v3960_v24, %v79_v25  ;;  %vm103_vm4 = vcmp.eq.s32.totalorder %v3960_v24, %v85_v30 }
  0x8b   :  { %v3295_v26 = vsel %vm101_vm2, 1.0, %v3747_v4  ;;  %v3297_v31 = vsel %vm103_vm4, 1.0, %v3747_v4  ;;  %vm272_vm2 = vcmask 261120  }
  0x8c   :  { %3304 = vmatmul.msk.f32.vlgmr.msra.gmra.mxu0 %vm137_vm1, %v3295_v26  ;;  %3313 = vmatmul.msk.f32.vlgmr.msra.gmra.mxu1 %vm137_vm1, %v3295_v26 }
  0x91   :  { %v82_v28 = vpop.permute.xlu0 %81  ;;  %v88_v33 = vpop.permute.xlu1 %87 }
  0x92   :  { %vm102_vm3 = vcmp.eq.s32.totalorder %v3960_v24, %v82_v28  ;;  %vm104_vm5 = vcmp.eq.s32.totalorder %v3960_v24, %v88_v33 }
  0x93   :  { %v3296_v29 = vsel %vm102_vm3, 1.0, %v3747_v4  ;;  %v3298_v35 = vsel %vm104_vm5, 1.0, %v3747_v4 }
  0x94   :  { %3305 = vmatmul.msk.f32.gmra.mxu0 %vm137_vm1, %v3296_v29  ;;  %3314 = vmatmul.msk.f32.gmra.mxu1 %vm137_vm1, %v3296_v29 }
  0x99   :  { %v97_v39 = vpop.permute.xlu0 %96  ;;  %v100_v41 = vpop.permute.xlu1 %99 }
  0x9a   :  { %vm107_vm8 = vcmp.eq.s32.totalorder %v3960_v24, %v97_v39  ;;  %vm108_vm9 = vcmp.eq.s32.totalorder %v3960_v24, %v100_v41 }
  0x9b   :  { %v3301_v40 = vsel %vm107_vm8, 1.0, %v3747_v4  ;;  %v3302_v42 = vsel %vm108_vm9, 1.0, %v3747_v4 }
  0x9c   :  { %3306 = vmatmul.msk.f32.gmra.mxu0 %vm137_vm1, %v3297_v31  ;;  %3315 = vmatmul.msk.f32.gmra.mxu1 %vm137_vm1, %v3297_v31  ;;  %v293_v46 = vpop.f32.mrf.mxu2 }
  0xa4   :  { %3307 = vmatmul.msk.f32.gmra.mxu0 %vm137_vm1, %v3298_v35  ;;  %3316 = vmatmul.msk.f32.gmra.mxu1 %vm137_vm1, %v3298_v35 }
  0xac   :  { %3308 = vmatmul.msk.f32.gmra.mxu0 %vm137_vm1, %v3299_v36  ;;  %3317 = vmatmul.msk.f32.gmra.mxu1 %vm137_vm1, %v3299_v36 }
  0xb4   :  { %3309 = vmatmul.msk.f32.gmra.mxu0 %vm137_vm1, %v3300_v38  ;;  %3318 = vmatmul.msk.f32.gmra.mxu1 %vm137_vm1, %v3300_v38 }
  0xbc   :  { %3310 = vmatmul.msk.f32.gmra.mxu0 %vm137_vm1, %v3301_v40  ;;  %3319 = vmatmul.msk.f32.gmra.mxu1 %vm137_vm1, %v3301_v40 }
  0xc4   :  { %3311 = vmatmul.msk.f32.gmra.mxu0 %vm137_vm1, %v3302_v42  ;;  %3320 = vmatmul.msk.f32.gmra.mxu1 %vm137_vm1, %v3302_v42 }
  0xcc   :  { %318 = vmatmul.f32.vlgmr.msrb.gmra.mxu0 %v3747_v4 }
 0x109   :  { %v186_v47 = vpop.f32.mrf.mxu0  ;;  %v227_v48 = vpop.f32.mrf.mxu1 }
 0x10a   :  { %v187_v49 = vadd.f32 %v186_v47, %v133_v44  ;;  %v4016_v50 = vadd.f32 %v227_v48, %v134_v45 }
 0x10c   :  { %v296_v51 = vadd.f32 %v293_v46, %v187_v49 }
 0x10e   :  { %3516 = vtanh.f32 %v296_v51  ;;  %v3321_v19 = vmul.f32 -1.442695, %v296_v51 }
 0x110   :  { %3518 = vpow2.f32 %v3321_v19 }
 0x111   :  { %v189_v52 = vpop.f32.mrf.mxu0  ;;  %v230_v53 = vpop.f32.mrf.mxu1 }
 0x112   :  { %v4018_v54 = vadd.f32 %v189_v52, %v133_v44  ;;  %v4020_v55 = vadd.f32 %v230_v53, %v134_v45 }
 0x114   :  { %v3517_v56 = vpop.eup %3516 }
 0x115   :  { %345 = vrot.lane.b32.xlu2 %v3517_v56, %s3748_s0 }
 0x116   :  { %v3519_v29 = vpop.eup %3518 }
 0x117   :  { %v326_v30 = vadd.f32 1.0, %v3519_v29 }
 0x119   :  { %v192_v57 = vpop.f32.mrf.mxu0  ;;  %v233_v58 = vpop.f32.mrf.mxu1  ;;  %v338_v38 = vand.u32 2147483648, %v326_v30  ;;  %vm332_vm11 = vweird.f32 %v326_v30  ;;  %v336_v39 = vand.u32 2147483647, %v326_v30 }
 0x11a   :  { %v4023_v59 = vadd.f32 %v192_v57, %v133_v44  ;;  %v4025_v60 = vadd.f32 %v233_v58, %v134_v45 }
 0x11b   :  { %v339_v41 = vor.u32 1.1754944e-38, %v338_v38  ;;  %vm337_vm13 = vcmp.eq.f32.partialorder %v336_v39, 8.507059e+37 }
 0x121   :  { %v195_v61 = vpop.f32.mrf.mxu0  ;;  %v236_v62 = vpop.f32.mrf.mxu1 }
 0x122   :  { %v4027_v63 = vadd.f32 %v195_v61, %v133_v44  ;;  %v4029_v0 = vadd.f32 %v236_v62, %v134_v45 }
 0x129   :  { %v198_v1 = vpop.f32.mrf.mxu0  ;;  %v239_v2 = vpop.f32.mrf.mxu1 }
 0x12a   :  { %v4031_v4 = vadd.f32 %v198_v1, %v133_v44  ;;  %v4033_v5 = vadd.f32 %v239_v2, %v134_v45 }
 0x131   :  { %v201_v9 = vpop.f32.mrf.mxu0  ;;  %v242_v10 = vpop.f32.mrf.mxu1 }
 0x132   :  { %v4035_v12 = vadd.f32 %v201_v9, %v133_v44  ;;  %v4037_v13 = vadd.f32 %v242_v10, %v134_v45 }
 0x139   :  { %v204_v14 = vpop.f32.mrf.mxu0  ;;  %v245_v15 = vpop.f32.mrf.mxu1 }
 0x13a   :  { %v4039_v16 = vadd.f32 %v204_v14, %v133_v44  ;;  %v4041_v17 = vadd.f32 %v245_v15, %v134_v45 }
 0x141   :  { %v207_v18 = vpop.f32.mrf.mxu0  ;;  %v248_v23 = vpop.f32.mrf.mxu1 }
 0x142   :  { %v4043_v20 = vadd.f32 %v207_v18, %v133_v44  ;;  %v249_v25 = vadd.f32 %v248_v23, %v134_v45 }
 0x149   :  { %v319_v26 = vpop.f32.mrf.mxu0 }
 0x14a   :  { %v322_v28 = vadd.f32 %v319_v26, %v249_v25 }
 0x14c   :  { %3520 = vtanh.f32 %v322_v28  ;;  %v3322_v45 = vmul.f32 -1.442695, %v322_v28 }
 0x14d   :  { %3522 = vrcp.f32 %v326_v30 }
 0x14e   :  { %3524 = vpow2.f32 %v3322_v45 }
 0x152   :  { %v3521_v31 = vpop.eup %3520 }
 0x153   :  { %382 = vrot.lane.b32.xlu0 %v3521_v31, %s3748_s0  ;;  %v3523_v33 = vpop.eup %3522 }
 0x154   :  { %v328_v34 = vmul.f32 %v3523_v33, %v326_v30  ;;  %vm333_vm10 = vweird.f32 %v3523_v33  ;;  %v3525_v46 = vpop.eup %3524 }
 0x155   :  { %vm334_vm12 = vmor %vm332_vm11, %vm333_vm10  ;;  %v363_v47 = vadd.f32 1.0, %v3525_v46 }
 0x156   :  { %v329_v35 = vsub.f32 1.0, %v328_v34 }
 0x157   :  { %3526 = vrcp.f32 %v363_v47  ;;  %v375_v56 = vand.u32 2147483648, %v363_v47  ;;  %vm369_vm15 = vweird.f32 %v363_v47  ;;  %v373_v57 = vand.u32 2147483647, %v363_v47 }
 0x158   :  { %v330_v36 = vmul.f32 %v3523_v33, %v329_v35 }
 0x159   :  { %v376_v61 = vor.u32 1.1754944e-38, %v375_v56  ;;  %vm374_vm1 = vcmp.eq.f32.partialorder %v373_v57, 8.507059e+37 }
 0x15a   :  { %v331_v37 = vadd.f32 %v3523_v33, %v330_v36 }
 0x15c   :  { %v335_v40 = vsel %vm334_vm12, %v3523_v33, %v331_v37 }
 0x15d   :  { %v340_v43 = vsel %vm337_vm13, %v339_v41, %v335_v40  ;;  %v3527_v48 = vpop.eup %3526 }
 0x15e   :  { %v365_v49 = vmul.f32 %v3527_v48, %v363_v47  ;;  %vm370_vm14 = vweird.f32 %v3527_v48  ;;  %v343_v9 = vmul.f32 0.0, %v340_v43 }
 0x15f   :  { %vm371_vm0 = vmor %vm369_vm15, %vm370_vm14 }
 0x160   :  { %v366_v51 = vsub.f32 1.0, %v365_v49 }
 0x162   :  { %v367_v52 = vmul.f32 %v3527_v48, %v366_v51 }
 0x164   :  { %v368_v53 = vadd.f32 %v3527_v48, %v367_v52 }
 0x166   :  { %v372_v58 = vsel %vm371_vm0, %v3527_v48, %v368_v53 }
 0x167   :  { %v377_v1 = vsel %vm374_vm1, %v376_v61, %v372_v58 }
 0x168   :  { %v380_v18 = vmul.f32 0.0, %v377_v1 }
 0x16f   :  { %v346_v42 = vpop.permute.xlu2 %345 }
 0x170   :  { %v348_v44 = vmul.f32 %v346_v42, %v340_v43 }
 0x172   :  { %350 = vrot.lane.b32.xlu1 %v348_v44, %s3749_s4 }
 0x1c5   :  { %v383_v62 = vpop.permute.xlu0 %382 }
 0x1c6   :  { %v385_v2 = vmul.f32 %v383_v62, %v377_v1 }
 0x1c8   :  { %387 = vrot.lane.b32.xlu2 %v385_v2, %s3749_s4 }
 0x1e4   :  { %v351_v10 = vpop.permute.xlu1 %350 }
 0x1e5   :  { %v4048_v14 = vadd.f32 %v351_v10, %v343_v9 }
 0x1e7   :  { %3528 = vtanh.f32 %v4048_v14 }
 0x1ed   :  { %v3529_v15 = vpop.eup %3528 }
 0x1ee   :  { %356 = vrot.lane.b32.xlu0 %v3529_v15, %s3748_s0 }
 0x222   :  { %v388_v19 = vpop.permute.xlu2 %387 }
 0x223   :  { %v4052_v23 = vadd.f32 %v388_v19, %v380_v18 }
 0x225   :  { %3530 = vtanh.f32 %v4052_v23 }
 0x22b   :  { %v3531_v25 = vpop.eup %3530 }
 0x22c   :  { %393 = vrot.lane.b32.xlu1 %v3531_v25, %s3748_s0 }
 0x260   :  { %v357_v26 = vpop.permute.xlu0 %356 }
 0x261   :  { %v359_v28 = vmul.f32 %v357_v26, %v340_v43 }
 0x263   :  { %398 = vrot.lane.b32.xlu2 %v359_v28, %s3749_s4 }
 0x29e   :  { %v394_v29 = vpop.permute.xlu1 %393 }
 0x29f   :  { %v4057_v30 = vmul.f32 %v394_v29, %v377_v1 }
 0x2a1   :  { %441 = vrot.lane.b32.xlu0 %v4057_v30, %s3749_s4 }
 0x2bd   :  { %v399_v31 = vpop.permute.xlu2 %398 }
 0x2be   :  { %401 = vst.msk [vmem:[#allocation3] sm:$0xff] %vm272_vm2, %v399_v31  ;;  %3323 = vmatmul.msk.f32.vlgmr.msrb.gmra.mxu2 %vm272_vm2, %v399_v31 }
 0x2bf   :  { %711 = vmatpush.msrb.mxu2 %v3879_v6 }
 0x2c1   :  { %712 = vmatpush.msrb.mxu2 %v3887_v7 }
 0x2c3   :  { %713 = vmatpush.msrb.mxu2 %v3892_v8 }
 0x2c5   :  { %714 = vmatpush.msrb.mxu2 %v3904_v11 }
 0x313   :  { %v442_v33 = vpop.permute.xlu0 %441 }
 0x314   :  { %3324 = vmatmul.msk.f32.vlgmr.msra.gmra.mxu3 %vm272_vm2, %v442_v33 }
 0x315   :  { %741 = vmatpush.msra.mxu3 %v3949_v21 }
 0x317   :  { %742 = vmatpush.msra.mxu3 %v3956_v22 }
 0x319   :  { %743 = vmatpush.msra.mxu3 %v3969_v27 }
 0x31b   :  { %744 = vmatpush.msra.mxu3 %v3984_v32 }
 0x341   :  { %v432_v34 = vpop.f32.mrf.mxu2 }
 0x342   :  { %v435_v35 = vadd.f32 %v432_v34, %v4018_v54 }
 0x344   :  { %3532 = vtanh.f32 %v435_v35  ;;  %v3325_v37 = vmul.f32 -1.442695, %v435_v35 }
 0x346   :  { %3534 = vpow2.f32 %v3325_v37 }
 0x34a   :  { %v3533_v36 = vpop.eup %3532 }
 0x34b   :  { %488 = vrot.lane.b32.xlu1 %v3533_v36, %s3748_s0 }
 0x34c   :  { %v3535_v40 = vpop.eup %3534 }
 0x34d   :  { %v469_v41 = vadd.f32 1.0, %v3535_v40 }
 0x34f   :  { %v481_v47 = vand.u32 2147483648, %v469_v41  ;;  %vm475_vm4 = vweird.f32 %v469_v41  ;;  %v479_v48 = vand.u32 2147483647, %v469_v41 }
 0x351   :  { %v482_v51 = vor.u32 1.1754944e-38, %v481_v47  ;;  %vm480_vm6 = vcmp.eq.f32.partialorder %v479_v48, 8.507059e+37 }
 0x397   :  { %v462_v38 = vpop.f32.mrf.mxu3 }
 0x398   :  { %v465_v39 = vadd.f32 %v462_v38, %v4041_v17 }
 0x39a   :  { %3536 = vtanh.f32 %v465_v39  ;;  %v3326_v56 = vmul.f32 -1.442695, %v465_v39 }
 0x39b   :  { %3538 = vrcp.f32 %v469_v41 }
 0x39c   :  { %3540 = vpow2.f32 %v3326_v56 }
 0x3a0   :  { %v3537_v42 = vpop.eup %3536 }
 0x3a1   :  { %525 = vrot.lane.b32.xlu2 %v3537_v42, %s3748_s0  ;;  %v3539_v43 = vpop.eup %3538 }
 0x3a2   :  { %v471_v44 = vmul.f32 %v3539_v43, %v469_v41  ;;  %vm476_vm3 = vweird.f32 %v3539_v43  ;;  %v3541_v57 = vpop.eup %3540 }
 0x3a3   :  { %vm477_vm5 = vmor %vm475_vm4, %vm476_vm3  ;;  %v506_v58 = vadd.f32 1.0, %v3541_v57 }
 0x3a4   :  { %v472_v45 = vsub.f32 1.0, %v471_v44 }
 0x3a5   :  { %3542 = vrcp.f32 %v506_v58  ;;  %v518_v10 = vand.u32 2147483648, %v506_v58  ;;  %vm512_vm8 = vweird.f32 %v506_v58  ;;  %v516_v15 = vand.u32 2147483647, %v506_v58 }
 0x3a6   :  { %v473_v54 = vmul.f32 %v3539_v43, %v472_v45 }
 0x3a7   :  { %v519_v19 = vor.u32 1.1754944e-38, %v518_v10  ;;  %vm517_vm10 = vcmp.eq.f32.partialorder %v516_v15, 8.507059e+37 }
 0x3a8   :  { %v474_v46 = vadd.f32 %v3539_v43, %v473_v54 }
 0x3aa   :  { %v478_v49 = vsel %vm477_vm5, %v3539_v43, %v474_v46 }
 0x3ab   :  { %v483_v52 = vsel %vm480_vm6, %v482_v51, %v478_v49  ;;  %v3543_v61 = vpop.eup %3542 }
 0x3ac   :  { %v508_v62 = vmul.f32 %v3543_v61, %v506_v58  ;;  %vm513_vm7 = vweird.f32 %v3543_v61  ;;  %v486_v29 = vmul.f32 %v483_v52, %v4048_v14 }
 0x3ad   :  { %vm514_vm9 = vmor %vm512_vm8, %vm513_vm7 }
 0x3ae   :  { %v509_v1 = vsub.f32 1.0, %v508_v62 }
 0x3b0   :  { %v510_v2 = vmul.f32 %v3543_v61, %v509_v1 }
 0x3b2   :  { %v511_v9 = vadd.f32 %v3543_v61, %v510_v2 }
 0x3b4   :  { %v515_v18 = vsel %vm514_vm9, %v3543_v61, %v511_v9 }
 0x3b5   :  { %v520_v26 = vsel %vm517_vm10, %v519_v19, %v515_v18 }
 0x3b6   :  { %v523_v35 = vmul.f32 %v520_v26, %v4052_v23 }
 0x3bd   :  { %v489_v17 = vpop.permute.xlu1 %488 }
 0x3be   :  { %v491_v53 = vmul.f32 %v489_v17, %v483_v52 }
 0x3c0   :  { %493 = vrot.lane.b32.xlu0 %v491_v53, %s3749_s4 }
 0x3fb   :  { %v526_v25 = vpop.permute.xlu2 %525 }
 0x3fc   :  { %v528_v28 = vmul.f32 %v526_v25, %v520_v26 }
 0x3fe   :  { %530 = vrot.lane.b32.xlu1 %v528_v28, %s3749_s4 }
 0x432   :  { %v494_v31 = vpop.permute.xlu0 %493 }
 0x433   :  { %v4079_v33 = vadd.f32 %v494_v31, %v486_v29 }
 0x435   :  { %3544 = vtanh.f32 %v4079_v33 }
 0x43b   :  { %v3545_v34 = vpop.eup %3544 }
 0x43c   :  { %499 = vrot.lane.b32.xlu2 %v3545_v34, %s3748_s0 }
 0x470   :  { %v531_v36 = vpop.permute.xlu1 %530 }
 0x471   :  { %v4084_v37 = vadd.f32 %v531_v36, %v523_v35 }
 0x473   :  { %3546 = vtanh.f32 %v4084_v37 }
 0x479   :  { %v3547_v38 = vpop.eup %3546 }
 0x47a   :  { %536 = vrot.lane.b32.xlu0 %v3547_v38, %s3748_s0 }
 0x496   :  { %v500_v39 = vpop.permute.xlu2 %499 }
 0x497   :  { %v502_v14 = vmul.f32 %v500_v39, %v483_v52 }
 0x499   :  { %541 = vrot.lane.b32.xlu1 %v502_v14, %s3749_s4 }
 0x4ec   :  { %v537_v40 = vpop.permute.xlu0 %536 }
 0x4ed   :  { %v4089_v41 = vmul.f32 %v537_v40, %v520_v26 }
 0x4ef   :  { %583 = vrot.lane.b32.xlu2 %v4089_v41, %s3749_s4 }
 0x50b   :  { %v542_v42 = vpop.permute.xlu1 %541 }
 0x50c   :  { %544 = vst.msk [vmem:[#allocation3 + $0x8] sm:$0xff] %vm272_vm2, %v542_v42  ;;  %3327 = vmatmul.msk.f32.vlgmr.msra.gmra.mxu2 %vm272_vm2, %v542_v42 }
 0x50d   :  { %853 = vmatpush.msra.mxu2 %v3879_v6 }
 0x50f   :  { %854 = vmatpush.msra.mxu2 %v3887_v7 }
 0x511   :  { %855 = vmatpush.msra.mxu2 %v3892_v8 }
 0x513   :  { %856 = vmatpush.msra.mxu2 %v3904_v11 }
 0x549   :  { %v584_v23 = vpop.permute.xlu2 %583 }
 0x54a   :  { %3328 = vmatmul.msk.f32.vlgmr.msrb.gmra.mxu3 %vm272_vm2, %v584_v23 }
 0x54b   :  { %883 = vmatpush.msrb.mxu3 %v3949_v21 }
 0x54d   :  { %884 = vmatpush.msrb.mxu3 %v3956_v22 }
 0x54f   :  { %885 = vmatpush.msrb.mxu3 %v3969_v27 }
 0x551   :  { %886 = vmatpush.msrb.mxu3 %v3984_v32 }
 0x58f   :  { %v574_v43 = vpop.f32.mrf.mxu2 }
 0x590   :  { %v577_v6 = vadd.f32 %v574_v43, %v4023_v59 }
 0x592   :  { %3548 = vtanh.f32 %v577_v6  ;;  %v3329_v45 = vmul.f32 -1.442695, %v577_v6 }
 0x598   :  { %v3549_v7 = vpop.eup %3548 }
 0x599   :  { %630 = vrot.lane.b32.xlu0 %v3549_v7, %s3748_s0 }
 0x5cd   :  { %v604_v8 = vpop.f32.mrf.mxu3 }
 0x5ce   :  { %v607_v11 = vadd.f32 %v604_v8, %v4037_v13 }
 0x5d0   :  { %3550 = vtanh.f32 %v607_v11  ;;  %v3330_v61 = vmul.f32 -1.442695, %v607_v11 }
 0x5d1   :  { %3552 = vpow2.f32 %v3329_v45 }
 0x5d6   :  { %v3551_v44 = vpop.eup %3550 }
 0x5d7   :  { %667 = vrot.lane.b32.xlu1 %v3551_v44, %s3748_s0  ;;  %v3553_v54 = vpop.eup %3552 }
 0x5d8   :  { %v611_v46 = vadd.f32 1.0, %v3553_v54 }
 0x5da   :  { %3554 = vrcp.f32 %v611_v46  ;;  %v623_v17 = vand.u32 2147483648, %v611_v46  ;;  %vm617_vm12 = vweird.f32 %v611_v46  ;;  %v621_v52 = vand.u32 2147483647, %v611_v46 }
 0x5db   :  { %3556 = vpow2.f32 %v3330_v61 }
 0x5dc   :  { %v624_v53 = vor.u32 1.1754944e-38, %v623_v17  ;;  %vm622_vm14 = vcmp.eq.f32.partialorder %v621_v52, 8.507059e+37 }
 0x5e0   :  { %v3555_v47 = vpop.eup %3554 }
 0x5e1   :  { %v613_v48 = vmul.f32 %v3555_v47, %v611_v46  ;;  %vm618_vm11 = vweird.f32 %v3555_v47  ;;  %v3557_v62 = vpop.eup %3556 }
 0x5e2   :  { %vm619_vm13 = vmor %vm617_vm12, %vm618_vm11  ;;  %v648_v1 = vadd.f32 1.0, %v3557_v62 }
 0x5e3   :  { %v614_v49 = vsub.f32 1.0, %v613_v48 }
 0x5e4   :  { %3558 = vrcp.f32 %v648_v1  ;;  %v660_v19 = vand.u32 2147483648, %v648_v1  ;;  %vm654_vm0 = vweird.f32 %v648_v1  ;;  %v658_v25 = vand.u32 2147483647, %v648_v1 }
 0x5e5   :  { %v615_v59 = vmul.f32 %v3555_v47, %v614_v49 }
 0x5e6   :  { %v661_v28 = vor.u32 1.1754944e-38, %v660_v19  ;;  %vm659_vm3 = vcmp.eq.f32.partialorder %v658_v25, 8.507059e+37 }
 0x5e7   :  { %v616_v51 = vadd.f32 %v3555_v47, %v615_v59 }
 0x5e9   :  { %v620_v13 = vsel %vm619_vm13, %v3555_v47, %v616_v51 }
 0x5ea   :  { %v625_v56 = vsel %vm622_vm14, %v624_v53, %v620_v13  ;;  %v3559_v2 = vpop.eup %3558 }
 0x5eb   :  { %v650_v9 = vmul.f32 %v3559_v2, %v648_v1  ;;  %vm655_vm15 = vweird.f32 %v3559_v2  ;;  %v628_v35 = vmul.f32 %v625_v56, %v4079_v33 }
 0x5ec   :  { %vm656_vm1 = vmor %vm654_vm0, %vm655_vm15 }
 0x5ed   :  { %v651_v10 = vsub.f32 1.0, %v650_v9 }
 0x5ef   :  { %v652_v15 = vmul.f32 %v3559_v2, %v651_v10 }
 0x5f1   :  { %v653_v18 = vadd.f32 %v3559_v2, %v652_v15 }
 0x5f3   :  { %v657_v26 = vsel %vm656_vm1, %v3559_v2, %v653_v18 }
 0x5f4   :  { %v662_v31 = vsel %vm659_vm3, %v661_v28, %v657_v26 }
 0x5f5   :  { %v665_v14 = vmul.f32 %v662_v31, %v4084_v37 }
 0x60b   :  { %v631_v57 = vpop.permute.xlu0 %630 }
 0x60c   :  { %v633_v58 = vmul.f32 %v631_v57, %v625_v56 }
 0x60e   :  { %635 = vrot.lane.b32.xlu2 %v633_v58, %s3749_s4 }
 0x649   :  { %v668_v29 = vpop.permute.xlu1 %667 }
 0x64a   :  { %v670_v34 = vmul.f32 %v668_v29, %v662_v31 }
 0x64c   :  { %672 = vrot.lane.b32.xlu0 %v670_v34, %s3749_s4 }
 0x668   :  { %v636_v36 = vpop.permute.xlu2 %635 }
 0x669   :  { %v4111_v38 = vadd.f32 %v636_v36, %v628_v35 }
 0x66b   :  { %3560 = vtanh.f32 %v4111_v38 }
 0x671   :  { %v3561_v39 = vpop.eup %3560 }
 0x672   :  { %641 = vrot.lane.b32.xlu1 %v3561_v39, %s3748_s0 }
 0x6be   :  { %v673_v40 = vpop.permute.xlu0 %672 }
 0x6bf   :  { %v4116_v42 = vadd.f32 %v673_v40, %v665_v14 }
 0x6c1   :  { %3562 = vtanh.f32 %v4116_v42 }
 0x6c7   :  { %v3563_v23 = vpop.eup %3562 }
 0x6c8   :  { %678 = vrot.lane.b32.xlu2 %v3563_v23, %s3748_s0 }
 0x6e4   :  { %v642_v43 = vpop.permute.xlu1 %641 }
 0x6e5   :  { %v644_v33 = vmul.f32 %v642_v43, %v625_v56 }
 0x6e7   :  { %683 = vrot.lane.b32.xlu0 %v644_v33, %s3749_s4 }
 0x722   :  { %v679_v6 = vpop.permute.xlu2 %678 }
 0x723   :  { %v4121_v7 = vmul.f32 %v679_v6, %v662_v31 }
 0x725   :  { %725 = vrot.lane.b32.xlu1 %v4121_v7, %s3749_s4 }
 0x759   :  { %v684_v8 = vpop.permute.xlu0 %683 }
 0x75a   :  { %686 = vst.msk [vmem:[#allocation3 + $0x10] sm:$0xff] %vm272_vm2, %v684_v8  ;;  %3331 = vmatmul.msk.f32.vlgmr.msrb.gmra.mxu2 %vm272_vm2, %v684_v8 }
 0x797   :  { %v726_v37 = vpop.permute.xlu1 %725 }
 0x798   :  { %3332 = vmatmul.msk.f32.vlgmr.msra.gmra.mxu3 %vm272_vm2, %v726_v37 }
 0x799   :  { %1025 = vmatpush.msra.mxu3 %v3949_v21 }
 0x79b   :  { %1026 = vmatpush.msra.mxu3 %v3956_v22 }
 0x79d   :  { %1027 = vmatpush.msra.mxu3 %v3969_v27 }
 0x79f   :  { %1028 = vmatpush.msra.mxu3 %v3984_v32 }
 0x7dd   :  { %v716_v11 = vpop.f32.mrf.mxu2 }
 0x7de   :  { %v719_v44 = vadd.f32 %v716_v11, %v4027_v63 }
 0x7e0   :  { %3564 = vtanh.f32 %v719_v44  ;;  %v3333_v54 = vmul.f32 -1.442695, %v719_v44 }
 0x7e2   :  { %3566 = vpow2.f32 %v3333_v54 }
 0x7e6   :  { %v3565_v45 = vpop.eup %3564 }
 0x7e7   :  { %772 = vrot.lane.b32.xlu2 %v3565_v45, %s3748_s0 }
 0x7e8   :  { %v3567_v48 = vpop.eup %3566 }
 0x7e9   :  { %v753_v21 = vadd.f32 1.0, %v3567_v48 }
 0x7eb   :  { %v765_v51 = vand.u32 2147483648, %v753_v21  ;;  %vm759_vm5 = vweird.f32 %v753_v21  ;;  %v763_v17 = vand.u32 2147483647, %v753_v21 }
 0x7ed   :  { %v766_v13 = vor.u32 1.1754944e-38, %v765_v51  ;;  %vm764_vm7 = vcmp.eq.f32.partialorder %v763_v17, 8.507059e+37 }
 0x81b   :  { %v746_v46 = vpop.f32.mrf.mxu3 }
 0x81c   :  { %v749_v47 = vadd.f32 %v746_v46, %v4033_v5 }
 0x81e   :  { %3568 = vtanh.f32 %v749_v47  ;;  %v3334_v57 = vmul.f32 -1.442695, %v749_v47 }
 0x81f   :  { %3570 = vrcp.f32 %v753_v21 }
 0x820   :  { %3572 = vpow2.f32 %v3334_v57 }
 0x824   :  { %v3569_v22 = vpop.eup %3568 }
 0x825   :  { %809 = vrot.lane.b32.xlu0 %v3569_v22, %s3748_s0  ;;  %v3571_v27 = vpop.eup %3570 }
 0x826   :  { %v755_v32 = vmul.f32 %v3571_v27, %v753_v21  ;;  %vm760_vm4 = vweird.f32 %v3571_v27  ;;  %v3573_v58 = vpop.eup %3572 }
 0x827   :  { %vm761_vm6 = vmor %vm759_vm5, %vm760_vm4  ;;  %v790_v61 = vadd.f32 1.0, %v3573_v58 }
 0x828   :  { %v756_v49 = vsub.f32 1.0, %v755_v32 }
 0x829   :  { %3574 = vrcp.f32 %v790_v61  ;;  %v802_v15 = vand.u32 2147483648, %v790_v61  ;;  %vm796_vm9 = vweird.f32 %v790_v61  ;;  %v800_v18 = vand.u32 2147483647, %v790_v61 }
 0x82a   :  { %v757_v63 = vmul.f32 %v3571_v27, %v756_v49 }
 0x82b   :  { %v803_v25 = vor.u32 1.1754944e-38, %v802_v15  ;;  %vm801_vm11 = vcmp.eq.f32.partialorder %v800_v18, 8.507059e+37 }
 0x82c   :  { %v758_v59 = vadd.f32 %v3571_v27, %v757_v63 }
 0x82e   :  { %v762_v52 = vsel %vm761_vm6, %v3571_v27, %v758_v59 }
 0x82f   :  { %v767_v53 = vsel %vm764_vm7, %v766_v13, %v762_v52  ;;  %v3575_v62 = vpop.eup %3574 }
 0x830   :  { %v792_v1 = vmul.f32 %v3575_v62, %v790_v61  ;;  %vm797_vm8 = vweird.f32 %v3575_v62  ;;  %v770_v31 = vmul.f32 %v767_v53, %v4111_v38 }
 0x831   :  { %vm798_vm10 = vmor %vm796_vm9, %vm797_vm8 }
 0x832   :  { %v793_v2 = vsub.f32 1.0, %v792_v1 }
 0x834   :  { %v794_v9 = vmul.f32 %v3575_v62, %v793_v2 }
 0x836   :  { %v795_v10 = vadd.f32 %v3575_v62, %v794_v9 }
 0x838   :  { %v799_v19 = vsel %vm798_vm10, %v3575_v62, %v795_v10 }
 0x839   :  { %v804_v26 = vsel %vm801_vm11, %v803_v25, %v799_v19 }
 0x83a   :  { %v807_v39 = vmul.f32 %v804_v26, %v4116_v42 }
 0x841   :  { %v773_v5 = vpop.permute.xlu2 %772 }
 0x842   :  { %v775_v56 = vmul.f32 %v773_v5, %v767_v53 }
 0x844   :  { %777 = vrot.lane.b32.xlu1 %v775_v56, %s3749_s4 }
 0x897   :  { %v810_v28 = vpop.permute.xlu0 %809 }
 0x898   :  { %v812_v29 = vmul.f32 %v810_v28, %v804_v26 }
 0x89a   :  { %814 = vrot.lane.b32.xlu2 %v812_v29, %s3749_s4 }
 0x8b6   :  { %v778_v34 = vpop.permute.xlu1 %777 }
 0x8b7   :  { %v4139_v35 = vadd.f32 %v778_v34, %v770_v31 }
 0x8b9   :  { %3576 = vtanh.f32 %v4139_v35 }
 0x8bf   :  { %v3577_v36 = vpop.eup %3576 }
 0x8c0   :  { %783 = vrot.lane.b32.xlu0 %v3577_v36, %s3748_s0 }
 0x8f4   :  { %v815_v14 = vpop.permute.xlu2 %814 }
 0x8f5   :  { %v4144_v40 = vadd.f32 %v815_v14, %v807_v39 }
 0x8f7   :  { %3578 = vtanh.f32 %v4144_v40 }
 0x8fd   :  { %v3579_v23 = vpop.eup %3578 }
 0x8fe   :  { %820 = vrot.lane.b32.xlu1 %v3579_v23, %s3748_s0 }
 0x932   :  { %v784_v43 = vpop.permute.xlu0 %783 }
 0x933   :  { %v786_v38 = vmul.f32 %v784_v43, %v767_v53  ;;  %v980_v43 = vld [vmem:[%s5147_s5 + $0x18] sm:$0xff] }
 0x934   :  { %995 = vmatpush.msrb.mxu2 %v980_v43 }
 0x935   :  { %825 = vrot.lane.b32.xlu2 %v786_v38, %s3749_s4  ;;  %v978_v38 = vld [vmem:[%s5147_s5 + $0x8] sm:$0xff] }
 0x970   :  { %v821_v33 = vpop.permute.xlu1 %820 }
 0x971   :  { %v4149_v6 = vmul.f32 %v821_v33, %v804_v26  ;;  %v977_v33 = vld [vmem:[%s5147_s5] sm:$0xff] }
 0x973   :  { %867 = vrot.lane.b32.xlu0 %v4149_v6, %s3749_s4 }
 0x98f   :  { %v826_v8 = vpop.permute.xlu2 %825 }
 0x990   :  { %828 = vst.msk [vmem:[#allocation3 + $0x18] sm:$0xff] %vm272_vm2, %v826_v8  ;;  %3335 = vmatmul.msk.f32.vlgmr.msra.gmra.mxu2 %vm272_vm2, %v826_v8 }
 0x9e5   :  { %v868_v42 = vpop.permute.xlu0 %867 }
 0x9e6   :  { %3336 = vmatmul.msk.f32.vlgmr.msrb.gmra.mxu3 %vm272_vm2, %v868_v42 }
 0xa13   :  { %v858_v37 = vpop.f32.mrf.mxu2 }
 0xa14   :  { %v861_v11 = vadd.f32 %v858_v37, %v4031_v4 }
 0xa16   :  { %3580 = vtanh.f32 %v861_v11  ;;  %v3337_v45 = vmul.f32 -1.442695, %v861_v11 }
 0xa18   :  { %3582 = vpow2.f32 %v3337_v45 }
 0xa1c   :  { %v3581_v44 = vpop.eup %3580 }
 0xa1d   :  { %914 = vrot.lane.b32.xlu1 %v3581_v44, %s3748_s0 }
 0xa1e   :  { %v3583_v47 = vpop.eup %3582 }
 0xa1f   :  { %v895_v48 = vadd.f32 1.0, %v3583_v47 }
 0xa21   :  { %v907_v63 = vand.u32 2147483648, %v895_v48  ;;  %vm901_vm13 = vweird.f32 %v895_v48  ;;  %v905_v59 = vand.u32 2147483647, %v895_v48 }
 0xa23   :  { %v908_v17 = vor.u32 1.1754944e-38, %v907_v63  ;;  %vm906_vm15 = vcmp.eq.f32.partialorder %v905_v59, 8.507059e+37 }
 0xa69   :  { %v888_v54 = vpop.f32.mrf.mxu3 }
 0xa6a   :  { %v891_v46 = vadd.f32 %v888_v54, %v4029_v0 }
 0xa6c   :  { %3584 = vtanh.f32 %v891_v46  ;;  %v3338_v5 = vmul.f32 -1.442695, %v891_v46 }
 0xa6d   :  { %3586 = vrcp.f32 %v895_v48 }
 0xa6e   :  { %3588 = vpow2.f32 %v3338_v5 }
 0xa72   :  { %v3585_v21 = vpop.eup %3584 }
 0xa73   :  { %951 = vrot.lane.b32.xlu2 %v3585_v21, %s3748_s0  ;;  %v3587_v22 = vpop.eup %3586 }
 0xa74   :  { %v897_v27 = vmul.f32 %v3587_v22, %v895_v48  ;;  %vm902_vm12 = vweird.f32 %v3587_v22  ;;  %v3589_v53 = vpop.eup %3588 }
 0xa75   :  { %vm903_vm14 = vmor %vm901_vm13, %vm902_vm12  ;;  %v932_v56 = vadd.f32 1.0, %v3589_v53 }
 0xa76   :  { %v898_v32 = vsub.f32 1.0, %v897_v27 }
 0xa77   :  { %3590 = vrcp.f32 %v932_v56  ;;  %v944_v2 = vand.u32 2147483648, %v932_v56  ;;  %vm938_vm1 = vweird.f32 %v932_v56  ;;  %v942_v9 = vand.u32 2147483647, %v932_v56 }
 0xa78   :  { %v899_v4 = vmul.f32 %v3587_v22, %v898_v32 }
 0xa79   :  { %v945_v15 = vor.u32 1.1754944e-38, %v944_v2  ;;  %vm943_vm4 = vcmp.eq.f32.partialorder %v942_v9, 8.507059e+37 }
 0xa7a   :  { %v900_v49 = vadd.f32 %v3587_v22, %v899_v4 }
 0xa7c   :  { %v904_v51 = vsel %vm903_vm14, %v3587_v22, %v900_v49 }
 0xa7d   :  { %v909_v52 = vsel %vm906_vm15, %v908_v17, %v904_v51  ;;  %v3591_v57 = vpop.eup %3590 }
 0xa7e   :  { %v934_v58 = vmul.f32 %v3591_v57, %v932_v56  ;;  %vm939_vm0 = vweird.f32 %v3591_v57  ;;  %v912_v26 = vmul.f32 %v909_v52, %v4139_v35 }
 0xa7f   :  { %vm940_vm3 = vmor %vm938_vm1, %vm939_vm0 }
 0xa80   :  { %v935_v61 = vsub.f32 1.0, %v934_v58 }
 0xa82   :  { %v936_v62 = vmul.f32 %v3591_v57, %v935_v61 }
 0xa84   :  { %v937_v1 = vadd.f32 %v3591_v57, %v936_v62 }
 0xa86   :  { %v941_v10 = vsel %vm940_vm3, %v3591_v57, %v937_v1 }
 0xa87   :  { %v946_v19 = vsel %vm943_vm4, %v945_v15, %v941_v10 }
 0xa88   :  { %v949_v34 = vmul.f32 %v946_v19, %v4144_v40  ;;  %v979_v40 = vld [vmem:[%s5147_s5 + $0x10] sm:$0xff] }
 0xa89   :  { %996 = vmatpush.msrb.mxu2 %v979_v40 }
 0xa8b   :  { %997 = vmatpush.msrb.mxu2 %v978_v38 }
 0xa8d   :  { %998 = vmatpush.msrb.mxu2 %v977_v33 }
 0xa8f   :  { %v915_v0 = vpop.permute.xlu1 %914  ;;  %1137 = vmatpush.msra.mxu2 %v980_v43 }
 0xa90   :  { %v917_v13 = vmul.f32 %v915_v0, %v909_v52 }
 0xa91   :  { %1138 = vmatpush.msra.mxu2 %v979_v40 }
 0xa92   :  { %919 = vrot.lane.b32.xlu0 %v917_v13, %s3749_s4 }
 0xa93   :  { %1139 = vmatpush.msra.mxu2 %v978_v38 }
 0xa95   :  { %1140 = vmatpush.msra.mxu2 %v977_v33 }
 0xacd   :  { %v952_v18 = vpop.permute.xlu2 %951 }
 0xace   :  { %v954_v25 = vmul.f32 %v952_v18, %v946_v19 }
 0xad0   :  { %956 = vrot.lane.b32.xlu1 %v954_v25, %s3749_s4 }
 0xb04   :  { %v920_v28 = vpop.permute.xlu0 %919 }
 0xb05   :  { %v4163_v29 = vadd.f32 %v920_v28, %v912_v26 }
 0xb07   :  { %3592 = vtanh.f32 %v4163_v29 }
 0xb0d   :  { %v3593_v31 = vpop.eup %3592 }
 0xb0e   :  { %925 = vrot.lane.b32.xlu2 %v3593_v31, %s3748_s0 }
 0xb42   :  { %v957_v36 = vpop.permute.xlu1 %956 }
 0xb43   :  { %v4168_v39 = vadd.f32 %v957_v36, %v949_v34 }
 0xb45   :  { %3594 = vtanh.f32 %v4168_v39 }
 0xb4b   :  { %v3595_v14 = vpop.eup %3594 }
 0xb4c   :  { %962 = vrot.lane.b32.xlu0 %v3595_v14, %s3748_s0 }
 0xb68   :  { %v926_v23 = vpop.permute.xlu2 %925 }
 0xb69   :  { %v928_v35 = vmul.f32 %v926_v23, %v909_v52 }
 0xb6b   :  { %967 = vrot.lane.b32.xlu1 %v928_v35, %s3749_s4 }
 0xbbe   :  { %v963_v8 = vpop.permute.xlu0 %962 }
 0xbbf   :  { %v4185_v42 = vmul.f32 %v963_v8, %v946_v19  ;;  %v1148_v8 = vld [vmem:[%s5148_s6 + $0x8] sm:$0xff] }
 0xbc1   :  { %1009 = vrot.lane.b32.xlu2 %v4185_v42, %s3749_s4 }
 0xbdd   :  { %v4189_v37 = vpop.permute.xlu1 %967 }
 0xbde   :  { %3339 = vmatmul.msk.f32.vlgmr.msrb.gmra.mxu2 %vm272_vm2, %v4189_v37 }
 0xbdf   :  { %1279 = vmatpush.msrb.mxu2 %v980_v43 }
 0xbe1   :  { %1280 = vmatpush.msrb.mxu2 %v979_v40 }
 0xbe3   :  { %1281 = vmatpush.msrb.mxu2 %v978_v38 }
 0xbe5   :  { %1282 = vmatpush.msrb.mxu2 %v977_v33  ;;  %v1149_v33 = vld [vmem:[%s5148_s6 + $0x10] sm:$0xff] }
 0xc1b   :  { %v1010_v11 = vpop.permute.xlu2 %1009 }
 0xc1c   :  { %3340 = vmatmul.msk.f32.vlgmr.msra.gmra.mxu3 %vm272_vm2, %v1010_v11  ;;  %v1147_v11 = vld [vmem:[%s5148_s6] sm:$0xff] }
 0xc61   :  { %v1000_v44 = vpop.f32.mrf.mxu2 }
 0xc62   :  { %v1003_v45 = vadd.f32 %v1000_v44, %v4035_v12 }
 0xc64   :  { %3596 = vtanh.f32 %v1003_v45  ;;  %v3341_v21 = vmul.f32 -1.442695, %v1003_v45 }
 0xc6a   :  { %v3597_v54 = vpop.eup %3596 }
 0xc6b   :  { %1056 = vrot.lane.b32.xlu0 %v3597_v54, %s3748_s0 }
 0xc9f   :  { %v1030_v46 = vpop.f32.mrf.mxu3 }
 0xca0   :  { %v1033_v47 = vadd.f32 %v1030_v46, %v4025_v60 }
 0xca2   :  { %3598 = vtanh.f32 %v1033_v47  ;;  %v3342_v5 = vmul.f32 -1.442695, %v1033_v47 }
 0xca3   :  { %3600 = vpow2.f32 %v3341_v21 }
 0xca8   :  { %v3599_v48 = vpop.eup %3598 }
 0xca9   :  { %1093 = vrot.lane.b32.xlu1 %v3599_v48, %s3748_s0  ;;  %v3601_v22 = vpop.eup %3600 }
 0xcaa   :  { %v1037_v27 = vadd.f32 1.0, %v3601_v22 }
 0xcac   :  { %3602 = vrcp.f32 %v1037_v27  ;;  %v1049_v59 = vand.u32 2147483648, %v1037_v27  ;;  %vm1043_vm6 = vweird.f32 %v1037_v27  ;;  %v1047_v51 = vand.u32 2147483647, %v1037_v27 }
 0xcad   :  { %3604 = vpow2.f32 %v3342_v5 }
 0xcae   :  { %v1050_v17 = vor.u32 1.1754944e-38, %v1049_v59  ;;  %vm1048_vm8 = vcmp.eq.f32.partialorder %v1047_v51, 8.507059e+37 }
 0xcb2   :  { %v3603_v32 = vpop.eup %3602 }
 0xcb3   :  { %v1039_v4 = vmul.f32 %v3603_v32, %v1037_v27  ;;  %vm1044_vm5 = vweird.f32 %v3603_v32  ;;  %v3605_v53 = vpop.eup %3604 }
 0xcb4   :  { %vm1045_vm7 = vmor %vm1043_vm6, %vm1044_vm5  ;;  %v1074_v56 = vadd.f32 1.0, %v3605_v53 }
 0xcb5   :  { %v1040_v49 = vsub.f32 1.0, %v1039_v4 }
 0xcb6   :  { %3606 = vrcp.f32 %v1074_v56  ;;  %v1086_v2 = vand.u32 2147483648, %v1074_v56  ;;  %vm1080_vm10 = vweird.f32 %v1074_v56  ;;  %v1084_v9 = vand.u32 2147483647, %v1074_v56 }
 0xcb7   :  { %v1041_v12 = vmul.f32 %v3603_v32, %v1040_v49 }
 0xcb8   :  { %v1087_v15 = vor.u32 1.1754944e-38, %v1086_v2  ;;  %vm1085_vm12 = vcmp.eq.f32.partialorder %v1084_v9, 8.507059e+37 }
 0xcb9   :  { %v1042_v63 = vadd.f32 %v3603_v32, %v1041_v12 }
 0xcbb   :  { %v1046_v60 = vsel %vm1045_vm7, %v3603_v32, %v1042_v63 }
 0xcbc   :  { %v1051_v0 = vsel %vm1048_vm8, %v1050_v17, %v1046_v60  ;;  %v3607_v57 = vpop.eup %3606 }
 0xcbd   :  { %v1076_v58 = vmul.f32 %v3607_v57, %v1074_v56  ;;  %vm1081_vm9 = vweird.f32 %v3607_v57  ;;  %v1054_v26 = vmul.f32 %v1051_v0, %v4163_v29 }
 0xcbe   :  { %vm1082_vm11 = vmor %vm1080_vm10, %vm1081_vm9 }
 0xcbf   :  { %v1077_v61 = vsub.f32 1.0, %v1076_v58 }
 0xcc1   :  { %v1078_v62 = vmul.f32 %v3607_v57, %v1077_v61 }
 0xcc3   :  { %v1079_v1 = vadd.f32 %v3607_v57, %v1078_v62 }
 0xcc5   :  { %v1083_v10 = vsel %vm1082_vm11, %v3607_v57, %v1079_v1 }
 0xcc6   :  { %v1088_v19 = vsel %vm1085_vm12, %v1087_v15, %v1083_v10 }
 0xcc7   :  { %v1091_v36 = vmul.f32 %v1088_v19, %v4168_v39  ;;  %v1150_v39 = vld [vmem:[%s5148_s6 + $0x18] sm:$0xff] }
 0xcc8   :  { %1167 = vmatpush.msrb.mxu3 %v1150_v39 }
 0xcca   :  { %1168 = vmatpush.msrb.mxu3 %v1149_v33 }
 0xccc   :  { %1169 = vmatpush.msrb.mxu3 %v1148_v8 }
 0xcce   :  { %1170 = vmatpush.msrb.mxu3 %v1147_v11 }
 0xcd0   :  { %1309 = vmatpush.msra.mxu3 %v1150_v39 }
 0xcd2   :  { %1310 = vmatpush.msra.mxu3 %v1149_v33 }
 0xcd4   :  { %1311 = vmatpush.msra.mxu3 %v1148_v8 }
 0xcd6   :  { %1312 = vmatpush.msra.mxu3 %v1147_v11 }
 0xcdd   :  { %v1057_v52 = vpop.permute.xlu0 %1056 }
 0xcde   :  { %v1059_v13 = vmul.f32 %v1057_v52, %v1051_v0 }
 0xce0   :  { %1061 = vrot.lane.b32.xlu2 %v1059_v13, %s3749_s4 }
 0xd1b   :  { %v1094_v18 = vpop.permute.xlu1 %1093 }
 0xd1c   :  { %v1096_v25 = vmul.f32 %v1094_v18, %v1088_v19 }
 0xd1e   :  { %1098 = vrot.lane.b32.xlu0 %v1096_v25, %s3749_s4 }
 0xd3a   :  { %v1062_v28 = vpop.permute.xlu2 %1061 }
 0xd3b   :  { %v4201_v31 = vadd.f32 %v1062_v28, %v1054_v26 }
 0xd3d   :  { %3608 = vtanh.f32 %v4201_v31 }
 0xd43   :  { %v3609_v34 = vpop.eup %3608 }
 0xd44   :  { %1067 = vrot.lane.b32.xlu1 %v3609_v34, %s3748_s0 }
 0xd90   :  { %v1099_v14 = vpop.permute.xlu0 %1098 }
 0xd91   :  { %v4206_v23 = vadd.f32 %v1099_v14, %v1091_v36 }
 0xd93   :  { %3610 = vtanh.f32 %v4206_v23 }
 0xd99   :  { %v3611_v35 = vpop.eup %3610 }
 0xd9a   :  { %1104 = vrot.lane.b32.xlu2 %v3611_v35, %s3748_s0 }
 0xdb6   :  { %v1068_v43 = vpop.permute.xlu1 %1067 }
 0xdb7   :  { %v1070_v29 = vmul.f32 %v1068_v43, %v1051_v0 }
 0xdb9   :  { %1109 = vrot.lane.b32.xlu0 %v1070_v29, %s3749_s4 }
 0xdf4   :  { %v1105_v40 = vpop.permute.xlu2 %1104 }
 0xdf5   :  { %v4211_v38 = vmul.f32 %v1105_v40, %v1088_v19 }
 0xdf7   :  { %1151 = vrot.lane.b32.xlu1 %v4211_v38, %s3749_s4 }
 0xe2b   :  { %v4227_v44 = vpop.permute.xlu0 %1109 }
 0xe2c   :  { %3343 = vmatmul.msk.f32.vlgmr.msra.gmra.mxu2 %vm272_vm2, %v4227_v44 }
 0xe69   :  { %v1152_v45 = vpop.permute.xlu1 %1151 }
 0xe6a   :  { %3344 = vmatmul.msk.f32.vlgmr.msrb.gmra.mxu3 %vm272_vm2, %v1152_v45 }
 0xeaf   :  { %v1142_v54 = vpop.f32.mrf.mxu2 }
 0xeb0   :  { %v1145_v46 = vadd.f32 %v1142_v54, %v4039_v16 }
 0xeb2   :  { %3612 = vtanh.f32 %v1145_v46  ;;  %v3345_v48 = vmul.f32 -1.442695, %v1145_v46 }
 0xeb4   :  { %3614 = vpow2.f32 %v3345_v48 }
 0xeb8   :  { %v3613_v47 = vpop.eup %3612 }
 0xeb9   :  { %1198 = vrot.lane.b32.xlu2 %v3613_v47, %s3748_s0 }
 0xeba   :  { %v3615_v27 = vpop.eup %3614 }
 0xebb   :  { %v1179_v32 = vadd.f32 1.0, %v3615_v27 }
 0xebd   :  { %v1191_v51 = vand.u32 2147483648, %v1179_v32  ;;  %vm1185_vm14 = vweird.f32 %v1179_v32  ;;  %v1189_v60 = vand.u32 2147483647, %v1179_v32 }
 0xebf   :  { %v1192_v0 = vor.u32 1.1754944e-38, %v1191_v51  ;;  %vm1190_vm0 = vcmp.eq.f32.partialorder %v1189_v60, 8.507059e+37 }
 0xeed   :  { %v1172_v21 = vpop.f32.mrf.mxu3 }
 0xeee   :  { %v1175_v22 = vadd.f32 %v1172_v21, %v4020_v55 }
 0xef0   :  { %3616 = vtanh.f32 %v1175_v22  ;;  %v3346_v5 = vmul.f32 -1.442695, %v1175_v22 }
 0xef1   :  { %3618 = vrcp.f32 %v1179_v32 }
 0xef2   :  { %3620 = vpow2.f32 %v3346_v5 }
 0xef6   :  { %v3617_v4 = vpop.eup %3616 }
 0xef7   :  { %1235 = vrot.lane.b32.xlu0 %v3617_v4, %s3748_s0  ;;  %v3619_v49 = vpop.eup %3618 }
 0xef8   :  { %v1181_v12 = vmul.f32 %v3619_v49, %v1179_v32  ;;  %vm1186_vm13 = vweird.f32 %v3619_v49  ;;  %v3621_v53 = vpop.eup %3620 }
 0xef9   :  { %vm1187_vm15 = vmor %vm1185_vm14, %vm1186_vm13  ;;  %v1216_v56 = vadd.f32 1.0, %v3621_v53  ;;  %vm406_vm14 = vcmask 523520  }
 0xefa   :  { %v1182_v63 = vsub.f32 1.0, %v1181_v12 }
 0xefb   :  { %3622 = vrcp.f32 %v1216_v56  ;;  %v1228_v2 = vand.u32 2147483648, %v1216_v56  ;;  %vm1222_vm3 = vweird.f32 %v1216_v56  ;;  %v1226_v9 = vand.u32 2147483647, %v1216_v56 }
 0xefc   :  { %v1183_v16 = vmul.f32 %v3619_v49, %v1182_v63 }
 0xefd   :  { %v1229_v15 = vor.u32 1.1754944e-38, %v1228_v2  ;;  %vm1227_vm5 = vcmp.eq.f32.partialorder %v1226_v9, 8.507059e+37 }
 0xefe   :  { %v1184_v59 = vadd.f32 %v3619_v49, %v1183_v16 }
 0xf00   :  { %v1188_v17 = vsel %vm1187_vm15, %v3619_v49, %v1184_v59  ;;  %vm1530_vm15 = vcmask 523264  }
 0xf01   :  { %v1193_v52 = vsel %vm1190_vm0, %v1192_v0, %v1188_v17  ;;  %v3623_v57 = vpop.eup %3622  ;;  %vm1538_vm0 = vcmask 7168  }
 0xf02   :  { %v1218_v58 = vmul.f32 %v3623_v57, %v1216_v56  ;;  %vm1223_vm1 = vweird.f32 %v3623_v57  ;;  %v1196_v26 = vmul.f32 %v1193_v52, %v4201_v31 }
 0xf03   :  { %vm1224_vm4 = vmor %vm1222_vm3, %vm1223_vm1  ;;  %vm1553_vm1 = vcmask 15368   ;;  %vm1568_vm3 = vcmask 23568  }
 0xf04   :  { %v1219_v61 = vsub.f32 1.0, %v1218_v58 }
 0xf06   :  { %v1220_v62 = vmul.f32 %v3623_v57, %v1219_v61 }
 0xf08   :  { %v1221_v1 = vadd.f32 %v3623_v57, %v1220_v62 }
 0xf0a   :  { %v1225_v10 = vsel %vm1224_vm4, %v3623_v57, %v1221_v1  ;;  %vm1583_vm4 = vcmask 31768  }
 0xf0b   :  { %v1230_v18 = vsel %vm1227_vm5, %v1229_v15, %v1225_v10  ;;  %vm1598_vm5 = vcmask 39968  }
 0xf0c   :  { %v1233_v14 = vmul.f32 %v1230_v18, %v4206_v23 }
 0xf13   :  { %v1199_v55 = vpop.permute.xlu2 %1198 }
 0xf14   :  { %v1201_v13 = vmul.f32 %v1199_v55, %v1193_v52 }
 0xf16   :  { %1203 = vrot.lane.b32.xlu1 %v1201_v13, %s3749_s4 }
 0xf69   :  { %v1236_v19 = vpop.permute.xlu0 %1235 }
 0xf6a   :  { %v1238_v25 = vmul.f32 %v1236_v19, %v1230_v18 }
 0xf6c   :  { %1240 = vrot.lane.b32.xlu2 %v1238_v25, %s3749_s4 }
 0xf88   :  { %v1204_v28 = vpop.permute.xlu1 %1203 }
 0xf89   :  { %v4239_v34 = vadd.f32 %v1204_v28, %v1196_v26 }
 0xf8b   :  { %3624 = vtanh.f32 %v4239_v34 }
 0xf91   :  { %v3625_v36 = vpop.eup %3624 }
 0xf92   :  { %1209 = vrot.lane.b32.xlu0 %v3625_v36, %s3748_s0 }
 0xfc6   :  { %v1241_v35 = vpop.permute.xlu2 %1240 }
 0xfc7   :  { %v4244_v43 = vadd.f32 %v1241_v35, %v1233_v14 }
 0xfc9   :  { %3626 = vtanh.f32 %v4244_v43 }
 0xfcf   :  { %v3627_v29 = vpop.eup %3626 }
 0xfd0   :  { %1246 = vrot.lane.b32.xlu1 %v3627_v29, %s3748_s0  ;;  %v1403_v29 = vld [vmem:[%s5149_s7 + $0x8] sm:$0xff] }
0x1004   :  { %v1210_v40 = vpop.permute.xlu0 %1209 }
0x1005   :  { %v1212_v31 = vmul.f32 %v1210_v40, %v1193_v52 }
0x1007   :  { %1251 = vrot.lane.b32.xlu2 %v1212_v31, %s3749_s4 }
0x1042   :  { %v1247_v39 = vpop.permute.xlu1 %1246 }
0x1043   :  { %v4249_v33 = vmul.f32 %v1247_v39, %v1230_v18 }
0x1045   :  { %1293 = vrot.lane.b32.xlu0 %v4249_v33, %s3749_s4 }
0x1061   :  { %v4253_v8 = vpop.permute.xlu2 %1251 }
0x1062   :  { %3347 = vmatmul.msk.f32.vlgmr.msrb.gmra.mxu2 %vm272_vm2, %v4253_v8 }
0x10b7   :  { %v1294_v23 = vpop.permute.xlu0 %1293 }
0x10b8   :  { %3348 = vmatmul.msk.f32.vlgmr.msra.gmra.mxu3 %vm272_vm2, %v1294_v23  ;;  %v3485_v23 = vld [vmem:[%s5153_s11] ss:$0 sm:$0xff] }
0x10e5   :  { %v1284_v11 = vpop.f32.mrf.mxu2 }
0x10e6   :  { %v1287_v45 = vadd.f32 %v1284_v11, %v4043_v20 }
0x10e8   :  { %3628 = vtanh.f32 %v1287_v45  ;;  %v3349_v46 = vmul.f32 -1.442695, %v1287_v45 }
0x10ea   :  { %3630 = vpow2.f32 %v3349_v46 }
0x10ee   :  { %v3629_v54 = vpop.eup %3628 }
0x10ef   :  { %1340 = vrot.lane.b32.xlu1 %v3629_v54, %s3748_s0 }
0x10f0   :  { %v3631_v21 = vpop.eup %3630 }
0x10f1   :  { %v1321_v22 = vadd.f32 1.0, %v3631_v21 }
0x10f3   :  { %v1333_v63 = vand.u32 2147483648, %v1321_v22  ;;  %vm1327_vm7 = vweird.f32 %v1321_v22  ;;  %v1331_v16 = vand.u32 2147483647, %v1321_v22 }
0x10f5   :  { %v1334_v51 = vor.u32 1.1754944e-38, %v1333_v63  ;;  %vm1332_vm9 = vcmp.eq.f32.partialorder %v1331_v16, 8.507059e+37  ;;  %v1549_v63 = vld [vmem:[#allocation8] sm:$0x1] }
0x10f6   :  { %v1564_v16 = vld [vmem:[#allocation8] sm:$0x1] }
0x113b   :  { %v1314_v47 = vpop.f32.mrf.mxu3 }
0x113c   :  { %v1317_v48 = vadd.f32 %v1314_v47, %v4016_v50  ;;  %v3486_v47 = vld [vmem:[%s5153_s11] ss:$0 sm:$0xff] }
0x113e   :  { %3632 = vtanh.f32 %v1317_v48  ;;  %v3350_v0 = vmul.f32 -1.442695, %v1317_v48 }
0x113f   :  { %3634 = vrcp.f32 %v1321_v22 }
0x1140   :  { %3636 = vpow2.f32 %v3350_v0 }
0x1144   :  { %v3633_v27 = vpop.eup %3632 }
0x1145   :  { %1377 = vrot.lane.b32.xlu2 %v3633_v27, %s3748_s0  ;;  %v3635_v32 = vpop.eup %3634 }
0x1146   :  { %v1323_v4 = vmul.f32 %v3635_v32, %v1321_v22  ;;  %vm1328_vm6 = vweird.f32 %v3635_v32  ;;  %v3637_v55 = vpop.eup %3636 }
0x1147   :  { %vm1329_vm8 = vmor %vm1327_vm7, %vm1328_vm6  ;;  %v1358_v52 = vadd.f32 1.0, %v3637_v55  ;;  %vm1613_vm6 = vcmask 48168   ;;  %vm1628_vm7 = vcmask 56368  }
0x1148   :  { %v1324_v49 = vsub.f32 1.0, %v1323_v4 }
0x1149   :  { %3638 = vrcp.f32 %v1358_v52  ;;  %v1370_v58 = vand.u32 2147483648, %v1358_v52  ;;  %vm1364_vm11 = vweird.f32 %v1358_v52  ;;  %v1368_v61 = vand.u32 2147483647, %v1358_v52 }
0x114a   :  { %v1325_v20 = vmul.f32 %v3635_v32, %v1324_v49 }
0x114b   :  { %v1371_v1 = vor.u32 1.1754944e-38, %v1370_v58  ;;  %vm1369_vm13 = vcmp.eq.f32.partialorder %v1368_v61, 8.507059e+37 }
0x114c   :  { %v1326_v12 = vadd.f32 %v3635_v32, %v1325_v20 }
0x114e   :  { %v1330_v59 = vsel %vm1329_vm8, %v3635_v32, %v1326_v12  ;;  %v3487_v32 = vld [vmem:[%s5153_s11] ss:$0 sm:$0xff]  ;;  %v1534_v12 = vld [vmem:[#allocation8] sm:$0x1]  ;;  %vm1643_vm8 = vcmask 64568  }
0x114f   :  { %v1335_v60 = vsel %vm1332_vm9, %v1334_v51, %v1330_v59  ;;  %v3639_v13 = vpop.eup %3638  ;;  %3389 = vpush %v1534_v12  ;;  %v1579_v59 = vld [vmem:[#allocation8] sm:$0x1]  ;;  %vm1659_vm9 = vcmask 64512  }
0x1150   :  { %v1360_v5 = vmul.f32 %v3639_v13, %v1358_v52  ;;  %vm1365_vm10 = vweird.f32 %v3639_v13  ;;  %v1338_v15 = vmul.f32 %v1335_v60, %v4239_v34  ;;  %3391 = vpush %v1549_v63 }
0x1151   :  { %vm1366_vm12 = vmor %vm1364_vm11, %vm1365_vm10  ;;  %3393 = vpush %v1564_v16  ;;  %vm1738_vm11 = vcmask 687616  }
0x1152   :  { %v1361_v53 = vsub.f32 1.0, %v1360_v5  ;;  %3395 = vpush %v1579_v59  ;;  %v3489_v5 = vld [vmem:[%s5153_s11] ss:$0 sm:$0xff] }
0x1154   :  { %v1362_v56 = vmul.f32 %v3639_v13, %v1361_v53 }
0x1156   :  { %v1363_v57 = vadd.f32 %v3639_v13, %v1362_v56 }
0x1158   :  { %v1367_v62 = vsel %vm1366_vm12, %v3639_v13, %v1363_v57  ;;  %vm1744_vm12 = vcmask 949920  }
0x1159   :  { %v1372_v9 = vsel %vm1369_vm13, %v1371_v1, %v1367_v62 }
0x115a   :  { %v1375_v26 = vmul.f32 %v1372_v9, %v4244_v43  ;;  %v1405_v43 = vld [vmem:[%s5149_s7 + $0x18] sm:$0xff] }
0x115b   :  { %1448 = vmatpush.msrb.mxu1 %v1405_v43  ;;  %v3493_v43 = vld [vmem:[%s5150_s8] ss:$0 sm:$0xff] }
0x1161   :  { %v1341_v50 = vpop.permute.xlu1 %1340 }
0x1162   :  { %v1343_v17 = vmul.f32 %v1341_v50, %v1335_v60  ;;  %v1594_v50 = vld [vmem:[#allocation8] sm:$0x1] }
0x1163   :  { %3397 = vpush %v1594_v50 }
0x1164   :  { %1345 = vrot.lane.b32.xlu0 %v1343_v17, %s3749_s4  ;;  %v3488_v17 = vld [vmem:[%s5153_s11] ss:$0 sm:$0xff] }
0x1180   :  { %s3390_s3 = spop %3389 }
0x1181   :  { %s3392_s26 = spop %3391 }
0x1182   :  { %s3394_s8 = spop %3393 }
0x1183   :  { %s3396_s27 = spop %3395 }
0x1194   :  { %s3398_s28 = spop %3397 }
0x119f   :  { %v1378_v2 = vpop.permute.xlu2 %1377 }
0x11a0   :  { %v1380_v10 = vmul.f32 %v1378_v2, %v1372_v9 }
0x11a2   :  { %1382 = vrot.lane.b32.xlu1 %v1380_v10, %s3749_s4 }
0x11d6   :  { %v1346_v18 = vpop.permute.xlu0 %1345 }
0x11d7   :  { %v4265_v19 = vadd.f32 %v1346_v18, %v1338_v15  ;;  %v3492_v15 = vld [vmem:[%s5153_s11] ss:$0 sm:$0xff] }
0x11d9   :  { %3640 = vtanh.f32 %v4265_v19 }
0x11df   :  { %v3641_v25 = vpop.eup %3640 }
0x11e0   :  { %1351 = vrot.lane.b32.xlu2 %v3641_v25, %s3748_s0 }
0x1214   :  { %v1383_v28 = vpop.permute.xlu1 %1382 }
0x1215   :  { %v4270_v36 = vadd.f32 %v1383_v28, %v1375_v26 }
0x1217   :  { %3642 = vtanh.f32 %v4270_v36 }
0x121d   :  { %v3643_v14 = vpop.eup %3642 }
0x121e   :  { %1388 = vrot.lane.b32.xlu0 %v3643_v14, %s3748_s0  ;;  %v1609_v14 = vld [vmem:[#allocation8] sm:$0x1] }
0x121f   :  { %3399 = vpush %v1609_v14  ;;  %v3753_v14 = vmov 4  }
0x1226   :  { %830 = vrot.lane.b32.xlu0 %v4149_v6, %s3748_s0  ;;  %v1404_v6 = vld [vmem:[%s5149_s7 + $0x10] sm:$0xff] }
0x1227   :  { %1449 = vmatpush.msrb.mxu1 %v1404_v6 }
0x1229   :  { %1450 = vmatpush.msrb.mxu1 %v1403_v29 }
0x123a   :  { %v1352_v34 = vpop.permute.xlu2 %1351 }
0x123b   :  { %v1354_v35 = vmul.f32 %v1352_v34, %v1335_v60  ;;  %v1624_v34 = vld [vmem:[#allocation8] sm:$0x1] }
0x123c   :  { %3401 = vpush %v1624_v34  ;;  %v3754_v34 = vmov 3  }
0x123d   :  { %1393 = vrot.lane.b32.xlu1 %v1354_v35, %s3749_s4  ;;  %v1639_v35 = vld [vmem:[#allocation8] sm:$0x1] }
0x123e   :  { %3403 = vpush %v1639_v35  ;;  %v3756_v35 = vmov 7  }
0x1245   :  { %1256 = vrot.lane.b32.xlu1 %v4249_v33, %s3748_s0  ;;  %v1409_v33 = vld [vmem:[%s5149_s7 + $0x38] sm:$0xff] }
0x1246   :  { %1426 = vmatpush.msra.mxu0 %v1409_v33 }
0x124d   :  { %972 = vrot.lane.b32.xlu1 %v4185_v42, %s3748_s0  ;;  %v1402_v42 = vld [vmem:[%s5149_s7] sm:$0xff] }
0x124e   :  { %1451 = vmatpush.msrb.mxu1 %v1402_v42 }
0x1250   :  { %s3400_s6 = spop %3399 }
0x1255   :  { %403 = vrot.lane.b32.xlu1 %v4057_v30, %s3748_s0 }
0x126d   :  { %s3402_s19 = spop %3401 }
0x126e   :  { %v1626_v59 = vstv %s3402_s19 }
0x126f   :  { %s3404_s1 = spop %3403 }
0x1290   :  { %v1389_v30 = vpop.permute.xlu0 %1388 }
0x1291   :  { %v1391_v40 = vmul.f32 %v1389_v30, %v1372_v9  ;;  %v3491_v9 = vld [vmem:[%s5153_s11] ss:$0 sm:$0xff] }
0x1292   :  { %v3494_v30 = vld [vmem:[%s5154_s12] ss:$0 sm:$0xff] }
0x1293   :  { %1398 = vrot.lane.b32.xlu0 %v1391_v40, %s3748_s0  ;;  %1410 = vrot.lane.b32.xlu2 %v1391_v40, %s3749_s4 }
0x1298   :  { %v831_v31 = vpop.permute.xlu0 %830 }
0x1299   :  { %833 = vst.msk [vmem:[#allocation3 + $0x20] sm:$0xff] %vm406_vm14, %v831_v31 }
0x129a   :  { %970 = vst.msk [vmem:[#allocation3 + $0x20] sm:$0xff] %vm272_vm2, %v4189_v37  ;;  %v1408_v37 = vld [vmem:[%s5149_s7 + $0x30] sm:$0xff] }
0x129b   :  { %546 = vrot.lane.b32.xlu0 %v4089_v41, %s3748_s0  ;;  %1114 = vrot.lane.b32.xlu2 %v4211_v38, %s3748_s0  ;;  %v1407_v41 = vld [vmem:[%s5149_s7 + $0x28] sm:$0xff] }
0x129c   :  { %1427 = vmatpush.msra.mxu0 %v1408_v37 }
0x129e   :  { %1428 = vmatpush.msra.mxu0 %v1407_v41 }
0x12a1   :  { %v4340_v4 = vld [vmem:[#allocation3 + $0x20] sm:$0xff] }
0x12a2   :  { %v1590_v49 = vmul.f32 %v3487_v32, %v4340_v4 }
0x12a3   :  { %688 = vrot.lane.b32.xlu2 %v4121_v7, %s3748_s0  ;;  %v1406_v7 = vld [vmem:[%s5149_s7 + $0x20] sm:$0xff] }
0x12a4   :  { %1429 = vmatpush.msra.mxu0 %v1406_v7  ;;  %v1591_v20 = vsel %vm1530_vm15, %v1590_v49, 0.0  ;;  %v1551_v7 = vstv %s3392_s26  ;;  %v1611_v49 = vstv %s3400_s6 }
0x12af   :  { %v1394_v39 = vpop.permute.xlu1 %1393 }
0x12b0   :  { %3352 = vmatmul.msk.f32.vlgmr.msrb.gmra.mxu1 %vm272_vm2, %v1394_v39 }
0x12b7   :  { %v1257_v38 = vpop.permute.xlu1 %1256 }
0x12b8   :  { %1259 = vst.msk [vmem:[#allocation3 + $0x8] sm:$0xff] %vm406_vm14, %v1257_v38  ;;  %v1536_v38 = vstv %s3390_s3  ;;  %s1884_s3 = scalar_select %p1883_p0, 1, 0 }
0x12bf   :  { %v973_v11 = vpop.permute.xlu1 %972  ;;  %v4323_v45 = vld [vmem:[#allocation3 + $0x8] sm:$0xff] }
0x12c0   :  { %975 = vst.msk [vmem:[#allocation3 + $0x18] sm:$0xff] %vm406_vm14, %v973_v11  ;;  %v1545_v54 = vmul.f32 %v3485_v23, %v4323_v45  ;;  %v1566_v23 = vstv %s3394_s8  ;;  %s3759_s8 = smov 116  }
0x12c2   :  { %v1546_v46 = vsel %vm1530_vm15, %v1545_v54, 0.0 }
0x12c5   :  { %1547 = vadd.xlane.f32.xlu0 %v1546_v46  ;;  %v1647_v46 = vld [vmem:[%s5169_s30] sm:$0xff] }
0x12c7   :  { %v404_v48 = vpop.permute.xlu1 %403  ;;  %v4331_v21 = vld [vmem:[#allocation3 + $0x18] sm:$0xff] }
0x12c8   :  { %407 = vst.msk [vmem:[#allocation3 + $0x38] sm:$0xff] %vm406_vm14, %v404_v48  ;;  %v1575_v22 = vmul.f32 %v3486_v47, %v4331_v21  ;;  %v1581_v47 = vstv %s3396_s27  ;;  %s3369_s27 = sld [smem:[#allocation7 + $0x3]] }
0x12c9   :  { %1396 = vst.msk [vmem:[#allocation3 + $0x38] sm:$0xff] %vm272_vm2, %v1394_v39 }
0x12ca   :  { %v1576_v27 = vsel %vm1530_vm15, %v1575_v22, 0.0 }
0x12cc   :  { %1577 = vadd.xlane.f32.xlu2 %v1576_v27  ;;  %v1596_v27 = vstv %s3398_s28  ;;  %s5170_s28 = sld [smem:[#allocation13_spill]] }
0x12ce   :  { %p2359_p2 = scmp.eq.s32.totalorder %s3369_s27, 1 }
0x12d0   :  { %v4377_v10 = vld [vmem:[#allocation3 + $0x38] sm:$0xff] }
0x12d1   :  { %v1635_v18 = vmul.f32 %v3491_v9, %v4377_v10  ;;  %v3750_v9 = vmov 1  }
0x12d2   :  { %3423 = vset.pattern.permute.xlu2 %v3750_v9 }
0x12d4   :  { %1592 = vadd.xlane.f32.xlu2 %v1591_v20 }
0x12ed   :  { %v1411_v51 = vpop.permute.xlu2 %1410 }
0x12ee   :  { %3351 = vmatmul.msk.f32.vlgmr.msra.gmra.mxu0 %vm272_vm2, %v1411_v51  ;;  %v1641_v51 = vstv %s3404_s1  ;;  %s3379_s1 = sld [smem:[#allocation7 + $0x5]] }
0x12f4   :  { %p2835_p4 = scmp.eq.s32.totalorder %s3379_s1, 1 }
0x12f5   :  { %v1115_v60 = vpop.permute.xlu2 %1114 }
0x12f6   :  { %1117 = vst.msk [vmem:[#allocation3 + $0x10] sm:$0xff] %vm406_vm14, %v1115_v60  ;;  %s2836_s22 = scalar_select %p2835_p4, 1, 0 }
0x12fd   :  { %v689_v0 = vpop.permute.xlu2 %688  ;;  %v4349_v55 = vld [vmem:[#allocation3 + $0x10] sm:$0xff] }
0x12fe   :  { %691 = vst.msk [vmem:[#allocation3 + $0x28] sm:$0xff] %vm406_vm14, %v689_v0  ;;  %v1560_v52 = vmul.f32 %v3488_v17, %v4349_v55 }
0x12ff   :  { %1112 = vst.msk [vmem:[#allocation3 + $0x28] sm:$0xff] %vm272_vm2, %v4227_v44  ;;  %v3490_v44 = vld [vmem:[%s5153_s11] ss:$0 sm:$0xff]  ;;  %s3374_s11 = sld [smem:[#allocation7 + $0x4]] }
0x1300   :  { %v1561_v13 = vsel %vm1530_vm15, %v1560_v52, 0.0 }
0x1301   :  { %1562 = vadd.xlane.f32.xlu1 %v1561_v13 }
0x1305   :  { %v1399_v53 = vpop.permute.xlu0 %1398  ;;  %p2597_p3 = scmp.eq.s32.totalorder %s3374_s11, 1 }
0x1306   :  { %1401 = vst.msk [vmem:[#allocation3] sm:$0xff] %vm406_vm14, %v1399_v53  ;;  %v4360_v56 = vld [vmem:[#allocation3 + $0x28] sm:$0xff] }
0x1307   :  { %v1605_v57 = vmul.f32 %v3489_v5, %v4360_v56  ;;  %s2598_s24 = scalar_select %p2597_p3, 1, 0 }
0x1309   :  { %v1606_v58 = vsel %vm1530_vm15, %v1605_v57, 0.0 }
0x130a   :  { %1607 = vadd.xlane.f32.xlu0 %v1606_v58 }
0x130d   :  { %v547_v61 = vpop.permute.xlu0 %546  ;;  %v4367_v62 = vld [vmem:[#allocation3] sm:$0xff] }
0x130e   :  { %549 = vst.msk [vmem:[#allocation3 + $0x30] sm:$0xff] %vm406_vm14, %v547_v61  ;;  %v1529_v1 = vmul.f32 %v3490_v44, %v4367_v62 }
0x130f   :  { %1254 = vst.msk [vmem:[#allocation3 + $0x30] sm:$0xff] %vm272_vm2, %v4253_v8  ;;  %v1636_v8 = vsel %vm1530_vm15, %v1635_v18, 0.0 }
0x1310   :  { %v1531_v2 = vsel %vm1530_vm15, %v1529_v1, 0.0 }
0x1311   :  { %1532 = vadd.xlane.f32.xlu2 %v1531_v2 }
0x1316   :  { %v4383_v25 = vld [vmem:[#allocation3 + $0x30] sm:$0xff] }
0x1317   :  { %v1620_v26 = vmul.f32 %v3492_v15, %v4383_v25  ;;  %v3751_v15 = vmov 2  }
0x1319   :  { %1637 = vadd.xlane.f32.xlu2 %v1636_v8  ;;  %v1621_v28 = vsel %vm1530_vm15, %v1620_v26, 0.0 }
0x131a   :  { %1622 = vadd.xlane.f32.xlu1 %v1621_v28  ;;  %v3752_v28 = vmov 6  }
0x132d   :  { %v1453_v6 = vpop.f32.mrf.mxu1 }
0x1338   :  { %v1548_v41 = vpop.xlane.xlu0 %1547 }
0x1339   :  { %v1552_v22 = vadd.f32 %v1551_v7, %v1548_v41  ;;  %v4470_v41 = vld [vmem:[%s5155_s14 + $0x50] sm:$0xff]  ;;  %v4480_v7 = vld [vmem:[%s5155_s14 + $0x48] sm:$0xff] }
0x133f   :  { %v1578_v39 = vpop.xlane.xlu2 %1577 }
0x1340   :  { %v1582_v12 = vadd.f32 %v1581_v47, %v1578_v39  ;;  %v1463_v39 = vld [vmem:[%s5151_s9 + $0x10] sm:$0xff]  ;;  %v1468_v47 = vld [vmem:[%s5151_s9 + $0x38] sm:$0xff] }
0x1341   :  { %1486 = vmatpush.msra.mxu2 %v1468_v47 }
0x1347   :  { %v1593_v37 = vpop.xlane.xlu2 %1592 }
0x1348   :  { %v1597_v63 = vadd.f32 %v1596_v27, %v1593_v37  ;;  %v1462_v37 = vld [vmem:[%s5151_s9 + $0x8] sm:$0xff]  ;;  %v4522_v27 = vld [vmem:[%s5155_s14 + $0x18] sm:$0xff] }
0x136b   :  { %v1431_v29 = vpop.f32.mrf.mxu0 }
0x136c   :  { %v1454_v42 = vadd.f32 %v1453_v6, %v1431_v29  ;;  %v4420_v29 = vld [vmem:[%s5159_s18] sm:$0xff] }
0x136e   :  { %v4394_v40 = vadd.f32 %v3493_v43, %v1454_v42  ;;  %v3757_v43 = vmov 5   ;;  %v4432_v42 = vld [vmem:[%s5155_s14 + $0x78] sm:$0xff] }
0x136f   :  { %1767 = vmatpush.msrb.mxu0 %v4432_v42 }
0x1370   :  { %v1652_v31 = vmul.f32 %v3494_v30, %v4394_v40  ;;  %v4437_v30 = vld [vmem:[%s5155_s14 + $0x70] sm:$0xff] }
0x1371   :  { %1768 = vmatpush.msrb.mxu0 %v4437_v30 }
0x1372   :  { %v1653_v33 = vsel %vm272_vm2, %v1652_v31, 0.0  ;;  %v4453_v31 = vld [vmem:[%s5155_s14 + $0x60] sm:$0xff] }
0x1373   :  { %1654 = vadd.xlane.f32.xlu0 %v1653_v33  ;;  %v4462_v33 = vld [vmem:[%s5155_s14 + $0x58] sm:$0xff] }
0x1374   :  { %v1563_v11 = vpop.xlane.xlu1 %1562 }
0x1375   :  { %v1567_v32 = vadd.f32 %v1566_v23, %v1563_v11  ;;  %v4486_v23 = vld [vmem:[%s5155_s14 + $0x40] sm:$0xff]  ;;  %v4492_v11 = vld [vmem:[%s5155_s14 + $0x38] sm:$0xff] }
0x137d   :  { %v1608_v20 = vpop.xlane.xlu0 %1607 }
0x137e   :  { %v1612_v16 = vadd.f32 %v1611_v49, %v1608_v20  ;;  %v4531_v20 = vld [vmem:[%s5155_s14 + $0x10] sm:$0xff] }
0x1384   :  { %v1533_v54 = vpop.xlane.xlu2 %1532 }
0x1385   :  { %v1537_v48 = vadd.f32 %v1536_v38, %v1533_v54  ;;  %v1461_v38 = vld [vmem:[%s5151_s9] sm:$0xff]  ;;  %v4498_v54 = vld [vmem:[%s5155_s14 + $0x30] sm:$0xff] }
0x1387   :  { %1539 = vst.msk [vmem:[#allocation4] sm:$0xff] %vm1538_vm0, %v1537_v48  ;;  %1728 = vperm.xlu0 %3420, %v1647_v46   ;;  %v4504_v46 = vld [vmem:[%s5155_s14 + $0x28] sm:$0xff]  ;;  %v4513_v48 = vld [vmem:[%s5155_s14 + $0x20] sm:$0xff] }
0x1388   :  { %1554 = vst.msk [vmem:[#allocation4] sm:$0xff] %vm1553_vm1, %v1552_v22  ;;  %v1467_v22 = vld [vmem:[%s5151_s9 + $0x30] sm:$0xff] }
0x1389   :  { %1569 = vst.msk [vmem:[#allocation4] sm:$0xff] %vm1568_vm3, %v1567_v32  ;;  %v1466_v32 = vld [vmem:[%s5151_s9 + $0x28] sm:$0xff]  ;;  %1487 = vmatpush.msra.mxu2 %v1467_v22 }
0x138a   :  { %1584 = vst.msk [vmem:[#allocation4] sm:$0xff] %vm1583_vm4, %v1582_v12 }
0x138b   :  { %1599 = vst.msk [vmem:[#allocation4] sm:$0xff] %vm1598_vm5, %v1597_v63  ;;  %v1465_v63 = vld [vmem:[%s5151_s9 + $0x20] sm:$0xff]  ;;  %1488 = vmatpush.msra.mxu2 %v1466_v32 }
0x138c   :  { %v1638_v50 = vpop.xlane.xlu2 %1637  ;;  %1614 = vst.msk [vmem:[#allocation4] sm:$0xff] %vm1613_vm6, %v1612_v16  ;;  %v4539_v16 = vld [vmem:[%s5155_s14 + $0x8] sm:$0xff] }
0x138d   :  { %v1623_v60 = vpop.xlane.xlu1 %1622  ;;  %v1642_v0 = vadd.f32 %v1641_v51, %v1638_v50  ;;  %1489 = vmatpush.msra.mxu2 %v1465_v63  ;;  %v4546_v51 = vld [vmem:[%s5155_s14] sm:$0xff] }
0x138e   :  { %v1627_v17 = vadd.f32 %v1626_v59, %v1623_v60 }
0x138f   :  { %3424 = vset.pattern.permute.xlu0 %v3751_v15  ;;  %2009 = vmatpush.msrb.mxu2 %v4432_v42 }
0x1390   :  { %1629 = vst.msk [vmem:[#allocation4] sm:$0xff] %vm1628_vm7, %v1627_v17 }
0x1391   :  { %1644 = vst.msk [vmem:[#allocation4] sm:$0xff] %vm1643_vm8, %v1642_v0  ;;  %2010 = vmatpush.msrb.mxu2 %v4437_v30 }
0x1398   :  { %v4401_v52 = vld [vmem:[#allocation4] sm:$0xff] }
0x13e6   :  { %v1655_v13 = vpop.xlane.xlu0 %1654 }
0x13e7   :  { %v1657_v5 = vadd.f32 %v4401_v52, %v1655_v13 }
0x13e9   :  { %v1658_v53 = vmax.f32 %v1657_v5, 0.0 }
0x13eb   :  { %v1660_v57 = vsel %vm1659_vm9, %v1658_v53, -inf }
0x13ec   :  { %1661 = vmax.xlane.f32.xlu1 %v1660_v57 }
0x13f9   :  { %v1729_v6 = vpop.permute.xlu0 %1728 }
0x13fa   :  { %vm1730_vm10 = vcmp.eq.s32.totalorder %v3960_v24, %v1729_v6 }
0x145f   :  { %v1662_v58 = vpop.xlane.xlu1 %1661 }
0x1460   :  { %v1663_v44 = vsub.f32 %v1658_v53, %v1662_v58 }
0x1462   :  { %v1664_v61 = vmul.f32 1.442695, %v1663_v44 }
0x1464   :  { %3644 = vpow2.f32 %v1664_v61 }
0x146a   :  { %v3645_v1 = vpop.eup %3644 }
0x146b   :  { %v1666_v2 = vsel %vm1659_vm9, %v3645_v1, 0.0 }
0x146c   :  { %1667 = vadd.xlane.f32.xlu2 %v1666_v2 }
0x14df   :  { %v1668_v18 = vpop.xlane.xlu2 %1667 }
0x14e0   :  { %3646 = vrcp.f32 %v1668_v18 }
0x14e6   :  { %v3647_v26 = vpop.eup %3646 }
0x14e7   :  { %v1670_v8 = vmul.f32 %v3647_v26, %v3645_v1 }
0x14e9   :  { %1687 = vperm.xlu0 %3424, %v1670_v8   ;;  %1680 = vperm.xlu2 %3423, %v1670_v8  }
0x14ea   :  { %1674 = vperm.xlu1 %3421, %v1670_v8  }
0x14f1   :  { %3428 = vset.pattern.permute.xlu0 %v3752_v28  ;;  %3426 = vset.pattern.permute.xlu2 %v3753_v14 }
0x14f2   :  { %3425 = vset.pattern.permute.xlu1 %v3754_v34  ;;  %1715 = vperm.xlu0 %3428, %v1670_v8  }
0x14f3   :  { %1701 = vperm.xlu2 %3426, %v1670_v8   ;;  %1694 = vperm.xlu1 %3425, %v1670_v8  }
0x14fa   :  { %1495 = vrot.lane.b32.xlu0 %v4265_v19, %s3755_s20  ;;  %v3355_v19 = vsel %vm1730_vm10, 1.0, %v4420_v29 }
0x14fb   :  { %3429 = vset.pattern.permute.xlu2 %v3756_v35  ;;  %3427 = vset.pattern.permute.xlu1 %v3757_v43 }
0x14fc   :  { %1722 = vperm.xlu2 %3429, %v1670_v8   ;;  %1708 = vperm.xlu1 %3427, %v1670_v8  }
0x14fd   :  { %3431 = vset.pattern.permute.xlu0 %v3746_v3 }
0x1504   :  { %1741 = vrot.lane.b32.xlu2 %v4394_v40, %s3758_s10  ;;  %1735 = vrot.lane.b32.xlu1 %v3355_v19, %s3748_s0  ;;  %v4444_v40 = vld [vmem:[%s5155_s14 + $0x68] sm:$0xff]  ;;  %s2122_s10 = scalar_select %p2121_p1, 1, 0 }
0x1505   :  { %3432 = vset.pattern.permute.xlu2 %v3750_v9  ;;  %3430 = vset.pattern.permute.xlu1 %v3746_v3 }
0x1506   :  { %1769 = vmatpush.msrb.mxu0 %v4444_v40  ;;  %2011 = vmatpush.msrb.mxu2 %v4444_v40 }
0x1508   :  { %1770 = vmatpush.msrb.mxu0 %v4453_v31  ;;  %2012 = vmatpush.msrb.mxu2 %v4453_v31 }
0x150a   :  { %1771 = vmatpush.msrb.mxu0 %v4462_v33  ;;  %2013 = vmatpush.msrb.mxu2 %v4462_v33 }
0x150c   :  { %1470 = vrot.lane.b32.xlu1 %v4270_v36, %s3755_s20  ;;  %v1464_v36 = vld [vmem:[%s5151_s9 + $0x18] sm:$0xff]  ;;  %1772 = vmatpush.msrb.mxu0 %v4470_v41 }
0x150d   :  { %1511 = vmatpush.msrb.mxu3 %v1464_v36  ;;  %2014 = vmatpush.msrb.mxu2 %v4470_v41 }
0x150e   :  { %1773 = vmatpush.msrb.mxu0 %v4480_v7 }
0x150f   :  { %1512 = vmatpush.msrb.mxu3 %v1463_v39  ;;  %2015 = vmatpush.msrb.mxu2 %v4480_v7 }
0x1510   :  { %1774 = vmatpush.msrb.mxu0 %v4486_v23 }
0x1511   :  { %1513 = vmatpush.msrb.mxu3 %v1462_v37  ;;  %2016 = vmatpush.msrb.mxu2 %v4486_v23 }
0x1512   :  { %1775 = vmatpush.msrb.mxu0 %v4492_v11 }
0x1513   :  { %1514 = vmatpush.msrb.mxu3 %v1461_v38  ;;  %2017 = vmatpush.msrb.mxu2 %v4492_v11 }
0x1514   :  { %1776 = vmatpush.msrb.mxu0 %v4498_v54 }
0x1515   :  { %2018 = vmatpush.msrb.mxu2 %v4498_v54 }
0x1516   :  { %1777 = vmatpush.msrb.mxu0 %v4504_v46 }
0x1517   :  { %2019 = vmatpush.msrb.mxu2 %v4504_v46 }
0x1518   :  { %1778 = vmatpush.msrb.mxu0 %v4513_v48 }
0x1519   :  { %2020 = vmatpush.msrb.mxu2 %v4513_v48 }
0x151a   :  { %1779 = vmatpush.msrb.mxu0 %v4522_v27 }
0x151b   :  { %2021 = vmatpush.msrb.mxu2 %v4522_v27 }
0x151c   :  { %1780 = vmatpush.msrb.mxu0 %v4531_v20 }
0x151d   :  { %2022 = vmatpush.msrb.mxu2 %v4531_v20 }
0x151e   :  { %1781 = vmatpush.msrb.mxu0 %v4539_v16 }
0x151f   :  { %2023 = vmatpush.msrb.mxu2 %v4539_v16 }
0x1520   :  { %1782 = vmatpush.msrb.mxu0 %v4546_v51 }
0x1521   :  { %2024 = vmatpush.msrb.mxu2 %v4546_v51 }
0x1543   :  { %v1681_v49 = vpop.permute.xlu2 %1680 }
0x1544   :  { %v1683_v60 = vmul.f32 %v1681_v49, %v4323_v45  ;;  %v3495_v49 = vld [vmem:[%s5156_s15] ss:$0 sm:$0xff] }
0x154d   :  { %v1702_v17 = vpop.permute.xlu2 %1701 }
0x154e   :  { %v1704_v1 = vmul.f32 %v1702_v17, %v4340_v4 }
0x1556   :  { %v1723_v2 = vpop.permute.xlu2 %1722 }
0x1557   :  { %v1725_v36 = vmul.f32 %v1723_v2, %v4377_v10 }
0x155b   :  { %v1688_v12 = vpop.permute.xlu0 %1687 }
0x155c   :  { %v1675_v59 = vpop.permute.xlu1 %1674  ;;  %v1690_v53 = vmul.f32 %v1688_v12, %v4349_v55 }
0x155d   :  { %v1677_v50 = vmul.f32 %v1675_v59, %v4367_v62  ;;  %v3496_v59 = vld [vmem:[%s5170_s28] ss:$0 sm:$0xff]  ;;  %s2360_s28 = scalar_select %p2359_p2, 1, 0 }
0x155e   :  { %v1742_v47 = vpop.permute.xlu2 %1741 }
0x155f   :  { %v1684_v13 = vadd.f32 %v1683_v60, %v1677_v50 }
0x1561   :  { %v1691_v58 = vadd.f32 %v1690_v53, %v1684_v13 }
0x1564   :  { %v1716_v0 = vpop.permute.xlu0 %1715 }
0x1565   :  { %v1695_v5 = vpop.permute.xlu1 %1694  ;;  %v1718_v6 = vmul.f32 %v1716_v0, %v4383_v25 }
0x1566   :  { %v1697_v57 = vmul.f32 %v1695_v5, %v4331_v21 }
0x1568   :  { %v1698_v44 = vadd.f32 %v1697_v57, %v1691_v58 }
0x156a   :  { %v1705_v26 = vadd.f32 %v1704_v1, %v1698_v44 }
0x156c   :  { %v1496_v61 = vpop.permute.xlu0 %1495 }
0x156d   :  { %3354 = vmatmul.msk.f32.vlgmr.msrb.gmra.mxu3 %vm272_vm2, %v1496_v61 }
0x156e   :  { %v1709_v18 = vpop.permute.xlu1 %1708 }
0x156f   :  { %v1711_v8 = vmul.f32 %v1709_v18, %v4360_v56 }
0x1571   :  { %v1712_v19 = vadd.f32 %v1711_v8, %v1705_v26 }
0x1573   :  { %v1719_v39 = vadd.f32 %v1718_v6, %v1712_v19 }
0x1575   :  { %v1726_v37 = vadd.f32 %v1725_v36, %v1719_v39 }
0x1576   :  { %v1736_v38 = vpop.permute.xlu1 %1735 }
0x1577   :  { %1733 = vst.msk [vmem:[#allocation5] sm:$0xff] %vm1530_vm15, %v1726_v37  ;;  %v3497_v37 = vld [vmem:[%s5154_s12] ss:$0 sm:$0xff] }
0x1578   :  { %1739 = vst.msk [vmem:[#allocation5] sm:$0xff] %vm1738_vm11, %v1736_v38 }
0x1579   :  { %1745 = vst.msk [vmem:[#allocation5] sm:$0xff] %vm1744_vm12, %v1742_v47 }
0x157e   :  { %v1471_v22 = vpop.permute.xlu1 %1470 }
0x157f   :  { %3353 = vmatmul.msk.f32.vlgmr.msra.gmra.mxu2 %vm272_vm2, %v1471_v22 }
0x1580   :  { %v1746_v32 = vld [vmem:[#allocation5] sm:$0xff] }
0x1581   :  { %1783 = vmatmul.f32.vlgmr.msrb.gmra.mxu0 %v1746_v32 }
0x15f0   :  { %v1516_v50 = vpop.f32.mrf.mxu3 }
0x15fe   :  { %v1784_v12 = vpop.f32.mrf.mxu0 }
0x15ff   :  { %v1785_v63 = vadd.f32 %v3495_v49, %v1784_v12 }
0x1601   :  { %3648 = vtanh.f32 %v1785_v63  ;;  %v3356_v5 = vmul.f32 -1.442695, %v1785_v63 }
0x1602   :  { %v1491_v60 = vpop.f32.mrf.mxu2 }
0x1603   :  { %v1517_v17 = vadd.f32 %v1516_v50, %v1491_v60  ;;  %3650 = vpow2.f32 %v3356_v5  ;;  %v1831_v60 = vld [vmem:[%s5157_s16 + $0x18] sm:$0xff] }
0x1604   :  { %1853 = vmatpush.msra.mxu1 %v1831_v60  ;;  %2091 = vmatpush.msra.mxu3 %v1831_v60 }
0x1605   :  { %v1523_v0 = vadd.f32 %v3496_v59, %v1517_v17  ;;  %v1830_v17 = vld [vmem:[%s5157_s16 + $0x10] sm:$0xff] }
0x1606   :  { %1854 = vmatpush.msra.mxu1 %v1830_v17  ;;  %2092 = vmatpush.msra.mxu3 %v1830_v17 }
0x1607   :  { %v3649_v13 = vpop.eup %3648  ;;  %1808 = vrot.lane.b32.xlu1 %v1523_v0, %s3749_s4  ;;  %v1829_v0 = vld [vmem:[%s5157_s16 + $0x8] sm:$0xff] }
0x1608   :  { %1813 = vrot.lane.b32.xlu2 %v3649_v13, %s3748_s0  ;;  %v1828_v13 = vld [vmem:[%s5157_s16] sm:$0xff]  ;;  %1855 = vmatpush.msra.mxu1 %v1829_v0 }
0x1609   :  { %v3651_v53 = vpop.eup %3650  ;;  %2093 = vmatpush.msra.mxu3 %v1829_v0 }
0x160a   :  { %v1790_v57 = vadd.f32 1.0, %v3651_v53  ;;  %1856 = vmatpush.msra.mxu1 %v1828_v13 }
0x160b   :  { %2094 = vmatpush.msra.mxu3 %v1828_v13 }
0x160c   :  { %3652 = vrcp.f32 %v1790_v57  ;;  %v1802_v18 = vand.u32 2147483648, %v1790_v57  ;;  %vm1796_vm14 = vweird.f32 %v1790_v57  ;;  %v1800_v26 = vand.u32 2147483647, %v1790_v57  ;;  %2247 = vmatpush.msrb.mxu1 %v4432_v42 }
0x160d   :  { %2329 = vmatpush.msrb.mxu3 %v1831_v60 }
0x160e   :  { %v1803_v6 = vor.u32 1.1754944e-38, %v1802_v18  ;;  %vm1801_vm1 = vcmp.eq.f32.partialorder %v1800_v26, 8.507059e+37  ;;  %2248 = vmatpush.msrb.mxu1 %v4437_v30 }
0x160f   :  { %2330 = vmatpush.msrb.mxu3 %v1830_v17 }
0x1610   :  { %2249 = vmatpush.msrb.mxu1 %v4444_v40 }
0x1611   :  { %2331 = vmatpush.msrb.mxu3 %v1829_v0 }
0x1612   :  { %v3653_v58 = vpop.eup %3652  ;;  %2250 = vmatpush.msrb.mxu1 %v4453_v31  ;;  %v3498_v31 = vld [vmem:[%s5158_s17] ss:$0 sm:$0xff] }
0x1613   :  { %v1792_v44 = vmul.f32 %v3653_v58, %v1790_v57  ;;  %vm1797_vm13 = vweird.f32 %v3653_v58  ;;  %2332 = vmatpush.msrb.mxu3 %v1828_v13 }
0x1614   :  { %vm1798_vm0 = vmor %vm1796_vm14, %vm1797_vm13  ;;  %2251 = vmatpush.msrb.mxu1 %v4462_v33 }
0x1615   :  { %v1793_v61 = vsub.f32 1.0, %v1792_v44 }
0x1616   :  { %2252 = vmatpush.msrb.mxu1 %v4470_v41 }
0x1617   :  { %v1794_v1 = vmul.f32 %v3653_v58, %v1793_v61 }
0x1618   :  { %2253 = vmatpush.msrb.mxu1 %v4480_v7 }
0x1619   :  { %v1795_v2 = vadd.f32 %v3653_v58, %v1794_v1 }
0x161a   :  { %2254 = vmatpush.msrb.mxu1 %v4486_v23 }
0x161b   :  { %v1799_v8 = vsel %vm1798_vm0, %v3653_v58, %v1795_v2 }
0x161c   :  { %v1804_v36 = vsel %vm1801_vm1, %v1803_v6, %v1799_v8  ;;  %2255 = vmatpush.msrb.mxu1 %v4492_v11  ;;  %v1885_v6 = vstv %s1884_s3  ;;  %s3074_s3 = scalar_select %p3073_p5, 1, 0 }
0x161d   :  { %vm1886_vm5 = vcmp.eq.s32.totalorder %v1885_v6, 1 }
0x161e   :  { %2256 = vmatpush.msrb.mxu1 %v4498_v54 }
0x1620   :  { %2257 = vmatpush.msrb.mxu1 %v4504_v46 }
0x1622   :  { %2258 = vmatpush.msrb.mxu1 %v4513_v48 }
0x1624   :  { %2259 = vmatpush.msrb.mxu1 %v4522_v27 }
0x1626   :  { %2260 = vmatpush.msrb.mxu1 %v4531_v20 }
0x1628   :  { %2261 = vmatpush.msrb.mxu1 %v4539_v16 }
0x162a   :  { %2262 = vmatpush.msrb.mxu1 %v4546_v51 }
0x1662   :  { %v1814_v19 = vpop.permute.xlu2 %1813 }
0x1663   :  { %v1816_v39 = vmul.f32 %v1814_v19, %v1804_v36 }
0x1665   :  { %1818 = vrot.lane.b32.xlu0 %v1816_v39, %s3749_s4 }
0x166d   :  { %1891 = vrot.lane.b32.xlu0 %v3497_v37, %s3755_s20  ;;  %v1881_v37 = vld [vmem:[%s5169_s30 + $0x8] sm:$0xff] }
0x1679   :  { %v1809_v38 = vpop.permute.xlu1 %1808 }
0x167a   :  { %v1811_v47 = vmul.f32 %v1809_v38, %v1804_v36 }
0x16d7   :  { %v1819_v22 = vpop.permute.xlu0 %1818 }
0x16d8   :  { %v4591_v32 = vadd.f32 %v1819_v22, %v1811_v47 }
0x16da   :  { %3654 = vtanh.f32 %v4591_v32 }
0x16df   :  { %v1892_v63 = vpop.permute.xlu0 %1891 }
0x16e0   :  { %v3655_v49 = vpop.eup %3654 }
0x16e1   :  { %1824 = vrot.lane.b32.xlu2 %v3655_v49, %s3748_s0 }
0x173b   :  { %v1825_v12 = vpop.permute.xlu2 %1824 }
0x173c   :  { %v4595_v59 = vmul.f32 %v1825_v12, %v1804_v36 }
0x173e   :  { %v1894_v50 = vmul.f32 %v1892_v63, %v4595_v59  ;;  %1837 = vrot.lane.b32.xlu1 %v4595_v59, %s3749_s4 }
0x1740   :  { %1896 = vrot.lane.b32.xlu2 %v1894_v50, %s3749_s4 }
0x179a   :  { %v1897_v42 = vpop.permute.xlu2 %1896 }
0x179b   :  { %v1899_v30 = vsel %vm272_vm2, %v1897_v42, 0.0 }
0x179c   :  { %1900 = vadd.xlane.f32.xlu0 %v1899_v30 }
0x17b0   :  { %v1838_v40 = vpop.permute.xlu1 %1837 }
0x17b1   :  { %3357 = vmatmul.msk.f32.vlgmr.msra.gmra.mxu1 %vm272_vm2, %v1838_v40 }
0x180f   :  { %v1901_v33 = vpop.xlane.xlu0 %1900 }
0x1810   :  { %v1903_v23 = vadd.f32 %v1901_v33, %v4401_v52 }
0x1812   :  { %v1904_v11 = vmax.f32 %v1903_v23, 0.0 }
0x1814   :  { %v1905_v54 = vsel %vm1659_vm9, %v1904_v11, -inf }
0x182e   :  { %v1858_v41 = vpop.f32.mrf.mxu1 }
0x182f   :  { %v1859_v7 = vadd.f32 %v3498_v31, %v1858_v41 }
0x1831   :  { %3358 = vst [vmem:[%s5159_s18 + $0x8] sm:$0xff] %v1859_v7  ;;  %1863 = vmax.xlane.f32.xlu1 %v1859_v7 }
0x1839   :  { %1906 = vmax.xlane.f32.xlu1 %v1905_v54 }
0x18a4   :  { %v1864_v46 = vpop.xlane.xlu1 %1863 }
0x18a5   :  { %vm1865_vm3 = vcmp.eq.f32.partialorder %v1859_v7, %v1864_v46 }
0x18a6   :  { %v1866_v48 = vsel %vm1865_vm3, %v3960_v24, 128 }
0x18a7   :  { %v1868_v27 = vshra.s32 %v1866_v48, 16  ;;  %v1867_v58 = vand.u32 65535, %v1866_v48 }
0x18a9   :  { %v1870_v20 = vcvt.s32.f32 %v1868_v27  ;;  %v1869_v61 = vcvt.s32.f32 %v1867_v58 }
0x18ab   :  { %1871 = vmin.xlane.f32.xlu2 %v1870_v20 }
0x18ac   :  { %v1907_v16 = vpop.xlane.xlu1 %1906 }
0x18ad   :  { %v1908_v51 = vsub.f32 %v1904_v11, %v1907_v16 }
0x18af   :  { %v1909_v5 = vmul.f32 1.442695, %v1908_v51 }
0x18b1   :  { %3656 = vpow2.f32 %v1909_v5 }
0x18b7   :  { %v3657_v53 = vpop.eup %3656 }
0x18b8   :  { %v1911_v57 = vsel %vm1659_vm9, %v3657_v53, 0.0 }
0x18b9   :  { %1912 = vadd.xlane.f32.xlu2 %v1911_v57 }
0x191e   :  { %v1872_v44 = vpop.xlane.xlu2 %1871 }
0x191f   :  { %vm1873_vm4 = vcmp.eq.f32.partialorder %v1870_v20, %v1872_v44  ;;  %v1878_v8 = vcvt.f32.s32 %v1872_v44 }
0x1920   :  { %v1874_v1 = vsel %vm1873_vm4, %v1869_v61, inf }
0x1921   :  { %1875 = vmin.xlane.f32.xlu0 %v1874_v1  ;;  %v1879_v36 = vshll.u32 %v1878_v8, 16 }
0x192c   :  { %v1913_v2 = vpop.xlane.xlu2 %1912 }
0x192d   :  { %3658 = vrcp.f32 %v1913_v2 }
0x1933   :  { %v3659_v18 = vpop.eup %3658 }
0x1934   :  { %v1915_v26 = vmul.f32 %v3659_v18, %v3657_v53 }
0x1936   :  { %1925 = vperm.xlu2 %3432, %v1915_v26   ;;  %1919 = vperm.xlu0 %3431, %v1915_v26  }
0x193e   :  { %3434 = vset.pattern.permute.xlu2 %v3754_v34  ;;  %3438 = vset.pattern.permute.xlu0 %v3756_v35 }
0x193f   :  { %1939 = vperm.xlu2 %3434, %v1915_v26   ;;  %1967 = vperm.xlu0 %3438, %v1915_v26  }
0x1947   :  { %3436 = vset.pattern.permute.xlu2 %v3757_v43  ;;  %3441 = vset.pattern.permute.xlu0 %v3750_v9 }
0x1948   :  { %1953 = vperm.xlu2 %3436, %v1915_v26  }
0x1950   :  { %3439 = vset.pattern.permute.xlu2 %v3746_v3 }
0x1990   :  { %v1926_v12 = vpop.permute.xlu2 %1925 }
0x1991   :  { %v1928_v0 = vmul.f32 %v1926_v12, %v4323_v45 }
0x1994   :  { %v1876_v19 = vpop.xlane.xlu0 %1875 }
0x1995   :  { %v1877_v39 = vcvt.f32.s32 %v1876_v19 }
0x1997   :  { %v1880_v38 = vadd.s32 %v1879_v36, %v1877_v39  ;;  %v3500_v36 = vld [vmem:[%s5154_s12] ss:$0 sm:$0xff] }
0x1999   :  { %v1887_v47 = vsel %vm1886_vm5, %v1881_v37, %v1880_v38  ;;  %v1940_v17 = vpop.permute.xlu2 %1939 }
0x199a   :  { %1973 = vperm.xlu1 %3430, %v1887_v47   ;;  %v1942_v40 = vmul.f32 %v1940_v17, %v4331_v21  ;;  %v3501_v17 = vld [vmem:[%s5158_s17] ss:$0 sm:$0xff] }
0x19a2   :  { %3433 = vset.pattern.permute.xlu1 %v3751_v15  ;;  %v1954_v41 = vpop.permute.xlu2 %1953 }
0x19a3   :  { %1932 = vperm.xlu1 %3433, %v1915_v26   ;;  %v1956_v23 = vmul.f32 %v1954_v41, %v4360_v56  ;;  %v3499_v56 = vld [vmem:[%s5156_s15] ss:$0 sm:$0xff] }
0x19a8   :  { %v1920_v63 = vpop.permute.xlu0 %1919 }
0x19a9   :  { %v1922_v60 = vmul.f32 %v1920_v63, %v4367_v62 }
0x19ab   :  { %3435 = vset.pattern.permute.xlu1 %v3753_v14 }
0x19ac   :  { %1946 = vperm.xlu1 %3435, %v1915_v26  }
0x19b1   :  { %v1968_v11 = vpop.permute.xlu0 %1967 }
0x19b2   :  { %v1970_v45 = vmul.f32 %v1968_v11, %v4377_v10 }
0x19b4   :  { %3437 = vset.pattern.permute.xlu1 %v3752_v28 }
0x19b5   :  { %1960 = vperm.xlu1 %3437, %v1915_v26  }
0x19bd   :  { %1984 = vrot.lane.b32.xlu1 %v4595_v59, %s3759_s8  ;;  %v1929_v59 = vadd.f32 %v1928_v0, %v1922_v60 }
0x19be   :  { %3440 = vset.pattern.permute.xlu1 %v3746_v3 }
0x1a0c   :  { %v1974_v22 = vpop.permute.xlu1 %1973 }
0x1a0d   :  { %vm1975_vm6 = vcmp.eq.s32.totalorder %v3960_v24, %v1974_v22 }
0x1a0e   :  { %v3360_v49 = vsel %vm1975_vm6, 1.0, %v4420_v29 }
0x1a0f   :  { %1980 = vrot.lane.b32.xlu2 %v3360_v49, %s3748_s0 }
0x1a15   :  { %v1933_v50 = vpop.permute.xlu1 %1932 }
0x1a16   :  { %v1935_v13 = vmul.f32 %v1933_v50, %v4349_v55 }
0x1a18   :  { %v1936_v42 = vadd.f32 %v1935_v13, %v1929_v59 }
0x1a1a   :  { %v1943_v33 = vadd.f32 %v1942_v40, %v1936_v42 }
0x1a1e   :  { %v1947_v30 = vpop.permute.xlu1 %1946 }
0x1a1f   :  { %v1949_v31 = vmul.f32 %v1947_v30, %v4340_v4 }
0x1a21   :  { %v1950_v7 = vadd.f32 %v1949_v31, %v1943_v33 }
0x1a23   :  { %v1957_v62 = vadd.f32 %v1956_v23, %v1950_v7 }
0x1a27   :  { %v1961_v54 = vpop.permute.xlu1 %1960 }
0x1a28   :  { %v1963_v46 = vmul.f32 %v1961_v54, %v4383_v25 }
0x1a2a   :  { %v1964_v55 = vadd.f32 %v1963_v46, %v1957_v62 }
0x1a2c   :  { %v1971_v48 = vadd.f32 %v1970_v45, %v1964_v55 }
0x1a2e   :  { %1978 = vst.msk [vmem:[#allocation5] sm:$0xff] %vm1530_vm15, %v1971_v48 }
0x1a2f   :  { %v1985_v21 = vpop.permute.xlu1 %1984 }
0x1a69   :  { %v1981_v27 = vpop.permute.xlu2 %1980 }
0x1a6a   :  { %1983 = vst.msk [vmem:[#allocation5] sm:$0xff] %vm1738_vm11, %v1981_v27 }
0x1a6b   :  { %1987 = vst.msk [vmem:[#allocation5] sm:$0xff] %vm1744_vm12, %v1985_v21 }
0x1a72   :  { %v1988_v4 = vld [vmem:[#allocation5] sm:$0xff] }
0x1a73   :  { %2025 = vmatmul.f32.vlgmr.msrb.gmra.mxu2 %v1988_v4 }
0x1af6   :  { %v2026_v20 = vpop.f32.mrf.mxu2 }
0x1af7   :  { %v2027_v25 = vadd.f32 %v3499_v56, %v2026_v20  ;;  %v2123_v20 = vstv %s2122_s10 }
0x1af8   :  { %vm2124_vm1 = vcmp.eq.s32.totalorder %v2123_v20, 1 }
0x1af9   :  { %3660 = vtanh.f32 %v2027_v25  ;;  %v3361_v16 = vmul.f32 -1.442695, %v2027_v25 }
0x1afb   :  { %3662 = vpow2.f32 %v3361_v16 }
0x1aff   :  { %v3661_v10 = vpop.eup %3660 }
0x1b00   :  { %2051 = vrot.lane.b32.xlu2 %v3661_v10, %s3748_s0 }
0x1b01   :  { %v3663_v51 = vpop.eup %3662 }
0x1b02   :  { %v2032_v5 = vadd.f32 1.0, %v3663_v51  ;;  %v2119_v51 = vld [vmem:[%s5169_s30 + $0x10] sm:$0xff] }
0x1b04   :  { %3664 = vrcp.f32 %v2032_v5  ;;  %v2044_v1 = vand.u32 2147483648, %v2032_v5  ;;  %vm2038_vm8 = vweird.f32 %v2032_v5  ;;  %v2042_v2 = vand.u32 2147483647, %v2032_v5 }
0x1b06   :  { %v2045_v26 = vor.u32 1.1754944e-38, %v2044_v1  ;;  %vm2043_vm13 = vcmp.eq.f32.partialorder %v2042_v2, 8.507059e+37 }
0x1b0a   :  { %v3665_v53 = vpop.eup %3664 }
0x1b0b   :  { %v2034_v57 = vmul.f32 %v3665_v53, %v2032_v5  ;;  %vm2039_vm7 = vweird.f32 %v3665_v53 }
0x1b0c   :  { %vm2040_vm10 = vmor %vm2038_vm8, %vm2039_vm7 }
0x1b0d   :  { %v2035_v58 = vsub.f32 1.0, %v2034_v57 }
0x1b0f   :  { %v2036_v44 = vmul.f32 %v3665_v53, %v2035_v58 }
0x1b11   :  { %v2037_v61 = vadd.f32 %v3665_v53, %v2036_v44 }
0x1b13   :  { %v2041_v18 = vsel %vm2040_vm10, %v3665_v53, %v2037_v61 }
0x1b14   :  { %v2046_v6 = vsel %vm2043_vm13, %v2045_v26, %v2041_v18  ;;  %v4718_v18 = vld [vmem:[#allocation3 + $0x8] sm:$0xff]  ;;  %v4720_v26 = vld [vmem:[#allocation3] sm:$0xff] }
0x1b15   :  { %v2049_v39 = vmul.f32 %v2046_v6, %v4591_v32 }
0x1b5a   :  { %v2052_v8 = vpop.permute.xlu2 %2051 }
0x1b5b   :  { %v2054_v19 = vmul.f32 %v2052_v8, %v2046_v6 }
0x1b5d   :  { %2056 = vrot.lane.b32.xlu1 %v2054_v19, %s3749_s4  ;;  %v4724_v19 = vld [vmem:[#allocation3 + $0x10] sm:$0xff] }
0x1b65   :  { %2129 = vrot.lane.b32.xlu1 %v3500_v36, %s3755_s20 }
0x1bcf   :  { %v2057_v37 = vpop.permute.xlu1 %2056 }
0x1bd0   :  { %v4679_v38 = vadd.f32 %v2057_v37, %v2049_v39 }
0x1bd2   :  { %3666 = vtanh.f32 %v4679_v38 }
0x1bd7   :  { %v2130_v49 = vpop.permute.xlu1 %2129 }
0x1bd8   :  { %v3667_v47 = vpop.eup %3666 }
0x1bd9   :  { %2062 = vrot.lane.b32.xlu0 %v3667_v47, %s3748_s0 }
0x1c4b   :  { %v2063_v22 = vpop.permute.xlu0 %2062 }
0x1c4c   :  { %v4683_v12 = vmul.f32 %v2063_v22, %v2046_v6  ;;  %v4727_v22 = vld [vmem:[#allocation3 + $0x18] sm:$0xff] }
0x1c4e   :  { %v2132_v63 = vmul.f32 %v2130_v49, %v4683_v12  ;;  %2075 = vrot.lane.b32.xlu2 %v4683_v12, %s3749_s4  ;;  %v4729_v49 = vld [vmem:[#allocation3 + $0x20] sm:$0xff] }
0x1c50   :  { %2134 = vrot.lane.b32.xlu0 %v2132_v63, %s3749_s4 }
0x1ca8   :  { %v2076_v32 = vpop.permute.xlu2 %2075 }
0x1ca9   :  { %3362 = vmatmul.msk.f32.vlgmr.msra.gmra.mxu3 %vm272_vm2, %v2076_v32 }
0x1cc2   :  { %v2135_v50 = vpop.permute.xlu0 %2134 }
0x1cc3   :  { %v2137_v60 = vsel %vm272_vm2, %v2135_v50, 0.0 }
0x1cc4   :  { %2138 = vadd.xlane.f32.xlu1 %v2137_v60  ;;  %v4733_v60 = vld [vmem:[#allocation3 + $0x28] sm:$0xff] }
0x1d2c   :  { %v2096_v0 = vpop.f32.mrf.mxu3 }
0x1d2d   :  { %v2097_v13 = vadd.f32 %v3501_v17, %v2096_v0 }
0x1d2f   :  { %3363 = vst [vmem:[%s5159_s18 + $0x10] sm:$0xff] %v2097_v13  ;;  %2101 = vmax.xlane.f32.xlu2 %v2097_v13 }
0x1d37   :  { %v2139_v59 = vpop.xlane.xlu1 %2138 }
0x1d38   :  { %v2141_v42 = vadd.f32 %v2139_v59, %v4401_v52 }
0x1d3a   :  { %v2142_v30 = vmax.f32 %v2141_v42, 0.0 }
0x1d3c   :  { %v2143_v40 = vsel %vm1659_vm9, %v2142_v30, -inf }
0x1d3d   :  { %2144 = vmax.xlane.f32.xlu2 %v2143_v40  ;;  %v4739_v40 = vld [vmem:[#allocation3 + $0x38] sm:$0xff] }
0x1da2   :  { %v2102_v31 = vpop.xlane.xlu2 %2101 }
0x1da3   :  { %vm2103_vm14 = vcmp.eq.f32.partialorder %v2097_v13, %v2102_v31  ;;  %v4736_v13 = vld [vmem:[#allocation3 + $0x30] sm:$0xff] }
0x1da4   :  { %v2104_v33 = vsel %vm2103_vm14, %v3960_v24, 128 }
0x1da5   :  { %v2106_v41 = vshra.s32 %v2104_v33, 16  ;;  %v2105_v52 = vand.u32 65535, %v2104_v33 }
0x1da7   :  { %v2108_v7 = vcvt.s32.f32 %v2106_v41  ;;  %v2107_v55 = vcvt.s32.f32 %v2105_v52 }
0x1da9   :  { %2109 = vmin.xlane.f32.xlu0 %v2108_v7 }
0x1db0   :  { %v2145_v23 = vpop.xlane.xlu2 %2144 }
0x1db1   :  { %v2146_v11 = vsub.f32 %v2142_v30, %v2145_v23 }
0x1db3   :  { %v2147_v54 = vmul.f32 1.442695, %v2146_v11 }
0x1db5   :  { %3668 = vpow2.f32 %v2147_v54  ;;  %v3502_v54 = vld [vmem:[%s5156_s15] ss:$0 sm:$0xff] }
0x1dbb   :  { %v3669_v62 = vpop.eup %3668 }
0x1dbc   :  { %v2149_v46 = vsel %vm1659_vm9, %v3669_v62, 0.0 }
0x1dbd   :  { %2150 = vadd.xlane.f32.xlu0 %v2149_v46 }
0x1e1c   :  { %v2110_v45 = vpop.xlane.xlu0 %2109 }
0x1e1d   :  { %vm2111_vm0 = vcmp.eq.f32.partialorder %v2108_v7, %v2110_v45  ;;  %v2116_v56 = vcvt.f32.s32 %v2110_v45 }
0x1e1e   :  { %v2112_v48 = vsel %vm2111_vm0, %v2107_v55, inf }
0x1e1f   :  { %2113 = vmin.xlane.f32.xlu1 %v2112_v48  ;;  %v2117_v10 = vshll.u32 %v2116_v56, 16 }
0x1e30   :  { %v2151_v27 = vpop.xlane.xlu0 %2150 }
0x1e31   :  { %3670 = vrcp.f32 %v2151_v27 }
0x1e37   :  { %v3671_v21 = vpop.eup %3670 }
0x1e38   :  { %v2153_v4 = vmul.f32 %v3671_v21, %v3669_v62 }
0x1e3a   :  { %2163 = vperm.xlu0 %3441, %v2153_v4   ;;  %2157 = vperm.xlu1 %3440, %v2153_v4  }
0x1e42   :  { %3443 = vset.pattern.permute.xlu1 %v3754_v34  ;;  %3449 = vset.pattern.permute.xlu0 %v3746_v3 }
0x1e43   :  { %2177 = vperm.xlu1 %3443, %v2153_v4  }
0x1e4b   :  { %3445 = vset.pattern.permute.xlu1 %v3757_v43 }
0x1e4c   :  { %2191 = vperm.xlu1 %3445, %v2153_v4  }
0x1e54   :  { %3447 = vset.pattern.permute.xlu1 %v3756_v35 }
0x1e55   :  { %2205 = vperm.xlu1 %3447, %v2153_v4  }
0x1e5d   :  { %3448 = vset.pattern.permute.xlu1 %v3746_v3 }
0x1e92   :  { %v2114_v25 = vpop.xlane.xlu1 %2113 }
0x1e93   :  { %v2115_v16 = vcvt.f32.s32 %v2114_v25 }
0x1e95   :  { %v2118_v5 = vadd.s32 %v2117_v10, %v2115_v16 }
0x1e97   :  { %v2125_v53 = vsel %vm2124_vm1, %v2119_v51, %v2118_v5 }
0x1e98   :  { %2211 = vperm.xlu2 %3439, %v2125_v53  }
0x1ea0   :  { %3442 = vset.pattern.permute.xlu2 %v3751_v15 }
0x1ea1   :  { %2170 = vperm.xlu2 %3442, %v2153_v4  }
0x1ea9   :  { %3444 = vset.pattern.permute.xlu2 %v3753_v14 }
0x1eaa   :  { %2184 = vperm.xlu2 %3444, %v2153_v4  }
0x1eac   :  { %v2158_v57 = vpop.permute.xlu1 %2157  ;;  %v2164_v1 = vpop.permute.xlu0 %2163 }
0x1ead   :  { %v2166_v8 = vmul.f32 %v2164_v1, %v4718_v18  ;;  %v2160_v6 = vmul.f32 %v2158_v57, %v4720_v26 }
0x1eaf   :  { %v2167_v39 = vadd.f32 %v2166_v8, %v2160_v6 }
0x1eb2   :  { %3446 = vset.pattern.permute.xlu2 %v3752_v28 }
0x1eb3   :  { %2198 = vperm.xlu2 %3446, %v2153_v4  }
0x1eb5   :  { %v2178_v61 = vpop.permute.xlu1 %2177 }
0x1ebb   :  { %2222 = vrot.lane.b32.xlu2 %v4683_v12, %s3759_s8  ;;  %v2180_v12 = vmul.f32 %v2178_v61, %v4727_v22 }
0x1ebc   :  { %3450 = vset.pattern.permute.xlu2 %v3750_v9 }
0x1ebe   :  { %v2192_v37 = vpop.permute.xlu1 %2191 }
0x1ebf   :  { %v2194_v17 = vmul.f32 %v2192_v37, %v4733_v60 }
0x1ec7   :  { %v2206_v0 = vpop.permute.xlu1 %2205 }
0x1ec8   :  { %v2208_v31 = vmul.f32 %v2206_v0, %v4739_v40 }
0x1ef2   :  { %v2212_v58 = vpop.permute.xlu2 %2211 }
0x1ef3   :  { %vm2213_vm3 = vcmp.eq.s32.totalorder %v3960_v24, %v2212_v58  ;;  %v3503_v58 = vld [vmem:[%s5154_s12] ss:$0 sm:$0xff] }
0x1ef4   :  { %v3365_v44 = vsel %vm2213_vm3, 1.0, %v4420_v29 }
0x1ef5   :  { %2218 = vrot.lane.b32.xlu0 %v3365_v44, %s3748_s0 }
0x1efb   :  { %v2171_v2 = vpop.permute.xlu2 %2170 }
0x1efc   :  { %v2173_v36 = vmul.f32 %v2171_v2, %v4724_v19 }
0x1efe   :  { %v2174_v29 = vadd.f32 %v2173_v36, %v2167_v39 }
0x1f00   :  { %v2181_v32 = vadd.f32 %v2180_v12, %v2174_v29 }
0x1f04   :  { %v2185_v47 = vpop.permute.xlu2 %2184 }
0x1f05   :  { %v2187_v63 = vmul.f32 %v2185_v47, %v4729_v49  ;;  %v3504_v47 = vld [vmem:[%s5158_s17] ss:$0 sm:$0xff] }
0x1f07   :  { %v2188_v50 = vadd.f32 %v2187_v63, %v2181_v32  ;;  %v4770_v32 = vld [vmem:[#allocation4] sm:$0xff] }
0x1f09   :  { %v2195_v42 = vadd.f32 %v2194_v17, %v2188_v50 }
0x1f0d   :  { %v2199_v59 = vpop.permute.xlu2 %2198 }
0x1f0e   :  { %v2201_v30 = vmul.f32 %v2199_v59, %v4736_v13 }
0x1f10   :  { %v2202_v33 = vadd.f32 %v2201_v30, %v2195_v42 }
0x1f12   :  { %v2209_v41 = vadd.f32 %v2208_v31, %v2202_v33 }
0x1f14   :  { %2216 = vst.msk [vmem:[#allocation5] sm:$0xff] %vm1530_vm15, %v2209_v41 }
0x1f15   :  { %v2223_v23 = vpop.permute.xlu2 %2222 }
0x1f67   :  { %v2219_v7 = vpop.permute.xlu0 %2218 }
0x1f68   :  { %2221 = vst.msk [vmem:[#allocation5] sm:$0xff] %vm1738_vm11, %v2219_v7 }
0x1f69   :  { %2225 = vst.msk [vmem:[#allocation5] sm:$0xff] %vm1744_vm12, %v2223_v23 }
0x1f70   :  { %v2226_v11 = vld [vmem:[#allocation5] sm:$0xff] }
0x1f71   :  { %2263 = vmatmul.f32.vlgmr.msrb.gmra.mxu1 %v2226_v11 }
0x1fee   :  { %v2264_v62 = vpop.f32.mrf.mxu1 }
0x1fef   :  { %v2265_v46 = vadd.f32 %v3502_v54, %v2264_v62 }
0x1ff1   :  { %3672 = vtanh.f32 %v2265_v46  ;;  %v3366_v45 = vmul.f32 -1.442695, %v2265_v46 }
0x1ff3   :  { %3674 = vpow2.f32 %v3366_v45 }
0x1ff7   :  { %v3673_v52 = vpop.eup %3672 }
0x1ff8   :  { %2289 = vrot.lane.b32.xlu1 %v3673_v52, %s3748_s0 }
0x1ff9   :  { %v3675_v55 = vpop.eup %3674 }
0x1ffa   :  { %v2270_v48 = vadd.f32 1.0, %v3675_v55 }
0x1ffc   :  { %3676 = vrcp.f32 %v2270_v48  ;;  %v2282_v25 = vand.u32 2147483648, %v2270_v48  ;;  %vm2276_vm5 = vweird.f32 %v2270_v48  ;;  %v2280_v10 = vand.u32 2147483647, %v2270_v48 }
0x1ffe   :  { %v2283_v51 = vor.u32 1.1754944e-38, %v2282_v25  ;;  %vm2281_vm7 = vcmp.eq.f32.partialorder %v2280_v10, 8.507059e+37  ;;  %v2357_v10 = vld [vmem:[%s5169_s30 + $0x18] sm:$0xff] }
0x2002   :  { %v3677_v27 = vpop.eup %3676 }
0x2003   :  { %v2272_v21 = vmul.f32 %v3677_v27, %v2270_v48  ;;  %vm2277_vm4 = vweird.f32 %v3677_v27 }
0x2004   :  { %vm2278_vm6 = vmor %vm2276_vm5, %vm2277_vm4 }
0x2005   :  { %v2273_v4 = vsub.f32 1.0, %v2272_v21 }
0x2007   :  { %v2274_v56 = vmul.f32 %v3677_v27, %v2273_v4  ;;  %v2361_v4 = vstv %s2360_s28 }
0x2008   :  { %vm2362_vm13 = vcmp.eq.s32.totalorder %v2361_v4, 1  ;;  %v2468_v4 = vld [vmem:[%s5155_s14 + $0x18] sm:$0xff] }
0x2009   :  { %v2275_v20 = vadd.f32 %v3677_v27, %v2274_v56 }
0x200b   :  { %v2279_v16 = vsel %vm2278_vm6, %v3677_v27, %v2275_v20 }
0x200c   :  { %v2284_v53 = vsel %vm2281_vm7, %v2283_v51, %v2279_v16 }
0x200d   :  { %v2287_v44 = vmul.f32 %v2284_v53, %v4679_v38 }
0x206a   :  { %v2290_v5 = vpop.permute.xlu1 %2289 }
0x206b   :  { %v2292_v57 = vmul.f32 %v2290_v5, %v2284_v53 }
0x206d   :  { %2294 = vrot.lane.b32.xlu0 %v2292_v57, %s3749_s4  ;;  %v4797_v57 = vld [vmem:[%s5159_s18] sm:$0xff] }
0x2075   :  { %2367 = vrot.lane.b32.xlu0 %v3503_v58, %s3755_s20 }
0x20df   :  { %v2295_v61 = vpop.permute.xlu0 %2294 }
0x20e0   :  { %v4755_v1 = vadd.f32 %v2295_v61, %v2287_v44  ;;  %v2480_v44 = vld [vmem:[%s5155_s14 + $0x78] sm:$0xff]  ;;  %v2479_v61 = vld [vmem:[%s5155_s14 + $0x70] sm:$0xff] }
0x20e1   :  { %2485 = vmatpush.msra.mxu3 %v2480_v44  ;;  %2723 = vmatpush.msra.mxu2 %v2480_v44 }
0x20e2   :  { %3678 = vtanh.f32 %v4755_v1  ;;  %2961 = vmatpush.msra.mxu1 %v2480_v44 }
0x20e3   :  { %2486 = vmatpush.msra.mxu3 %v2479_v61  ;;  %2724 = vmatpush.msra.mxu2 %v2479_v61 }
0x20e4   :  { %2962 = vmatpush.msra.mxu1 %v2479_v61 }
0x20e7   :  { %v2368_v6 = vpop.permute.xlu0 %2367 }
0x20e8   :  { %v3679_v2 = vpop.eup %3678 }
0x20e9   :  { %2300 = vrot.lane.b32.xlu2 %v3679_v2, %s3748_s0  ;;  %v2478_v2 = vld [vmem:[%s5155_s14 + $0x68] sm:$0xff] }
0x20ea   :  { %2487 = vmatpush.msra.mxu3 %v2478_v2  ;;  %2725 = vmatpush.msra.mxu2 %v2478_v2 }
0x20eb   :  { %2963 = vmatpush.msra.mxu1 %v2478_v2 }
0x2143   :  { %v2301_v8 = vpop.permute.xlu2 %2300 }
0x2144   :  { %v4759_v36 = vmul.f32 %v2301_v8, %v2284_v53 }
0x2146   :  { %v2370_v39 = vmul.f32 %v2368_v6, %v4759_v36  ;;  %2313 = vrot.lane.b32.xlu1 %v4759_v36, %s3749_s4  ;;  %v2477_v6 = vld [vmem:[%s5155_s14 + $0x60] sm:$0xff] }
0x2147   :  { %2488 = vmatpush.msra.mxu3 %v2477_v6  ;;  %2726 = vmatpush.msra.mxu2 %v2477_v6 }
0x2148   :  { %2372 = vrot.lane.b32.xlu2 %v2370_v39, %s3749_s4  ;;  %2964 = vmatpush.msra.mxu1 %v2477_v6 }
0x21a2   :  { %v2373_v38 = vpop.permute.xlu2 %2372 }
0x21a3   :  { %v2375_v37 = vsel %vm272_vm2, %v2373_v38, 0.0 }
0x21a4   :  { %2376 = vadd.xlane.f32.xlu0 %v2375_v37  ;;  %v2476_v37 = vld [vmem:[%s5155_s14 + $0x58] sm:$0xff] }
0x21a5   :  { %2489 = vmatpush.msra.mxu3 %v2476_v37  ;;  %2727 = vmatpush.msra.mxu2 %v2476_v37 }
0x21a6   :  { %2965 = vmatpush.msra.mxu1 %v2476_v37 }
0x21b8   :  { %v2314_v29 = vpop.permute.xlu1 %2313 }
0x21b9   :  { %3367 = vmatmul.msk.f32.vlgmr.msrb.gmra.mxu3 %vm272_vm2, %v2314_v29 }
0x2217   :  { %v2377_v12 = vpop.xlane.xlu0 %2376 }
0x2218   :  { %v2379_v17 = vadd.f32 %v4770_v32, %v2377_v12  ;;  %v2475_v12 = vld [vmem:[%s5155_s14 + $0x50] sm:$0xff] }
0x2219   :  { %2490 = vmatpush.msra.mxu3 %v2475_v12  ;;  %2728 = vmatpush.msra.mxu2 %v2475_v12 }
0x221a   :  { %v2380_v0 = vmax.f32 %v2379_v17, 0.0  ;;  %2966 = vmatpush.msra.mxu1 %v2475_v12 }
0x221c   :  { %v2381_v59 = vsel %vm1659_vm9, %v2380_v0, -inf }
0x223c   :  { %v2334_v63 = vpop.f32.mrf.mxu3 }
0x223d   :  { %v2335_v50 = vadd.f32 %v3504_v47, %v2334_v63 }
0x223f   :  { %3368 = vst [vmem:[%s5159_s18 + $0x18] sm:$0xff] %v2335_v50  ;;  %2339 = vmax.xlane.f32.xlu1 %v2335_v50 }
0x2247   :  { %2382 = vmax.xlane.f32.xlu1 %v2381_v59 }
0x22b2   :  { %v2340_v42 = vpop.xlane.xlu1 %2339 }
0x22b3   :  { %vm2341_vm8 = vcmp.eq.f32.partialorder %v2335_v50, %v2340_v42  ;;  %v2474_v50 = vld [vmem:[%s5155_s14 + $0x48] sm:$0xff]  ;;  %v2472_v42 = vld [vmem:[%s5155_s14 + $0x38] sm:$0xff] }
0x22b4   :  { %v2342_v30 = vsel %vm2341_vm8, %v3960_v24, 128  ;;  %2491 = vmatpush.msra.mxu3 %v2474_v50  ;;  %2729 = vmatpush.msra.mxu2 %v2474_v50 }
0x22b5   :  { %v2344_v31 = vshra.s32 %v2342_v30, 16  ;;  %v2343_v62 = vand.u32 65535, %v2342_v30  ;;  %2967 = vmatpush.msra.mxu1 %v2474_v50 }
0x22b7   :  { %v2346_v33 = vcvt.s32.f32 %v2344_v31  ;;  %v2345_v46 = vcvt.s32.f32 %v2343_v62 }
0x22b9   :  { %2347 = vmin.xlane.f32.xlu2 %v2346_v33 }
0x22ba   :  { %v2383_v41 = vpop.xlane.xlu1 %2382 }
0x22bb   :  { %v2384_v7 = vsub.f32 %v2380_v0, %v2383_v41  ;;  %v2473_v0 = vld [vmem:[%s5155_s14 + $0x40] sm:$0xff] }
0x22bc   :  { %2492 = vmatpush.msra.mxu3 %v2473_v0  ;;  %2730 = vmatpush.msra.mxu2 %v2473_v0 }
0x22bd   :  { %v2385_v23 = vmul.f32 1.442695, %v2384_v7  ;;  %v2471_v7 = vld [vmem:[%s5155_s14 + $0x30] sm:$0xff]  ;;  %2968 = vmatpush.msra.mxu1 %v2473_v0 }
0x22be   :  { %2493 = vmatpush.msra.mxu3 %v2472_v42  ;;  %2731 = vmatpush.msra.mxu2 %v2472_v42 }
0x22bf   :  { %3680 = vpow2.f32 %v2385_v23  ;;  %2969 = vmatpush.msra.mxu1 %v2472_v42 }
0x22c0   :  { %2494 = vmatpush.msra.mxu3 %v2471_v7  ;;  %2732 = vmatpush.msra.mxu2 %v2471_v7 }
0x22c1   :  { %2970 = vmatpush.msra.mxu1 %v2471_v7  ;;  %v2544_v7 = vld [vmem:[%s5157_s16 + $0x10] sm:$0xff] }
0x22c5   :  { %v3681_v11 = vpop.eup %3680 }
0x22c6   :  { %v2387_v54 = vsel %vm1659_vm9, %v3681_v11, 0.0 }
0x22c7   :  { %2388 = vadd.xlane.f32.xlu2 %v2387_v54 }
0x232c   :  { %v2348_v52 = vpop.xlane.xlu2 %2347 }
0x232d   :  { %vm2349_vm10 = vcmp.eq.f32.partialorder %v2346_v33, %v2348_v52  ;;  %v2354_v21 = vcvt.f32.s32 %v2348_v52 }
0x232e   :  { %v2350_v45 = vsel %vm2349_vm10, %v2345_v46, inf }
0x232f   :  { %2351 = vmin.xlane.f32.xlu0 %v2350_v45  ;;  %v2355_v20 = vshll.u32 %v2354_v21, 16  ;;  %v2469_v21 = vld [vmem:[%s5155_s14 + $0x20] sm:$0xff] }
0x233a   :  { %v2389_v55 = vpop.xlane.xlu2 %2388 }
0x233b   :  { %3682 = vrcp.f32 %v2389_v55 }
0x2341   :  { %v3683_v48 = vpop.eup %3682 }
0x2342   :  { %v2391_v27 = vmul.f32 %v3683_v48, %v3681_v11  ;;  %v2470_v11 = vld [vmem:[%s5155_s14 + $0x28] sm:$0xff] }
0x2343   :  { %2495 = vmatpush.msra.mxu3 %v2470_v11  ;;  %2733 = vmatpush.msra.mxu2 %v2470_v11 }
0x2344   :  { %2401 = vperm.xlu2 %3450, %v2391_v27   ;;  %2395 = vperm.xlu0 %3449, %v2391_v27  }
0x2345   :  { %2971 = vmatpush.msra.mxu1 %v2470_v11  ;;  %2496 = vmatpush.msra.mxu3 %v2469_v21 }
0x2346   :  { %2734 = vmatpush.msra.mxu2 %v2469_v21 }
0x2347   :  { %2972 = vmatpush.msra.mxu1 %v2469_v21  ;;  %2497 = vmatpush.msra.mxu3 %v2468_v4 }
0x2348   :  { %2735 = vmatpush.msra.mxu2 %v2468_v4 }
0x2349   :  { %2973 = vmatpush.msra.mxu1 %v2468_v4 }
0x234c   :  { %3452 = vset.pattern.permute.xlu2 %v3754_v34  ;;  %3455 = vset.pattern.permute.xlu0 %v3752_v28 }
0x234d   :  { %2415 = vperm.xlu2 %3452, %v2391_v27   ;;  %2436 = vperm.xlu0 %3455, %v2391_v27  }
0x2355   :  { %3454 = vset.pattern.permute.xlu2 %v3757_v43  ;;  %3459 = vset.pattern.permute.xlu0 %v3750_v9 }
0x2356   :  { %2429 = vperm.xlu2 %3454, %v2391_v27  }
0x235e   :  { %3458 = vset.pattern.permute.xlu2 %v3746_v3 }
0x239e   :  { %v2402_v5 = vpop.permute.xlu2 %2401 }
0x239f   :  { %v2404_v29 = vmul.f32 %v2402_v5, %v4718_v18  ;;  %v3505_v5 = vld [vmem:[%s5156_s15] ss:$0 sm:$0xff] }
0x23a2   :  { %v2352_v56 = vpop.xlane.xlu0 %2351 }
0x23a3   :  { %v2353_v25 = vcvt.f32.s32 %v2352_v56  ;;  %v2467_v56 = vld [vmem:[%s5155_s14 + $0x10] sm:$0xff] }
0x23a4   :  { %2498 = vmatpush.msra.mxu3 %v2467_v56  ;;  %2736 = vmatpush.msra.mxu2 %v2467_v56 }
0x23a5   :  { %v2356_v16 = vadd.s32 %v2355_v20, %v2353_v25  ;;  %v2466_v20 = vld [vmem:[%s5155_s14 + $0x8] sm:$0xff]  ;;  %v2465_v25 = vld [vmem:[%s5155_s14] sm:$0xff]  ;;  %2974 = vmatpush.msra.mxu1 %v2467_v56 }
0x23a6   :  { %2499 = vmatpush.msra.mxu3 %v2466_v20  ;;  %2737 = vmatpush.msra.mxu2 %v2466_v20 }
0x23a7   :  { %v2363_v51 = vsel %vm2362_vm13, %v2357_v10, %v2356_v16  ;;  %2975 = vmatpush.msra.mxu1 %v2466_v20 }
0x23a8   :  { %2449 = vperm.xlu1 %3448, %v2363_v51   ;;  %2500 = vmatpush.msra.mxu3 %v2465_v25 }
0x23a9   :  { %2738 = vmatpush.msra.mxu2 %v2465_v25  ;;  %2976 = vmatpush.msra.mxu1 %v2465_v25 }
0x23b0   :  { %3451 = vset.pattern.permute.xlu1 %v3751_v15 }
0x23b1   :  { %2408 = vperm.xlu1 %3451, %v2391_v27  }
0x23b6   :  { %v2396_v8 = vpop.permute.xlu0 %2395 }
0x23b7   :  { %v2398_v39 = vmul.f32 %v2396_v8, %v4720_v26 }
0x23b9   :  { %3453 = vset.pattern.permute.xlu1 %v3753_v14  ;;  %v2405_v63 = vadd.f32 %v2404_v29, %v2398_v39 }
0x23ba   :  { %2422 = vperm.xlu1 %3453, %v2391_v27  }
0x23bf   :  { %v2437_v62 = vpop.permute.xlu0 %2436 }
0x23c0   :  { %v2439_v52 = vmul.f32 %v2437_v62, %v4736_v13 }
0x23c2   :  { %3456 = vset.pattern.permute.xlu1 %v3756_v35 }
0x23c3   :  { %2443 = vperm.xlu1 %3456, %v2391_v27  }
0x23cb   :  { %2460 = vrot.lane.b32.xlu1 %v4759_v36, %s3759_s8  ;;  %v2416_v36 = vpop.permute.xlu2 %2415 }
0x23cc   :  { %3457 = vset.pattern.permute.xlu1 %v3746_v3  ;;  %v2418_v59 = vmul.f32 %v2416_v36, %v4727_v22 }
0x23d3   :  { %v2430_v31 = vpop.permute.xlu2 %2429 }
0x23d4   :  { %v2432_v54 = vmul.f32 %v2430_v31, %v4733_v60 }
0x241a   :  { %v2450_v53 = vpop.permute.xlu1 %2449 }
0x241b   :  { %vm2451_vm14 = vcmp.eq.s32.totalorder %v3960_v24, %v2450_v53 }
0x241c   :  { %v3370_v58 = vsel %vm2451_vm14, 1.0, %v4797_v57 }
0x241d   :  { %2456 = vrot.lane.b32.xlu2 %v3370_v58, %s3748_s0 }
0x2423   :  { %v2409_v38 = vpop.permute.xlu1 %2408 }
0x2424   :  { %v2411_v47 = vmul.f32 %v2409_v38, %v4724_v19 }
0x2426   :  { %v2412_v17 = vadd.f32 %v2411_v47, %v2405_v63 }
0x2428   :  { %v2419_v33 = vadd.f32 %v2418_v59, %v2412_v17  ;;  %v3506_v59 = vld [vmem:[%s5154_s12] ss:$0 sm:$0xff] }
0x242c   :  { %v2423_v30 = vpop.permute.xlu1 %2422 }
0x242d   :  { %v2425_v41 = vmul.f32 %v2423_v30, %v4729_v49 }
0x242f   :  { %v2426_v23 = vadd.f32 %v2425_v41, %v2419_v33  ;;  %v2545_v41 = vld [vmem:[%s5157_s16 + $0x18] sm:$0xff] }
0x2430   :  { %2567 = vmatpush.msra.mxu0 %v2545_v41 }
0x2431   :  { %v2433_v46 = vadd.f32 %v2432_v54, %v2426_v23  ;;  %v2542_v23 = vld [vmem:[%s5157_s16] sm:$0xff] }
0x2432   :  { %2568 = vmatpush.msra.mxu0 %v2544_v7 }
0x2433   :  { %v2440_v55 = vadd.f32 %v2439_v52, %v2433_v46 }
0x2435   :  { %v2444_v45 = vpop.permute.xlu1 %2443 }
0x2436   :  { %v2446_v48 = vmul.f32 %v2444_v45, %v4739_v40 }
0x2438   :  { %v2447_v27 = vadd.f32 %v2446_v48, %v2440_v55  ;;  %v3507_v48 = vld [vmem:[%s5158_s17] ss:$0 sm:$0xff] }
0x243a   :  { %2454 = vst.msk [vmem:[#allocation5] sm:$0xff] %vm1530_vm15, %v2447_v27 }
0x243d   :  { %v2461_v16 = vpop.permute.xlu1 %2460 }
0x2477   :  { %v2457_v10 = vpop.permute.xlu2 %2456 }
0x2478   :  { %2459 = vst.msk [vmem:[#allocation5] sm:$0xff] %vm1738_vm11, %v2457_v10 }
0x2479   :  { %2463 = vst.msk [vmem:[#allocation5] sm:$0xff] %vm1744_vm12, %v2461_v16 }
0x2480   :  { %v2464_v51 = vld [vmem:[#allocation5] sm:$0xff] }
0x2481   :  { %2501 = vmatmul.f32.vlgmr.msra.gmra.mxu3 %v2464_v51 }
0x2504   :  { %v2502_v53 = vpop.f32.mrf.mxu3 }
0x2505   :  { %v2503_v58 = vadd.f32 %v3505_v5, %v2502_v53 }
0x2507   :  { %3684 = vtanh.f32 %v2503_v58  ;;  %v3371_v61 = vmul.f32 -1.442695, %v2503_v58 }
0x2509   :  { %3686 = vpow2.f32 %v3371_v61 }
0x250d   :  { %v3685_v44 = vpop.eup %3684 }
0x250e   :  { %2527 = vrot.lane.b32.xlu2 %v3685_v44, %s3748_s0 }
0x250f   :  { %v3687_v2 = vpop.eup %3686 }
0x2510   :  { %v2508_v8 = vadd.f32 1.0, %v3687_v2 }
0x2512   :  { %3688 = vrcp.f32 %v2508_v8  ;;  %v2520_v29 = vand.u32 2147483648, %v2508_v8  ;;  %vm2514_vm1 = vweird.f32 %v2508_v8  ;;  %v2518_v47 = vand.u32 2147483647, %v2508_v8 }
0x2514   :  { %v2521_v63 = vor.u32 1.1754944e-38, %v2520_v29  ;;  %vm2519_vm4 = vcmp.eq.f32.partialorder %v2518_v47, 8.507059e+37 }
0x2518   :  { %v3689_v6 = vpop.eup %3688 }
0x2519   :  { %v2510_v36 = vmul.f32 %v3689_v6, %v2508_v8  ;;  %vm2515_vm0 = vweird.f32 %v3689_v6 }
0x251a   :  { %vm2516_vm3 = vmor %vm2514_vm1, %vm2515_vm0 }
0x251b   :  { %v2511_v39 = vsub.f32 1.0, %v2510_v36 }
0x251d   :  { %v2512_v38 = vmul.f32 %v3689_v6, %v2511_v39 }
0x251f   :  { %v2513_v37 = vadd.f32 %v3689_v6, %v2512_v38 }
0x2521   :  { %v2517_v12 = vsel %vm2516_vm3, %v3689_v6, %v2513_v37 }
0x2522   :  { %v2522_v17 = vsel %vm2519_vm4, %v2521_v63, %v2517_v12  ;;  %v2599_v12 = vstv %s2598_s24 }
0x2523   :  { %v2525_v42 = vmul.f32 %v2522_v17, %v4755_v1  ;;  %v2543_v1 = vld [vmem:[%s5157_s16 + $0x8] sm:$0xff]  ;;  %vm2600_vm7 = vcmp.eq.s32.totalorder %v2599_v12, 1 }
0x2524   :  { %2569 = vmatpush.msra.mxu0 %v2543_v1 }
0x2526   :  { %2570 = vmatpush.msra.mxu0 %v2542_v23 }
0x2528   :  { %2805 = vmatpush.msrb.mxu0 %v2545_v41 }
0x252a   :  { %2806 = vmatpush.msrb.mxu0 %v2544_v7 }
0x252c   :  { %2807 = vmatpush.msrb.mxu0 %v2543_v1 }
0x252e   :  { %2808 = vmatpush.msrb.mxu0 %v2542_v23 }
0x2568   :  { %v2528_v50 = vpop.permute.xlu2 %2527 }
0x2569   :  { %v2530_v0 = vmul.f32 %v2528_v50, %v2522_v17 }
0x256b   :  { %2532 = vrot.lane.b32.xlu0 %v2530_v0, %s3749_s4  ;;  %v2595_v0 = vld [vmem:[%s5169_s30 + $0x20] sm:$0xff] }
0x2573   :  { %2605 = vrot.lane.b32.xlu0 %v3506_v59, %s3755_s20 }
0x25dd   :  { %v2533_v30 = vpop.permute.xlu0 %2532 }
0x25de   :  { %v4870_v31 = vadd.f32 %v2533_v30, %v2525_v42 }
0x25e0   :  { %3690 = vtanh.f32 %v4870_v31 }
0x25e5   :  { %v2606_v54 = vpop.permute.xlu0 %2605 }
0x25e6   :  { %v3691_v33 = vpop.eup %3690 }
0x25e7   :  { %2538 = vrot.lane.b32.xlu1 %v3691_v33, %s3748_s0 }
0x2659   :  { %v2539_v11 = vpop.permute.xlu1 %2538 }
0x265a   :  { %v4886_v62 = vmul.f32 %v2539_v11, %v2522_v17 }
0x265c   :  { %v2608_v46 = vmul.f32 %v2606_v54, %v4886_v62  ;;  %2551 = vrot.lane.b32.xlu2 %v4886_v62, %s3749_s4 }
0x265e   :  { %2610 = vrot.lane.b32.xlu1 %v2608_v46, %s3749_s4 }
0x26b6   :  { %v2552_v52 = vpop.permute.xlu2 %2551 }
0x26b7   :  { %3372 = vmatmul.msk.f32.vlgmr.msra.gmra.mxu0 %vm272_vm2, %v2552_v52 }
0x26b8   :  { %3043 = vmatpush.msra.mxu0 %v2545_v41 }
0x26ba   :  { %3044 = vmatpush.msra.mxu0 %v2544_v7 }
0x26bc   :  { %3045 = vmatpush.msra.mxu0 %v2543_v1 }
0x26be   :  { %3046 = vmatpush.msra.mxu0 %v2542_v23 }
0x26d0   :  { %v2611_v45 = vpop.permute.xlu1 %2610 }
0x26d1   :  { %v2613_v55 = vsel %vm272_vm2, %v2611_v45, 0.0 }
0x26d2   :  { %2614 = vadd.xlane.f32.xlu0 %v2613_v55 }
0x2734   :  { %v2572_v27 = vpop.f32.mrf.mxu0 }
0x2735   :  { %v2573_v21 = vadd.f32 %v3507_v48, %v2572_v27 }
0x2737   :  { %3373 = vst [vmem:[%s5159_s18 + $0x20] sm:$0xff] %v2573_v21  ;;  %2577 = vmax.xlane.f32.xlu2 %v2573_v21 }
0x2745   :  { %v2615_v4 = vpop.xlane.xlu0 %2614 }
0x2746   :  { %v2617_v56 = vadd.f32 %v2615_v4, %v4770_v32 }
0x2748   :  { %v2618_v20 = vmax.f32 %v2617_v56, 0.0 }
0x274a   :  { %v2619_v25 = vsel %vm1659_vm9, %v2618_v20, -inf }
0x274b   :  { %2620 = vmax.xlane.f32.xlu2 %v2619_v25 }
0x27aa   :  { %v2578_v10 = vpop.xlane.xlu2 %2577 }
0x27ab   :  { %vm2579_vm5 = vcmp.eq.f32.partialorder %v2573_v21, %v2578_v10 }
0x27ac   :  { %v2580_v16 = vsel %vm2579_vm5, %v3960_v24, 128 }
0x27ad   :  { %v2582_v51 = vshra.s32 %v2580_v16, 16  ;;  %v2581_v8 = vand.u32 65535, %v2580_v16 }
0x27af   :  { %v2584_v5 = vcvt.s32.f32 %v2582_v51  ;;  %v2583_v6 = vcvt.s32.f32 %v2581_v8 }
0x27b1   :  { %2585 = vmin.xlane.f32.xlu1 %v2584_v5 }
0x27be   :  { %v2621_v53 = vpop.xlane.xlu2 %2620 }
0x27bf   :  { %v2622_v58 = vsub.f32 %v2618_v20, %v2621_v53 }
0x27c1   :  { %v2623_v44 = vmul.f32 1.442695, %v2622_v58 }
0x27c3   :  { %3692 = vpow2.f32 %v2623_v44 }
0x27c9   :  { %v3693_v61 = vpop.eup %3692 }
0x27ca   :  { %v2625_v2 = vsel %vm1659_vm9, %v3693_v61, 0.0 }
0x27cb   :  { %2626 = vadd.xlane.f32.xlu0 %v2625_v2 }
0x2824   :  { %v2586_v36 = vpop.xlane.xlu1 %2585 }
0x2825   :  { %vm2587_vm6 = vcmp.eq.f32.partialorder %v2584_v5, %v2586_v36  ;;  %v2592_v47 = vcvt.f32.s32 %v2586_v36 }
0x2826   :  { %v2588_v39 = vsel %vm2587_vm6, %v2583_v6, inf }
0x2827   :  { %2589 = vmin.xlane.f32.xlu2 %v2588_v39  ;;  %v2593_v50 = vshll.u32 %v2592_v47, 16 }
0x283e   :  { %v2627_v38 = vpop.xlane.xlu0 %2626 }
0x283f   :  { %3694 = vrcp.f32 %v2627_v38 }
0x2845   :  { %v3695_v37 = vpop.eup %3694 }
0x2846   :  { %v2629_v29 = vmul.f32 %v3695_v37, %v3693_v61 }
0x2848   :  { %2639 = vperm.xlu0 %3459, %v2629_v29   ;;  %2633 = vperm.xlu2 %3458, %v2629_v29  }
0x2850   :  { %3461 = vset.pattern.permute.xlu2 %v3754_v34  ;;  %3467 = vset.pattern.permute.xlu0 %v3746_v3 }
0x2851   :  { %2653 = vperm.xlu2 %3461, %v2629_v29  }
0x2859   :  { %3463 = vset.pattern.permute.xlu2 %v3757_v43 }
0x285a   :  { %2667 = vperm.xlu2 %3463, %v2629_v29  }
0x2862   :  { %3465 = vset.pattern.permute.xlu2 %v3756_v35 }
0x2863   :  { %2681 = vperm.xlu2 %3465, %v2629_v29  }
0x286b   :  { %3466 = vset.pattern.permute.xlu2 %v3746_v3 }
0x289a   :  { %v2590_v63 = vpop.xlane.xlu2 %2589 }
0x289b   :  { %v2591_v17 = vcvt.f32.s32 %v2590_v63 }
0x289d   :  { %v2594_v59 = vadd.s32 %v2593_v50, %v2591_v17  ;;  %v3509_v50 = vld [vmem:[%s5154_s12] ss:$0 sm:$0xff] }
0x289f   :  { %v2601_v42 = vsel %vm2600_vm7, %v2595_v0, %v2594_v59 }
0x28a0   :  { %2687 = vperm.xlu1 %3457, %v2601_v42  }
0x28a2   :  { %v2634_v30 = vpop.permute.xlu2 %2633 }
0x28a3   :  { %v2636_v54 = vmul.f32 %v2634_v30, %v4720_v26 }
0x28a8   :  { %3460 = vset.pattern.permute.xlu1 %v3751_v15 }
0x28a9   :  { %2646 = vperm.xlu1 %3460, %v2629_v29  }
0x28ab   :  { %v2654_v7 = vpop.permute.xlu2 %2653 }
0x28ac   :  { %v2656_v48 = vmul.f32 %v2654_v7, %v4727_v22 }
0x28b1   :  { %3462 = vset.pattern.permute.xlu1 %v3753_v14 }
0x28b2   :  { %2660 = vperm.xlu1 %3462, %v2629_v29  }
0x28b4   :  { %v2668_v52 = vpop.permute.xlu2 %2667 }
0x28b5   :  { %v2670_v56 = vmul.f32 %v2668_v52, %v4733_v60 }
0x28ba   :  { %3464 = vset.pattern.permute.xlu1 %v3752_v28  ;;  %v2640_v1 = vpop.permute.xlu0 %2639 }
0x28bb   :  { %2674 = vperm.xlu1 %3464, %v2629_v29   ;;  %v2642_v11 = vmul.f32 %v2640_v1, %v4718_v18 }
0x28bd   :  { %v2682_v20 = vpop.permute.xlu2 %2681 }
0x28be   :  { %v2684_v26 = vmul.f32 %v2682_v20, %v4739_v40 }
0x28c3   :  { %2698 = vrot.lane.b32.xlu1 %v4886_v62, %s3759_s8  ;;  %v2643_v62 = vadd.f32 %v2642_v11, %v2636_v54  ;;  %v3510_v11 = vld [vmem:[%s5158_s17] ss:$0 sm:$0xff] }
0x28c4   :  { %3468 = vset.pattern.permute.xlu1 %v3750_v9 }
0x2912   :  { %v2688_v33 = vpop.permute.xlu1 %2687 }
0x2913   :  { %vm2689_vm8 = vcmp.eq.s32.totalorder %v3960_v24, %v2688_v33 }
0x2914   :  { %v3375_v41 = vsel %vm2689_vm8, 1.0, %v4797_v57 }
0x2915   :  { %2694 = vrot.lane.b32.xlu0 %v3375_v41, %s3748_s0 }
0x291b   :  { %v2647_v23 = vpop.permute.xlu1 %2646 }
0x291c   :  { %v2649_v46 = vmul.f32 %v2647_v23, %v4724_v19 }
0x291e   :  { %v2650_v45 = vadd.f32 %v2649_v46, %v2643_v62 }
0x2920   :  { %v2657_v21 = vadd.f32 %v2656_v48, %v2650_v45 }
0x2924   :  { %v2661_v55 = vpop.permute.xlu1 %2660 }
0x2925   :  { %v2663_v27 = vmul.f32 %v2661_v55, %v4729_v49  ;;  %v3508_v49 = vld [vmem:[%s5156_s15] ss:$0 sm:$0xff] }
0x2927   :  { %v2664_v4 = vadd.f32 %v2663_v27, %v2657_v21 }
0x2929   :  { %v2671_v10 = vadd.f32 %v2670_v56, %v2664_v4 }
0x292d   :  { %v2675_v25 = vpop.permute.xlu1 %2674 }
0x292e   :  { %v2677_v18 = vmul.f32 %v2675_v25, %v4736_v13 }
0x2930   :  { %v2678_v19 = vadd.f32 %v2677_v18, %v2671_v10 }
0x2932   :  { %v2685_v16 = vadd.f32 %v2684_v26, %v2678_v19 }
0x2934   :  { %2692 = vst.msk [vmem:[#allocation5] sm:$0xff] %vm1530_vm15, %v2685_v16 }
0x2935   :  { %v2699_v5 = vpop.permute.xlu1 %2698 }
0x2987   :  { %v2695_v51 = vpop.permute.xlu0 %2694 }
0x2988   :  { %2697 = vst.msk [vmem:[#allocation5] sm:$0xff] %vm1738_vm11, %v2695_v51 }
0x2989   :  { %2701 = vst.msk [vmem:[#allocation5] sm:$0xff] %vm1744_vm12, %v2699_v5 }
0x2990   :  { %v2702_v22 = vld [vmem:[#allocation5] sm:$0xff] }
0x2991   :  { %2739 = vmatmul.f32.vlgmr.msra.gmra.mxu2 %v2702_v22 }
0x2a14   :  { %v2740_v60 = vpop.f32.mrf.mxu2 }
0x2a15   :  { %v2741_v13 = vadd.f32 %v3508_v49, %v2740_v60  ;;  %v2837_v60 = vstv %s2836_s22 }
0x2a16   :  { %vm2838_vm4 = vcmp.eq.s32.totalorder %v2837_v60, 1 }
0x2a17   :  { %3696 = vtanh.f32 %v2741_v13  ;;  %v3376_v53 = vmul.f32 -1.442695, %v2741_v13 }
0x2a19   :  { %3698 = vpow2.f32 %v3376_v53 }
0x2a1d   :  { %v3697_v40 = vpop.eup %3696 }
0x2a1e   :  { %2765 = vrot.lane.b32.xlu2 %v3697_v40, %s3748_s0 }
0x2a1f   :  { %v3699_v58 = vpop.eup %3698 }
0x2a20   :  { %v2746_v44 = vadd.f32 1.0, %v3699_v58  ;;  %v2833_v58 = vld [vmem:[%s5169_s30 + $0x28] sm:$0xff] }
0x2a22   :  { %3700 = vrcp.f32 %v2746_v44  ;;  %v2758_v39 = vand.u32 2147483648, %v2746_v44  ;;  %vm2752_vm13 = vweird.f32 %v2746_v44  ;;  %v2756_v38 = vand.u32 2147483647, %v2746_v44 }
0x2a24   :  { %v2759_v29 = vor.u32 1.1754944e-38, %v2758_v39  ;;  %vm2757_vm0 = vcmp.eq.f32.partialorder %v2756_v38, 8.507059e+37  ;;  %v4981_v39 = vld [vmem:[#allocation3 + $0x8] sm:$0xff]  ;;  %v4983_v38 = vld [vmem:[#allocation3] sm:$0xff] }
0x2a28   :  { %v3701_v61 = vpop.eup %3700 }
0x2a29   :  { %v2748_v2 = vmul.f32 %v3701_v61, %v2746_v44  ;;  %vm2753_vm10 = vweird.f32 %v3701_v61 }
0x2a2a   :  { %vm2754_vm14 = vmor %vm2752_vm13, %vm2753_vm10 }
0x2a2b   :  { %v2749_v8 = vsub.f32 1.0, %v2748_v2 }
0x2a2d   :  { %v2750_v6 = vmul.f32 %v3701_v61, %v2749_v8 }
0x2a2f   :  { %v2751_v36 = vadd.f32 %v3701_v61, %v2750_v6 }
0x2a31   :  { %v2755_v37 = vsel %vm2754_vm14, %v3701_v61, %v2751_v36 }
0x2a32   :  { %v2760_v12 = vsel %vm2757_vm0, %v2759_v29, %v2755_v37 }
0x2a33   :  { %v2763_v17 = vmul.f32 %v2760_v12, %v4870_v31 }
0x2a78   :  { %v2766_v47 = vpop.permute.xlu2 %2765 }
0x2a79   :  { %v2768_v63 = vmul.f32 %v2766_v47, %v2760_v12 }
0x2a7b   :  { %2770 = vrot.lane.b32.xlu0 %v2768_v63, %s3749_s4 }
0x2a83   :  { %2843 = vrot.lane.b32.xlu0 %v3509_v50, %s3755_s20 }
0x2aed   :  { %v2771_v0 = vpop.permute.xlu0 %2770 }
0x2aee   :  { %v4942_v59 = vadd.f32 %v2771_v0, %v2763_v17  ;;  %v4990_v0 = vld [vmem:[#allocation3 + $0x18] sm:$0xff] }
0x2af0   :  { %3702 = vtanh.f32 %v4942_v59 }
0x2af5   :  { %v2844_v33 = vpop.permute.xlu0 %2843 }
0x2af6   :  { %v3703_v42 = vpop.eup %3702 }
0x2af7   :  { %2776 = vrot.lane.b32.xlu1 %v3703_v42, %s3748_s0  ;;  %v4992_v42 = vld [vmem:[#allocation3 + $0x20] sm:$0xff] }
0x2b69   :  { %v2777_v30 = vpop.permute.xlu1 %2776 }
0x2b6a   :  { %v4946_v41 = vmul.f32 %v2777_v30, %v2760_v12  ;;  %v4987_v12 = vld [vmem:[#allocation3 + $0x10] sm:$0xff] }
0x2b6c   :  { %v2846_v7 = vmul.f32 %v2844_v33, %v4946_v41  ;;  %2789 = vrot.lane.b32.xlu2 %v4946_v41, %s3749_s4 }
0x2b6e   :  { %2848 = vrot.lane.b32.xlu1 %v2846_v7, %s3749_s4 }
0x2bc6   :  { %v2790_v31 = vpop.permute.xlu2 %2789 }
0x2bc7   :  { %3377 = vmatmul.msk.f32.vlgmr.msrb.gmra.mxu0 %vm272_vm2, %v2790_v31 }
0x2be0   :  { %v2849_v1 = vpop.permute.xlu1 %2848 }
0x2be1   :  { %v2851_v23 = vsel %vm272_vm2, %v2849_v1, 0.0  ;;  %v4996_v1 = vld [vmem:[#allocation3 + $0x28] sm:$0xff] }
0x2be2   :  { %2852 = vadd.xlane.f32.xlu0 %v2851_v23 }
0x2c44   :  { %v2810_v54 = vpop.f32.mrf.mxu0 }
0x2c45   :  { %v2811_v46 = vadd.f32 %v3510_v11, %v2810_v54  ;;  %v4999_v54 = vld [vmem:[#allocation3 + $0x30] sm:$0xff] }
0x2c47   :  { %3378 = vst [vmem:[%s5159_s18 + $0x28] sm:$0xff] %v2811_v46  ;;  %2815 = vmax.xlane.f32.xlu2 %v2811_v46 }
0x2c55   :  { %v2853_v62 = vpop.xlane.xlu0 %2852 }
0x2c56   :  { %v2855_v52 = vadd.f32 %v2853_v62, %v4770_v32 }
0x2c58   :  { %v2856_v45 = vmax.f32 %v2855_v52, 0.0 }
0x2c5a   :  { %v2857_v55 = vsel %vm1659_vm9, %v2856_v45, -inf }
0x2c5b   :  { %2858 = vmax.xlane.f32.xlu2 %v2857_v55 }
0x2cba   :  { %v2816_v48 = vpop.xlane.xlu2 %2815 }
0x2cbb   :  { %vm2817_vm1 = vcmp.eq.f32.partialorder %v2811_v46, %v2816_v48 }
0x2cbc   :  { %v2818_v27 = vsel %vm2817_vm1, %v3960_v24, 128 }
0x2cbd   :  { %v2820_v21 = vshra.s32 %v2818_v27, 16  ;;  %v2819_v32 = vand.u32 65535, %v2818_v27 }
0x2cbf   :  { %v2822_v4 = vcvt.s32.f32 %v2820_v21  ;;  %v2821_v26 = vcvt.s32.f32 %v2819_v32 }
0x2cc1   :  { %2823 = vmin.xlane.f32.xlu1 %v2822_v4 }
0x2cce   :  { %v2859_v56 = vpop.xlane.xlu2 %2858 }
0x2ccf   :  { %v2860_v20 = vsub.f32 %v2856_v45, %v2859_v56  ;;  %v5002_v45 = vld [vmem:[#allocation3 + $0x38] sm:$0xff] }
0x2cd1   :  { %v2861_v25 = vmul.f32 1.442695, %v2860_v20  ;;  %v3511_v20 = vld [vmem:[%s5156_s15] ss:$0 sm:$0xff] }
0x2cd3   :  { %3704 = vpow2.f32 %v2861_v25 }
0x2cd9   :  { %v3705_v10 = vpop.eup %3704 }
0x2cda   :  { %v2863_v18 = vsel %vm1659_vm9, %v3705_v10, 0.0 }
0x2cdb   :  { %2864 = vadd.xlane.f32.xlu1 %v2863_v18 }
0x2d34   :  { %v2824_v19 = vpop.xlane.xlu1 %2823 }
0x2d35   :  { %vm2825_vm3 = vcmp.eq.f32.partialorder %v2822_v4, %v2824_v19  ;;  %v2830_v49 = vcvt.f32.s32 %v2824_v19 }
0x2d36   :  { %v2826_v16 = vsel %vm2825_vm3, %v2821_v26, inf }
0x2d37   :  { %2827 = vmin.xlane.f32.xlu0 %v2826_v16  ;;  %v2831_v40 = vshll.u32 %v2830_v49, 16 }
0x2d4e   :  { %v2865_v51 = vpop.xlane.xlu1 %2864 }
0x2d4f   :  { %3706 = vrcp.f32 %v2865_v51 }
0x2d55   :  { %v3707_v5 = vpop.eup %3706 }
0x2d56   :  { %v2867_v22 = vmul.f32 %v3707_v5, %v3705_v10 }
0x2d58   :  { %2877 = vperm.xlu1 %3468, %v2867_v22   ;;  %2871 = vperm.xlu0 %3467, %v2867_v22  }
0x2d60   :  { %3470 = vset.pattern.permute.xlu1 %v3754_v34  ;;  %3474 = vset.pattern.permute.xlu0 %v3756_v35 }
0x2d61   :  { %2891 = vperm.xlu1 %3470, %v2867_v22   ;;  %2919 = vperm.xlu0 %3474, %v2867_v22  }
0x2d69   :  { %3472 = vset.pattern.permute.xlu1 %v3757_v43  ;;  %3477 = vset.pattern.permute.xlu0 %v3750_v9 }
0x2d6a   :  { %2905 = vperm.xlu1 %3472, %v2867_v22  }
0x2d72   :  { %3475 = vset.pattern.permute.xlu1 %v3746_v3 }
0x2daa   :  { %v2828_v13 = vpop.xlane.xlu0 %2827 }
0x2dab   :  { %v2829_v53 = vcvt.f32.s32 %v2828_v13 }
0x2dad   :  { %v2832_v44 = vadd.s32 %v2831_v40, %v2829_v53 }
0x2daf   :  { %v2839_v61 = vsel %vm2838_vm4, %v2833_v58, %v2832_v44 }
0x2db0   :  { %2925 = vperm.xlu2 %3466, %v2839_v61  }
0x2db8   :  { %3469 = vset.pattern.permute.xlu2 %v3751_v15 }
0x2db9   :  { %2884 = vperm.xlu2 %3469, %v2867_v22  }
0x2dc1   :  { %3471 = vset.pattern.permute.xlu2 %v3753_v14 }
0x2dc2   :  { %2898 = vperm.xlu2 %3471, %v2867_v22  }
0x2dca   :  { %3473 = vset.pattern.permute.xlu2 %v3752_v28  ;;  %v2878_v8 = vpop.permute.xlu1 %2877  ;;  %v2872_v6 = vpop.permute.xlu0 %2871 }
0x2dcb   :  { %2912 = vperm.xlu2 %3473, %v2867_v22   ;;  %v2880_v37 = vmul.f32 %v2878_v8, %v4981_v39  ;;  %v2874_v29 = vmul.f32 %v2872_v6, %v4983_v38 }
0x2dcd   :  { %v2881_v50 = vadd.f32 %v2880_v37, %v2874_v29 }
0x2dd3   :  { %2936 = vrot.lane.b32.xlu2 %v4946_v41, %s3759_s8  ;;  %v2892_v47 = vpop.permute.xlu1 %2891  ;;  %v2920_v11 = vpop.permute.xlu0 %2919 }
0x2dd4   :  { %3476 = vset.pattern.permute.xlu2 %v3746_v3  ;;  %v2894_v30 = vmul.f32 %v2892_v47, %v4990_v0  ;;  %v2922_v55 = vmul.f32 %v2920_v11, %v5002_v45 }
0x2ddc   :  { %v2906_v7 = vpop.permute.xlu1 %2905 }
0x2ddd   :  { %v2908_v23 = vmul.f32 %v2906_v7, %v4996_v1 }
0x2e0a   :  { %v2926_v9 = vpop.permute.xlu2 %2925 }
0x2e0b   :  { %vm2927_vm5 = vcmp.eq.s32.totalorder %v3960_v24, %v2926_v9  ;;  %v3512_v9 = vld [vmem:[%s5154_s12] ss:$0 sm:$0xff] }
0x2e0c   :  { %v3380_v2 = vsel %vm2927_vm5, 1.0, %v4797_v57 }
0x2e0d   :  { %2932 = vrot.lane.b32.xlu1 %v3380_v2, %s3748_s0 }
0x2e13   :  { %v2885_v36 = vpop.permute.xlu2 %2884 }
0x2e14   :  { %v2887_v63 = vmul.f32 %v2885_v36, %v4987_v12 }
0x2e16   :  { %v2888_v57 = vadd.f32 %v2887_v63, %v2881_v50 }
0x2e18   :  { %v2895_v41 = vadd.f32 %v2894_v30, %v2888_v57 }
0x2e1c   :  { %v2899_v17 = vpop.permute.xlu2 %2898 }
0x2e1d   :  { %v2901_v33 = vmul.f32 %v2899_v17, %v4992_v42  ;;  %v3513_v17 = vld [vmem:[%s5158_s17] ss:$0 sm:$0xff] }
0x2e1f   :  { %v2902_v31 = vadd.f32 %v2901_v33, %v2895_v41  ;;  %v3092_v41 = vld [vmem:[#allocation4] sm:$0xff] }
0x2e21   :  { %v2909_v62 = vadd.f32 %v2908_v23, %v2902_v31 }
0x2e25   :  { %v2913_v46 = vpop.permute.xlu2 %2912 }
0x2e26   :  { %v2915_v52 = vmul.f32 %v2913_v46, %v4999_v54 }
0x2e28   :  { %v2916_v48 = vadd.f32 %v2915_v52, %v2909_v62 }
0x2e2a   :  { %v2923_v27 = vadd.f32 %v2922_v55, %v2916_v48 }
0x2e2c   :  { %2930 = vst.msk [vmem:[#allocation5] sm:$0xff] %vm1530_vm15, %v2923_v27 }
0x2e2d   :  { %v2937_v4 = vpop.permute.xlu2 %2936 }
0x2e7f   :  { %v2933_v21 = vpop.permute.xlu1 %2932 }
0x2e80   :  { %2935 = vst.msk [vmem:[#allocation5] sm:$0xff] %vm1738_vm11, %v2933_v21 }
0x2e81   :  { %2939 = vst.msk [vmem:[#allocation5] sm:$0xff] %vm1744_vm12, %v2937_v4 }
0x2e88   :  { %v2940_v56 = vld [vmem:[#allocation5] sm:$0xff] }
0x2e89   :  { %2977 = vmatmul.f32.vlgmr.msra.gmra.mxu1 %v2940_v56 }
0x2f06   :  { %v2978_v25 = vpop.f32.mrf.mxu1 }
0x2f07   :  { %v2979_v10 = vadd.f32 %v3511_v20, %v2978_v25 }
0x2f09   :  { %3708 = vtanh.f32 %v2979_v10  ;;  %v3381_v32 = vmul.f32 -1.442695, %v2979_v10 }
0x2f0b   :  { %3710 = vpow2.f32 %v3381_v32 }
0x2f0f   :  { %v3709_v18 = vpop.eup %3708 }
0x2f10   :  { %3003 = vrot.lane.b32.xlu1 %v3709_v18, %s3748_s0 }
0x2f11   :  { %v3711_v26 = vpop.eup %3710 }
0x2f12   :  { %v2984_v19 = vadd.f32 1.0, %v3711_v26 }
0x2f14   :  { %3712 = vrcp.f32 %v2984_v19  ;;  %v2996_v60 = vand.u32 2147483648, %v2984_v19  ;;  %vm2990_vm7 = vweird.f32 %v2984_v19  ;;  %v2994_v13 = vand.u32 2147483647, %v2984_v19 }
0x2f16   :  { %v2997_v53 = vor.u32 1.1754944e-38, %v2996_v60  ;;  %vm2995_vm10 = vcmp.eq.f32.partialorder %v2994_v13, 8.507059e+37  ;;  %v3730_v13 = vld [vmem:[%s5159_s18] sm:$0xff] }
0x2f1a   :  { %v3713_v16 = vpop.eup %3712 }
0x2f1b   :  { %v2986_v51 = vmul.f32 %v3713_v16, %v2984_v19  ;;  %vm2991_vm6 = vweird.f32 %v3713_v16 }
0x2f1c   :  { %vm2992_vm8 = vmor %vm2990_vm7, %vm2991_vm6 }
0x2f1d   :  { %v2987_v5 = vsub.f32 1.0, %v2986_v51  ;;  %v3075_v51 = vstv %s3074_s3 }
0x2f1f   :  { %v2988_v22 = vmul.f32 %v3713_v16, %v2987_v5 }
0x2f21   :  { %v2989_v49 = vadd.f32 %v3713_v16, %v2988_v22 }
0x2f23   :  { %v2993_v40 = vsel %vm2992_vm8, %v3713_v16, %v2989_v49 }
0x2f24   :  { %v2998_v44 = vsel %vm2995_vm10, %v2997_v53, %v2993_v40  ;;  %v3191_v53 = vld [vmem:[%s5155_s14 + $0x60] sm:$0xff] }
0x2f25   :  { %v3001_v2 = vmul.f32 %v2998_v44, %v4942_v59 }
0x2f82   :  { %v3004_v58 = vpop.permute.xlu1 %3003 }
0x2f83   :  { %v3006_v61 = vmul.f32 %v3004_v58, %v2998_v44 }
0x2f85   :  { %3008 = vrot.lane.b32.xlu2 %v3006_v61, %s3749_s4  ;;  %v3190_v61 = vld [vmem:[%s5155_s14 + $0x58] sm:$0xff] }
0x2f8d   :  { %3081 = vrot.lane.b32.xlu2 %v3512_v9, %s3755_s20  ;;  %v3189_v9 = vld [vmem:[%s5155_s14 + $0x50] sm:$0xff] }
0x2fdf   :  { %v3009_v8 = vpop.permute.xlu2 %3008 }
0x2fe0   :  { %v5018_v6 = vadd.f32 %v3009_v8, %v3001_v2  ;;  %v3188_v8 = vld [vmem:[%s5155_s14 + $0x48] sm:$0xff] }
0x2fe2   :  { %3714 = vtanh.f32 %v5018_v6 }
0x2fe7   :  { %v3082_v29 = vpop.permute.xlu2 %3081 }
0x2fe8   :  { %v3715_v36 = vpop.eup %3714 }
0x2fe9   :  { %3014 = vrot.lane.b32.xlu0 %v3715_v36, %s3748_s0 }
0x305b   :  { %v3015_v37 = vpop.permute.xlu0 %3014 }
0x305c   :  { %v5022_v47 = vmul.f32 %v3015_v37, %v2998_v44 }
0x305e   :  { %v3084_v63 = vmul.f32 %v3082_v29, %v5022_v47  ;;  %3027 = vrot.lane.b32.xlu1 %v5022_v47, %s3749_s4  ;;  %v3187_v29 = vld [vmem:[%s5155_s14 + $0x40] sm:$0xff] }
0x3060   :  { %3086 = vrot.lane.b32.xlu0 %v3084_v63, %s3749_s4 }
0x30d0   :  { %v3028_v59 = vpop.permute.xlu1 %3027 }
0x30d1   :  { %3382 = vmatmul.msk.f32.vlgmr.msra.gmra.mxu0 %vm272_vm2, %v3028_v59 }
0x30d2   :  { %v3087_v50 = vpop.permute.xlu0 %3086 }
0x30d3   :  { %v3089_v57 = vsel %vm272_vm2, %v3087_v50, 0.0 }
0x30d4   :  { %3090 = vadd.xlane.f32.xlu2 %v3089_v57 }
0x3147   :  { %v3091_v30 = vpop.xlane.xlu2 %3090 }
0x3148   :  { %v3093_v31 = vadd.f32 %v3092_v41, %v3091_v30 }
0x314a   :  { %v3094_v23 = vmax.f32 %v3093_v31, 0.0 }
0x314c   :  { %v3095_v11 = vsel %vm1659_vm9, %v3094_v23, -inf }
0x314e   :  { %v3048_v33 = vpop.f32.mrf.mxu0 }
0x314f   :  { %v3049_v7 = vadd.f32 %v3513_v17, %v3048_v33  ;;  %v3184_v17 = vld [vmem:[%s5155_s14 + $0x28] sm:$0xff] }
0x3151   :  { %3383 = vst [vmem:[%s5159_s18 + $0x30] sm:$0xff] %v3049_v7  ;;  %3053 = vmax.xlane.f32.xlu1 %v3049_v7 }
0x3159   :  { %3096 = vmax.xlane.f32.xlu1 %v3095_v11 }
0x31c4   :  { %v3054_v46 = vpop.xlane.xlu1 %3053 }
0x31c5   :  { %vm3055_vm13 = vcmp.eq.f32.partialorder %v3049_v7, %v3054_v46 }
0x31c6   :  { %v3056_v62 = vsel %vm3055_vm13, %v3960_v24, 128 }
0x31c7   :  { %v3058_v52 = vshra.s32 %v3056_v62, 16  ;;  %v3057_v20 = vand.u32 65535, %v3056_v62  ;;  %v3183_v62 = vld [vmem:[%s5155_s14 + $0x20] sm:$0xff] }
0x31c9   :  { %v3060_v55 = vcvt.s32.f32 %v3058_v52  ;;  %v3059_v25 = vcvt.s32.f32 %v3057_v20  ;;  %v3181_v52 = vld [vmem:[%s5155_s14 + $0x10] sm:$0xff] }
0x31cb   :  { %3061 = vmin.xlane.f32.xlu0 %v3060_v55 }
0x31cc   :  { %v3097_v48 = vpop.xlane.xlu1 %3096 }
0x31cd   :  { %v3098_v27 = vsub.f32 %v3094_v23, %v3097_v48 }
0x31cf   :  { %v3099_v21 = vmul.f32 1.442695, %v3098_v27 }
0x31d1   :  { %3716 = vpow2.f32 %v3099_v21  ;;  %v3514_v21 = vld [vmem:[%s5156_s15] ss:$0 sm:$0xff] }
0x31d7   :  { %v3717_v4 = vpop.eup %3716 }
0x31d8   :  { %v3101_v56 = vsel %vm1659_vm9, %v3717_v4, 0.0  ;;  %vm3076_vm9 = vcmp.eq.s32.totalorder %v3075_v51, 1 }
0x31d9   :  { %3102 = vadd.xlane.f32.xlu0 %v3101_v56 }
0x323e   :  { %v3062_v10 = vpop.xlane.xlu0 %3061 }
0x323f   :  { %vm3063_vm14 = vcmp.eq.f32.partialorder %v3060_v55, %v3062_v10  ;;  %v3068_v16 = vcvt.f32.s32 %v3062_v10 }
0x3240   :  { %v3064_v18 = vsel %vm3063_vm14, %v3059_v25, inf }
0x3241   :  { %3065 = vmin.xlane.f32.xlu2 %v3064_v18  ;;  %v3069_v22 = vshll.u32 %v3068_v16, 16 }
0x324c   :  { %v3103_v32 = vpop.xlane.xlu0 %3102 }
0x324d   :  { %3718 = vrcp.f32 %v3103_v32 }
0x3253   :  { %v3719_v26 = vpop.eup %3718 }
0x3254   :  { %v3105_v19 = vmul.f32 %v3719_v26, %v3717_v4 }
0x3256   :  { %3115 = vperm.xlu0 %3477, %v3105_v19  }
0x3259   :  { %3109 = vperm.xlu2 %3476, %v3105_v19  }
0x325e   :  { %3484 = vset.pattern.permute.xlu0 %v3746_v3  ;;  %v3071_v3 = vld [vmem:[%s5169_s30 + $0x30] sm:$0xff] }
0x3261   :  { %3479 = vset.pattern.permute.xlu2 %v3754_v34 }
0x3262   :  { %3129 = vperm.xlu2 %3479, %v3105_v19  }
0x326a   :  { %3481 = vset.pattern.permute.xlu2 %v3757_v43 }
0x326b   :  { %3143 = vperm.xlu2 %3481, %v3105_v19  }
0x3273   :  { %3483 = vset.pattern.permute.xlu2 %v3756_v35 }
0x3274   :  { %3157 = vperm.xlu2 %3483, %v3105_v19  }
0x32b4   :  { %v3066_v5 = vpop.xlane.xlu2 %3065 }
0x32b5   :  { %v3067_v49 = vcvt.f32.s32 %v3066_v5 }
0x32b7   :  { %v3070_v34 = vadd.s32 %v3069_v22, %v3067_v49 }
0x32b9   :  { %v3077_v60 = vsel %vm3076_vm9, %v3071_v3, %v3070_v34 }
0x32ba   :  { %3163 = vperm.xlu1 %3475, %v3077_v60  }
0x32bc   :  { %v3110_v35 = vpop.permute.xlu2 %3109 }
0x32bd   :  { %v3112_v36 = vmul.f32 %v3110_v35, %v4983_v38  ;;  %v3185_v38 = vld [vmem:[%s5155_s14 + $0x30] sm:$0xff] }
0x32c2   :  { %3478 = vset.pattern.permute.xlu1 %v3751_v15  ;;  %v3194_v15 = vld [vmem:[%s5155_s14 + $0x78] sm:$0xff] }
0x32c3   :  { %3122 = vperm.xlu1 %3478, %v3105_v19   ;;  %3199 = vmatpush.msrb.mxu3 %v3194_v15 }
0x32c8   :  { %v3116_v58 = vpop.permute.xlu0 %3115 }
0x32c9   :  { %v3118_v2 = vmul.f32 %v3116_v58, %v4981_v39  ;;  %v3186_v39 = vld [vmem:[%s5155_s14 + $0x38] sm:$0xff] }
0x32cb   :  { %3480 = vset.pattern.permute.xlu1 %v3753_v14  ;;  %v3130_v14 = vpop.permute.xlu2 %3129 }
0x32cc   :  { %3136 = vperm.xlu1 %3480, %v3105_v19  }
0x32d3   :  { %v3144_v63 = vpop.permute.xlu2 %3143 }
0x32d4   :  { %3482 = vset.pattern.permute.xlu1 %v3752_v28  ;;  %v3193_v28 = vld [vmem:[%s5155_s14 + $0x70] sm:$0xff]  ;;  %v3146_v41 = vmul.f32 %v3144_v63, %v4996_v1  ;;  %v3182_v1 = vld [vmem:[%s5155_s14 + $0x18] sm:$0xff] }
0x32d5   :  { %3150 = vperm.xlu1 %3482, %v3105_v19   ;;  %3200 = vmatpush.msrb.mxu3 %v3193_v28  ;;  %v3259_v28 = vld [vmem:[%s5157_s16 + $0x18] sm:$0xff] }
0x32d6   :  { %3281 = vmatpush.msrb.mxu0 %v3259_v28 }
0x32db   :  { %v3158_v7 = vpop.permute.xlu2 %3157 }
0x32dd   :  { %3174 = vrot.lane.b32.xlu1 %v5022_v47, %s3759_s8  ;;  %v3119_v47 = vadd.f32 %v3118_v2, %v3112_v36 }
0x332c   :  { %v3164_v43 = vpop.permute.xlu1 %3163 }
0x332d   :  { %vm3165_vm0 = vcmp.eq.s32.totalorder %v3960_v24, %v3164_v43  ;;  %v3192_v24 = vld [vmem:[%s5155_s14 + $0x68] sm:$0xff] }
0x332e   :  { %v3385_v40 = vsel %vm3165_vm0, 1.0, %v3730_v13  ;;  %3201 = vmatpush.msrb.mxu3 %v3192_v24  ;;  %v3258_v24 = vld [vmem:[%s5157_s16 + $0x10] sm:$0xff] }
0x332f   :  { %3170 = vrot.lane.b32.xlu0 %v3385_v40, %s3748_s0  ;;  %3282 = vmatpush.msrb.mxu0 %v3258_v24 }
0x3330   :  { %3202 = vmatpush.msrb.mxu3 %v3191_v53 }
0x3332   :  { %3203 = vmatpush.msrb.mxu3 %v3190_v61  ;;  %v3515_v61 = vld [vmem:[%s5158_s17] ss:$0 sm:$0xff] }
0x3334   :  { %3204 = vmatpush.msrb.mxu3 %v3189_v9 }
0x3335   :  { %v3123_v44 = vpop.permute.xlu1 %3122 }
0x3336   :  { %v3125_v37 = vmul.f32 %v3123_v44, %v4987_v12  ;;  %3205 = vmatpush.msrb.mxu3 %v3188_v8  ;;  %v3132_v12 = vmul.f32 %v3130_v14, %v4990_v0  ;;  %v3160_v0 = vmul.f32 %v3158_v7, %v5002_v45  ;;  %v3179_v45 = vld [vmem:[%s5155_s14] sm:$0xff]  ;;  %v3257_v14 = vld [vmem:[%s5157_s16 + $0x8] sm:$0xff] }
0x3337   :  { %3283 = vmatpush.msrb.mxu0 %v3257_v14 }
0x3338   :  { %v3126_v59 = vadd.f32 %v3125_v37, %v3119_v47  ;;  %3206 = vmatpush.msrb.mxu3 %v3187_v29 }
0x333a   :  { %3207 = vmatpush.msrb.mxu3 %v3186_v39  ;;  %v3133_v30 = vadd.f32 %v3132_v12, %v3126_v59 }
0x333c   :  { %3208 = vmatpush.msrb.mxu3 %v3185_v38 }
0x333e   :  { %v3137_v50 = vpop.permute.xlu1 %3136  ;;  %3209 = vmatpush.msrb.mxu3 %v3184_v17 }
0x333f   :  { %v3139_v57 = vmul.f32 %v3137_v50, %v4992_v42 }
0x3340   :  { %3210 = vmatpush.msrb.mxu3 %v3183_v62 }
0x3341   :  { %v3140_v33 = vadd.f32 %v3139_v57, %v3133_v30 }
0x3342   :  { %3211 = vmatpush.msrb.mxu3 %v3182_v1 }
0x3343   :  { %v3147_v23 = vadd.f32 %v3146_v41, %v3140_v33 }
0x3344   :  { %3212 = vmatpush.msrb.mxu3 %v3181_v52 }
0x3347   :  { %v3151_v31 = vpop.permute.xlu1 %3150 }
0x3348   :  { %v3153_v11 = vmul.f32 %v3151_v31, %v4999_v54  ;;  %v3180_v54 = vld [vmem:[%s5155_s14 + $0x8] sm:$0xff] }
0x3349   :  { %3213 = vmatpush.msrb.mxu3 %v3180_v54 }
0x334a   :  { %v3154_v46 = vadd.f32 %v3153_v11, %v3147_v23 }
0x334b   :  { %3214 = vmatpush.msrb.mxu3 %v3179_v45 }
0x334c   :  { %v3161_v42 = vadd.f32 %v3160_v0, %v3154_v46 }
0x334e   :  { %3168 = vst.msk [vmem:[#allocation5] sm:$0xff] %vm1530_vm15, %v3161_v42 }
0x334f   :  { %v3175_v48 = vpop.permute.xlu1 %3174 }
0x33a1   :  { %v3171_v55 = vpop.permute.xlu0 %3170 }
0x33a2   :  { %3173 = vst.msk [vmem:[#allocation5] sm:$0xff] %vm1738_vm11, %v3171_v55 }
0x33a3   :  { %3177 = vst.msk [vmem:[#allocation5] sm:$0xff] %vm1744_vm12, %v3175_v48 }
0x33aa   :  { %v3178_v27 = vld [vmem:[#allocation5] sm:$0xff] }
0x33ab   :  { %3215 = vmatmul.f32.vlgmr.msrb.gmra.mxu3 %v3178_v27 }
0x342e   :  { %v3216_v4 = vpop.f32.mrf.mxu3 }
0x342f   :  { %v3217_v56 = vadd.f32 %v3514_v21, %v3216_v4 }
0x3431   :  { %3720 = vtanh.f32 %v3217_v56  ;;  %v3386_v25 = vmul.f32 -1.442695, %v3217_v56 }
0x3433   :  { %3722 = vpow2.f32 %v3386_v25 }
0x3437   :  { %v3721_v20 = vpop.eup %3720 }
0x3438   :  { %3241 = vrot.lane.b32.xlu2 %v3721_v20, %s3748_s0 }
0x3439   :  { %v3723_v10 = vpop.eup %3722 }
0x343a   :  { %v3222_v18 = vadd.f32 1.0, %v3723_v10 }
0x343c   :  { %3724 = vrcp.f32 %v3222_v18  ;;  %v3234_v5 = vand.u32 2147483648, %v3222_v18  ;;  %vm3228_vm11 = vweird.f32 %v3222_v18  ;;  %v3232_v22 = vand.u32 2147483647, %v3222_v18 }
0x343e   :  { %v3235_v3 = vor.u32 1.1754944e-38, %v3234_v5  ;;  %vm3233_vm1 = vcmp.eq.f32.partialorder %v3232_v22, 8.507059e+37 }
0x3442   :  { %v3725_v32 = vpop.eup %3724 }
0x3443   :  { %v3224_v26 = vmul.f32 %v3725_v32, %v3222_v18  ;;  %vm3229_vm15 = vweird.f32 %v3725_v32 }
0x3444   :  { %vm3230_vm12 = vmor %vm3228_vm11, %vm3229_vm15 }
0x3445   :  { %v3225_v19 = vsub.f32 1.0, %v3224_v26 }
0x3447   :  { %v3226_v16 = vmul.f32 %v3725_v32, %v3225_v19 }
0x3449   :  { %v3227_v51 = vadd.f32 %v3725_v32, %v3226_v16 }
0x344b   :  { %v3231_v49 = vsel %vm3230_vm12, %v3725_v32, %v3227_v51 }
0x344c   :  { %v3236_v60 = vsel %vm3233_vm1, %v3235_v3, %v3231_v49 }
0x344d   :  { %v3239_v43 = vmul.f32 %v3236_v60, %v5018_v6  ;;  %v3256_v6 = vld [vmem:[%s5157_s16] sm:$0xff] }
0x344e   :  { %3284 = vmatpush.msrb.mxu0 %v3256_v6 }
0x3492   :  { %v3242_v34 = vpop.permute.xlu2 %3241 }
0x3493   :  { %v3244_v35 = vmul.f32 %v3242_v34, %v3236_v60 }
0x3495   :  { %3246 = vrot.lane.b32.xlu0 %v3244_v35, %s3749_s4 }
0x3507   :  { %v3247_v13 = vpop.permute.xlu0 %3246 }
0x3508   :  { %v3249_v40 = vadd.f32 %v3247_v13, %v3239_v43 }
0x350a   :  { %3726 = vtanh.f32 %v3249_v40 }
0x3510   :  { %v3727_v15 = vpop.eup %3726 }
0x3511   :  { %3252 = vrot.lane.b32.xlu1 %v3727_v15, %s3748_s0 }
0x3583   :  { %v3253_v53 = vpop.permute.xlu1 %3252 }
0x3584   :  { %v3255_v58 = vmul.f32 %v3253_v53, %v3236_v60 }
0x3586   :  { %3265 = vrot.lane.b32.xlu2 %v3255_v58, %s3749_s4 }
0x35e0   :  { %v3266_v44 = vpop.permute.xlu2 %3265 }
0x35e1   :  { %3387 = vmatmul.msk.f32.vlgmr.msrb.gmra.mxu0 %vm272_vm2, %v3266_v44 }
0x365e   :  { %v3286_v9 = vpop.f32.mrf.mxu0 }
0x365f   :  { %v3287_v2 = vadd.f32 %v3515_v61, %v3286_v9 }
0x3661   :  { %3388 = vst [vmem:[%s5159_s18 + $0x38] sm:$0xff] %v3287_v2 }

</bundles_post_ra>
